<compile_context>
chip_gen: v7x
topology: tpu7x:2x2x1
jax: 0.10.0
libtpu: 0.0.40
codegen_flags: <defaults>
</compile_context>

<pallas_src>
import functools

import jax
import jax.numpy as jnp
from jax import lax
from jax.experimental import pallas as pl
from jax.experimental.pallas import tpu as pltpu

# module hyper-parameters (from model.py)
N_EMBD = 256
N_HEAD = 4
BLOCK_SIZE = 128      # max sequence length (tril buffer size)
HEAD_SIZE = N_EMBD // N_HEAD
LN_EPS = 1e-5


def _layer_norm(h, gamma, beta):
    mu = jnp.mean(h, axis=-1, keepdims=True)
    d = h - mu
    var = jnp.mean(d * d, axis=-1, keepdims=True)
    return d * lax.rsqrt(var + LN_EPS) * gamma + beta


def block_kernel(x_ref, wqkv_ref, wo_ref, bo_ref,
                 w1_ref, b1_ref, w2_ref, b2_ref,
                 g1_ref, be1_ref, g2_ref, be2_ref,
                 o_ref, *, n_head, compute_dtype):
    cd = jnp.dtype(compute_dtype)
    approx = cd == jnp.dtype(jnp.bfloat16)

    Bb, T, C = x_ref.shape
    hs = C // n_head
    R = Bb * T

    x = x_ref[...].reshape(R, C).astype(jnp.float32)

    # ---------------- x = x + proj(multi_head_attention(ln1(x))) ------------
    ln1 = _layer_norm(x, g1_ref[...], be1_ref[...])

    # Fused QKV projection: single (R, C) @ (C, 3C) matmul, f32 accumulation.
    qkv = jnp.dot(ln1.astype(cd), wqkv_ref[...],
                  preferred_element_type=jnp.float32)            # (R, 3C)

    scale = float(C) ** -0.5        # NOTE: PyTorch code scales by C, not head_size
    q = (qkv[:, :C] * scale).reshape(Bb, T, C)
    k = qkv[:, C:2 * C].reshape(Bb, T, C)
    v = qkv[:, 2 * C:].reshape(Bb, T, C)

    # Additive causal bias, computed once (large finite value avoids inf-inf).
    row = lax.broadcasted_iota(jnp.int32, (T, T), 0)
    col = lax.broadcasted_iota(jnp.int32, (T, T), 1)
    mask_bias = jnp.where(col <= row, 0.0, -1e30).astype(jnp.float32)

    wo = wo_ref[...]                                             # (C, C)
    sa = jnp.zeros((R, C), jnp.float32)
    for h in range(n_head):                                      # static unroll
        lo, hi = h * hs, (h + 1) * hs
        qh = q[:, :, lo:hi].astype(cd)                           # (Bb, T, hs)
        kh = k[:, :, lo:hi].astype(cd)
        vh = v[:, :, lo:hi].astype(cd)

        # Contraction on the last dim of both operands: no kh.T materialized.
        wei = jnp.einsum('bqd,bkd->bqk', qh, kh,
                         preferred_element_type=jnp.float32)     # (Bb, T, T)
        wei = wei + mask_bias
        m = jnp.max(wei, axis=-1, keepdims=True)
        p = jnp.exp(wei - m)
        denom = jnp.sum(p, axis=-1, keepdims=True)
        pv = jnp.einsum('bqk,bkd->bqd', p.astype(cd), vh,
                        preferred_element_type=jnp.float32)      # (Bb, T, hs)
        head_out = pv * pl.reciprocal(denom, approx=approx)      # deferred norm

        # Fold the output projection into the head loop (no concat):
        # (R, hs) @ (hs, C) with lane-dense N=256 output, accumulated in f32.
        sa = sa + jnp.dot(head_out.reshape(R, hs).astype(cd), wo[lo:hi, :],
                          preferred_element_type=jnp.float32)

    x1 = x + sa + bo_ref[...]

    # ---------------- x = x + ffwd(ln2(x)) -----------------------------------
    ln2 = _layer_norm(x1, g2_ref[...], be2_ref[...])
    hid = jnp.dot(ln2.astype(cd), w1_ref[...],
                  preferred_element_type=jnp.float32) + b1_ref[...]
    hid = jnp.maximum(hid, 0.0)
    ff = jnp.dot(hid.astype(cd), w2_ref[...],
                 preferred_element_type=jnp.float32) + b2_ref[...]

    # TODO(synk): dropout omitted (eval-mode identity).
    o_ref[...] = (x1 + ff).reshape(Bb, T, C).astype(o_ref.dtype)


def _pick_block_b(batch, max_block_b=8):
    """Largest divisor of `batch` that is <= min(max_block_b, batch // 2).

    Packs several sequences per grid step (raises matmul M, amortizes the
    ~0.35us/step overhead) while keeping >=2 grid steps when batch >= 2 so
    both v7x TensorCores get work via the "parallel" grid axis.
    """
    cap = max(1, min(max_block_b, batch // 2))
    for d in range(cap, 0, -1):
        if batch % d == 0:
            return d
    return 1


def block_forward(x, params, *, n_head=N_HEAD, block_b=None,
                  compute_dtype=jnp.float32):
    B, T, C = x.shape
    if block_b is None:
        block_b = _pick_block_b(B)
    assert B % block_b == 0, (B, block_b)
    cd = jnp.dtype(compute_dtype)

    # Matmul weights shipped in the MXU compute dtype (halves weight DMA when
    # bf16); biases / LayerNorm params stay f32 for exact vector math.
    wqkv = params["wqkv"].astype(cd)
    wo = params["wo"].astype(cd)
    w1 = params["w1"].astype(cd)
    w2 = params["w2"].astype(cd)

    def wspec(shape):
        return pl.BlockSpec(shape, lambda b, _n=len(shape): (0,) * _n)

    kernel = functools.partial(block_kernel, n_head=n_head, compute_dtype=cd)

    in_specs = [
        pl.BlockSpec((block_b, T, C), lambda b: (b, 0, 0)),   # x
        wspec((C, 3 * C)),                                    # wqkv (fused)
        wspec((C, C)),                                        # wo (proj)
        wspec((1, C)),                                        # bo
        wspec((C, 4 * C)),                                    # w1
        wspec((1, 4 * C)),                                    # b1
        wspec((4 * C, C)),                                    # w2
        wspec((1, C)),                                        # b2
        wspec((1, C)),                                        # ln1 gamma
        wspec((1, C)),                                        # ln1 beta
        wspec((1, C)),                                        # ln2 gamma
        wspec((1, C)),                                        # ln2 beta
    ]
    out_specs = pl.BlockSpec((block_b, T, C), lambda b: (b, 0, 0))

    return pl.pallas_call(
        kernel,
        out_shape=jax.ShapeDtypeStruct((B, T, C), x.dtype),
        grid=(B // block_b,),
        in_specs=in_specs,
        out_specs=out_specs,
        compiler_params=pltpu.CompilerParams(
            dimension_semantics=("parallel",)),
    )(x, wqkv, wo, params["bo"], w1, params["b1"], w2, params["b2"],
      params["g1"], params["be1"], params["g2"], params["be2"])


def init_params(key, n_embd=N_EMBD, n_head=N_HEAD):
    """Deterministic PyTorch-style init: U(-1/sqrt(fan_in), 1/sqrt(fan_in)).

    QKV weights stored fused as (C, 3C); head h of Q lives in columns
    [h*hs : (h+1)*hs] of the first C-column block, etc.  All weights are
    (in, out) so the kernel does plain `x @ W`.
    """
    ks = jax.random.split(key, 8)

    def lin(k, fan_in, shape):
        bound = 1.0 / (fan_in ** 0.5)
        return jax.random.uniform(k, shape, jnp.float32, -bound, bound)

    return {
        "wqkv": lin(ks[0], n_embd, (n_embd, 3 * n_embd)),
        "wo":   lin(ks[1], n_embd, (n_embd, n_embd)),
        "bo":   lin(ks[2], n_embd, (1, n_embd)),
        "w1":   lin(ks[3], n_embd, (n_embd, 4 * n_embd)),
        "b1":   lin(ks[4], n_embd, (1, 4 * n_embd)),
        "w2":   lin(ks[5], 4 * n_embd, (4 * n_embd, n_embd)),
        "b2":   lin(ks[6], 4 * n_embd, (1, n_embd)),
        "g1":  jnp.ones((1, n_embd), jnp.float32),
        "be1": jnp.zeros((1, n_embd), jnp.float32),
        "g2":  jnp.ones((1, n_embd), jnp.float32),
        "be2": jnp.zeros((1, n_embd), jnp.float32),
    }


def block_forward_ref(x, p, n_head=N_HEAD):
    """Pure-JAX reference of the PyTorch Block forward (eval mode)."""
    B, T, C = x.shape
    hs = C // n_head

    def ln(h, g, b):
        mu = h.mean(-1, keepdims=True)
        var = ((h - mu) ** 2).mean(-1, keepdims=True)
        return (h - mu) / jnp.sqrt(var + LN_EPS) * g + b

    h = ln(x, p["g1"], p["be1"])
    qkv = h @ p["wqkv"]
    q, k, v = qkv[..., :C], qkv[..., C:2 * C], qkv[..., 2 * C:]
    mask = jnp.tril(jnp.ones((T, T), bool))
    outs = []
    for hd in range(n_head):
        qh = q[..., hd * hs:(hd + 1) * hs]
        kh = k[..., hd * hs:(hd + 1) * hs]
        vh = v[..., hd * hs:(hd + 1) * hs]
        wei = jnp.einsum('btd,bsd->bts', qh, kh) * C ** (-0.5)
        wei = jnp.where(mask, wei, -jnp.inf)
        wei = jax.nn.softmax(wei, axis=-1)
        outs.append(jnp.einsum('bts,bsd->btd', wei, vh))
    sa = jnp.concatenate(outs, -1) @ p["wo"] + p["bo"]
    x1 = x + sa
    h2 = ln(x1, p["g2"], p["be2"])
    ff = jnp.maximum(h2 @ p["w1"] + p["b1"], 0.0) @ p["w2"] + p["b2"]
    return x1 + ff


if __name__ == "__main__":
    key = jax.random.PRNGKey(0)
    kx, kp = jax.random.split(key)

    B, T = 2, BLOCK_SIZE          # (2, 128, 256)
    x = jax.random.normal(kx, (B, T, N_EMBD), jnp.float32)
    params = init_params(kp)

    # f32 path (default)
    out = jax.block_until_ready(block_forward(x, params))
    ref = jax.block_until_ready(block_forward_ref(x, params))
    assert out.shape == (B, T, N_EMBD)
    assert jnp.allclose(out, ref, atol=1e-4, rtol=1e-4), "f32 mismatch vs reference"

    # multi-sequence-per-grid-step path (block_b auto-picked = 2 for B=4)
    x4 = jax.random.normal(jax.random.PRNGKey(1), (4, T, N_EMBD), jnp.float32)
    out4 = jax.block_until_ready(block_forward(x4, params))
    ref4 = block_forward_ref(x4, params)
    assert jnp.allclose(out4, ref4, atol=1e-4, rtol=1e-4), "blocked-batch mismatch"

    # bf16 MXU-operand path (v6e/v7x recommendation): looser tolerance.
    out_bf16 = jax.block_until_ready(
        block_forward(x, params, compute_dtype=jnp.bfloat16))
    assert float(jnp.max(jnp.abs(out_bf16 - ref))) < 0.3, "bf16 path diverged"

    print("KERNEL_OK")
</pallas_src>

<mosaic_0001>
module attributes {stable_mosaic.version = 11 : i64} {
  func.func @block_kernel(%arg0: i32, %arg1: memref<1x128x256xf32, #tpu.memory_space<vmem>>, %arg2: memref<256x768xf32, #tpu.memory_space<vmem>>, %arg3: memref<256x256xf32, #tpu.memory_space<vmem>>, %arg4: memref<1x256xf32, #tpu.memory_space<vmem>>, %arg5: memref<256x1024xf32, #tpu.memory_space<vmem>>, %arg6: memref<1x1024xf32, #tpu.memory_space<vmem>>, %arg7: memref<1024x256xf32, #tpu.memory_space<vmem>>, %arg8: memref<1x256xf32, #tpu.memory_space<vmem>>, %arg9: memref<1x256xf32, #tpu.memory_space<vmem>>, %arg10: memref<1x256xf32, #tpu.memory_space<vmem>>, %arg11: memref<1x256xf32, #tpu.memory_space<vmem>>, %arg12: memref<1x256xf32, #tpu.memory_space<vmem>>, %arg13: memref<1x128x256xf32, #tpu.memory_space<vmem>>) attributes {dimension_semantics = [#tpu.dimension_semantics<parallel>], iteration_bounds = array<i64: 2>, scalar_prefetch = 0 : i64, scratch_operands = 0 : i64, tpu.core_type = #tpu.core_type<tc>, window_params = [{transform_indices = @transform_0, window_bounds = array<i64: 1, 128, 256>}, {pipeline_mode = #tpu.pipeline_mode<synchronous>, transform_indices = @transform_1, window_bounds = array<i64: 256, 768>}, {pipeline_mode = #tpu.pipeline_mode<synchronous>, transform_indices = @transform_2, window_bounds = array<i64: 256, 256>}, {pipeline_mode = #tpu.pipeline_mode<synchronous>, transform_indices = @transform_3, window_bounds = array<i64: 1, 256>}, {pipeline_mode = #tpu.pipeline_mode<synchronous>, transform_indices = @transform_4, window_bounds = array<i64: 256, 1024>}, {pipeline_mode = #tpu.pipeline_mode<synchronous>, transform_indices = @transform_5, window_bounds = array<i64: 1, 1024>}, {pipeline_mode = #tpu.pipeline_mode<synchronous>, transform_indices = @transform_6, window_bounds = array<i64: 1024, 256>}, {pipeline_mode = #tpu.pipeline_mode<synchronous>, transform_indices = @transform_7, window_bounds = array<i64: 1, 256>}, {pipeline_mode = #tpu.pipeline_mode<synchronous>, transform_indices = @transform_8, window_bounds = array<i64: 1, 256>}, {pipeline_mode = #tpu.pipeline_mode<synchronous>, transform_indices = @transform_9, window_bounds = array<i64: 1, 256>}, {pipeline_mode = #tpu.pipeline_mode<synchronous>, transform_indices = @transform_10, window_bounds = array<i64: 1, 256>}, {pipeline_mode = #tpu.pipeline_mode<synchronous>, transform_indices = @transform_11, window_bounds = array<i64: 1, 256>}, {transform_indices = @transform_12, window_bounds = array<i64: 1, 128, 256>}]} {
    %c0 = arith.constant 0 : index
    %c0_0 = arith.constant 0 : index
    %c0_1 = arith.constant 0 : index
    %0 = vector.load %arg1[%c0, %c0_0, %c0_1] : memref<1x128x256xf32, #tpu.memory_space<vmem>>, vector<1x128x256xf32>
    %1 = vector.shape_cast %0 : vector<1x128x256xf32> to vector<128x256xf32>
    %c0_2 = arith.constant 0 : index
    %c0_3 = arith.constant 0 : index
    %2 = vector.load %arg9[%c0_2, %c0_3] : memref<1x256xf32, #tpu.memory_space<vmem>>, vector<1x256xf32>
    %c0_4 = arith.constant 0 : index
    %c0_5 = arith.constant 0 : index
    %3 = vector.load %arg10[%c0_4, %c0_5] : memref<1x256xf32, #tpu.memory_space<vmem>>, vector<1x256xf32>
    %cst = arith.constant dense<0.000000e+00> : vector<128xf32>
    %4 = vector.multi_reduction <add>, %1, %cst [1] : vector<128x256xf32> to vector<128xf32>
    %5 = vector.shape_cast %4 : vector<128xf32> to vector<128x1xf32>
    %cst_6 = arith.constant 2.560000e+02 : f32
    %6 = vector.broadcast %cst_6 : f32 to vector<128x1xf32>
    %7 = arith.divf %5, %6 : vector<128x1xf32>
    %8 = vector.broadcast %7 : vector<128x1xf32> to vector<128x256xf32>
    %9 = arith.subf %1, %8 : vector<128x256xf32>
    %10 = arith.mulf %9, %9 : vector<128x256xf32>
    %cst_7 = arith.constant dense<0.000000e+00> : vector<128xf32>
    %11 = vector.multi_reduction <add>, %10, %cst_7 [1] : vector<128x256xf32> to vector<128xf32>
    %12 = vector.shape_cast %11 : vector<128xf32> to vector<128x1xf32>
    %cst_8 = arith.constant 2.560000e+02 : f32
    %13 = vector.broadcast %cst_8 : f32 to vector<128x1xf32>
    %14 = arith.divf %12, %13 : vector<128x1xf32>
    %cst_9 = arith.constant 9.99999974E-6 : f32
    %15 = vector.broadcast %cst_9 : f32 to vector<128x1xf32>
    %16 = arith.addf %14, %15 : vector<128x1xf32>
    %17 = math.rsqrt %16 : vector<128x1xf32>
    %18 = vector.broadcast %17 : vector<128x1xf32> to vector<128x256xf32>
    %19 = arith.mulf %9, %18 : vector<128x256xf32>
    %20 = vector.broadcast %2 : vector<1x256xf32> to vector<128x256xf32>
    %21 = arith.mulf %19, %20 : vector<128x256xf32>
    %22 = vector.broadcast %3 : vector<1x256xf32> to vector<128x256xf32>
    %23 = arith.addf %21, %22 : vector<128x256xf32>
    %c0_10 = arith.constant 0 : index
    %c0_11 = arith.constant 0 : index
    %24 = vector.load %arg2[%c0_10, %c0_11] : memref<256x768xf32, #tpu.memory_space<vmem>>, vector<256x768xf32>
    %cst_12 = arith.constant dense<0.000000e+00> : vector<128x768xf32>
    %25 = tpu.matmul %23, %24, %cst_12 {dimension_numbers = #tpu.dot_dimension_numbers<[1], [0], [0], [1], [0, 0, 1, 1], [], []>} : vector<128x256xf32>, vector<256x768xf32>, vector<128x768xf32> -> vector<128x768xf32>
    %26 = vector.extract_strided_slice %25 {offsets = [0, 0], sizes = [128, 256], strides = [1, 1]} : vector<128x768xf32> to vector<128x256xf32>
    %cst_13 = arith.constant 6.250000e-02 : f32
    %27 = vector.broadcast %cst_13 : f32 to vector<128x256xf32>
    %28 = arith.mulf %26, %27 : vector<128x256xf32>
    %29 = vector.shape_cast %28 : vector<128x256xf32> to vector<1x128x256xf32>
    %30 = vector.extract_strided_slice %25 {offsets = [0, 256], sizes = [128, 256], strides = [1, 1]} : vector<128x768xf32> to vector<128x256xf32>
    %31 = vector.shape_cast %30 : vector<128x256xf32> to vector<1x128x256xf32>
    %32 = vector.extract_strided_slice %25 {offsets = [0, 512], sizes = [128, 256], strides = [1, 1]} : vector<128x768xf32> to vector<128x256xf32>
    %33 = vector.shape_cast %32 : vector<128x256xf32> to vector<1x128x256xf32>
    %34 = tpu.iota {dimensions = array<i32: 0>} : vector<128x128xi32>
    %35 = tpu.iota {dimensions = array<i32: 1>} : vector<128x128xi32>
    %36 = arith.cmpi sle, %35, %34 : vector<128x128xi32>
    %cst_14 = arith.constant 0.000000e+00 : f32
    %cst_15 = arith.constant -1.000000e+30 : f32
    %37 = vector.broadcast %cst_14 : f32 to vector<128x128xf32>
    %38 = vector.broadcast %cst_15 : f32 to vector<128x128xf32>
    %39 = arith.select %36, %37, %38 : vector<128x128xi1>, vector<128x128xf32>
    %c0_16 = arith.constant 0 : index
    %c0_17 = arith.constant 0 : index
    %40 = vector.load %arg3[%c0_16, %c0_17] : memref<256x256xf32, #tpu.memory_space<vmem>>, vector<256x256xf32>
    %cst_18 = arith.constant 0.000000e+00 : f32
    %41 = vector.broadcast %cst_18 : f32 to vector<128x256xf32>
    %42 = vector.extract_strided_slice %29 {offsets = [0, 0, 0], sizes = [1, 128, 64], strides = [1, 1, 1]} : vector<1x128x256xf32> to vector<1x128x64xf32>
    %43 = vector.extract_strided_slice %31 {offsets = [0, 0, 0], sizes = [1, 128, 64], strides = [1, 1, 1]} : vector<1x128x256xf32> to vector<1x128x64xf32>
    %44 = vector.extract_strided_slice %33 {offsets = [0, 0, 0], sizes = [1, 128, 64], strides = [1, 1, 1]} : vector<1x128x256xf32> to vector<1x128x64xf32>
    "tpu.trace_start"() <{level = 10 : i32, message = "bqd,bkd->bqk"}> : () -> ()
    %cst_19 = arith.constant dense<0.000000e+00> : vector<1x128x128xf32>
    %45 = tpu.matmul %42, %43, %cst_19 {dimension_numbers = #tpu.dot_dimension_numbers<[2], [2], [1], [1], [0, 0, 0, 1, 1, 1], [0], [0]>} : vector<1x128x64xf32>, vector<1x128x64xf32>, vector<1x128x128xf32> -> vector<1x128x128xf32>
    "tpu.trace_stop"() : () -> ()
    %46 = vector.shape_cast %39 : vector<128x128xf32> to vector<1x128x128xf32>
    %47 = arith.addf %45, %46 : vector<1x128x128xf32>
    %cst_20 = arith.constant dense<0xFF800000> : vector<1x128xf32>
    %48 = vector.multi_reduction <maximumf>, %47, %cst_20 [2] : vector<1x128x128xf32> to vector<1x128xf32>
    %49 = vector.shape_cast %48 : vector<1x128xf32> to vector<1x128x1xf32>
    %50 = vector.broadcast %49 : vector<1x128x1xf32> to vector<1x128x128xf32>
    %51 = arith.subf %47, %50 : vector<1x128x128xf32>
    %52 = math.exp %51 : vector<1x128x128xf32>
    %cst_21 = arith.constant dense<0.000000e+00> : vector<1x128xf32>
    %53 = vector.multi_reduction <add>, %52, %cst_21 [2] : vector<1x128x128xf32> to vector<1x128xf32>
    %54 = vector.shape_cast %53 : vector<1x128xf32> to vector<1x128x1xf32>
    "tpu.trace_start"() <{level = 10 : i32, message = "bqk,bkd->bqd"}> : () -> ()
    %cst_22 = arith.constant dense<0.000000e+00> : vector<1x128x64xf32>
    %55 = tpu.matmul %52, %44, %cst_22 {dimension_numbers = #tpu.dot_dimension_numbers<[2], [1], [1], [2], [0, 0, 0, 1, 1, 2], [0], [0]>} : vector<1x128x128xf32>, vector<1x128x64xf32>, vector<1x128x64xf32> -> vector<1x128x64xf32>
    "tpu.trace_stop"() : () -> ()
    %56 = tpu.reciprocal %54 : vector<1x128x1xf32> -> vector<1x128x1xf32>
    %57 = vector.broadcast %56 : vector<1x128x1xf32> to vector<1x128x64xf32>
    %58 = arith.mulf %55, %57 : vector<1x128x64xf32>
    %59 = vector.shape_cast %58 : vector<1x128x64xf32> to vector<128x64xf32>
    %60 = vector.extract_strided_slice %40 {offsets = [0, 0], sizes = [64, 256], strides = [1, 1]} : vector<256x256xf32> to vector<64x256xf32>
    %cst_23 = arith.constant dense<0.000000e+00> : vector<128x256xf32>
    %61 = tpu.matmul %59, %60, %cst_23 {dimension_numbers = #tpu.dot_dimension_numbers<[1], [0], [0], [1], [0, 0, 1, 1], [], []>} : vector<128x64xf32>, vector<64x256xf32>, vector<128x256xf32> -> vector<128x256xf32>
    %62 = arith.addf %41, %61 : vector<128x256xf32>
    %63 = vector.extract_strided_slice %29 {offsets = [0, 0, 64], sizes = [1, 128, 64], strides = [1, 1, 1]} : vector<1x128x256xf32> to vector<1x128x64xf32>
    %64 = vector.extract_strided_slice %31 {offsets = [0, 0, 64], sizes = [1, 128, 64], strides = [1, 1, 1]} : vector<1x128x256xf32> to vector<1x128x64xf32>
    %65 = vector.extract_strided_slice %33 {offsets = [0, 0, 64], sizes = [1, 128, 64], strides = [1, 1, 1]} : vector<1x128x256xf32> to vector<1x128x64xf32>
    "tpu.trace_start"() <{level = 10 : i32, message = "bqd,bkd->bqk"}> : () -> ()
    %cst_24 = arith.constant dense<0.000000e+00> : vector<1x128x128xf32>
    %66 = tpu.matmul %63, %64, %cst_24 {dimension_numbers = #tpu.dot_dimension_numbers<[2], [2], [1], [1], [0, 0, 0, 1, 1, 1], [0], [0]>} : vector<1x128x64xf32>, vector<1x128x64xf32>, vector<1x128x128xf32> -> vector<1x128x128xf32>
    "tpu.trace_stop"() : () -> ()
    %67 = vector.shape_cast %39 : vector<128x128xf32> to vector<1x128x128xf32>
    %68 = arith.addf %66, %67 : vector<1x128x128xf32>
    %cst_25 = arith.constant dense<0xFF800000> : vector<1x128xf32>
    %69 = vector.multi_reduction <maximumf>, %68, %cst_25 [2] : vector<1x128x128xf32> to vector<1x128xf32>
    %70 = vector.shape_cast %69 : vector<1x128xf32> to vector<1x128x1xf32>
    %71 = vector.broadcast %70 : vector<1x128x1xf32> to vector<1x128x128xf32>
    %72 = arith.subf %68, %71 : vector<1x128x128xf32>
    %73 = math.exp %72 : vector<1x128x128xf32>
    %cst_26 = arith.constant dense<0.000000e+00> : vector<1x128xf32>
    %74 = vector.multi_reduction <add>, %73, %cst_26 [2] : vector<1x128x128xf32> to vector<1x128xf32>
    %75 = vector.shape_cast %74 : vector<1x128xf32> to vector<1x128x1xf32>
    "tpu.trace_start"() <{level = 10 : i32, message = "bqk,bkd->bqd"}> : () -> ()
    %cst_27 = arith.constant dense<0.000000e+00> : vector<1x128x64xf32>
    %76 = tpu.matmul %73, %65, %cst_27 {dimension_numbers = #tpu.dot_dimension_numbers<[2], [1], [1], [2], [0, 0, 0, 1, 1, 2], [0], [0]>} : vector<1x128x128xf32>, vector<1x128x64xf32>, vector<1x128x64xf32> -> vector<1x128x64xf32>
    "tpu.trace_stop"() : () -> ()
    %77 = tpu.reciprocal %75 : vector<1x128x1xf32> -> vector<1x128x1xf32>
    %78 = vector.broadcast %77 : vector<1x128x1xf32> to vector<1x128x64xf32>
    %79 = arith.mulf %76, %78 : vector<1x128x64xf32>
    %80 = vector.shape_cast %79 : vector<1x128x64xf32> to vector<128x64xf32>
    %81 = vector.extract_strided_slice %40 {offsets = [64, 0], sizes = [64, 256], strides = [1, 1]} : vector<256x256xf32> to vector<64x256xf32>
    %cst_28 = arith.constant dense<0.000000e+00> : vector<128x256xf32>
    %82 = tpu.matmul %80, %81, %cst_28 {dimension_numbers = #tpu.dot_dimension_numbers<[1], [0], [0], [1], [0, 0, 1, 1], [], []>} : vector<128x64xf32>, vector<64x256xf32>, vector<128x256xf32> -> vector<128x256xf32>
    %83 = arith.addf %62, %82 : vector<128x256xf32>
    %84 = vector.extract_strided_slice %29 {offsets = [0, 0, 128], sizes = [1, 128, 64], strides = [1, 1, 1]} : vector<1x128x256xf32> to vector<1x128x64xf32>
    %85 = vector.extract_strided_slice %31 {offsets = [0, 0, 128], sizes = [1, 128, 64], strides = [1, 1, 1]} : vector<1x128x256xf32> to vector<1x128x64xf32>
    %86 = vector.extract_strided_slice %33 {offsets = [0, 0, 128], sizes = [1, 128, 64], strides = [1, 1, 1]} : vector<1x128x256xf32> to vector<1x128x64xf32>
    "tpu.trace_start"() <{level = 10 : i32, message = "bqd,bkd->bqk"}> : () -> ()
    %cst_29 = arith.constant dense<0.000000e+00> : vector<1x128x128xf32>
    %87 = tpu.matmul %84, %85, %cst_29 {dimension_numbers = #tpu.dot_dimension_numbers<[2], [2], [1], [1], [0, 0, 0, 1, 1, 1], [0], [0]>} : vector<1x128x64xf32>, vector<1x128x64xf32>, vector<1x128x128xf32> -> vector<1x128x128xf32>
    "tpu.trace_stop"() : () -> ()
    %88 = vector.shape_cast %39 : vector<128x128xf32> to vector<1x128x128xf32>
    %89 = arith.addf %87, %88 : vector<1x128x128xf32>
    %cst_30 = arith.constant dense<0xFF800000> : vector<1x128xf32>
    %90 = vector.multi_reduction <maximumf>, %89, %cst_30 [2] : vector<1x128x128xf32> to vector<1x128xf32>
    %91 = vector.shape_cast %90 : vector<1x128xf32> to vector<1x128x1xf32>
    %92 = vector.broadcast %91 : vector<1x128x1xf32> to vector<1x128x128xf32>
    %93 = arith.subf %89, %92 : vector<1x128x128xf32>
    %94 = math.exp %93 : vector<1x128x128xf32>
    %cst_31 = arith.constant dense<0.000000e+00> : vector<1x128xf32>
    %95 = vector.multi_reduction <add>, %94, %cst_31 [2] : vector<1x128x128xf32> to vector<1x128xf32>
    %96 = vector.shape_cast %95 : vector<1x128xf32> to vector<1x128x1xf32>
    "tpu.trace_start"() <{level = 10 : i32, message = "bqk,bkd->bqd"}> : () -> ()
    %cst_32 = arith.constant dense<0.000000e+00> : vector<1x128x64xf32>
    %97 = tpu.matmul %94, %86, %cst_32 {dimension_numbers = #tpu.dot_dimension_numbers<[2], [1], [1], [2], [0, 0, 0, 1, 1, 2], [0], [0]>} : vector<1x128x128xf32>, vector<1x128x64xf32>, vector<1x128x64xf32> -> vector<1x128x64xf32>
    "tpu.trace_stop"() : () -> ()
    %98 = tpu.reciprocal %96 : vector<1x128x1xf32> -> vector<1x128x1xf32>
    %99 = vector.broadcast %98 : vector<1x128x1xf32> to vector<1x128x64xf32>
    %100 = arith.mulf %97, %99 : vector<1x128x64xf32>
    %101 = vector.shape_cast %100 : vector<1x128x64xf32> to vector<128x64xf32>
    %102 = vector.extract_strided_slice %40 {offsets = [128, 0], sizes = [64, 256], strides = [1, 1]} : vector<256x256xf32> to vector<64x256xf32>
    %cst_33 = arith.constant dense<0.000000e+00> : vector<128x256xf32>
    %103 = tpu.matmul %101, %102, %cst_33 {dimension_numbers = #tpu.dot_dimension_numbers<[1], [0], [0], [1], [0, 0, 1, 1], [], []>} : vector<128x64xf32>, vector<64x256xf32>, vector<128x256xf32> -> vector<128x256xf32>
    %104 = arith.addf %83, %103 : vector<128x256xf32>
    %105 = vector.extract_strided_slice %29 {offsets = [0, 0, 192], sizes = [1, 128, 64], strides = [1, 1, 1]} : vector<1x128x256xf32> to vector<1x128x64xf32>
    %106 = vector.extract_strided_slice %31 {offsets = [0, 0, 192], sizes = [1, 128, 64], strides = [1, 1, 1]} : vector<1x128x256xf32> to vector<1x128x64xf32>
    %107 = vector.extract_strided_slice %33 {offsets = [0, 0, 192], sizes = [1, 128, 64], strides = [1, 1, 1]} : vector<1x128x256xf32> to vector<1x128x64xf32>
    "tpu.trace_start"() <{level = 10 : i32, message = "bqd,bkd->bqk"}> : () -> ()
    %cst_34 = arith.constant dense<0.000000e+00> : vector<1x128x128xf32>
    %108 = tpu.matmul %105, %106, %cst_34 {dimension_numbers = #tpu.dot_dimension_numbers<[2], [2], [1], [1], [0, 0, 0, 1, 1, 1], [0], [0]>} : vector<1x128x64xf32>, vector<1x128x64xf32>, vector<1x128x128xf32> -> vector<1x128x128xf32>
    "tpu.trace_stop"() : () -> ()
    %109 = vector.shape_cast %39 : vector<128x128xf32> to vector<1x128x128xf32>
    %110 = arith.addf %108, %109 : vector<1x128x128xf32>
    %cst_35 = arith.constant dense<0xFF800000> : vector<1x128xf32>
    %111 = vector.multi_reduction <maximumf>, %110, %cst_35 [2] : vector<1x128x128xf32> to vector<1x128xf32>
    %112 = vector.shape_cast %111 : vector<1x128xf32> to vector<1x128x1xf32>
    %113 = vector.broadcast %112 : vector<1x128x1xf32> to vector<1x128x128xf32>
    %114 = arith.subf %110, %113 : vector<1x128x128xf32>
    %115 = math.exp %114 : vector<1x128x128xf32>
    %cst_36 = arith.constant dense<0.000000e+00> : vector<1x128xf32>
    %116 = vector.multi_reduction <add>, %115, %cst_36 [2] : vector<1x128x128xf32> to vector<1x128xf32>
    %117 = vector.shape_cast %116 : vector<1x128xf32> to vector<1x128x1xf32>
    "tpu.trace_start"() <{level = 10 : i32, message = "bqk,bkd->bqd"}> : () -> ()
    %cst_37 = arith.constant dense<0.000000e+00> : vector<1x128x64xf32>
    %118 = tpu.matmul %115, %107, %cst_37 {dimension_numbers = #tpu.dot_dimension_numbers<[2], [1], [1], [2], [0, 0, 0, 1, 1, 2], [0], [0]>} : vector<1x128x128xf32>, vector<1x128x64xf32>, vector<1x128x64xf32> -> vector<1x128x64xf32>
    "tpu.trace_stop"() : () -> ()
    %119 = tpu.reciprocal %117 : vector<1x128x1xf32> -> vector<1x128x1xf32>
    %120 = vector.broadcast %119 : vector<1x128x1xf32> to vector<1x128x64xf32>
    %121 = arith.mulf %118, %120 : vector<1x128x64xf32>
    %122 = vector.shape_cast %121 : vector<1x128x64xf32> to vector<128x64xf32>
    %123 = vector.extract_strided_slice %40 {offsets = [192, 0], sizes = [64, 256], strides = [1, 1]} : vector<256x256xf32> to vector<64x256xf32>
    %cst_38 = arith.constant dense<0.000000e+00> : vector<128x256xf32>
    %124 = tpu.matmul %122, %123, %cst_38 {dimension_numbers = #tpu.dot_dimension_numbers<[1], [0], [0], [1], [0, 0, 1, 1], [], []>} : vector<128x64xf32>, vector<64x256xf32>, vector<128x256xf32> -> vector<128x256xf32>
    %125 = arith.addf %104, %124 : vector<128x256xf32>
    %126 = arith.addf %1, %125 : vector<128x256xf32>
    %c0_39 = arith.constant 0 : index
    %c0_40 = arith.constant 0 : index
    %127 = vector.load %arg4[%c0_39, %c0_40] : memref<1x256xf32, #tpu.memory_space<vmem>>, vector<1x256xf32>
    %128 = vector.broadcast %127 : vector<1x256xf32> to vector<128x256xf32>
    %129 = arith.addf %126, %128 : vector<128x256xf32>
    %c0_41 = arith.constant 0 : index
    %c0_42 = arith.constant 0 : index
    %130 = vector.load %arg11[%c0_41, %c0_42] : memref<1x256xf32, #tpu.memory_space<vmem>>, vector<1x256xf32>
    %c0_43 = arith.constant 0 : index
    %c0_44 = arith.constant 0 : index
    %131 = vector.load %arg12[%c0_43, %c0_44] : memref<1x256xf32, #tpu.memory_space<vmem>>, vector<1x256xf32>
    %cst_45 = arith.constant dense<0.000000e+00> : vector<128xf32>
    %132 = vector.multi_reduction <add>, %129, %cst_45 [1] : vector<128x256xf32> to vector<128xf32>
    %133 = vector.shape_cast %132 : vector<128xf32> to vector<128x1xf32>
    %cst_46 = arith.constant 2.560000e+02 : f32
    %134 = vector.broadcast %cst_46 : f32 to vector<128x1xf32>
    %135 = arith.divf %133, %134 : vector<128x1xf32>
    %136 = vector.broadcast %135 : vector<128x1xf32> to vector<128x256xf32>
    %137 = arith.subf %129, %136 : vector<128x256xf32>
    %138 = arith.mulf %137, %137 : vector<128x256xf32>
    %cst_47 = arith.constant dense<0.000000e+00> : vector<128xf32>
    %139 = vector.multi_reduction <add>, %138, %cst_47 [1] : vector<128x256xf32> to vector<128xf32>
    %140 = vector.shape_cast %139 : vector<128xf32> to vector<128x1xf32>
    %cst_48 = arith.constant 2.560000e+02 : f32
    %141 = vector.broadcast %cst_48 : f32 to vector<128x1xf32>
    %142 = arith.divf %140, %141 : vector<128x1xf32>
    %cst_49 = arith.constant 9.99999974E-6 : f32
    %143 = vector.broadcast %cst_49 : f32 to vector<128x1xf32>
    %144 = arith.addf %142, %143 : vector<128x1xf32>
    %145 = math.rsqrt %144 : vector<128x1xf32>
    %146 = vector.broadcast %145 : vector<128x1xf32> to vector<128x256xf32>
    %147 = arith.mulf %137, %146 : vector<128x256xf32>
    %148 = vector.broadcast %130 : vector<1x256xf32> to vector<128x256xf32>
    %149 = arith.mulf %147, %148 : vector<128x256xf32>
    %150 = vector.broadcast %131 : vector<1x256xf32> to vector<128x256xf32>
    %151 = arith.addf %149, %150 : vector<128x256xf32>
    %c0_50 = arith.constant 0 : index
    %c0_51 = arith.constant 0 : index
    %152 = vector.load %arg5[%c0_50, %c0_51] : memref<256x1024xf32, #tpu.memory_space<vmem>>, vector<256x1024xf32>
    %cst_52 = arith.constant dense<0.000000e+00> : vector<128x1024xf32>
    %153 = tpu.matmul %151, %152, %cst_52 {dimension_numbers = #tpu.dot_dimension_numbers<[1], [0], [0], [1], [0, 0, 1, 1], [], []>} : vector<128x256xf32>, vector<256x1024xf32>, vector<128x1024xf32> -> vector<128x1024xf32>
    %c0_53 = arith.constant 0 : index
    %c0_54 = arith.constant 0 : index
    %154 = vector.load %arg6[%c0_53, %c0_54] : memref<1x1024xf32, #tpu.memory_space<vmem>>, vector<1x1024xf32>
    %155 = vector.broadcast %154 : vector<1x1024xf32> to vector<128x1024xf32>
    %156 = arith.addf %153, %155 : vector<128x1024xf32>
    %cst_55 = arith.constant 0.000000e+00 : f32
    %157 = vector.broadcast %cst_55 : f32 to vector<128x1024xf32>
    %158 = arith.maximumf %156, %157 : vector<128x1024xf32>
    %c0_56 = arith.constant 0 : index
    %c0_57 = arith.constant 0 : index
    %159 = vector.load %arg7[%c0_56, %c0_57] : memref<1024x256xf32, #tpu.memory_space<vmem>>, vector<1024x256xf32>
    %cst_58 = arith.constant dense<0.000000e+00> : vector<128x256xf32>
    %160 = tpu.matmul %158, %159, %cst_58 {dimension_numbers = #tpu.dot_dimension_numbers<[1], [0], [0], [1], [0, 0, 1, 1], [], []>} : vector<128x1024xf32>, vector<1024x256xf32>, vector<128x256xf32> -> vector<128x256xf32>
    %c0_59 = arith.constant 0 : index
    %c0_60 = arith.constant 0 : index
    %161 = vector.load %arg8[%c0_59, %c0_60] : memref<1x256xf32, #tpu.memory_space<vmem>>, vector<1x256xf32>
    %162 = vector.broadcast %161 : vector<1x256xf32> to vector<128x256xf32>
    %163 = arith.addf %160, %162 : vector<128x256xf32>
    %164 = arith.addf %129, %163 : vector<128x256xf32>
    %165 = vector.shape_cast %164 : vector<128x256xf32> to vector<1x128x256xf32>
    %c0_61 = arith.constant 0 : index
    %c0_62 = arith.constant 0 : index
    %c0_63 = arith.constant 0 : index
    %166 = vector.load %arg13[%c0_61, %c0_62, %c0_63] : memref<1x128x256xf32, #tpu.memory_space<vmem>>, vector<1x128x256xf32>
    tpu.vector_store %arg13[%c0_61, %c0_62, %c0_63], %165 {strides = array<i32>} : memref<1x128x256xf32, #tpu.memory_space<vmem>>, vector<1x128x256xf32>,
    return
  }
  func.func @transform_0(%arg0: i32) -> (i32, i32, i32) {
    %c0_i32 = arith.constant 0 : i32
    %c0_i32_0 = arith.constant 0 : i32
    %c0_i32_1 = arith.constant 0 : i32
    return %arg0, %c0_i32, %c0_i32_0 : i32, i32, i32
  }
  func.func @transform_1(%arg0: i32) -> (i32, i32) {
    %c0_i32 = arith.constant 0 : i32
    %c0_i32_0 = arith.constant 0 : i32
    %c0_i32_1 = arith.constant 0 : i32
    return %c0_i32, %c0_i32_0 : i32, i32
  }
  func.func @transform_2(%arg0: i32) -> (i32, i32) {
    %c0_i32 = arith.constant 0 : i32
    %c0_i32_0 = arith.constant 0 : i32
    %c0_i32_1 = arith.constant 0 : i32
    return %c0_i32, %c0_i32_0 : i32, i32
  }
  func.func @transform_3(%arg0: i32) -> (i32, i32) {
    %c0_i32 = arith.constant 0 : i32
    %c0_i32_0 = arith.constant 0 : i32
    %c0_i32_1 = arith.constant 0 : i32
    return %c0_i32, %c0_i32_0 : i32, i32
  }
  func.func @transform_4(%arg0: i32) -> (i32, i32) {
    %c0_i32 = arith.constant 0 : i32
    %c0_i32_0 = arith.constant 0 : i32
    %c0_i32_1 = arith.constant 0 : i32
    return %c0_i32, %c0_i32_0 : i32, i32
  }
  func.func @transform_5(%arg0: i32) -> (i32, i32) {
    %c0_i32 = arith.constant 0 : i32
    %c0_i32_0 = arith.constant 0 : i32
    %c0_i32_1 = arith.constant 0 : i32
    return %c0_i32, %c0_i32_0 : i32, i32
  }
  func.func @transform_6(%arg0: i32) -> (i32, i32) {
    %c0_i32 = arith.constant 0 : i32
    %c0_i32_0 = arith.constant 0 : i32
    %c0_i32_1 = arith.constant 0 : i32
    return %c0_i32, %c0_i32_0 : i32, i32
  }
  func.func @transform_7(%arg0: i32) -> (i32, i32) {
    %c0_i32 = arith.constant 0 : i32
    %c0_i32_0 = arith.constant 0 : i32
    %c0_i32_1 = arith.constant 0 : i32
    return %c0_i32, %c0_i32_0 : i32, i32
  }
  func.func @transform_8(%arg0: i32) -> (i32, i32) {
    %c0_i32 = arith.constant 0 : i32
    %c0_i32_0 = arith.constant 0 : i32
    %c0_i32_1 = arith.constant 0 : i32
    return %c0_i32, %c0_i32_0 : i32, i32
  }
  func.func @transform_9(%arg0: i32) -> (i32, i32) {
    %c0_i32 = arith.constant 0 : i32
    %c0_i32_0 = arith.constant 0 : i32
    %c0_i32_1 = arith.constant 0 : i32
    return %c0_i32, %c0_i32_0 : i32, i32
  }
  func.func @transform_10(%arg0: i32) -> (i32, i32) {
    %c0_i32 = arith.constant 0 : i32
    %c0_i32_0 = arith.constant 0 : i32
    %c0_i32_1 = arith.constant 0 : i32
    return %c0_i32, %c0_i32_0 : i32, i32
  }
  func.func @transform_11(%arg0: i32) -> (i32, i32) {
    %c0_i32 = arith.constant 0 : i32
    %c0_i32_0 = arith.constant 0 : i32
    %c0_i32_1 = arith.constant 0 : i32
    return %c0_i32, %c0_i32_0 : i32, i32
  }
  func.func @transform_12(%arg0: i32) -> (i32, i32, i32) {
    %c0_i32 = arith.constant 0 : i32
    %c0_i32_0 = arith.constant 0 : i32
    %c0_i32_1 = arith.constant 0 : i32
    return %arg0, %c0_i32, %c0_i32_0 : i32, i32, i32
  }
}

</mosaic_0001>

<bundles_post_ra>
// kernel: tpu_custom_call.1
= control target key start
LH: loop header
LB: loop body
LE: loop exit
PB: predicated region body
PF: predicated region fallthrough
CT: control target
= control target key end

     0   :  { %s14290_s0 = inlined_call_operand.hbm [shape: f32[2,128,256], index: 0, kind: input, shape index: {}]   ;;  %s14291_s1 = inlined_call_operand.hbm [shape: f32[256,768], index: 1, kind: input, shape index: {}]   ;;  %s14292_s2 = inlined_call_operand.hbm [shape: f32[256,256], index: 2, kind: input, shape index: {}]   ;;  %s14293_s3 = inlined_call_operand.vmem [shape: f32[1,256], index: 3, kind: input, shape index: {}]   ;;  %s14294_s4 = inlined_call_operand.hbm [shape: f32[256,1024], index: 4, kind: input, shape index: {}]   ;;  %s14295_s5 = inlined_call_operand.vmem [shape: f32[1,1024], index: 5, kind: input, shape index: {}]   ;;  %s14296_s6 = inlined_call_operand.hbm [shape: f32[1024,256], index: 6, kind: input, shape index: {}]   ;;  %s14297_s7 = inlined_call_operand.vmem [shape: f32[1,256], index: 7, kind: input, shape index: {}]   ;;  %s14298_s8 = inlined_call_operand.vmem [shape: f32[1,256], index: 8, kind: input, shape index: {}]   ;;  %s14299_s9 = inlined_call_operand.vmem [shape: f32[1,256], index: 9, kind: input, shape index: {}]   ;;  %s14300_s10 = inlined_call_operand.vmem [shape: f32[1,256], index: 10, kind: input, shape index: {}]   ;;  %s14301_s11 = inlined_call_operand.vmem [shape: f32[1,256], index: 11, kind: input, shape index: {}]   ;;  %s14302_s12 = inlined_call_operand.hbm [shape: f32[2,128,256], index: 12, kind: output, shape index: {}]  }
   0x1   :  { %14412 = sst [smem:[#allocation89_spill]] %s14291_s1 }
   0x2   :  { %14413 = sst [smem:[#allocation90_spill]] %s14295_s5 }
   0x3   :  { %14414 = sst [smem:[#allocation91_spill]] %s14297_s7 }
   0x4   :  { %14415 = sst [smem:[#allocation92_spill]] %s14302_s12 }
   0x5   :  { %17 = vsyncpa [#allocation3], 0 }
   0x6   :  { %19 = vsyncpa [#allocation3 + $0x1], 0 }
   0x7   :  { %20 = vsyncpa [#allocation6], 0 }
   0x8   :  { %21 = vsyncpa [#allocation9], 0 }
   0x9   :  { %22 = vsyncpa [#allocation4], 0 }
   0xa   :  { %24 = vsyncpa [#allocation4 + $0x1], 0  ;;  %s10636_s21 = smov 0   ;;  %s10638_s22 = smov 0  }
   0xb   :  { %s10640_s23 = smov 0   ;;  %s10642_s24 = smov 0  }
   0xc LB: > { %14416 = sst [smem:[#allocation16_spill]] %s10540_s21  ;;  %s10657_s25 = sadd.s32 4294967295, %s10552_s24   ;;  %s10552_s24 = sphi %s10642_s24, %s14739_s24   ;;  %s10548_s23 = sphi %s10640_s23, %s14738_s23   ;;  %s10544_s22 = sphi %s10638_s22, %s14737_s22   ;;  %s10540_s21 = sphi %s10636_s21, %s14736_s21  }
   0xd   : > { %s7493_s26 = sadd.s32 4294967294, %s10552_s24   ;;  %p50_p0 = scmp.ne.s32.totalorder %s10544_s22, %s10540_s21 }
   0xe   : > { %p14304_p1 = scmp.eq.s32.totalorder %s10657_s25, 0  ;;  %p311_p3 = scmp.eq.s32.totalorder %s7493_s26, 1 }
   0xf   : > { %p7494_p5 = scmp.ge.s32.totalorder %s10552_s24, 1  ;;  %p318_p7 = scmp.lt.s32.totalorder %s10552_s24, 3 }
  0x10   : > { %p10666_p4 = por %p14304_p1, %p50_p0  ;;  %p10671_p6 = por %p311_p3, %p50_p0 }
  0x11   : > { %p10676_p8 = pnand %p7494_p5, %p318_p7  ;;  %s10554_s30 = smov [#allocation5]  }
  0x12   : > { %s14417_s27 = scalar_select %p10666_p4, 1, 0 }
  0x13   : > { %s14418_s28 = scalar_select %p10671_p6, 1, 0 }
  0x14   : > { %s14420_s29 = scalar_select %p10676_p8, 1, 0 }
  0x15   : > { %14419 = sst [smem:[#allocation17_spill]] %s14418_s28  ;;  %s330_s13 = sshll.u32 %s10554_s30, 4  ;;  %s10680_s13 = int_to_ptr.vmem [resolvable:$true] %s330_s13 }
  0x16   : > { %p9745_p9 = pneg %p10676_p8  ;;  %s10555_s15 = smov [#allocation8]  }
  0x17   : > { %s359_s16 = sshll.u32 %s10555_s15, 4  ;;  %s14422_s1 = sld [smem:[#allocation89_spill]]  ;;  %s10691_s16 = int_to_ptr.vmem [resolvable:$true] %s359_s16 }
  0x18   : > { %p10687_p11 = pnand %p9745_p9, %p14304_p1 }
  0x1a   : > { %p10701_p13 = pneg %p10687_p11 }
  0x1d   : > { %s10336_s19 = scalar_lea.hbm %s14422_s1, 24576 }
  0x1e   : > { %p10337_p12 = scmp.ne.s32.totalorder %s14422_s1, %s10336_s19  ;;  %p10343_p5 = scmp.lt.u32.totalorder %s10336_s19, %s14422_s1 }
  0x20   : > { %p10339_p0 = pnand %p10701_p13, %p10337_p12 }
  0x22   : > { %p10340_p3 = pneg %p10339_p0 }
  0x24   : > { %p10345_p7 = pnand %p10343_p5, %p10340_p3 }
  0x26   : > { %10348 = shalt.err (!%p10345_p7)
}
  0x27   : > { %s10349_s17 = scalar_lea.vmem %s10680_s13, 24576  ;;  %p10357_p2 = scmp.lt.s32.totalorder %s10680_s13, %s10680_s13 }
  0x28   : > { %p10350_p9 = scmp.ne.s32.totalorder %s10680_s13, %s10349_s17  ;;  %p10358_p6 = scmp.lt.s32.totalorder %s10349_s17, %s10349_s17 }
  0x2a   : > { %p10352_p10 = pnand %p10350_p9, %p10701_p13  ;;  %p10359_p12 = por %p10358_p6, %p10357_p2 }
  0x2c   : > { %p10353_p1 = pneg %p10352_p10 }
  0x2e   : > { %p10360_p0 = pnand %p10359_p12, %p10353_p1 }
  0x30   : > { %10363 = shalt.err (!%p10360_p0)
}
  0x31   : > { %s10556_s18 = smov 768   ;;  %s10557_s28 = smov 48  }
  0x32   : > { %9748 = dma.hbm_to_vmem [thread:$0]  (!%p10687_p11), %s14422_s1, 24576, %s10680_s13, [#allocation6], %s10556_s18, %s10556_s18, %s10557_s28  }
  0x33   : > { %s10364_s21 = scalar_lea.hbm %s14294_s4, 32768 }
  0x34   : > { %p10365_p2 = scmp.ne.s32.totalorder %s14294_s4, %s10364_s21  ;;  %p10371_p10 = scmp.lt.u32.totalorder %s10364_s21, %s14294_s4 }
  0x36   : > { %p10367_p1 = pnand %p10365_p2, %p10701_p13 }
  0x38   : > { %p10368_p6 = pneg %p10367_p1 }
  0x3a   : > { %p10373_p3 = pnand %p10371_p10, %p10368_p6 }
  0x3c   : > { %10376 = shalt.err (!%p10373_p3)
}
  0x3d   : > { %s10377_s13 = scalar_lea.vmem %s10691_s16, 32768  ;;  %p10385_p12 = scmp.lt.s32.totalorder %s10691_s16, %s10691_s16 }
  0x3e   : > { %p10378_p5 = scmp.ne.s32.totalorder %s10691_s16, %s10377_s13  ;;  %p10386_p0 = scmp.lt.s32.totalorder %s10377_s13, %s10377_s13 }
  0x40   : > { %p10380_p7 = pnand %p10378_p5, %p10701_p13  ;;  %p10387_p2 = por %p10386_p0, %p10385_p12 }
  0x42   : > { %p10381_p9 = pneg %p10380_p7 }
  0x44   : > { %p10388_p1 = pnand %p10387_p2, %p10381_p9 }
  0x46   : > { %10391 = shalt.err (!%p10388_p1)
}
  0x47   : > { %s10558_s7 = smov 1024   ;;  %s10559_s5 = smov 64  }
  0x48   : > { %9754 = dma.hbm_to_vmem [thread:$0]  (!%p10687_p11), %s14294_s4, 32768, %s10691_s16, [#allocation9], %s10558_s7, %s10558_s7, %s10559_s5  }
  0x49   : > { %s10560_s18 = smov [#allocation7]   ;;  %s10392_s26 = scalar_lea.hbm %s14292_s2, 8192 }
  0x4a   : > { %s343_s28 = sshll.u32 %s10560_s18, 4  ;;  %p10393_p6 = scmp.ne.s32.totalorder %s14292_s2, %s10392_s26  ;;  %s344_s28 = int_to_ptr.vmem [resolvable:$true] %s343_s28 }
  0x4b   : > { %p10399_p5 = scmp.lt.u32.totalorder %s10392_s26, %s14292_s2 }
  0x4c   : > { %p10395_p10 = pnand %p10393_p6, %p10701_p13 }
  0x4e   : > { %p10396_p3 = pneg %p10395_p10 }
  0x50   : > { %p10401_p7 = pnand %p10399_p5, %p10396_p3 }
  0x52   : > { %10404 = shalt.err (!%p10401_p7)
}
  0x53   : > { %s10405_s16 = scalar_lea.vmem %s344_s28, 8192  ;;  %p10413_p2 = scmp.lt.s32.totalorder %s344_s28, %s344_s28 }
  0x54   : > { %p10406_p9 = scmp.ne.s32.totalorder %s344_s28, %s10405_s16  ;;  %p10414_p1 = scmp.lt.s32.totalorder %s10405_s16, %s10405_s16 }
  0x56   : > { %p10408_p12 = pnand %p10406_p9, %p10701_p13  ;;  %p10415_p4 = por %p10414_p1, %p10413_p2 }
  0x58   : > { %p10409_p0 = pneg %p10408_p12 }
  0x5a   : > { %p10416_p8 = pnand %p10415_p4, %p10409_p0 }
  0x5c   : > { %10419 = shalt.err (!%p10416_p8)
}
  0x5d   : > { %s10561_s7 = smov 256   ;;  %s10562_s5 = smov 16  }
  0x5e   : > { %9751 = dma.hbm_to_vmem [thread:$0]  (!%p10687_p11), %s14292_s2, 8192, %s344_s28, [#allocation6], %s10561_s7, %s10561_s7, %s10562_s5  }
  0x5f   : > { %s10563_s21 = smov [#allocation10]   ;;  %s10420_s26 = scalar_lea.hbm %s14296_s6, 32768 }
  0x60   : > { %s375_s18 = sshll.u32 %s10563_s21, 4  ;;  %p10421_p4 = scmp.ne.s32.totalorder %s14296_s6, %s10420_s26  ;;  %s376_s18 = int_to_ptr.vmem [resolvable:$true] %s375_s18 }
  0x61   : > { %p10427_p10 = scmp.lt.u32.totalorder %s10420_s26, %s14296_s6 }
  0x62   : > { %p10423_p8 = pnand %p10421_p4, %p10701_p13 }
  0x64   : > { %p10424_p6 = pneg %p10423_p8 }
  0x66   : > { %p10429_p3 = pnand %p10427_p10, %p10424_p6 }
  0x68   : > { %10432 = shalt.err (!%p10429_p3)
}
  0x69   : > { %s10433_s28 = scalar_lea.vmem %s376_s18, 32768  ;;  %p10441_p12 = scmp.lt.s32.totalorder %s376_s18, %s376_s18 }
  0x6a   : > { %p10434_p5 = scmp.ne.s32.totalorder %s376_s18, %s10433_s28  ;;  %p10442_p0 = scmp.lt.s32.totalorder %s10433_s28, %s10433_s28 }
  0x6c   : > { %p10436_p7 = pnand %p10434_p5, %p10701_p13  ;;  %p10443_p2 = por %p10442_p0, %p10441_p12 }
  0x6e   : > { %p10437_p9 = pneg %p10436_p7 }
  0x70   : > { %p10444_p1 = pnand %p10443_p2, %p10437_p9 }
  0x72   : > { %10447 = shalt.err (!%p10444_p1)
}
  0x73   : > { %9757 = dma.hbm_to_vmem [thread:$0]  (!%p10687_p11), %s14296_s6, 32768, %s376_s18, [#allocation9], %s10561_s7, %s10561_s7, %s10562_s5  }
  0x74   : > { %s10788_s30 = sadd.s32 1, %s10552_s24   ;;  %s37_s14 = sadd.s32 1, %s10548_s23 }
  0x75   : > { %s34_s21 = ssub.s32 %s10552_s24, %s10788_s30  ;;  %p44_p13 = scmp.ne.s32.totalorder %s10548_s23, %s10544_s22 }
  0x76   : > { %p35_p4 = scmp.eq.s32.totalorder %s34_s21, 0  ;;  %p45_p8 = scmp.eq.s32.totalorder %s10552_s24, 0 }
  0x77   : > { %p14424_p6 = scmp.eq.s32.totalorder %s10657_s25, 1  ;;  %p9770_p3 = scmp.lt.s32.totalorder %s10552_s24, 2 }
  0x78   : > { %s10804_s20 = scalar_select %p35_p4, %s10548_s23, %s37_s14  }
  0x79   : > { %p10798_p10 = por %p14424_p6, %p44_p13  ;;  %p46_p5 = por %p45_p8, %p44_p13 }
  0x7a   : > { %s404_s26 = sand.u32 1, %s10548_s23   ;;  %s7707_s18 = sshll.u32 %s10552_s24, 12 }
  0x7b   : > { %s7500_s15 = sshll.u32 %s404_s26, 8  ;;  %s10811_s16 = scalar_lea.hbm %s14290_s0, %s7707_s18 }
  0x7c   : > { %s408_s28 = scalar_lea.vmem [#allocation2], %s7500_s15  ;;  %p10815_p11 = pnand %p9770_p3, %p46_p5 }
  0x7d   : > { %s415_s1 = sshll.u32 %s408_s28, 4  ;;  %s10819_s14 = scalar_lea.sflag [#allocation3], %s404_s26  ;;  %s10813_s1 = int_to_ptr.vmem [resolvable:$true] %s415_s1 }
  0x7e   : > { %s10448_s21 = scalar_lea.hbm %s10811_s16, 4096  ;;  %p10450_p9 = pneg %p10815_p11 }
  0x7f   : > { %p10449_p7 = scmp.ne.s32.totalorder %s10811_s16, %s10448_s21  ;;  %s10453_s17 = scalar_lea.hbm %s14290_s0, 8192 }
  0x80   : > { %p10454_p2 = scmp.lt.u32.totalorder %s10811_s16, %s14290_s0  ;;  %p10455_p1 = scmp.lt.u32.totalorder %s10453_s17, %s10448_s21 }
  0x81   : > { %p10451_p12 = pnand %p10450_p9, %p10449_p7  ;;  %p10457_p4 = scmp.lt.u32.totalorder %s10448_s21, %s10811_s16 }
  0x82   : > { %p10456_p13 = por %p10455_p1, %p10454_p2 }
  0x83   : > { %p10452_p0 = pneg %p10451_p12 }
  0x84   : > { %p10458_p8 = por %p10457_p4, %p10456_p13 }
  0x86   : > { %p10459_p6 = pnand %p10458_p8, %p10452_p0 }
  0x88   : > { %10462 = shalt.err (!%p10459_p6)
}
  0x89   : > { %s10463_s26 = scalar_lea.vmem %s10813_s1, 4096  ;;  %s10564_s15 = smov [#allocation2]  }
  0x8a   : > { %p10464_p3 = scmp.ne.s32.totalorder %s10813_s1, %s10463_s26  ;;  %s10468_s18 = sshll.u32 %s10564_s15, 4  ;;  %s10469_s18 = int_to_ptr.vmem [resolvable:$false] %s10468_s18 }
  0x8b   : > { %s10470_s13 = scalar_lea.vmem %s10469_s18, 8192  ;;  %p10471_p12 = scmp.lt.s32.totalorder %s10813_s1, %s10469_s18 }
  0x8c   : > { %p10466_p5 = pnand %p10464_p3, %p10450_p9  ;;  %p10472_p2 = scmp.lt.s32.totalorder %s10470_s13, %s10463_s26 }
  0x8e   : > { %p10467_p7 = pneg %p10466_p5  ;;  %p10473_p1 = por %p10472_p2, %p10471_p12 }
  0x90   : > { %p10474_p13 = pnand %p10473_p1, %p10467_p7 }
  0x92   : > { %10477 = shalt.err (!%p10474_p13)
}
  0x93   : > { %9761 = dma.hbm_to_vmem [thread:$0]  (!%p10815_p11), %s10811_s16, 4096, %s10813_s1, %s10819_s14, %s10561_s7, %s10561_s7, %s10562_s5  }
  0x94   : > { %p14427_p9 = scmp.ne.s32.totalorder %s14420_s29, 0 }
  0x96   : > { %427 = sbr.rel (%p14427_p9) target bundleno = 4089 (0xff9), region = 68 }
  0x9d   : > { %s10853_s21 = sand.u32 1, %s10544_s22   ;;  %p14428_p0 = scmp.ne.s32.totalorder %s14417_s27, 0 }
  0x9e   : > { %s7504_s17 = sshll.u32 %s10853_s21, 8  ;;  %s430_s28 = scalar_lea.sflag [#allocation3], %s10853_s21 }
  0x9f   : > { %s10859_s12 = scalar_lea.vmem [#allocation2], %s7504_s17 }
  0xa0   : > { %10523 = dma.done.wait (%p14428_p0), %s430_s28, 4096  }
  0xa1   : > { %10525 = vsyncadd (%p14428_p0), %s430_s28, 4294963200  ;;  %p14429_p11 = scmp.eq.s32.totalorder %s10657_s25, 0 }
  0xa3   : > { %10527 = dma.done.wait (%p14429_p11), [#allocation6], 32768   ;;  %p14430_p4 = pmov %p14429_p11 }
  0xa5   : > { %10529 = vsyncadd (%p14430_p4), [#allocation6], 4294934528  ;;  %p14431_p8 = pmov %p14430_p4 }
  0xa6   : > { %p14432_p6 = pmov %p14430_p4 }
  0xa7   : > { %10531 = dma.done.wait (%p14431_p8), [#allocation9], 65536  }
  0xa8   : > { %10533 = vsyncadd (%p14432_p6), [#allocation9], 4294901760  ;;  %v10874_v0 = vld [vmem:[%s10859_s12] sm:$0xff]  ;;  %v10877_v1 = vld [vmem:[%s10859_s12 + $0x8] sm:$0xff]  ;;  %vm1689_vm0 = vcmask 523264   ;;  %s10565_s16 = smov 64  }
  0xa9   : > { %v10880_v2 = vld [vmem:[%s10859_s12 + $0x20] sm:$0xff]  ;;  %v524_v3 = vadd.f32 %v10877_v1, %v10874_v0  ;;  %v10885_v4 = vld [vmem:[%s10859_s12 + $0x28] sm:$0xff]  ;;  %v10888_v5 = vld [vmem:[%s10859_s12 + $0x10] sm:$0xff]  ;;  %s14646_s27 = sld [smem:[#allocation90_spill]]  ;;  %s14696_s1 = sld [smem:[#allocation91_spill]] }
  0xaa   : > { %v10891_v6 = vld [vmem:[%s10859_s12 + $0x18] sm:$0xff]  ;;  %v530_v7 = vadd.f32 %v10885_v4, %v10880_v2  ;;  %v10896_v8 = vld [vmem:[%s10859_s12 + $0x30] sm:$0xff]  ;;  %v10906_v12 = vld [vmem:[%s10859_s12 + $0x40] sm:$0xff]  ;;  %s14145_s14 = scalar_lea.vmem [#allocation11], %s7504_s17  ;;  %s7708_s17 = sshll.u32 %s10657_s25, 12 }
  0xab   : > { %v10899_v9 = vld [vmem:[%s10859_s12 + $0x38] sm:$0xff]  ;;  %525 = vadd.xlane.f32.xlu0 %v524_v3  ;;  %v527_v10 = vadd.f32 %v10891_v6, %v10888_v5  ;;  %v10909_v13 = vld [vmem:[%s10859_s12 + $0x48] sm:$0xff]  ;;  %v10912_v14 = vld [vmem:[%s10859_s12 + $0x50] sm:$0xff]  ;;  %s7382_s26 = sshll.u32 %s14145_s14, 4  ;;  %s14730_s13 = sld [smem:[#allocation92_spill]]  ;;  %s14243_s26 = int_to_ptr.vmem [resolvable:$true] %s7382_s26 }
  0xac   : > { %531 = vadd.xlane.f32.xlu1 %v530_v7  ;;  %v533_v11 = vadd.f32 %v10899_v9, %v10896_v8  ;;  %v10915_v15 = vld [vmem:[%s10859_s12 + $0x58] sm:$0xff]  ;;  %v536_v16 = vadd.f32 %v10909_v13, %v10906_v12  ;;  %v10922_v18 = vld [vmem:[%s10859_s12 + $0x60] sm:$0xff]  ;;  %v10925_v19 = vld [vmem:[%s10859_s12 + $0x68] sm:$0xff]  ;;  %s7369_s25 = scalar_lea.sflag [#allocation4], %s10853_s21  ;;  %s10568_s29 = smov [#allocation11]  }
  0xad   : > { %v539_v17 = vadd.f32 %v10915_v15, %v10912_v14  ;;  %v10928_v20 = vld [vmem:[%s10859_s12 + $0x70] sm:$0xff]  ;;  %v10931_v21 = vld [vmem:[%s10859_s12 + $0x78] sm:$0xff]  ;;  %v542_v22 = vadd.f32 %v10925_v19, %v10922_v18  ;;  %v10938_v24 = vld [vmem:[%s10859_s12 + $0x80] sm:$0xff]  ;;  %s10482_s7 = sshll.u32 %s10568_s29, 4  ;;  %s10483_s7 = int_to_ptr.vmem [resolvable:$false] %s10482_s7 }
  0xae   : > { %v545_v23 = vadd.f32 %v10931_v21, %v10928_v20  ;;  %v10941_v25 = vld [vmem:[%s10859_s12 + $0x88] sm:$0xff]  ;;  %v10944_v26 = vld [vmem:[%s10859_s12 + $0x90] sm:$0xff]  ;;  %v10947_v27 = vld [vmem:[%s10859_s12 + $0x98] sm:$0xff]  ;;  %s10484_s5 = scalar_lea.vmem %s10483_s7, 8192  ;;  %p10485_p12 = scmp.lt.s32.totalorder %s14243_s26, %s10483_s7 }
  0xaf   : > { %528 = vadd.xlane.f32.xlu0 %v527_v10  ;;  %v548_v28 = vadd.f32 %v10941_v25, %v10938_v24  ;;  %v551_v29 = vadd.f32 %v10947_v27, %v10944_v26  ;;  %v10954_v30 = vld [vmem:[%s10859_s12 + $0xa0] sm:$0xff]  ;;  %v10957_v31 = vld [vmem:[%s10859_s12 + $0xa8] sm:$0xff]  ;;  %v10960_v32 = vld [vmem:[%s10859_s12 + $0xb0] sm:$0xff] }
  0xb0   : > { %534 = vadd.xlane.f32.xlu1 %v533_v11  ;;  %v10963_v33 = vld [vmem:[%s10859_s12 + $0xb8] sm:$0xff]  ;;  %v554_v34 = vadd.f32 %v10957_v31, %v10954_v30  ;;  %v10970_v36 = vld [vmem:[%s10859_s12 + $0xc0] sm:$0xff]  ;;  %v10973_v37 = vld [vmem:[%s10859_s12 + $0xc8] sm:$0xff] }
  0xb1   : > { %v557_v35 = vadd.f32 %v10963_v33, %v10960_v32  ;;  %v10976_v38 = vld [vmem:[%s10859_s12 + $0xd0] sm:$0xff]  ;;  %v10979_v39 = vld [vmem:[%s10859_s12 + $0xd8] sm:$0xff]  ;;  %v560_v40 = vadd.f32 %v10973_v37, %v10970_v36  ;;  %v10986_v42 = vld [vmem:[%s10859_s12 + $0xe0] sm:$0xff]  ;;  %s14241_s28 = scalar_lea.hbm %s14730_s13, %s7708_s17 }
  0xb2   : > { %v563_v41 = vadd.f32 %v10979_v39, %v10976_v38  ;;  %v10989_v43 = vld [vmem:[%s10859_s12 + $0xe8] sm:$0xff]  ;;  %v10992_v44 = vld [vmem:[%s10859_s12 + $0xf0] sm:$0xff]  ;;  %v10995_v45 = vld [vmem:[%s10859_s12 + $0xf8] sm:$0xff] }
  0xb3   : > { %537 = vadd.xlane.f32.xlu0 %v536_v16  ;;  %v566_v46 = vadd.f32 %v10989_v43, %v10986_v42  ;;  %v569_v47 = vadd.f32 %v10995_v45, %v10992_v44  ;;  %v868_v48 = vld [vmem:[#allocation5 + $0x8] sm:$0xff]  ;;  %v874_v49 = vld [vmem:[#allocation5 + $0x38] sm:$0xff]  ;;  %v867_v50 = vld [vmem:[#allocation5] sm:$0xff] }
  0xb4   : > { %540 = vadd.xlane.f32.xlu1 %v539_v17  ;;  %v8413_v51 = vpack.c.bf16 %v874_v49, %v868_v48  ;;  %v873_v52 = vld [vmem:[#allocation5 + $0x30] sm:$0xff]  ;;  %v880_v53 = vld [vmem:[#allocation5 + $0x68] sm:$0xff]  ;;  %v886_v54 = vld [vmem:[#allocation5 + $0x98] sm:$0xff] }
  0xb5   : > { %v8415_v55 = vpack.c.bf16 %v873_v52, %v867_v50  ;;  %v8417_v56 = vpack.c.bf16 %v886_v54, %v880_v53  ;;  %v879_v57 = vld [vmem:[#allocation5 + $0x60] sm:$0xff]  ;;  %v885_v58 = vld [vmem:[#allocation5 + $0x90] sm:$0xff]  ;;  %v892_v59 = vld [vmem:[#allocation5 + $0xc8] sm:$0xff] }
  0xb6   : > { %8414 = vmatprep.subr.bf16.mxu0 %v8413_v51  ;;  %v898_v60 = vld [vmem:[#allocation5 + $0xf8] sm:$0xff]  ;;  %v8419_v61 = vpack.c.bf16 %v885_v58, %v879_v57  ;;  %v891_v63 = vld [vmem:[#allocation5 + $0xc0] sm:$0xff]  ;;  %v897_v3 = vld [vmem:[#allocation5 + $0xf0] sm:$0xff] }
  0xb7   : > { %543 = vadd.xlane.f32.xlu0 %v542_v22  ;;  %8416 = vmatpush1.bf16.msra.mxu0 %v8415_v55  ;;  %v8421_v62 = vpack.c.bf16 %v898_v60, %v892_v59  ;;  %v904_v7 = vld [vmem:[#allocation5 + $0x128] sm:$0xff]  ;;  %v910_v10 = vld [vmem:[#allocation5 + $0x158] sm:$0xff]  ;;  %v8423_v11 = vpack.c.bf16 %v897_v3, %v891_v63  ;;  %v903_v17 = vld [vmem:[#allocation5 + $0x120] sm:$0xff] }
  0xb8   : > { %546 = vadd.xlane.f32.xlu1 %v545_v23  ;;  %8418 = vmatprep.subr.bf16.mxu0 %v8417_v56  ;;  %v8425_v16 = vpack.c.bf16 %v910_v10, %v904_v7  ;;  %v909_v22 = vld [vmem:[#allocation5 + $0x150] sm:$0xff]  ;;  %v916_v23 = vld [vmem:[#allocation5 + $0x188] sm:$0xff]  ;;  %v927_v49 = vld [vmem:[#allocation5 + $0x1e0] sm:$0xff] }
  0xb9   : > { %v933_v50 = vld [vmem:[#allocation5 + $0x210] sm:$0xff]  ;;  %v940_v51 = vld [vmem:[#allocation5 + $0x248] sm:$0xff]  ;;  %v946_v52 = vld [vmem:[#allocation5 + $0x278] sm:$0xff] }
  0xba   : > { %v8435_v53 = vpack.c.bf16 %v933_v50, %v927_v49  ;;  %v8437_v54 = vpack.c.bf16 %v946_v52, %v940_v51  ;;  %v939_v55 = vld [vmem:[#allocation5 + $0x240] sm:$0xff]  ;;  %v945_v56 = vld [vmem:[#allocation5 + $0x270] sm:$0xff]  ;;  %v952_v57 = vld [vmem:[#allocation5 + $0x2a8] sm:$0xff] }
  0xbb   : > { %549 = vadd.xlane.f32.xlu0 %v548_v28  ;;  %8420 = vmatpush1.bf16.msra.mxu0 %v8419_v61  ;;  %v922_v28 = vld [vmem:[#allocation5 + $0x1b8] sm:$0xff]  ;;  %v8439_v59 = vpack.c.bf16 %v945_v56, %v939_v55  ;;  %v951_v61 = vld [vmem:[#allocation5 + $0x2a0] sm:$0xff]  ;;  %v964_v63 = vld [vmem:[#allocation5 + $0x308] sm:$0xff] }
  0xbc   : > { %552 = vadd.xlane.f32.xlu1 %v551_v29  ;;  %8422 = vmatprep.subr.bf16.mxu0 %v8421_v62  ;;  %v8427_v29 = vpack.c.bf16 %v909_v22, %v903_v17  ;;  %v958_v58 = vld [vmem:[#allocation5 + $0x2d8] sm:$0xff]  ;;  %v957_v62 = vld [vmem:[#allocation5 + $0x2d0] sm:$0xff]  ;;  %v976_v17 = vld [vmem:[#allocation5 + $0x368] sm:$0xff] }
  0xbd   : > { %v8441_v60 = vpack.c.bf16 %v958_v58, %v952_v57  ;;  %v970_v3 = vld [vmem:[#allocation5 + $0x338] sm:$0xff]  ;;  %v8443_v7 = vpack.c.bf16 %v957_v62, %v951_v61  ;;  %vm11514_vm1 = vmpackc.low %vm1689_vm0, %vm1689_vm0 }
  0xbe   : > { %v8445_v10 = vpack.c.bf16 %v970_v3, %v964_v63  ;;  %v982_v22 = vld [vmem:[#allocation5 + $0x398] sm:$0xff] }
  0xbf   : > { %555 = vadd.xlane.f32.xlu0 %v554_v34  ;;  %8424 = vmatpush1.bf16.msra.mxu0 %v8423_v11  ;;  %v8429_v34 = vpack.c.bf16 %v922_v28, %v916_v23  ;;  %v963_v11 = vld [vmem:[#allocation5 + $0x300] sm:$0xff]  ;;  %v8449_v28 = vpack.c.bf16 %v982_v22, %v976_v17 }
  0xc0   : > { %558 = vadd.xlane.f32.xlu1 %v557_v35  ;;  %8426 = vmatprep.subr.bf16.mxu0 %v8425_v16  ;;  %v915_v35 = vld [vmem:[#allocation5 + $0x180] sm:$0xff]  ;;  %v969_v16 = vld [vmem:[#allocation5 + $0x330] sm:$0xff] }
  0xc1   : > { %v8447_v23 = vpack.c.bf16 %v969_v16, %v963_v11 }
  0xc3   : > { %561 = vadd.xlane.f32.xlu0 %v560_v40  ;;  %v921_v40 = vld [vmem:[#allocation5 + $0x1b0] sm:$0xff]  ;;  %8428 = vmatpush1.bf16.msra.mxu0 %v8427_v29  ;;  %v975_v29 = vld [vmem:[#allocation5 + $0x360] sm:$0xff] }
  0xc4   : > { %564 = vadd.xlane.f32.xlu1 %v563_v41  ;;  %v928_v41 = vld [vmem:[#allocation5 + $0x1e8] sm:$0xff]  ;;  %8430 = vmatprep.subr.bf16.mxu0 %v8429_v34  ;;  %v981_v34 = vld [vmem:[#allocation5 + $0x390] sm:$0xff] }
  0xc7   : > { %567 = vadd.xlane.f32.xlu0 %v566_v46  ;;  %v934_v46 = vld [vmem:[#allocation5 + $0x218] sm:$0xff] }
  0xc8   : > { %570 = vadd.xlane.f32.xlu1 %v569_v47  ;;  %v8431_v47 = vpack.c.bf16 %v921_v40, %v915_v35  ;;  %v8433_v48 = vpack.c.bf16 %v934_v46, %v928_v41  ;;  %v988_v35 = vld [vmem:[#allocation5 + $0x3c8] sm:$0xff]  ;;  %v994_v40 = vld [vmem:[#allocation5 + $0x3f8] sm:$0xff]  ;;  %v8451_v41 = vpack.c.bf16 %v981_v34, %v975_v29 }
  0xc9   : > { %v8453_v46 = vpack.c.bf16 %v994_v40, %v988_v35 }
  0xca   : > { %8432 = vmatpush1.bf16.msra.mxu0 %v8431_v47  ;;  %v987_v47 = vld [vmem:[#allocation5 + $0x3c0] sm:$0xff] }
  0xcb   : > { %8434 = vmatprep.subr.bf16.mxu0 %v8433_v48  ;;  %v993_v48 = vld [vmem:[#allocation5 + $0x3f0] sm:$0xff] }
  0xcc   : > { %v8455_v49 = vpack.c.bf16 %v993_v48, %v987_v47 }
  0xce   : > { %8436 = vmatpush1.bf16.msra.mxu0 %v8435_v53 }
  0xcf   : > { %8438 = vmatprep.subr.bf16.mxu0 %v8437_v54 }
  0xd2   : > { %8440 = vmatpush1.bf16.msra.mxu0 %v8439_v59 }
  0xd3   : > { %8442 = vmatprep.subr.bf16.mxu0 %v8441_v60 }
  0xd6   : > { %8444 = vmatpush1.bf16.msra.mxu0 %v8443_v7 }
  0xd7   : > { %8446 = vmatprep.subr.bf16.mxu0 %v8445_v10 }
  0xda   : > { %8448 = vmatpush1.bf16.msra.mxu0 %v8447_v23 }
  0xdb   : > { %8450 = vmatprep.subr.bf16.mxu0 %v8449_v28 }
  0xde   : > { %8452 = vmatpush1.bf16.msra.mxu0 %v8451_v41 }
  0xdf   : > { %8454 = vmatprep.subr.bf16.mxu0 %v8453_v46 }
  0xe2   : > { %8456 = vmatpush1.bf16.msra.mxu0 %v8455_v49 }
 0x138   : > { %v526_v50 = vpop.xlane.xlu0 %525 }
 0x139   : > { %v573_v51 = vmul.f32 0.00390625, %v526_v50  ;;  %v532_v52 = vpop.xlane.xlu1 %531 }
 0x13a   : > { %v575_v53 = vmul.f32 0.00390625, %v532_v52 }
 0x13b   : > { %v11002_v54 = vsub.f32 %v10874_v0, %v573_v51  ;;  %v11005_v55 = vsub.f32 %v10877_v1, %v573_v51 }
 0x13c   : > { %v11008_v56 = vsub.f32 %v10880_v2, %v575_v53  ;;  %v11011_v57 = vsub.f32 %v10885_v4, %v575_v53  ;;  %v529_v58 = vpop.xlane.xlu0 %528 }
 0x13d   : > { %v574_v59 = vmul.f32 0.00390625, %v529_v58  ;;  %v535_v60 = vpop.xlane.xlu1 %534  ;;  %v621_v61 = vmul.f32 %v11002_v54, %v11002_v54  ;;  %v622_v62 = vmul.f32 %v11005_v55, %v11005_v55 }
 0x13e   : > { %v576_v0 = vmul.f32 0.00390625, %v535_v60  ;;  %v625_v1 = vmul.f32 %v11008_v56, %v11008_v56  ;;  %v626_v2 = vmul.f32 %v11011_v57, %v11011_v57 }
 0x13f   : > { %v11022_v63 = vsub.f32 %v10888_v5, %v574_v59  ;;  %v11025_v4 = vsub.f32 %v10891_v6, %v574_v59  ;;  %v653_v3 = vadd.f32 %v622_v62, %v621_v61 }
 0x140   : > { %v11028_v7 = vsub.f32 %v10896_v8, %v576_v0  ;;  %v11031_v10 = vsub.f32 %v10899_v9, %v576_v0  ;;  %v538_v11 = vpop.xlane.xlu0 %537  ;;  %v659_v22 = vadd.f32 %v626_v2, %v625_v1 }
 0x141   : > { %v577_v16 = vmul.f32 0.00390625, %v538_v11  ;;  %654 = vadd.xlane.f32.xlu0 %v653_v3  ;;  %v541_v17 = vpop.xlane.xlu1 %540  ;;  %v623_v23 = vmul.f32 %v11022_v63, %v11022_v63  ;;  %v624_v5 = vmul.f32 %v11025_v4, %v11025_v4 }
 0x142   : > { %v578_v6 = vmul.f32 0.00390625, %v541_v17  ;;  %v627_v28 = vmul.f32 %v11028_v7, %v11028_v7  ;;  %v628_v8 = vmul.f32 %v11031_v10, %v11031_v10 }
 0x143   : > { %v11042_v9 = vsub.f32 %v10906_v12, %v577_v16  ;;  %v11045_v29 = vsub.f32 %v10909_v13, %v577_v16  ;;  %v656_v34 = vadd.f32 %v624_v5, %v623_v23 }
 0x144   : > { %v11048_v35 = vsub.f32 %v10912_v14, %v578_v6  ;;  %v11051_v40 = vsub.f32 %v10915_v15, %v578_v6  ;;  %v544_v41 = vpop.xlane.xlu0 %543  ;;  %v662_v48 = vadd.f32 %v628_v8, %v627_v28  ;;  %v1000_v28 = vld [vmem:[#allocation5 + $0x428] sm:$0xff]  ;;  %v1006_v8 = vld [vmem:[#allocation5 + $0x458] sm:$0xff] }
 0x145   : > { %v579_v46 = vmul.f32 0.00390625, %v544_v41  ;;  %660 = vadd.xlane.f32.xlu0 %v659_v22  ;;  %657 = vadd.xlane.f32.xlu1 %v656_v34  ;;  %v547_v47 = vpop.xlane.xlu1 %546  ;;  %v629_v12 = vmul.f32 %v11042_v9, %v11042_v9  ;;  %v630_v13 = vmul.f32 %v11045_v29, %v11045_v29 }
 0x146   : > { %v580_v49 = vmul.f32 0.00390625, %v547_v47  ;;  %v631_v14 = vmul.f32 %v11048_v35, %v11048_v35  ;;  %v632_v15 = vmul.f32 %v11051_v40, %v11051_v40  ;;  %v8457_v47 = vpack.c.bf16 %v1006_v8, %v1000_v28 }
 0x147   : > { %v11062_v50 = vsub.f32 %v10922_v18, %v579_v46  ;;  %v11065_v51 = vsub.f32 %v10925_v19, %v579_v46  ;;  %v665_v52 = vadd.f32 %v630_v13, %v629_v12  ;;  %v1005_v12 = vld [vmem:[#allocation5 + $0x450] sm:$0xff] }
 0x148   : > { %v11068_v53 = vsub.f32 %v10928_v20, %v580_v49  ;;  %v11071_v58 = vsub.f32 %v10931_v21, %v580_v49  ;;  %v550_v59 = vpop.xlane.xlu0 %549  ;;  %v668_v62 = vadd.f32 %v632_v15, %v631_v14  ;;  %8458 = vmatprep.subr.bf16.mxu0 %v8457_v47  ;;  %v1024_v47 = vld [vmem:[#allocation5 + $0x4e8] sm:$0xff] }
 0x149   : > { %v581_v60 = vmul.f32 0.00390625, %v550_v59  ;;  %663 = vadd.xlane.f32.xlu1 %v662_v48  ;;  %666 = vadd.xlane.f32.xlu0 %v665_v52  ;;  %v553_v61 = vpop.xlane.xlu1 %552  ;;  %v633_v18 = vmul.f32 %v11062_v50, %v11062_v50  ;;  %v634_v19 = vmul.f32 %v11065_v51, %v11065_v51  ;;  %v999_v48 = vld [vmem:[#allocation5 + $0x420] sm:$0xff] }
 0x14a   : > { %v582_v0 = vmul.f32 0.00390625, %v553_v61  ;;  %v635_v20 = vmul.f32 %v11068_v53, %v11068_v53  ;;  %v636_v21 = vmul.f32 %v11071_v58, %v11071_v58  ;;  %v8459_v15 = vpack.c.bf16 %v1005_v12, %v999_v48  ;;  %v1030_v48 = vld [vmem:[#allocation5 + $0x518] sm:$0xff] }
 0x14b   : > { %v11082_v1 = vsub.f32 %v10938_v24, %v581_v60  ;;  %v11085_v2 = vsub.f32 %v10941_v25, %v581_v60  ;;  %v671_v3 = vadd.f32 %v634_v19, %v633_v18 }
 0x14c   : > { %v11088_v11 = vsub.f32 %v10944_v26, %v582_v0  ;;  %v11091_v16 = vsub.f32 %v10947_v27, %v582_v0  ;;  %v556_v17 = vpop.xlane.xlu0 %555  ;;  %v674_v5 = vadd.f32 %v636_v21, %v635_v20  ;;  %8460 = vmatpush1.bf16.msra.mxu0 %v8459_v15  ;;  %v1012_v0 = vld [vmem:[#allocation5 + $0x488] sm:$0xff]  ;;  %v1018_v20 = vld [vmem:[#allocation5 + $0x4b8] sm:$0xff] }
 0x14d   : > { %v583_v22 = vmul.f32 0.00390625, %v556_v17  ;;  %669 = vadd.xlane.f32.xlu1 %v668_v62  ;;  %672 = vadd.xlane.f32.xlu0 %v671_v3  ;;  %v559_v23 = vpop.xlane.xlu1 %558  ;;  %v637_v24 = vmul.f32 %v11082_v1, %v11082_v1  ;;  %v638_v25 = vmul.f32 %v11085_v2, %v11085_v2 }
 0x14e   : > { %v584_v6 = vmul.f32 0.00390625, %v559_v23  ;;  %v639_v26 = vmul.f32 %v11088_v11, %v11088_v11  ;;  %v640_v27 = vmul.f32 %v11091_v16, %v11091_v16  ;;  %v8461_v23 = vpack.c.bf16 %v1018_v20, %v1012_v0  ;;  %v1041_v0 = vld [vmem:[#allocation5 + $0x570] sm:$0xff] }
 0x14f   : > { %v11102_v34 = vsub.f32 %v10954_v30, %v583_v22  ;;  %v11105_v41 = vsub.f32 %v10957_v31, %v583_v22  ;;  %v677_v46 = vadd.f32 %v638_v25, %v637_v24  ;;  %v1017_v24 = vld [vmem:[#allocation5 + $0x4b0] sm:$0xff] }
 0x150   : > { %v11108_v13 = vsub.f32 %v10960_v32, %v584_v6  ;;  %v11111_v49 = vsub.f32 %v10963_v33, %v584_v6  ;;  %v562_v14 = vpop.xlane.xlu0 %561  ;;  %v680_v59 = vadd.f32 %v640_v27, %v639_v26  ;;  %8462 = vmatprep.subr.bf16.mxu0 %v8461_v23  ;;  %v1054_v23 = vld [vmem:[#allocation5 + $0x5d8] sm:$0xff] }
 0x151   : > { %v585_v52 = vmul.f32 0.00390625, %v562_v14  ;;  %675 = vadd.xlane.f32.xlu1 %v674_v5  ;;  %678 = vadd.xlane.f32.xlu0 %v677_v46  ;;  %v565_v30 = vpop.xlane.xlu1 %564  ;;  %v641_v31 = vmul.f32 %v11102_v34, %v11102_v34  ;;  %v642_v60 = vmul.f32 %v11105_v41, %v11105_v41  ;;  %v1011_v5 = vld [vmem:[#allocation5 + $0x480] sm:$0xff] }
 0x152   : > { %v586_v61 = vmul.f32 0.00390625, %v565_v30  ;;  %v643_v32 = vmul.f32 %v11108_v13, %v11108_v13  ;;  %v644_v33 = vmul.f32 %v11111_v49, %v11111_v49  ;;  %v1023_v30 = vld [vmem:[#allocation5 + $0x4e0] sm:$0xff] }
 0x153   : > { %v11122_v62 = vsub.f32 %v10970_v36, %v585_v52  ;;  %v11125_v18 = vsub.f32 %v10973_v37, %v585_v52  ;;  %v683_v19 = vadd.f32 %v642_v60, %v641_v31  ;;  %v8465_v52 = vpack.c.bf16 %v1030_v48, %v1024_v47 }
 0x154   : > { %v11128_v21 = vsub.f32 %v10976_v38, %v586_v61  ;;  %v11131_v3 = vsub.f32 %v10979_v39, %v586_v61  ;;  %v568_v17 = vpop.xlane.xlu0 %567  ;;  %v686_v22 = vadd.f32 %v644_v33, %v643_v32  ;;  %v8463_v38 = vpack.c.bf16 %v1017_v24, %v1011_v5  ;;  %v1036_v61 = vld [vmem:[#allocation5 + $0x548] sm:$0xff]  ;;  %v1042_v32 = vld [vmem:[#allocation5 + $0x578] sm:$0xff]  ;;  %v1047_v24 = vld [vmem:[#allocation5 + $0x5a0] sm:$0xff] }
 0x155   : > { %v587_v36 = vmul.f32 0.00390625, %v568_v17  ;;  %681 = vadd.xlane.f32.xlu1 %v680_v59  ;;  %684 = vadd.xlane.f32.xlu0 %v683_v19  ;;  %v571_v37 = vpop.xlane.xlu1 %570  ;;  %v645_v25 = vmul.f32 %v11122_v62, %v11122_v62  ;;  %v646_v6 = vmul.f32 %v11125_v18, %v11125_v18  ;;  %v1029_v59 = vld [vmem:[#allocation5 + $0x510] sm:$0xff]  ;;  %v8469_v33 = vpack.c.bf16 %v1042_v32, %v1036_v61  ;;  %v1035_v19 = vld [vmem:[#allocation5 + $0x540] sm:$0xff] }
 0x156   : > { %v588_v26 = vmul.f32 0.00390625, %v571_v37  ;;  %v647_v39 = vmul.f32 %v11128_v21, %v11128_v21  ;;  %v648_v27 = vmul.f32 %v11131_v3, %v11131_v3  ;;  %8464 = vmatpush1.bf16.msra.mxu0 %v8463_v38  ;;  %v8467_v31 = vpack.c.bf16 %v1029_v59, %v1023_v30 }
 0x157   : > { %v11142_v28 = vsub.f32 %v10986_v42, %v587_v36  ;;  %v11145_v8 = vsub.f32 %v10989_v43, %v587_v36  ;;  %v689_v46 = vadd.f32 %v646_v6, %v645_v25  ;;  %8466 = vmatprep.subr.bf16.mxu0 %v8465_v52  ;;  %v8471_v17 = vpack.c.bf16 %v1041_v0, %v1035_v19  ;;  %v1053_v36 = vld [vmem:[#allocation5 + $0x5d0] sm:$0xff]  ;;  %v870_v25 = vld [vmem:[#allocation5 + $0x18] sm:$0xff]  ;;  %v876_v6 = vld [vmem:[#allocation5 + $0x48] sm:$0xff] }
 0x158   : > { %v11148_v12 = vsub.f32 %v10992_v44, %v588_v26  ;;  %v11151_v14 = vsub.f32 %v10995_v45, %v588_v26  ;;  %v692_v15 = vadd.f32 %v648_v27, %v647_v39  ;;  %v8475_v37 = vpack.c.bf16 %v1053_v36, %v1047_v24  ;;  %v522_v19 = vld [vmem:[%s14298_s8] sm:$0x3] }
 0x159   : > { %687 = vadd.xlane.f32.xlu1 %v686_v22  ;;  %690 = vadd.xlane.f32.xlu0 %v689_v46  ;;  %v649_v42 = vmul.f32 %v11142_v28, %v11142_v28  ;;  %v650_v43 = vmul.f32 %v11145_v8, %v11145_v8  ;;  %v1048_v22 = vld [vmem:[#allocation5 + $0x5a8] sm:$0xff]  ;;  %v8477_v38 = vpack.c.bf16 %v876_v6, %v870_v25  ;;  %v14310_v27 = vlaneseq  ;;  %v869_v25 = vld [vmem:[#allocation5 + $0x10] sm:$0xff] }
 0x15a   : > { %v651_v44 = vmul.f32 %v11148_v12, %v11148_v12  ;;  %v652_v45 = vmul.f32 %v11151_v14, %v11151_v14  ;;  %8468 = vmatpush1.bf16.msra.mxu0 %v8467_v31  ;;  %v8473_v5 = vpack.c.bf16 %v1054_v23, %v1048_v22  ;;  %v523_v23 = vld [vmem:[%s14299_s9] sm:$0x3] }
 0x15b   : > { %v695_v60 = vadd.f32 %v650_v43, %v649_v42  ;;  %8470 = vmatprep.subr.bf16.mxu0 %v8469_v33  ;;  %v11162_v30 = vshrl.u32 %v14310_v27, 7 }
 0x15c   : > { %v698_v20 = vadd.f32 %v652_v45, %v651_v44 }
 0x15d   : > { %693 = vadd.xlane.f32.xlu1 %v692_v15  ;;  %696 = vadd.xlane.f32.xlu0 %v695_v60  ;;  %14433 = vst [vmem:[#allocation18_spill] sm:$0xff] %v11162_v30  ;;  %v11165_v60 = vsub.s32 1, %v11162_v30  ;;  %v11168_v61 = vsub.s32 0, %v11162_v30 }
 0x15e   : > { %8472 = vmatpush1.bf16.msra.mxu0 %v8471_v17 }
 0x15f   : > { %8474 = vmatprep.subr.bf16.mxu0 %v8473_v5  ;;  %14434 = vst [vmem:[#allocation19_spill] sm:$0xff] %v11165_v60  ;;  %14435 = vst [vmem:[#allocation20_spill] sm:$0xff] %v11168_v61  ;;  %v11177_v5 = vrot.slane %v522_v19, %v11165_v60  ;;  %v11180_v24 = vrot.slane %v522_v19, %v11168_v61 }
 0x161   : > { %699 = vadd.xlane.f32.xlu1 %v698_v20 }
 0x162   : > { %8476 = vmatpush1.bf16.msra.mxu0 %v8475_v37 }
 0x163   : > { %8478 = vmatprep.subr.bf16.mxu0 %v8477_v38 }
 0x1ce   : > { %v655_v26 = vpop.xlane.xlu0 %654 }
 0x1cf   : > { %v701_v39 = vmul.f32 0.00390625, %v655_v26  ;;  %v11184_v26 = vrot.slane %v523_v23, %v11165_v60 }
 0x1d1   : > { %v717_v46 = vadd.f32 1e-05, %v701_v39 }
 0x1d2   : > { %v658_v47 = vpop.xlane.xlu1 %657  ;;  %v661_v48 = vpop.xlane.xlu0 %660 }
 0x1d3   : > { %9983 = vrsqrt.f32 %v717_v46  ;;  %v702_v15 = vmul.f32 0.00390625, %v658_v47  ;;  %v703_v52 = vmul.f32 0.00390625, %v661_v48  ;;  %v11188_v46 = vrot.slane %v523_v23, %v11168_v61  ;;  %v875_v47 = vld [vmem:[#allocation5 + $0x40] sm:$0xff]  ;;  %v882_v48 = vld [vmem:[#allocation5 + $0x78] sm:$0xff] }
 0x1d5   : > { %v718_v59 = vadd.f32 1e-05, %v702_v15  ;;  %v719_v42 = vadd.f32 1e-05, %v703_v52  ;;  %v888_v15 = vld [vmem:[#allocation5 + $0xa8] sm:$0xff] }
 0x1d6   : > { %v664_v43 = vpop.xlane.xlu1 %663  ;;  %v667_v31 = vpop.xlane.xlu0 %666 }
 0x1d7   : > { %9985 = vrsqrt.f32 %v718_v59  ;;  %v704_v44 = vmul.f32 0.00390625, %v664_v43  ;;  %v705_v45 = vmul.f32 0.00390625, %v667_v31 }
 0x1d8   : > { %9987 = vrsqrt.f32 %v719_v42 }
 0x1d9   : > { %v720_v32 = vadd.f32 1e-05, %v704_v44  ;;  %v721_v33 = vadd.f32 1e-05, %v705_v45  ;;  %v8479_v44 = vpack.c.bf16 %v875_v47, %v869_v25  ;;  %v8481_v45 = vpack.c.bf16 %v888_v15, %v882_v48 }
 0x1da   : > { %v670_v0 = vpop.xlane.xlu1 %669  ;;  %v673_v20 = vpop.xlane.xlu0 %672 }
 0x1db   : > { %9989 = vrsqrt.f32 %v720_v32  ;;  %v706_v17 = vmul.f32 0.00390625, %v670_v0  ;;  %v707_v22 = vmul.f32 0.00390625, %v673_v20  ;;  %v881_v20 = vld [vmem:[#allocation5 + $0x70] sm:$0xff] }
 0x1dc   : > { %9991 = vrsqrt.f32 %v721_v33 }
 0x1dd   : > { %v9984_v36 = vpop.eup %9983  ;;  %v722_v37 = vadd.f32 1e-05, %v706_v17  ;;  %v723_v52 = vadd.f32 1e-05, %v707_v22  ;;  %v887_v17 = vld [vmem:[#allocation5 + $0xa0] sm:$0xff] }
 0x1de   : > { %v676_v6 = vpop.xlane.xlu1 %675  ;;  %v750_v38 = vmul.f32 %v9984_v36, %v11005_v55  ;;  %v749_v39 = vmul.f32 %v9984_v36, %v11002_v54  ;;  %v679_v42 = vpop.xlane.xlu0 %678  ;;  %v8483_v48 = vpack.c.bf16 %v887_v17, %v881_v20  ;;  %v912_v20 = vld [vmem:[#allocation5 + $0x168] sm:$0xff] }
 0x1df   : > { %9993 = vrsqrt.f32 %v722_v37  ;;  %v708_v59 = vmul.f32 0.00390625, %v676_v6  ;;  %v709_v23 = vmul.f32 0.00390625, %v679_v42 }
 0x1e0   : > { %v793_v43 = vmul.f32 %v11177_v5, %v750_v38  ;;  %v792_v31 = vmul.f32 %v11180_v24, %v749_v39  ;;  %9995 = vrsqrt.f32 %v723_v52  ;;  %v894_v39 = vld [vmem:[#allocation5 + $0xd8] sm:$0xff] }
 0x1e1   : > { %v9986_v55 = vpop.eup %9985  ;;  %v724_v22 = vadd.f32 1e-05, %v708_v59 }
 0x1e2   : > { %v9988_v32 = vpop.eup %9987  ;;  %v11193_v54 = vadd.f32 %v11184_v26, %v793_v43  ;;  %v11196_v33 = vadd.f32 %v11188_v46, %v792_v31  ;;  %v752_v19 = vmul.f32 %v9986_v55, %v11025_v4  ;;  %v751_v0 = vmul.f32 %v9986_v55, %v11022_v63  ;;  %v682_v36 = vpop.xlane.xlu1 %681  ;;  %v900_v4 = vld [vmem:[#allocation5 + $0x108] sm:$0xff] }
 0x1e3   : > { %v754_v37 = vmul.f32 %v9988_v32, %v11011_v57  ;;  %v753_v38 = vmul.f32 %v9988_v32, %v11008_v56  ;;  %v710_v52 = vmul.f32 0.00390625, %v682_v36  ;;  %v893_v56 = vld [vmem:[#allocation5 + $0xd0] sm:$0xff]  ;;  %9997 = vrsqrt.f32 %v724_v22  ;;  %v685_v31 = vpop.xlane.xlu0 %684 }
 0x1e4   : > { %1123 = vmatprep.mubr.f32.mxu0 %v11193_v54  ;;  %v795_v25 = vmul.f32 %v11177_v5, %v752_v19  ;;  %v794_v6 = vmul.f32 %v11180_v24, %v751_v0  ;;  %v725_v43 = vadd.f32 1e-05, %v709_v23  ;;  %v8485_v32 = vpack.c.bf16 %v900_v4, %v894_v39  ;;  %v899_v19 = vld [vmem:[#allocation5 + $0x100] sm:$0xff]  ;;  %v906_v0 = vld [vmem:[#allocation5 + $0x138] sm:$0xff] }
 0x1e5   : > { %v9990_v47 = vpop.eup %9989  ;;  %1124 = vmatmul.mubr.f32.vlgmr.msra.gmra.mrb[0].mxu0 %v11196_v33  ;;  %v797_v63 = vmul.f32 %v11177_v5, %v754_v37  ;;  %v796_v55 = vmul.f32 %v11180_v24, %v753_v38  ;;  %v726_v22 = vadd.f32 1e-05, %v710_v52  ;;  %v711_v23 = vmul.f32 0.00390625, %v685_v31  ;;  %v911_v39 = vld [vmem:[#allocation5 + $0x160] sm:$0xff] }
 0x1e6   : > { %v9992_v15 = vpop.eup %9991  ;;  %8480 = vmatpush1.bf16.msra.mxu0 %v8479_v44  ;;  %v11208_v57 = vadd.f32 %v11184_v26, %v795_v25  ;;  %v11211_v59 = vadd.f32 %v11188_v46, %v794_v6  ;;  %v756_v42 = vmul.f32 %v9990_v47, %v11031_v10  ;;  %v755_v10 = vmul.f32 %v9990_v47, %v11028_v7  ;;  %v905_v6 = vld [vmem:[#allocation5 + $0x130] sm:$0xff]  ;;  %v918_v47 = vld [vmem:[#allocation5 + $0x198] sm:$0xff] }
 0x1e7   : > { %8482 = vmatprep.subr.bf16.mxu0 %v8481_v45  ;;  %v11217_v44 = vadd.f32 %v11184_v26, %v797_v63  ;;  %v758_v45 = vmul.f32 %v9992_v15, %v11045_v29  ;;  %v8487_v37 = vpack.c.bf16 %v899_v19, %v893_v56  ;;  %v8489_v25 = vpack.c.bf16 %v912_v20, %v906_v0  ;;  %v924_v29 = vld [vmem:[#allocation5 + $0x1c8] sm:$0xff]  ;;  %v688_v63 = vpop.xlane.xlu1 %687 }
 0x1e8   : > { %1129 = vmatprep.mubr.f32.mxu0 %v11208_v57  ;;  %v799_v17 = vmul.f32 %v11177_v5, %v756_v42  ;;  %9999 = vrsqrt.f32 %v725_v43  ;;  %v11225_v38 = vadd.f32 %v11188_v46, %v796_v55  ;;  %v798_v7 = vmul.f32 %v11180_v24, %v755_v10  ;;  %v936_v10 = vld [vmem:[#allocation5 + $0x228] sm:$0xff] }
 0x1e9   : > { %v9994_v36 = vpop.eup %9993  ;;  %1130 = vmatmul.mubr.f32.gmra.mrb[2].mxu0 %v11211_v59  ;;  %v757_v4 = vmul.f32 %v9992_v15, %v11042_v9  ;;  %10001 = vrsqrt.f32 %v726_v22  ;;  %v727_v43 = vadd.f32 1e-05, %v711_v23  ;;  %v8491_v31 = vpack.c.bf16 %v911_v39, %v905_v6  ;;  %v917_v15 = vld [vmem:[#allocation5 + $0x190] sm:$0xff] }
 0x1ea   : > { %1135 = vmatprep.mubr.f32.mxu0 %v11217_v44  ;;  %8484 = vmatpush1.bf16.msra.mxu0 %v8483_v48  ;;  %v11230_v52 = vadd.f32 %v11184_v26, %v799_v17  ;;  %v801_v48 = vmul.f32 %v11177_v5, %v758_v45  ;;  %v760_v42 = vmul.f32 %v9994_v36, %v11051_v40  ;;  %v9996_v56 = vpop.eup %9995  ;;  %v712_v55 = vmul.f32 0.00390625, %v688_v63  ;;  %v923_v40 = vld [vmem:[#allocation5 + $0x1c0] sm:$0xff]  ;;  %v930_v17 = vld [vmem:[#allocation5 + $0x1f8] sm:$0xff] }
 0x1eb   : > { %8486 = vmatprep.subr.bf16.mxu0 %v8485_v32  ;;  %v8493_v9 = vpack.c.bf16 %v924_v29, %v918_v47  ;;  %v691_v32 = vpop.xlane.xlu0 %690  ;;  %v11237_v19 = vadd.f32 %v11188_v46, %v798_v7  ;;  %v800_v0 = vmul.f32 %v11180_v24, %v757_v4  ;;  %v759_v20 = vmul.f32 %v9994_v36, %v11048_v35  ;;  %v929_v35 = vld [vmem:[#allocation5 + $0x1f0] sm:$0xff]  ;;  %v694_v39 = vpop.xlane.xlu1 %693  ;;  %v942_v63 = vld [vmem:[#allocation5 + $0x258] sm:$0xff] }
 0x1ec   : > { %v11242_v45 = vadd.f32 %v11184_v26, %v801_v48  ;;  %v803_v22 = vmul.f32 %v11177_v5, %v760_v42  ;;  %v762_v23 = vmul.f32 %v9996_v56, %v11065_v51  ;;  %10003 = vrsqrt.f32 %v727_v43  ;;  %v935_v51 = vld [vmem:[#allocation5 + $0x220] sm:$0xff]  ;;  %v948_v48 = vld [vmem:[#allocation5 + $0x288] sm:$0xff] }
 0x1ed   : > { %1136 = vmatmul.mubr.f32.gmra.mrb[4].mxu0 %v11225_v38  ;;  %v713_v6 = vmul.f32 0.00390625, %v691_v32  ;;  %v8497_v7 = vpack.c.bf16 %v936_v10, %v930_v17  ;;  %v728_v36 = vadd.f32 1e-05, %v712_v55  ;;  %v11249_v4 = vadd.f32 %v11188_v46, %v800_v0  ;;  %v954_v10 = vld [vmem:[#allocation5 + $0x2b8] sm:$0xff] }
 0x1ee   : > { %1141 = vmatprep.mubr.f32.mxu0 %v11230_v52  ;;  %8488 = vmatpush1.bf16.msra.mxu0 %v8487_v37  ;;  %v9998_v37 = vpop.eup %9997  ;;  %v802_v47 = vmul.f32 %v11180_v24, %v759_v20  ;;  %v761_v29 = vmul.f32 %v9996_v56, %v11062_v50  ;;  %v11254_v42 = vadd.f32 %v11184_v26, %v803_v22  ;;  %v714_v32 = vmul.f32 0.00390625, %v694_v39  ;;  %v941_v50 = vld [vmem:[#allocation5 + $0x250] sm:$0xff]  ;;  %v960_v22 = vld [vmem:[#allocation5 + $0x2e8] sm:$0xff] }
 0x1ef   : > { %8490 = vmatprep.subr.bf16.mxu0 %v8489_v25  ;;  %v8495_v25 = vpack.c.bf16 %v923_v40, %v917_v15  ;;  %v805_v43 = vmul.f32 %v11177_v5, %v762_v23  ;;  %v729_v55 = vadd.f32 1e-05, %v713_v6  ;;  %v8501_v0 = vpack.c.bf16 %v948_v48, %v942_v63  ;;  %v697_v56 = vpop.xlane.xlu0 %696  ;;  %v966_v63 = vld [vmem:[#allocation5 + $0x318] sm:$0xff]  ;;  %v972_v48 = vld [vmem:[#allocation5 + $0x348] sm:$0xff] }
 0x1f0   : > { %10005 = vrsqrt.f32 %v728_v36  ;;  %v11261_v40 = vadd.f32 %v11188_v46, %v802_v47  ;;  %v804_v20 = vmul.f32 %v11180_v24, %v761_v29  ;;  %v763_v17 = vmul.f32 %v9998_v37, %v11068_v53  ;;  %v953_v53 = vld [vmem:[#allocation5 + $0x2b0] sm:$0xff]  ;;  %v959_v29 = vld [vmem:[#allocation5 + $0x2e0] sm:$0xff] }
 0x1f1   : > { %1142 = vmatmul.mubr.f32.gmra.mrb[6].mxu0 %v11237_v19  ;;  %v11266_v6 = vadd.f32 %v11184_v26, %v805_v43  ;;  %v730_v36 = vadd.f32 1e-05, %v714_v32  ;;  %v715_v39 = vmul.f32 0.00390625, %v697_v56  ;;  %v8505_v47 = vpack.c.bf16 %v960_v22, %v954_v10  ;;  %v978_v10 = vld [vmem:[#allocation5 + $0x378] sm:$0xff]  ;;  %v984_v22 = vld [vmem:[#allocation5 + $0x3a8] sm:$0xff] }
 0x1f2   : > { %1147 = vmatprep.mubr.f32.mxu0 %v11242_v45  ;;  %8492 = vmatpush1.bf16.msra.mxu0 %v8491_v31  ;;  %v764_v31 = vmul.f32 %v9998_v37, %v11071_v58  ;;  %v10000_v15 = vpop.eup %9999  ;;  %v947_v58 = vld [vmem:[#allocation5 + $0x280] sm:$0xff]  ;;  %10007 = vrsqrt.f32 %v729_v55  ;;  %v11273_v37 = vadd.f32 %v11188_v46, %v804_v20 }
 0x1f3   : > { %8494 = vmatprep.subr.bf16.mxu0 %v8493_v9  ;;  %v8499_v9 = vpack.c.bf16 %v935_v51, %v929_v35  ;;  %v10002_v23 = vpop.eup %10001  ;;  %v766_v35 = vmul.f32 %v10000_v15, %v11085_v2  ;;  %v806_v51 = vmul.f32 %v11180_v24, %v763_v17  ;;  %v765_v2 = vmul.f32 %v10000_v15, %v11082_v1  ;;  %v965_v15 = vld [vmem:[#allocation5 + $0x310] sm:$0xff]  ;;  %v971_v17 = vld [vmem:[#allocation5 + $0x340] sm:$0xff] }
 0x1f4   : > { %v768_v55 = vmul.f32 %v10002_v23, %v11091_v16  ;;  %10009 = vrsqrt.f32 %v730_v36  ;;  %v8509_v1 = vpack.c.bf16 %v972_v48, %v966_v63  ;;  %v767_v16 = vmul.f32 %v10002_v23, %v11088_v11  ;;  %v996_v63 = vld [vmem:[#allocation5 + $0x408] sm:$0xff] }
 0x1f5   : > { %1148 = vmatmul.mubr.f32.gmra.mrb[8].mxu0 %v11249_v4  ;;  %v11285_v20 = vadd.f32 %v11188_v46, %v806_v51 }
 0x1f6   : > { %1153 = vmatprep.mubr.f32.mxu0 %v11254_v42  ;;  %8496 = vmatpush1.bf16.msra.mxu0 %v8495_v25  ;;  %v807_v25 = vmul.f32 %v11177_v5, %v764_v31  ;;  %v10004_v43 = vpop.eup %10003  ;;  %v700_v31 = vpop.xlane.xlu1 %699  ;;  %v810_v51 = vmul.f32 %v11180_v24, %v767_v16  ;;  %v1002_v16 = vld [vmem:[#allocation5 + $0x438] sm:$0xff] }
 0x1f7   : > { %8498 = vmatprep.subr.bf16.mxu0 %v8497_v7  ;;  %v8503_v7 = vpack.c.bf16 %v947_v58, %v941_v50  ;;  %v8507_v50 = vpack.c.bf16 %v959_v29, %v953_v53  ;;  %v716_v56 = vmul.f32 0.00390625, %v700_v31  ;;  %v808_v58 = vmul.f32 %v11180_v24, %v765_v2  ;;  %v977_v53 = vld [vmem:[#allocation5 + $0x370] sm:$0xff]  ;;  %v983_v29 = vld [vmem:[#allocation5 + $0x3a0] sm:$0xff]  ;;  %v990_v2 = vld [vmem:[#allocation5 + $0x3d8] sm:$0xff] }
 0x1f8   : > { %v11278_v32 = vadd.f32 %v11184_v26, %v807_v25  ;;  %v770_v36 = vmul.f32 %v10004_v43, %v11105_v41  ;;  %v769_v41 = vmul.f32 %v10004_v43, %v11102_v34  ;;  %v11309_v34 = vadd.f32 %v11188_v46, %v810_v51 }
 0x1f9   : > { %1154 = vmatmul.mubr.f32.gmra.mrb[10].mxu0 %v11261_v40  ;;  %v732_v11 = vadd.f32 1e-05, %v716_v56  ;;  %v11297_v23 = vadd.f32 %v11188_v46, %v808_v58 }
 0x1fa   : > { %1159 = vmatprep.mubr.f32.mxu0 %v11266_v6  ;;  %8500 = vmatpush1.bf16.msra.mxu0 %v8499_v9  ;;  %v809_v9 = vmul.f32 %v11177_v5, %v766_v35  ;;  %v811_v35 = vmul.f32 %v11177_v5, %v768_v55  ;;  %v813_v31 = vmul.f32 %v11177_v5, %v770_v36 }
 0x1fb   : > { %8502 = vmatprep.subr.bf16.mxu0 %v8501_v0  ;;  %v731_v0 = vadd.f32 1e-05, %v715_v39  ;;  %v10006_v39 = vpop.eup %10005  ;;  %v812_v43 = vmul.f32 %v11180_v24, %v769_v41  ;;  %v1020_v41 = vld [vmem:[#allocation5 + $0x4c8] sm:$0xff] }
 0x1fc   : > { %v11290_v25 = vadd.f32 %v11184_v26, %v809_v9  ;;  %v11302_v48 = vadd.f32 %v11184_v26, %v811_v35  ;;  %v772_v9 = vmul.f32 %v10006_v39, %v11111_v49  ;;  %v10008_v55 = vpop.eup %10007  ;;  %v771_v56 = vmul.f32 %v10006_v39, %v11108_v13 }
 0x1fd   : > { %1160 = vmatmul.mubr.f32.gmra.mrb[12].mxu0 %v11273_v37  ;;  %10011 = vrsqrt.f32 %v731_v0  ;;  %v8515_v0 = vpack.c.bf16 %v983_v29, %v977_v53  ;;  %v11314_v58 = vadd.f32 %v11184_v26, %v813_v31  ;;  %v11321_v36 = vadd.f32 %v11188_v46, %v812_v43  ;;  %v1014_v29 = vld [vmem:[#allocation5 + $0x498] sm:$0xff] }
 0x1fe   : > { %1165 = vmatprep.mubr.f32.mxu0 %v11278_v32  ;;  %8504 = vmatpush1.bf16.msra.mxu0 %v8503_v7  ;;  %v8511_v7 = vpack.c.bf16 %v971_v17, %v965_v15  ;;  %10013 = vrsqrt.f32 %v732_v11  ;;  %v995_v15 = vld [vmem:[#allocation5 + $0x400] sm:$0xff]  ;;  %v10010_v49 = vpop.eup %10009  ;;  %v815_v17 = vmul.f32 %v11177_v5, %v772_v9  ;;  %v814_v13 = vmul.f32 %v11180_v24, %v771_v56 }
 0x1ff   : > { %8506 = vmatprep.subr.bf16.mxu0 %v8505_v47  ;;  %v8513_v47 = vpack.c.bf16 %v984_v22, %v978_v10  ;;  %v1008_v10 = vld [vmem:[#allocation5 + $0x468] sm:$0xff]  ;;  %v774_v22 = vmul.f32 %v10008_v55, %v11125_v18  ;;  %v773_v53 = vmul.f32 %v10008_v55, %v11122_v62  ;;  %v8525_v9 = vpack.c.bf16 %v1020_v41, %v1014_v29  ;;  %v1013_v55 = vld [vmem:[#allocation5 + $0x490] sm:$0xff] }
 0x200   : > { %v8521_v39 = vpack.c.bf16 %v1008_v10, %v1002_v16  ;;  %v11326_v18 = vadd.f32 %v11184_v26, %v815_v17  ;;  %v11333_v31 = vadd.f32 %v11188_v46, %v814_v13  ;;  %v1037_v41 = vld [vmem:[#allocation5 + $0x550] sm:$0xff] }
 0x201   : > { %1166 = vmatmul.mubr.f32.gmra.mrb[14].mxu0 %v11285_v20  ;;  %v817_v51 = vmul.f32 %v11177_v5, %v774_v22  ;;  %v816_v62 = vmul.f32 %v11180_v24, %v773_v53  ;;  %v1025_v22 = vld [vmem:[#allocation5 + $0x4f0] sm:$0xff] }
 0x202   : > { %1171 = vmatprep.mubr.f32.mxu0 %v11290_v25  ;;  %8508 = vmatpush1.bf16.msra.mxu0 %v8507_v50  ;;  %v8517_v50 = vpack.c.bf16 %v996_v63, %v990_v2  ;;  %v776_v2 = vmul.f32 %v10010_v49, %v11131_v3 }
 0x203   : > { %8510 = vmatprep.subr.bf16.mxu0 %v8509_v1  ;;  %v989_v1 = vld [vmem:[#allocation5 + $0x3d0] sm:$0xff]  ;;  %v11338_v43 = vadd.f32 %v11184_v26, %v817_v51  ;;  %v11345_v10 = vadd.f32 %v11188_v46, %v816_v62 }
 0x204   : > { %v8519_v35 = vpack.c.bf16 %v995_v15, %v989_v1  ;;  %v819_v3 = vmul.f32 %v11177_v5, %v776_v2  ;;  %v1026_v1 = vld [vmem:[#allocation5 + $0x4f8] sm:$0xff]  ;;  %v1032_v15 = vld [vmem:[#allocation5 + $0x528] sm:$0xff]  ;;  %v1043_v2 = vld [vmem:[#allocation5 + $0x580] sm:$0xff] }
 0x205   : > { %1172 = vmatmul.mubr.f32.gmra.mrb[16].mxu0 %v11297_v23 }
 0x206   : > { %1177 = vmatprep.mubr.f32.mxu0 %v11302_v48  ;;  %8512 = vmatpush1.bf16.msra.mxu0 %v8511_v7  ;;  %v1001_v7 = vld [vmem:[#allocation5 + $0x430] sm:$0xff] }
 0x207   : > { %8514 = vmatprep.subr.bf16.mxu0 %v8513_v47  ;;  %v1007_v47 = vld [vmem:[#allocation5 + $0x460] sm:$0xff]  ;;  %v10012_v11 = vpop.eup %10011 }
 0x208   : > { %v8523_v63 = vpack.c.bf16 %v1007_v47, %v1001_v7  ;;  %v778_v56 = vmul.f32 %v10012_v11, %v11145_v8  ;;  %v10014_v17 = vpop.eup %10013  ;;  %v777_v13 = vmul.f32 %v10012_v11, %v11142_v28  ;;  %v11350_v8 = vadd.f32 %v11184_v26, %v819_v3  ;;  %v1038_v7 = vld [vmem:[#allocation5 + $0x558] sm:$0xff]  ;;  %v1044_v47 = vld [vmem:[#allocation5 + $0x588] sm:$0xff] }
 0x209   : > { %1178 = vmatmul.mubr.f32.gmra.mrb[18].mxu0 %v11309_v34  ;;  %v780_v53 = vmul.f32 %v10014_v17, %v11151_v14  ;;  %v8533_v11 = vpack.c.bf16 %v1044_v47, %v1038_v7  ;;  %v883_v7 = vld [vmem:[#allocation5 + $0x80] sm:$0xff]  ;;  %v889_v47 = vld [vmem:[#allocation5 + $0xb0] sm:$0xff] }
 0x20a   : > { %1183 = vmatprep.mubr.f32.mxu0 %v11314_v58  ;;  %8516 = vmatpush1.bf16.msra.mxu0 %v8515_v0  ;;  %v1019_v0 = vld [vmem:[#allocation5 + $0x4c0] sm:$0xff]  ;;  %v820_v28 = vmul.f32 %v11180_v24, %v777_v13  ;;  %v890_v13 = vld [vmem:[#allocation5 + $0xb8] sm:$0xff] }
 0x20b   : > { %8518 = vmatprep.subr.bf16.mxu0 %v8517_v50  ;;  %v775_v50 = vmul.f32 %v10010_v49, %v11128_v21  ;;  %v8527_v16 = vpack.c.bf16 %v1019_v0, %v1013_v55  ;;  %v8529_v49 = vpack.c.bf16 %v1032_v15, %v1026_v1  ;;  %v823_v14 = vmul.f32 %v11177_v5, %v780_v53  ;;  %v1056_v55 = vld [vmem:[#allocation5 + $0x5e8] sm:$0xff]  ;;  %v1049_v1 = vld [vmem:[#allocation5 + $0x5b0] sm:$0xff]  ;;  %v1055_v15 = vld [vmem:[#allocation5 + $0x5e0] sm:$0xff] }
 0x20c   : > { %v8535_v0 = vpack.c.bf16 %v1043_v2, %v1037_v41  ;;  %v896_v53 = vld [vmem:[#allocation5 + $0xe8] sm:$0xff]  ;;  %v901_v41 = vld [vmem:[#allocation5 + $0x110] sm:$0xff] }
 0x20d   : > { %1184 = vmatmul.mubr.f32.gmra.mrb[20].mxu0 %v11321_v36  ;;  %v818_v21 = vmul.f32 %v11180_v24, %v775_v50  ;;  %v11368_v50 = vadd.f32 %v11188_v46, %v820_v28  ;;  %v908_v2 = vld [vmem:[#allocation5 + $0x148] sm:$0xff] }
 0x20e   : > { %1189 = vmatprep.mubr.f32.mxu0 %v11326_v18  ;;  %8520 = vmatpush1.bf16.msra.mxu0 %v8519_v35  ;;  %v1031_v35 = vld [vmem:[#allocation5 + $0x520] sm:$0xff] }
 0x20f   : > { %8522 = vmatprep.subr.bf16.mxu0 %v8521_v39  ;;  %v821_v39 = vmul.f32 %v11177_v5, %v778_v56  ;;  %v8531_v51 = vpack.c.bf16 %v1031_v35, %v1025_v22  ;;  %v11357_v29 = vadd.f32 %v11188_v46, %v818_v21  ;;  %v11372_v56 = vadd.f32 %v11184_v26, %v823_v14  ;;  %v872_v5 = vld [vmem:[#allocation5 + $0x28] sm:$0xff]  ;;  %v877_v22 = vld [vmem:[#allocation5 + $0x50] sm:$0xff] }
 0x210   : > { %v884_v35 = vld [vmem:[#allocation5 + $0x88] sm:$0xff] }
 0x211   : > { %1190 = vmatmul.mubr.f32.gmra.mrb[22].mxu0 %v11333_v31  ;;  %v11362_v62 = vadd.f32 %v11184_v26, %v821_v39  ;;  %v8545_v39 = vpack.c.bf16 %v890_v13, %v884_v35  ;;  %v931_v35 = vld [vmem:[#allocation5 + $0x200] sm:$0xff]  ;;  %v937_v13 = vld [vmem:[#allocation5 + $0x230] sm:$0xff] }
 0x212   : > { %1195 = vmatprep.mubr.f32.mxu0 %v11338_v43  ;;  %8524 = vmatpush1.bf16.msra.mxu0 %v8523_v63  ;;  %v779_v63 = vmul.f32 %v10014_v17, %v11148_v12  ;;  %v878_v17 = vld [vmem:[#allocation5 + $0x58] sm:$0xff] }
 0x213   : > { %8526 = vmatprep.subr.bf16.mxu0 %v8525_v9  ;;  %v1050_v9 = vld [vmem:[#allocation5 + $0x5b8] sm:$0xff] }
 0x214   : > { %v822_v3 = vmul.f32 %v11180_v24, %v779_v63  ;;  %v8537_v12 = vpack.c.bf16 %v1056_v55, %v1050_v9  ;;  %v871_v24 = vld [vmem:[#allocation5 + $0x20] sm:$0xff]  ;;  %v914_v63 = vld [vmem:[#allocation5 + $0x178] sm:$0xff] }
 0x215   : > { %1196 = vmatmul.mubr.f32.gmra.mrb[24].mxu0 %v11345_v10  ;;  %v8543_v26 = vpack.c.bf16 %v877_v22, %v871_v24  ;;  %v8553_v9 = vpack.c.bf16 %v914_v63, %v908_v2  ;;  %v907_v55 = vld [vmem:[#allocation5 + $0x140] sm:$0xff]  ;;  %v961_v63 = vld [vmem:[#allocation5 + $0x2f0] sm:$0xff] }
 0x216   : > { %1201 = vmatprep.mubr.f32.mxu0 %v11350_v8  ;;  %8528 = vmatpush1.bf16.msra.mxu0 %v8527_v16  ;;  %v8539_v16 = vpack.c.bf16 %v1055_v15, %v1049_v1  ;;  %v11377_v21 = vadd.f32 %v11188_v46, %v822_v3  ;;  %v8547_v46 = vpack.c.bf16 %v889_v47, %v883_v7  ;;  %v920_v3 = vld [vmem:[#allocation5 + $0x1a8] sm:$0xff]  ;;  %v955_v2 = vld [vmem:[#allocation5 + $0x2c0] sm:$0xff] }
 0x217   : > { %8530 = vmatprep.subr.bf16.mxu0 %v8529_v49  ;;  %v8541_v49 = vpack.c.bf16 %v878_v17, %v872_v5  ;;  %v919_v5 = vld [vmem:[#allocation5 + $0x1a0] sm:$0xff]  ;;  %v925_v17 = vld [vmem:[#allocation5 + $0x1d0] sm:$0xff]  ;;  %v8563_v7 = vpack.c.bf16 %v937_v13, %v931_v35 }
 0x218   : > { %v8559_v24 = vpack.c.bf16 %v925_v17, %v919_v5 }
 0x219   : > { %1202 = vmatmul.mubr.f32.gmra.mrb[26].mxu0 %v11357_v29 }
 0x21a   : > { %1207 = vmatprep.mubr.f32.mxu0 %v11362_v62  ;;  %8532 = vmatpush1.bf16.msra.mxu0 %v8531_v51  ;;  %v902_v51 = vld [vmem:[#allocation5 + $0x118] sm:$0xff] }
 0x21b   : > { %8534 = vmatprep.subr.bf16.mxu0 %v8533_v11  ;;  %v8549_v28 = vpack.c.bf16 %v902_v51, %v896_v53  ;;  %v895_v11 = vld [vmem:[#allocation5 + $0xe0] sm:$0xff]  ;;  %v949_v51 = vld [vmem:[#allocation5 + $0x290] sm:$0xff] }
 0x21c   : > { %v8551_v14 = vpack.c.bf16 %v901_v41, %v895_v11  ;;  %v943_v53 = vld [vmem:[#allocation5 + $0x260] sm:$0xff] }
 0x21d   : > { %1208 = vmatmul.mubr.f32.gmra.mrb[28].mxu0 %v11368_v50  ;;  %v8567_v11 = vpack.c.bf16 %v949_v51, %v943_v53 }
 0x21e   : > { %1213 = vmatprep.mubr.f32.mxu0 %v11372_v56  ;;  %8536 = vmatpush1.bf16.msra.mxu0 %v8535_v0  ;;  %v913_v0 = vld [vmem:[#allocation5 + $0x170] sm:$0xff] }
 0x21f   : > { %8538 = vmatprep.subr.bf16.mxu0 %v8537_v12  ;;  %v926_v12 = vld [vmem:[#allocation5 + $0x1d8] sm:$0xff]  ;;  %v8555_v1 = vpack.c.bf16 %v913_v0, %v907_v55  ;;  %v8571_v55 = vpack.c.bf16 %v961_v63, %v955_v2 }
 0x220   : > { %v8557_v15 = vpack.c.bf16 %v926_v12, %v920_v3  ;;  %v967_v3 = vld [vmem:[#allocation5 + $0x320] sm:$0xff]  ;;  %v973_v12 = vld [vmem:[#allocation5 + $0x350] sm:$0xff] }
 0x221   : > { %1214 = vmatmul.mubr.f32.gmra.mrb[30].mxu0 %v11377_v21  ;;  %v8575_v5 = vpack.c.bf16 %v973_v12, %v967_v3 }
 0x222   : > { %8540 = vmatpush1.bf16.msra.mxu0 %v8539_v16  ;;  %1284 = vmatprep.mubr.f32.mxu0 %v11193_v54  ;;  %v932_v16 = vld [vmem:[#allocation5 + $0x208] sm:$0xff] }
 0x223   : > { %8542 = vmatprep.subr.bf16.mxu0 %v8541_v49  ;;  %v938_v49 = vld [vmem:[#allocation5 + $0x238] sm:$0xff] }
 0x224   : > { %v8561_v22 = vpack.c.bf16 %v938_v49, %v932_v16  ;;  %v979_v16 = vld [vmem:[#allocation5 + $0x380] sm:$0xff]  ;;  %v985_v49 = vld [vmem:[#allocation5 + $0x3b0] sm:$0xff] }
 0x225   : > { %1285 = vmatmul.mubr.f32.vlgmr.msra.gmra.mrb[32].mxu0 %v11196_v33  ;;  %v8579_v35 = vpack.c.bf16 %v985_v49, %v979_v16 }
 0x226   : > { %1290 = vmatprep.mubr.f32.mxu0 %v11208_v57  ;;  %8544 = vmatpush1.bf16.msra.mxu0 %v8543_v26  ;;  %v944_v26 = vld [vmem:[#allocation5 + $0x268] sm:$0xff] }
 0x227   : > { %8546 = vmatprep.subr.bf16.mxu0 %v8545_v39  ;;  %v950_v39 = vld [vmem:[#allocation5 + $0x298] sm:$0xff] }
 0x228   : > { %v8565_v47 = vpack.c.bf16 %v950_v39, %v944_v26  ;;  %v991_v26 = vld [vmem:[#allocation5 + $0x3e0] sm:$0xff]  ;;  %v997_v39 = vld [vmem:[#allocation5 + $0x410] sm:$0xff] }
 0x229   : > { %1291 = vmatmul.mubr.f32.gmra.mrb[34].mxu0 %v11211_v59  ;;  %v8583_v53 = vpack.c.bf16 %v997_v39, %v991_v26 }
 0x22a   : > { %1296 = vmatprep.mubr.f32.mxu0 %v11217_v44  ;;  %8548 = vmatpush1.bf16.msra.mxu0 %v8547_v46  ;;  %v956_v46 = vld [vmem:[#allocation5 + $0x2c8] sm:$0xff] }
 0x22b   : > { %8550 = vmatprep.subr.bf16.mxu0 %v8549_v28  ;;  %v962_v28 = vld [vmem:[#allocation5 + $0x2f8] sm:$0xff] }
 0x22c   : > { %v8569_v41 = vpack.c.bf16 %v962_v28, %v956_v46  ;;  %v1003_v46 = vld [vmem:[#allocation5 + $0x440] sm:$0xff]  ;;  %v1009_v28 = vld [vmem:[#allocation5 + $0x470] sm:$0xff] }
 0x22d   : > { %1297 = vmatmul.mubr.f32.gmra.mrb[36].mxu0 %v11225_v38  ;;  %v8587_v2 = vpack.c.bf16 %v1009_v28, %v1003_v46 }
 0x22e   : > { %1302 = vmatprep.mubr.f32.mxu0 %v11230_v52  ;;  %8552 = vmatpush1.bf16.msra.mxu0 %v8551_v14  ;;  %v968_v14 = vld [vmem:[#allocation5 + $0x328] sm:$0xff] }
 0x22f   : > { %8554 = vmatprep.subr.bf16.mxu0 %v8553_v9  ;;  %v974_v9 = vld [vmem:[#allocation5 + $0x358] sm:$0xff] }
 0x230   : > { %v8573_v0 = vpack.c.bf16 %v974_v9, %v968_v14  ;;  %v1015_v14 = vld [vmem:[#allocation5 + $0x4a0] sm:$0xff]  ;;  %v1021_v9 = vld [vmem:[#allocation5 + $0x4d0] sm:$0xff] }
 0x231   : > { %1303 = vmatmul.mubr.f32.gmra.mrb[38].mxu0 %v11237_v19  ;;  %v8591_v3 = vpack.c.bf16 %v1021_v9, %v1015_v14 }
 0x232   : > { %1308 = vmatprep.mubr.f32.mxu0 %v11242_v45  ;;  %8556 = vmatpush1.bf16.msra.mxu0 %v8555_v1  ;;  %v980_v1 = vld [vmem:[#allocation5 + $0x388] sm:$0xff] }
 0x233   : > { %8558 = vmatprep.subr.bf16.mxu0 %v8557_v15  ;;  %v986_v15 = vld [vmem:[#allocation5 + $0x3b8] sm:$0xff] }
 0x234   : > { %v8577_v17 = vpack.c.bf16 %v986_v15, %v980_v1  ;;  %v1027_v1 = vld [vmem:[#allocation5 + $0x500] sm:$0xff]  ;;  %v1033_v15 = vld [vmem:[#allocation5 + $0x530] sm:$0xff] }
 0x235   : > { %1309 = vmatmul.mubr.f32.gmra.mrb[40].mxu0 %v11249_v4  ;;  %v8595_v16 = vpack.c.bf16 %v1033_v15, %v1027_v1 }
 0x236   : > { %1314 = vmatprep.mubr.f32.mxu0 %v11254_v42  ;;  %8560 = vmatpush1.bf16.msra.mxu0 %v8559_v24  ;;  %v992_v24 = vld [vmem:[#allocation5 + $0x3e8] sm:$0xff] }
 0x237   : > { %8562 = vmatprep.subr.bf16.mxu0 %v8561_v22  ;;  %v998_v22 = vld [vmem:[#allocation5 + $0x418] sm:$0xff] }
 0x238   : > { %v8581_v13 = vpack.c.bf16 %v998_v22, %v992_v24  ;;  %v1039_v24 = vld [vmem:[#allocation5 + $0x560] sm:$0xff]  ;;  %v1045_v22 = vld [vmem:[#allocation5 + $0x590] sm:$0xff] }
 0x239   : > { %1315 = vmatmul.mubr.f32.gmra.mrb[42].mxu0 %v11261_v40  ;;  %v8599_v26 = vpack.c.bf16 %v1045_v22, %v1039_v24 }
 0x23a   : > { %1320 = vmatprep.mubr.f32.mxu0 %v11266_v6  ;;  %8564 = vmatpush1.bf16.msra.mxu0 %v8563_v7  ;;  %v1004_v7 = vld [vmem:[#allocation5 + $0x448] sm:$0xff] }
 0x23b   : > { %8566 = vmatprep.subr.bf16.mxu0 %v8565_v47  ;;  %v1010_v47 = vld [vmem:[#allocation5 + $0x478] sm:$0xff] }
 0x23c   : > { %v8585_v51 = vpack.c.bf16 %v1010_v47, %v1004_v7  ;;  %v1051_v7 = vld [vmem:[#allocation5 + $0x5c0] sm:$0xff]  ;;  %v1057_v47 = vld [vmem:[#allocation5 + $0x5f0] sm:$0xff] }
 0x23d   : > { %1321 = vmatmul.mubr.f32.gmra.mrb[44].mxu0 %v11273_v37 }
 0x23e   : > { %1326 = vmatprep.mubr.f32.mxu0 %v11278_v32  ;;  %8568 = vmatpush1.bf16.msra.mxu0 %v8567_v11  ;;  %v1016_v11 = vld [vmem:[#allocation5 + $0x4a8] sm:$0xff] }
 0x23f   : > { %8570 = vmatprep.subr.bf16.mxu0 %v8569_v41  ;;  %v1022_v41 = vld [vmem:[#allocation5 + $0x4d8] sm:$0xff] }
 0x240   : > { %v8589_v63 = vpack.c.bf16 %v1022_v41, %v1016_v11  ;;  %v14453_v41 = vmov 0 }
 0x241   : > { %1327 = vmatmul.mubr.f32.gmra.mrb[46].mxu0 %v11285_v20  ;;  %v14454_v41 = vsel %vm11514_vm1, 4294967295, %v14453_v41 }
 0x242   : > { %1332 = vmatprep.mubr.f32.mxu0 %v11290_v25  ;;  %8572 = vmatpush1.bf16.msra.mxu0 %v8571_v55  ;;  %v1028_v55 = vld [vmem:[#allocation5 + $0x508] sm:$0xff]  ;;  %14455 = vst [vmem:[#allocation38_spill] sm:$0xff] %v14454_v41 }
 0x243   : > { %8574 = vmatprep.subr.bf16.mxu0 %v8573_v0  ;;  %v1034_v0 = vld [vmem:[#allocation5 + $0x538] sm:$0xff] }
 0x244   : > { %v8593_v12 = vpack.c.bf16 %v1034_v0, %v1028_v55 }
 0x245   : > { %1333 = vmatmul.mubr.f32.gmra.mrb[48].mxu0 %v11297_v23 }
 0x246   : > { %1338 = vmatprep.mubr.f32.mxu0 %v11302_v48  ;;  %8576 = vmatpush1.bf16.msra.mxu0 %v8575_v5  ;;  %v1040_v5 = vld [vmem:[#allocation5 + $0x568] sm:$0xff] }
 0x247   : > { %8578 = vmatprep.subr.bf16.mxu0 %v8577_v17  ;;  %v1046_v17 = vld [vmem:[#allocation5 + $0x598] sm:$0xff] }
 0x248   : > { %v8597_v49 = vpack.c.bf16 %v1046_v17, %v1040_v5 }
 0x249   : > { %1339 = vmatmul.mubr.f32.gmra.mrb[50].mxu0 %v11309_v34 }
 0x24a   : > { %1344 = vmatprep.mubr.f32.mxu0 %v11314_v58  ;;  %8580 = vmatpush1.bf16.msra.mxu0 %v8579_v35  ;;  %v1052_v35 = vld [vmem:[#allocation5 + $0x5c8] sm:$0xff] }
 0x24b   : > { %8582 = vmatprep.subr.bf16.mxu0 %v8581_v13  ;;  %v1058_v13 = vld [vmem:[#allocation5 + $0x5f8] sm:$0xff] }
 0x24c   : > { %v8601_v39 = vpack.c.bf16 %v1058_v13, %v1052_v35 }
 0x24d   : > { %1345 = vmatmul.mubr.f32.gmra.mrb[52].mxu0 %v11321_v36 }
 0x24e   : > { %1350 = vmatprep.mubr.f32.mxu0 %v11326_v18  ;;  %8584 = vmatpush1.bf16.msra.mxu0 %v8583_v53  ;;  %v8603_v53 = vpack.c.bf16 %v1057_v47, %v1051_v7 }
 0x24f   : > { %8586 = vmatprep.subr.bf16.mxu0 %v8585_v51 }
 0x251   : > { %1351 = vmatmul.mubr.f32.gmra.mrb[54].mxu0 %v11333_v31 }
 0x252   : > { %1356 = vmatprep.mubr.f32.mxu0 %v11338_v43  ;;  %8588 = vmatpush1.bf16.msra.mxu0 %v8587_v2 }
 0x253   : > { %8590 = vmatprep.subr.bf16.mxu0 %v8589_v63 }
 0x255   : > { %1357 = vmatmul.mubr.f32.gmra.mrb[56].mxu0 %v11345_v10 }
 0x256   : > { %1362 = vmatprep.mubr.f32.mxu0 %v11350_v8  ;;  %8592 = vmatpush1.bf16.msra.mxu0 %v8591_v3 }
 0x257   : > { %8594 = vmatprep.subr.bf16.mxu0 %v8593_v12 }
 0x259   : > { %1363 = vmatmul.mubr.f32.gmra.mrb[58].mxu0 %v11357_v29 }
 0x25a   : > { %1368 = vmatprep.mubr.f32.mxu0 %v11362_v62  ;;  %8596 = vmatpush1.bf16.msra.mxu0 %v8595_v16 }
 0x25b   : > { %8598 = vmatprep.subr.bf16.mxu0 %v8597_v49 }
 0x25d   : > { %1369 = vmatmul.mubr.f32.gmra.mrb[60].mxu0 %v11368_v50 }
 0x25e   : > { %1374 = vmatprep.mubr.f32.mxu0 %v11372_v56  ;;  %8600 = vmatpush1.bf16.msra.mxu0 %v8599_v26 }
 0x25f   : > { %8602 = vmatprep.subr.bf16.mxu0 %v8601_v39 }
 0x261   : > { %1375 = vmatmul.mubr.f32.gmra.mrb[62].mxu0 %v11377_v21 }
 0x262   : > { %8604 = vmatpush1.bf16.msra.mxu0 %v8603_v53  ;;  %1445 = vmatprep.mubr.f32.mxu0 %v11193_v54 }
 0x265   : > { %1446 = vmatmul.mubr.f32.vlgmr.msra.gmra.mrb[64].mxu0 %v11196_v33 }
 0x266   : > { %1451 = vmatprep.mubr.f32.mxu0 %v11208_v57 }
 0x269   : > { %1452 = vmatmul.mubr.f32.gmra.mrb[66].mxu0 %v11211_v59 }
 0x26a   : > { %1457 = vmatprep.mubr.f32.mxu0 %v11217_v44 }
 0x26d   : > { %1458 = vmatmul.mubr.f32.gmra.mrb[68].mxu0 %v11225_v38 }
 0x26e   : > { %1463 = vmatprep.mubr.f32.mxu0 %v11230_v52 }
 0x271   : > { %1464 = vmatmul.mubr.f32.gmra.mrb[70].mxu0 %v11237_v19 }
 0x272   : > { %1469 = vmatprep.mubr.f32.mxu0 %v11242_v45 }
 0x275   : > { %1470 = vmatmul.mubr.f32.gmra.mrb[72].mxu0 %v11249_v4 }
 0x276   : > { %1475 = vmatprep.mubr.f32.mxu0 %v11254_v42 }
 0x279   : > { %1476 = vmatmul.mubr.f32.gmra.mrb[74].mxu0 %v11261_v40 }
 0x27a   : > { %1481 = vmatprep.mubr.f32.mxu0 %v11266_v6 }
 0x27d   : > { %1482 = vmatmul.mubr.f32.gmra.mrb[76].mxu0 %v11273_v37 }
 0x27e   : > { %1487 = vmatprep.mubr.f32.mxu0 %v11278_v32 }
 0x281   : > { %1488 = vmatmul.mubr.f32.gmra.mrb[78].mxu0 %v11285_v20 }
 0x282   : > { %1493 = vmatprep.mubr.f32.mxu0 %v11290_v25 }
 0x285   : > { %1494 = vmatmul.mubr.f32.gmra.mrb[80].mxu0 %v11297_v23 }
 0x286   : > { %1499 = vmatprep.mubr.f32.mxu0 %v11302_v48 }
 0x289   : > { %1500 = vmatmul.mubr.f32.gmra.mrb[82].mxu0 %v11309_v34 }
 0x28a   : > { %1505 = vmatprep.mubr.f32.mxu0 %v11314_v58 }
 0x28d   : > { %1506 = vmatmul.mubr.f32.gmra.mrb[84].mxu0 %v11321_v36 }
 0x28e   : > { %1511 = vmatprep.mubr.f32.mxu0 %v11326_v18 }
 0x291   : > { %1512 = vmatmul.mubr.f32.gmra.mrb[86].mxu0 %v11333_v31 }
 0x292   : > { %1517 = vmatprep.mubr.f32.mxu0 %v11338_v43 }
 0x295   : > { %1518 = vmatmul.mubr.f32.gmra.mrb[88].mxu0 %v11345_v10 }
 0x296   : > { %1523 = vmatprep.mubr.f32.mxu0 %v11350_v8 }
 0x299   : > { %1524 = vmatmul.mubr.f32.gmra.mrb[90].mxu0 %v11357_v29 }
 0x29a   : > { %1529 = vmatprep.mubr.f32.mxu0 %v11362_v62 }
 0x29d   : > { %1530 = vmatmul.mubr.f32.gmra.mrb[92].mxu0 %v11368_v50 }
 0x29e   : > { %1535 = vmatprep.mubr.f32.mxu0 %v11372_v56 }
 0x2a1   : > { %1536 = vmatmul.mubr.f32.gmra.mrb[94].mxu0 %v11377_v21 }
 0x2b8   : > { %v1125_v54 = vpop.f32.mrb[0].mxu0 }
 0x2b9   : > { %v11444_v33 = vmul.f32 0.0625, %v1125_v54  ;;  %v11446_v57 = vpop.f32.mrb[1].mxu0 }
 0x2ba   : > { %14436 = vst [vmem:[#allocation21_spill] sm:$0xff] %v11446_v57  ;;  %v14507_v57 = vmov -1e+30  }
 0x2bb   : > { %7997 = vmatprep.mubr.msk.f32.mxu1 %vm1689_vm0, %v11444_v33 }
 0x2bc   : > { %v11450_v59 = vpop.f32.mrb[2].mxu0 }
 0x2bd   : > { %v11452_v44 = vpop.f32.mrb[3].mxu0 }
 0x2be   : > { %14437 = vst [vmem:[#allocation22_spill] sm:$0xff] %v11452_v44 }
 0x2c0   : > { %v11454_v38 = vpop.f32.mrb[4].mxu0 }
 0x2c1   : > { %v11456_v52 = vpop.f32.mrb[5].mxu0 }
 0x2c2   : > { %14438 = vst [vmem:[#allocation23_spill] sm:$0xff] %v11456_v52 }
 0x2c4   : > { %v11458_v19 = vpop.f32.mrb[6].mxu0 }
 0x2c5   : > { %v11460_v45 = vpop.f32.mrb[7].mxu0 }
 0x2c6   : > { %14439 = vst [vmem:[#allocation24_spill] sm:$0xff] %v11460_v45 }
 0x2c8   : > { %v11462_v4 = vpop.f32.mrb[8].mxu0 }
 0x2c9   : > { %v11464_v42 = vpop.f32.mrb[9].mxu0 }
 0x2ca   : > { %14440 = vst [vmem:[#allocation25_spill] sm:$0xff] %v11464_v42 }
 0x2cc   : > { %v11466_v40 = vpop.f32.mrb[10].mxu0 }
 0x2cd   : > { %v11468_v6 = vpop.f32.mrb[11].mxu0 }
 0x2ce   : > { %14441 = vst [vmem:[#allocation26_spill] sm:$0xff] %v11468_v6 }
 0x2d0   : > { %v11470_v37 = vpop.f32.mrb[12].mxu0 }
 0x2d1   : > { %v11472_v32 = vpop.f32.mrb[13].mxu0 }
 0x2d2   : > { %14442 = vst [vmem:[#allocation27_spill] sm:$0xff] %v11472_v32 }
 0x2d4   : > { %v11474_v20 = vpop.f32.mrb[14].mxu0 }
 0x2d5   : > { %v11476_v25 = vpop.f32.mrb[15].mxu0 }
 0x2d6   : > { %14443 = vst [vmem:[#allocation28_spill] sm:$0xff] %v11476_v25 }
 0x2d8   : > { %v11478_v23 = vpop.f32.mrb[16].mxu0 }
 0x2d9   : > { %v11480_v48 = vpop.f32.mrb[17].mxu0 }
 0x2da   : > { %14444 = vst [vmem:[#allocation29_spill] sm:$0xff] %v11480_v48 }
 0x2dc   : > { %v11482_v34 = vpop.f32.mrb[18].mxu0 }
 0x2dd   : > { %v11484_v58 = vpop.f32.mrb[19].mxu0 }
 0x2de   : > { %14445 = vst [vmem:[#allocation30_spill] sm:$0xff] %v11484_v58 }
 0x2e0   : > { %v11486_v36 = vpop.f32.mrb[20].mxu0 }
 0x2e1   : > { %v11488_v18 = vpop.f32.mrb[21].mxu0 }
 0x2e2   : > { %14446 = vst [vmem:[#allocation31_spill] sm:$0xff] %v11488_v18 }
 0x2e4   : > { %v11490_v31 = vpop.f32.mrb[22].mxu0 }
 0x2e5   : > { %v11492_v43 = vpop.f32.mrb[23].mxu0 }
 0x2e6   : > { %14447 = vst [vmem:[#allocation32_spill] sm:$0xff] %v11492_v43 }
 0x2e8   : > { %v11494_v10 = vpop.f32.mrb[24].mxu0 }
 0x2e9   : > { %v11496_v8 = vpop.f32.mrb[25].mxu0 }
 0x2ea   : > { %14448 = vst [vmem:[#allocation33_spill] sm:$0xff] %v11496_v8 }
 0x2ec   : > { %v11498_v29 = vpop.f32.mrb[26].mxu0 }
 0x2ed   : > { %v11500_v62 = vpop.f32.mrb[27].mxu0 }
 0x2ee   : > { %14449 = vst [vmem:[#allocation34_spill] sm:$0xff] %v11500_v62 }
 0x2f0   : > { %v11502_v50 = vpop.f32.mrb[28].mxu0 }
 0x2f1   : > { %v11504_v56 = vpop.f32.mrb[29].mxu0 }
 0x2f2   : > { %14450 = vst [vmem:[#allocation35_spill] sm:$0xff] %v11504_v56 }
 0x2f4   : > { %v11506_v21 = vpop.f32.mrb[30].mxu0 }
 0x2f5   : > { %v11508_v51 = vpop.f32.mrb[31].mxu0 }
 0x2f6   : > { %14451 = vst [vmem:[#allocation36_spill] sm:$0xff] %v11508_v51 }
 0x2f8   : > { %v1286_v46 = vpop.f32.mrb[32].mxu0 }
 0x2f9   : > { %v11510_v28 = vpop.f32.mrb[33].mxu0 }
 0x2fa   : > { %14452 = vst [vmem:[#allocation37_spill] sm:$0xff] %v11510_v28 }
 0x2fc   : > { %v1292_v11 = vpop.f32.mrb[34].mxu0 }
 0x2fd   : > { %v9823_v2 = vpack.i.bf16 %v1292_v11, %v1286_v46  ;;  %v11518_v63 = vpop.f32.mrb[35].mxu0  ;;  %v8605_v14 = vpack.c.bf16 %v1292_v11, %v1286_v46 }
 0x2fe   : > { %14456 = vst [vmem:[#allocation39_spill] sm:$0xff] %v11518_v63  ;;  %v11524_v55 = vpack.c.bf16 %v11518_v63, %v11510_v28 }
 0x2ff   : > { %9824 = vrot.lane.b32.xlu0 %v9823_v2, %s10565_s16  ;;  %8607 = vmatprep.subr.msk.bf16.mxu1 %vm11514_vm1, %v8605_v14 }
 0x300   : > { %14457 = vst [vmem:[#allocation40_spill] sm:$0xff] %v11524_v55  ;;  %v1298_v0 = vpop.f32.mrb[36].mxu0  ;;  %8610 = vmatpush3.bf16.xpose.msk.msra.mxu1 %vm11514_vm1, %v8605_v14 }
 0x301   : > { %v11531_v3 = vpop.f32.mrb[37].mxu0 }
 0x302   : > { %14458 = vst [vmem:[#allocation41_spill] sm:$0xff] %v11531_v3 }
 0x304   : > { %v1304_v12 = vpop.f32.mrb[38].mxu0 }
 0x305   : > { %v9828_v1 = vpack.i.bf16 %v1304_v12, %v1298_v0  ;;  %v8611_v15 = vpack.c.bf16 %v1304_v12, %v1298_v0  ;;  %v11533_v5 = vpop.f32.mrb[39].mxu0 }
 0x306   : > { %14459 = vst [vmem:[#allocation42_spill] sm:$0xff] %v11533_v5  ;;  %v11539_v16 = vpack.c.bf16 %v11533_v5, %v11531_v3 }
 0x307   : > { %9829 = vrot.lane.b32.xlu1 %v9828_v1, %s10565_s16  ;;  %8613 = vmatprep.subr.msk.bf16.mxu1 %vm11514_vm1, %v8611_v15 }
 0x308   : > { %14460 = vst [vmem:[#allocation43_spill] sm:$0xff] %v11539_v16  ;;  %v1310_v49 = vpop.f32.mrb[40].mxu0  ;;  %8616 = vmatpush3.bf16.xpose.msk.msra.mxu1 %vm11514_vm1, %v8611_v15 }
 0x309   : > { %v11546_v24 = vpop.f32.mrb[41].mxu0 }
 0x30a   : > { %14461 = vst [vmem:[#allocation44_spill] sm:$0xff] %v11546_v24 }
 0x30c   : > { %v1316_v22 = vpop.f32.mrb[42].mxu0 }
 0x30d   : > { %v9833_v35 = vpack.i.bf16 %v1316_v22, %v1310_v49  ;;  %v8617_v13 = vpack.c.bf16 %v1316_v22, %v1310_v49  ;;  %v11548_v26 = vpop.f32.mrb[43].mxu0 }
 0x30e   : > { %14462 = vst [vmem:[#allocation45_spill] sm:$0xff] %v11548_v26  ;;  %v11554_v7 = vpack.c.bf16 %v11548_v26, %v11546_v24 }
 0x30f   : > { %9834 = vrot.lane.b32.xlu1 %v9833_v35, %s10565_s16  ;;  %8619 = vmatprep.subr.msk.bf16.mxu1 %vm11514_vm1, %v8617_v13 }
 0x310   : > { %14463 = vst [vmem:[#allocation46_spill] sm:$0xff] %v11554_v7  ;;  %v1322_v47 = vpop.f32.mrb[44].mxu0  ;;  %8622 = vmatpush3.bf16.xpose.msk.msra.mxu1 %vm11514_vm1, %v8617_v13 }
 0x311   : > { %v11561_v53 = vpop.f32.mrb[45].mxu0 }
 0x312   : > { %14464 = vst [vmem:[#allocation47_spill] sm:$0xff] %v11561_v53 }
 0x314   : > { %v1328_v54 = vpop.f32.mrb[46].mxu0 }
 0x315   : > { %v9838_v46 = vpack.i.bf16 %v1328_v54, %v1322_v47  ;;  %v8623_v11 = vpack.c.bf16 %v1328_v54, %v1322_v47  ;;  %v11563_v2 = vpop.f32.mrb[47].mxu0 }
 0x316   : > { %14465 = vst [vmem:[#allocation48_spill] sm:$0xff] %v11563_v2  ;;  %v11569_v0 = vpack.c.bf16 %v11563_v2, %v11561_v53 }
 0x317   : > { %9839 = vrot.lane.b32.xlu1 %v9838_v46, %s10565_s16  ;;  %8625 = vmatprep.subr.msk.bf16.mxu1 %vm11514_vm1, %v8623_v11 }
 0x318   : > { %14466 = vst [vmem:[#allocation49_spill] sm:$0xff] %v11569_v0  ;;  %v1334_v12 = vpop.f32.mrb[48].mxu0  ;;  %8628 = vmatpush3.bf16.xpose.msk.msra.mxu1 %vm11514_vm1, %v8623_v11 }
 0x319   : > { %v11576_v1 = vpop.f32.mrb[49].mxu0 }
 0x31a   : > { %14467 = vst [vmem:[#allocation50_spill] sm:$0xff] %v11576_v1 }
 0x31c   : > { %v1340_v15 = vpop.f32.mrb[50].mxu0 }
 0x31d   : > { %v9843_v49 = vpack.i.bf16 %v1340_v15, %v1334_v12  ;;  %v8629_v22 = vpack.c.bf16 %v1340_v15, %v1334_v12  ;;  %v11578_v35 = vpop.f32.mrb[51].mxu0 }
 0x31e   : > { %14468 = vst [vmem:[#allocation51_spill] sm:$0xff] %v11578_v35  ;;  %v11584_v47 = vpack.c.bf16 %v11578_v35, %v11576_v1 }
 0x31f   : > { %9844 = vrot.lane.b32.xlu0 %v9843_v49, %s10565_s16  ;;  %8631 = vmatprep.subr.msk.bf16.mxu1 %vm11514_vm1, %v8629_v22 }
 0x320   : > { %14469 = vst [vmem:[#allocation52_spill] sm:$0xff] %v11584_v47  ;;  %v1346_v54 = vpop.f32.mrb[52].mxu0  ;;  %8634 = vmatpush3.bf16.xpose.msk.msra.mxu1 %vm11514_vm1, %v8629_v22 }
 0x321   : > { %v11591_v46 = vpop.f32.mrb[53].mxu0 }
 0x322   : > { %14470 = vst [vmem:[#allocation53_spill] sm:$0xff] %v11591_v46 }
 0x324   : > { %v1352_v11 = vpop.f32.mrb[54].mxu0 }
 0x325   : > { %v9848_v12 = vpack.i.bf16 %v1352_v11, %v1346_v54  ;;  %v8635_v15 = vpack.c.bf16 %v1352_v11, %v1346_v54  ;;  %v11593_v39 = vpop.f32.mrb[55].mxu0 }
 0x326   : > { %14471 = vst [vmem:[#allocation54_spill] sm:$0xff] %v11593_v39  ;;  %v11599_v49 = vpack.c.bf16 %v11593_v39, %v11591_v46 }
 0x327   : > { %9849 = vrot.lane.b32.xlu1 %v9848_v12, %s10565_s16  ;;  %8637 = vmatprep.subr.msk.bf16.mxu1 %vm11514_vm1, %v8635_v15 }
 0x328   : > { %14472 = vst [vmem:[#allocation55_spill] sm:$0xff] %v11599_v49  ;;  %v1358_v22 = vpop.f32.mrb[56].mxu0  ;;  %8640 = vmatpush3.bf16.xpose.msk.msra.mxu1 %vm11514_vm1, %v8635_v15 }
 0x329   : > { %v11606_v17 = vpop.f32.mrb[57].mxu0 }
 0x32a   : > { %14473 = vst [vmem:[#allocation56_spill] sm:$0xff] %v11606_v17 }
 0x32c   : > { %v1364_v54 = vpop.f32.mrb[58].mxu0 }
 0x32d   : > { %v9853_v11 = vpack.i.bf16 %v1364_v54, %v1358_v22  ;;  %v8641_v14 = vpack.c.bf16 %v1364_v54, %v1358_v22  ;;  %v11608_v9 = vpop.f32.mrb[59].mxu0  ;;  %v1546_v54 = vmul.f32 0.0625, %v11454_v38  ;;  %v1544_v38 = vmul.f32 0.0625, %v11450_v59 }
 0x32e   : > { %14474 = vst [vmem:[#allocation57_spill] sm:$0xff] %v11608_v9  ;;  %v11614_v12 = vpack.c.bf16 %v11608_v9, %v11606_v17  ;;  %v1558_v59 = vmul.f32 0.0625, %v11478_v23 }
 0x32f   : > { %9854 = vrot.lane.b32.xlu0 %v9853_v11, %s10565_s16  ;;  %8643 = vmatprep.subr.msk.bf16.mxu1 %vm11514_vm1, %v8641_v14  ;;  %v1554_v11 = vmul.f32 0.0625, %v11470_v37  ;;  %v1552_v37 = vmul.f32 0.0625, %v11466_v40 }
 0x330   : > { %14475 = vst [vmem:[#allocation58_spill] sm:$0xff] %v11614_v12  ;;  %v1370_v15 = vpop.f32.mrb[60].mxu0  ;;  %8646 = vmatpush3.bf16.xpose.msk.msra.mxu1 %vm11514_vm1, %v8641_v14  ;;  %v1550_v14 = vmul.f32 0.0625, %v11462_v4 }
 0x331   : > { %v11621_v27 = vpop.f32.mrb[61].mxu0 }
 0x332   : > { %14476 = vst [vmem:[#allocation59_spill] sm:$0xff] %v11621_v27 }
 0x333   : > { %2220 = vrot.lane.b32.xlu0 %v11444_v33, %s10565_s16 }
 0x334   : > { %v1376_v22 = vpop.f32.mrb[62].mxu0 }
 0x335   : > { %v9858_v13 = vpack.i.bf16 %v1376_v22, %v1370_v15  ;;  %v8647_v60 = vpack.c.bf16 %v1376_v22, %v1370_v15  ;;  %v11626_v61 = vpop.f32.mrb[63].mxu0 }
 0x336   : > { %14477 = vst [vmem:[#allocation60_spill] sm:$0xff] %v11626_v61  ;;  %v11632_v17 = vpack.c.bf16 %v11626_v61, %v11621_v27 }
 0x337   : > { %2224 = vrot.lane.b32.xlu0 %v1546_v54, %s10565_s16  ;;  %9859 = vrot.lane.b32.xlu1 %v9858_v13, %s10565_s16  ;;  %v1548_v13 = vmul.f32 0.0625, %v11458_v19 }
 0x338   : > { %14478 = vst [vmem:[#allocation61_spill] sm:$0xff] %v11632_v17  ;;  %8649 = vmatprep.subr.msk.bf16.mxu1 %vm11514_vm1, %v8647_v60  ;;  %v11638_v33 = vpop.f32.mrb[64].mxu0 }
 0x339   : > { %8652 = vmatpush3.bf16.xpose.msk.msra.mxu1 %vm11514_vm1, %v8647_v60  ;;  %v11644_v15 = vpop.f32.mrb[65].mxu0 }
 0x33a   : > { %14479 = vst [vmem:[#allocation62_spill] sm:$0xff] %v11644_v15 }
 0x33b   : > { %2228 = vrot.lane.b32.xlu0 %v1550_v14, %s10565_s16  ;;  %2222 = vrot.lane.b32.xlu1 %v1544_v38, %s10565_s16 }
 0x33c   : > { %v11648_v22 = vpop.f32.mrb[66].mxu0 }
 0x33d   : > { %v8653_v4 = vpack.c.bf16 %v11648_v22, %v11638_v33  ;;  %v11656_v27 = vpop.f32.mrb[67].mxu0 }
 0x33e   : > { %14480 = vst [vmem:[#allocation63_spill] sm:$0xff] %v11656_v27  ;;  %v11662_v61 = vpack.c.bf16 %v11656_v27, %v11644_v15  ;;  %v1562_v27 = vmul.f32 0.0625, %v11486_v36  ;;  %v1560_v36 = vmul.f32 0.0625, %v11482_v34 }
 0x33f   : > { %2232 = vrot.lane.b32.xlu0 %v1554_v11, %s10565_s16  ;;  %2226 = vrot.lane.b32.xlu1 %v1548_v13, %s10565_s16 }
 0x340   : > { %14481 = vst [vmem:[#allocation64_spill] sm:$0xff] %v11662_v61  ;;  %7998 = vmatmul.mubr.msk.f32.vlgmr.msra.gmra.mrb[0].mxu1 %vm1689_vm0, %v1544_v38  ;;  %8654 = vmatprep.subr.bf16.mxu1 %v8653_v4  ;;  %v1459_v19 = vpop.f32.mrb[68].mxu0  ;;  %v1556_v38 = vmul.f32 0.0625, %v11474_v20 }
 0x341   : > { %8000 = vmatprep.mubr.msk.f32.mxu1 %vm1689_vm0, %v1546_v54  ;;  %8656 = vmatpush3.bf16.msra.mxu1 %v8653_v4  ;;  %v11670_v60 = vpop.f32.mrb[69].mxu0 }
 0x342   : > { %14482 = vst [vmem:[#allocation65_spill] sm:$0xff] %v11670_v60 }
 0x343   : > { %2236 = vrot.lane.b32.xlu0 %v1558_v59, %s10565_s16  ;;  %2230 = vrot.lane.b32.xlu1 %v1552_v37, %s10565_s16 }
 0x344   : > { %8001 = vmatmul.mubr.msk.f32.gmra.mrb[2].mxu1 %vm1689_vm0, %v1548_v13  ;;  %v1465_v15 = vpop.f32.mrb[70].mxu0 }
 0x345   : > { %v9868_v9 = vpack.i.bf16 %v1465_v15, %v1459_v19  ;;  %v8657_v40 = vpack.c.bf16 %v1465_v15, %v1459_v19  ;;  %8003 = vmatprep.mubr.msk.f32.mxu1 %vm1689_vm0, %v1550_v14  ;;  %v11678_v23 = vpop.f32.mrb[71].mxu0  ;;  %v1566_v14 = vmul.f32 0.0625, %v11494_v10  ;;  %v1564_v19 = vmul.f32 0.0625, %v11490_v31 }
 0x346   : > { %14483 = vst [vmem:[#allocation66_spill] sm:$0xff] %v11678_v23  ;;  %v11684_v4 = vpack.c.bf16 %v11678_v23, %v11670_v60 }
 0x347   : > { %2240 = vrot.lane.b32.xlu0 %v1562_v27, %s10565_s16  ;;  %2234 = vrot.lane.b32.xlu1 %v1556_v38, %s10565_s16 }
 0x348   : > { %14484 = vst [vmem:[#allocation67_spill] sm:$0xff] %v11684_v4  ;;  %8004 = vmatmul.mubr.msk.f32.gmra.mrb[4].mxu1 %vm1689_vm0, %v1552_v37  ;;  %8658 = vmatprep.subr.bf16.mxu1 %v8657_v40  ;;  %v11689_v20 = vpop.f32.mrb[72].mxu0  ;;  %v1570_v37 = vmul.f32 0.0625, %v11502_v50  ;;  %v1568_v50 = vmul.f32 0.0625, %v11498_v29 }
 0x349   : > { %8006 = vmatprep.mubr.msk.f32.mxu1 %vm1689_vm0, %v1554_v11  ;;  %8660 = vmatpush3.bf16.msra.mxu1 %v8657_v40  ;;  %v11694_v15 = vpop.f32.mrb[73].mxu0 }
 0x34a   : > { %14485 = vst [vmem:[#allocation68_spill] sm:$0xff] %v11694_v15 }
 0x34b   : > { %2244 = vrot.lane.b32.xlu0 %v1566_v14, %s10565_s16  ;;  %2238 = vrot.lane.b32.xlu1 %v1560_v36, %s10565_s16 }
 0x34c   : > { %8007 = vmatmul.mubr.msk.f32.gmra.mrb[6].mxu1 %vm1689_vm0, %v1556_v38  ;;  %v11699_v13 = vpop.f32.mrb[74].mxu0 }
 0x34d   : > { %v8661_v10 = vpack.c.bf16 %v11699_v13, %v11689_v20  ;;  %8009 = vmatprep.mubr.msk.f32.mxu1 %vm1689_vm0, %v1558_v59  ;;  %v11708_v11 = vpop.f32.mrb[75].mxu0 }
 0x34e   : > { %14486 = vst [vmem:[#allocation69_spill] sm:$0xff] %v11708_v11  ;;  %v11714_v38 = vpack.c.bf16 %v11708_v11, %v11694_v15 }
 0x34f   : > { %2248 = vrot.lane.b32.xlu0 %v1570_v37, %s10565_s16  ;;  %2242 = vrot.lane.b32.xlu1 %v1564_v19, %s10565_s16 }
 0x350   : > { %14487 = vst [vmem:[#allocation70_spill] sm:$0xff] %v11714_v38  ;;  %8010 = vmatmul.mubr.msk.f32.gmra.mrb[8].mxu1 %vm1689_vm0, %v1560_v36  ;;  %8662 = vmatprep.subr.bf16.mxu1 %v8661_v10  ;;  %v11719_v31 = vpop.f32.mrb[76].mxu0  ;;  %v1572_v36 = vmul.f32 0.0625, %v11506_v21 }
 0x351   : > { %8012 = vmatprep.mubr.msk.f32.mxu1 %vm1689_vm0, %v1562_v27  ;;  %8664 = vmatpush3.bf16.msra.mxu1 %v8661_v10  ;;  %v11723_v59 = vpop.f32.mrb[77].mxu0 }
 0x352   : > { %14488 = vst [vmem:[#allocation71_spill] sm:$0xff] %v11723_v59 }
 0x353   : > { %2246 = vrot.lane.b32.xlu1 %v1568_v50, %s10565_s16  ;;  %9869 = vrot.lane.b32.xlu0 %v9868_v9, %s10565_s16 }
 0x354   : > { %8013 = vmatmul.mubr.msk.f32.gmra.mrb[10].mxu1 %vm1689_vm0, %v1564_v19  ;;  %v11728_v40 = vpop.f32.mrb[78].mxu0  ;;  %v14492_v19 = vpack.i.bf16 %v11648_v22, %v11638_v33 }
 0x355   : > { %v8665_v29 = vpack.c.bf16 %v11728_v40, %v11719_v31  ;;  %8015 = vmatprep.mubr.msk.f32.mxu1 %vm1689_vm0, %v1566_v14  ;;  %v11736_v27 = vpop.f32.mrb[79].mxu0 }
 0x356   : > { %14489 = vst [vmem:[#allocation72_spill] sm:$0xff] %v11736_v27  ;;  %v11742_v9 = vpack.c.bf16 %v11736_v27, %v11723_v59 }
 0x357   : > { %2250 = vrot.lane.b32.xlu1 %v1572_v36, %s10565_s16  ;;  %8666 = vmatprep.subr.bf16.mxu1 %v8665_v29 }
 0x358   : > { %14490 = vst [vmem:[#allocation73_spill] sm:$0xff] %v11742_v9  ;;  %8016 = vmatmul.mubr.msk.f32.gmra.mrb[12].mxu1 %vm1689_vm0, %v1568_v50  ;;  %v11746_v21 = vpop.f32.mrb[80].mxu0 }
 0x359   : > { %8018 = vmatprep.mubr.msk.f32.mxu1 %vm1689_vm0, %v1570_v37  ;;  %8668 = vmatpush3.bf16.msra.mxu1 %v8665_v29  ;;  %v11749_v14 = vpop.f32.mrb[81].mxu0 }
 0x35a   : > { %14491 = vst [vmem:[#allocation74_spill] sm:$0xff] %v11749_v14 }
 0x35b   : > { %9864 = vrot.lane.b32.xlu1 %v14492_v19, %s10565_s16 }
 0x35c   : > { %8019 = vmatmul.mubr.msk.f32.gmra.mrb[14].mxu1 %vm1689_vm0, %v1572_v36  ;;  %v11756_v10 = vpop.f32.mrb[82].mxu0 }
 0x35d   : > { %v8669_v50 = vpack.c.bf16 %v11756_v10, %v11746_v21  ;;  %v11762_v54 = vpop.f32.mrb[83].mxu0 }
 0x35e   : > { %14493 = vst [vmem:[#allocation75_spill] sm:$0xff] %v11762_v54  ;;  %v11768_v29 = vpack.c.bf16 %v11762_v54, %v11749_v14 }
 0x35f   : > { %8670 = vmatprep.subr.bf16.mxu1 %v8669_v50 }
 0x360   : > { %14494 = vst [vmem:[#allocation76_spill] sm:$0xff] %v11768_v29  ;;  %v11770_v33 = vpop.f32.mrb[84].mxu0  ;;  %8672 = vmatpush3.bf16.msra.mxu1 %v8669_v50 }
 0x361   : > { %v11772_v22 = vpop.f32.mrb[85].mxu0 }
 0x362   : > { %14495 = vst [vmem:[#allocation77_spill] sm:$0xff] %v11772_v22 }
 0x364   : > { %v11774_v36 = vpop.f32.mrb[86].mxu0 }
 0x365   : > { %v8673_v34 = vpack.c.bf16 %v11774_v36, %v11770_v33  ;;  %v11780_v59 = vpop.f32.mrb[87].mxu0 }
 0x366   : > { %14496 = vst [vmem:[#allocation78_spill] sm:$0xff] %v11780_v59  ;;  %v11786_v14 = vpack.c.bf16 %v11780_v59, %v11772_v22 }
 0x367   : > { %8674 = vmatprep.subr.bf16.mxu1 %v8673_v34 }
 0x368   : > { %14497 = vst [vmem:[#allocation79_spill] sm:$0xff] %v11786_v14  ;;  %v11788_v50 = vpop.f32.mrb[88].mxu0  ;;  %8676 = vmatpush3.bf16.msra.mxu1 %v8673_v34 }
 0x369   : > { %v11790_v54 = vpop.f32.mrb[89].mxu0 }
 0x36a   : > { %14498 = vst [vmem:[#allocation80_spill] sm:$0xff] %v11790_v54 }
 0x36c   : > { %v11792_v27 = vpop.f32.mrb[90].mxu0 }
 0x36d   : > { %v8677_v15 = vpack.c.bf16 %v11792_v27, %v11788_v50  ;;  %v11798_v11 = vpop.f32.mrb[91].mxu0 }
 0x36e   : > { %14499 = vst [vmem:[#allocation81_spill] sm:$0xff] %v11798_v11  ;;  %v11804_v22 = vpack.c.bf16 %v11798_v11, %v11790_v54 }
 0x36f   : > { %8678 = vmatprep.subr.bf16.mxu1 %v8677_v15 }
 0x370   : > { %14500 = vst [vmem:[#allocation82_spill] sm:$0xff] %v11804_v22  ;;  %v11806_v34 = vpop.f32.mrb[92].mxu0  ;;  %8680 = vmatpush3.bf16.msra.mxu1 %v8677_v15  ;;  %v14510_v22 = vpack.i.bf16 %v11756_v10, %v11746_v21  ;;  %v14512_v10 = vpack.i.bf16 %v11774_v36, %v11770_v33 }
 0x371   : > { %v9825_v59 = vpop.permute.xlu0 %9824  ;;  %v11808_v60 = vpop.f32.mrb[93].mxu0 }
 0x372   : > { %14501 = vst [vmem:[#allocation83_spill] sm:$0xff] %v11808_v60  ;;  %v9827_v19 = vunpack.i.h.bf16 %v9825_v59  ;;  %v9826_v23 = vunpack.i.l.bf16 %v9825_v59 }
 0x374   : > { %v8685_v46 = vpack.c.bf16 %v9827_v19, %v9826_v23  ;;  %v11810_v39 = vpop.f32.mrb[94].mxu0 }
 0x375   : > { %v8681_v37 = vpack.c.bf16 %v11810_v39, %v11806_v34  ;;  %v11816_v54 = vpop.f32.mrb[95].mxu0  ;;  %v14514_v36 = vpack.i.bf16 %v11810_v39, %v11806_v34 }
 0x376   : > { %14502 = vst [vmem:[#allocation84_spill] sm:$0xff] %v11816_v54  ;;  %v11822_v15 = vpack.c.bf16 %v11816_v54, %v11808_v60  ;;  %8687 = vmatprep.subr.msk.bf16.mxu0 %vm11514_vm1, %v8685_v46 }
 0x377   : > { %8682 = vmatprep.subr.bf16.mxu1 %v8681_v37  ;;  %8690 = vmatpush3.bf16.xpose.msk.msra.mxu0 %vm11514_vm1, %v8685_v46 }
 0x378   : > { %14503 = vst [vmem:[#allocation85_spill] sm:$0xff] %v11822_v15  ;;  %8684 = vmatpush3.bf16.msra.mxu1 %v8681_v37 }
 0x379   : > { %v9830_v23 = vpop.permute.xlu1 %9829 }
 0x37a   : > { %v9832_v59 = vunpack.i.h.bf16 %v9830_v23  ;;  %v9831_v19 = vunpack.i.l.bf16 %v9830_v23 }
 0x37c   : > { %v8691_v51 = vpack.c.bf16 %v9832_v59, %v9831_v19 }
 0x37e   : > { %8693 = vmatprep.subr.msk.bf16.mxu0 %vm11514_vm1, %v8691_v51 }
 0x37f   : > { %8696 = vmatpush3.bf16.xpose.msk.msra.mxu0 %vm11514_vm1, %v8691_v51 }
 0x381   : > { %v9835_v11 = vpop.permute.xlu1 %9834 }
 0x382   : > { %v9837_v60 = vunpack.i.h.bf16 %v9835_v11  ;;  %v9836_v54 = vunpack.i.l.bf16 %v9835_v11 }
 0x384   : > { %v8697_v56 = vpack.c.bf16 %v9837_v60, %v9836_v54 }
 0x386   : > { %8699 = vmatprep.subr.msk.bf16.mxu0 %vm11514_vm1, %v8697_v56 }
 0x387   : > { %8702 = vmatpush3.bf16.xpose.msk.msra.mxu0 %vm11514_vm1, %v8697_v56 }
 0x389   : > { %v9840_v46 = vpop.permute.xlu1 %9839 }
 0x38a   : > { %v9842_v37 = vunpack.i.h.bf16 %v9840_v46  ;;  %v9841_v23 = vunpack.i.l.bf16 %v9840_v46 }
 0x38c   : > { %v8703_v59 = vpack.c.bf16 %v9842_v37, %v9841_v23 }
 0x38e   : > { %8705 = vmatprep.subr.msk.bf16.mxu0 %vm11514_vm1, %v8703_v59 }
 0x38f   : > { %8708 = vmatpush3.bf16.xpose.msk.msra.mxu0 %vm11514_vm1, %v8703_v59 }
 0x391   : > { %v9845_v51 = vpop.permute.xlu0 %9844 }
 0x392   : > { %v9847_v19 = vunpack.i.h.bf16 %v9845_v51  ;;  %v9846_v11 = vunpack.i.l.bf16 %v9845_v51 }
 0x394   : > { %v8709_v60 = vpack.c.bf16 %v9847_v19, %v9846_v11 }
 0x396   : > { %8711 = vmatprep.subr.msk.bf16.mxu0 %vm11514_vm1, %v8709_v60 }
 0x397   : > { %8714 = vmatpush3.bf16.xpose.msk.msra.mxu0 %vm11514_vm1, %v8709_v60 }
 0x399   : > { %v9850_v56 = vpop.permute.xlu1 %9849 }
 0x39a   : > { %v9852_v54 = vunpack.i.h.bf16 %v9850_v56  ;;  %v9851_v46 = vunpack.i.l.bf16 %v9850_v56 }
 0x39c   : > { %v8715_v37 = vpack.c.bf16 %v9852_v54, %v9851_v46 }
 0x39e   : > { %8717 = vmatprep.subr.msk.bf16.mxu0 %vm11514_vm1, %v8715_v37 }
 0x39f   : > { %8720 = vmatpush3.bf16.xpose.msk.msra.mxu0 %vm11514_vm1, %v8715_v37 }
 0x3a1   : > { %v9855_v23 = vpop.permute.xlu0 %9854 }
 0x3a2   : > { %v9857_v59 = vunpack.i.h.bf16 %v9855_v23  ;;  %v9856_v51 = vunpack.i.l.bf16 %v9855_v23 }
 0x3a4   : > { %v8721_v19 = vpack.c.bf16 %v9857_v59, %v9856_v51 }
 0x3a5   : > { %v2221_v11 = vpop.permute.xlu0 %2220 }
 0x3a6   : > { %8723 = vmatprep.subr.msk.bf16.mxu0 %vm11514_vm1, %v8721_v19  ;;  %8109 = vmatprep.mubr.msk.f32.mxu0 %vm1689_vm0, %v2221_v11 }
 0x3a7   : > { %8726 = vmatpush3.bf16.xpose.msk.msra.mxu0 %vm11514_vm1, %v8721_v19 }
 0x3a9   : > { %v9860_v60 = vpop.permute.xlu1 %9859  ;;  %v2225_v56 = vpop.permute.xlu0 %2224 }
 0x3aa   : > { %v9862_v54 = vunpack.i.h.bf16 %v9860_v60  ;;  %v9861_v46 = vunpack.i.l.bf16 %v9860_v60 }
 0x3ac   : > { %v8727_v62 = vpack.c.bf16 %v9862_v54, %v9861_v46 }
 0x3ad   : > { %v2223_v8 = vpop.permute.xlu1 %2222  ;;  %v2229_v37 = vpop.permute.xlu0 %2228 }
 0x3ae   : > { %8729 = vmatprep.subr.msk.bf16.mxu0 %vm11514_vm1, %v8727_v62 }
 0x3af   : > { %8732 = vmatpush3.bf16.xpose.msk.msra.mxu0 %vm11514_vm1, %v8727_v62 }
 0x3b1   : > { %v2227_v23 = vpop.permute.xlu1 %2226  ;;  %v2233_v51 = vpop.permute.xlu0 %2232 }
 0x3b5   : > { %v2231_v59 = vpop.permute.xlu1 %2230  ;;  %v2237_v11 = vpop.permute.xlu0 %2236 }
 0x3b6   : > { %8110 = vmatmul.mubr.msk.f32.vlgmr.msra.gmra.mrb[96].mxu0 %vm1689_vm0, %v2223_v8 }
 0x3b7   : > { %8112 = vmatprep.mubr.msk.f32.mxu0 %vm1689_vm0, %v2225_v56 }
 0x3b9   : > { %v2235_v19 = vpop.permute.xlu1 %2234  ;;  %v2241_v54 = vpop.permute.xlu0 %2240 }
 0x3ba   : > { %8113 = vmatmul.mubr.msk.f32.gmra.mrb[98].mxu0 %vm1689_vm0, %v2227_v23 }
 0x3bb   : > { %8115 = vmatprep.mubr.msk.f32.mxu0 %vm1689_vm0, %v2229_v37 }
 0x3bd   : > { %v2239_v60 = vpop.permute.xlu1 %2238  ;;  %v2245_v56 = vpop.permute.xlu0 %2244 }
 0x3be   : > { %8116 = vmatmul.mubr.msk.f32.gmra.mrb[100].mxu0 %vm1689_vm0, %v2231_v59 }
 0x3bf   : > { %8118 = vmatprep.mubr.msk.f32.mxu0 %vm1689_vm0, %v2233_v51 }
 0x3c1   : > { %v2243_v62 = vpop.permute.xlu1 %2242  ;;  %v2249_v23 = vpop.permute.xlu0 %2248 }
 0x3c2   : > { %8119 = vmatmul.mubr.msk.f32.gmra.mrb[102].mxu0 %vm1689_vm0, %v2235_v19 }
 0x3c3   : > { %8121 = vmatprep.mubr.msk.f32.mxu0 %vm1689_vm0, %v2237_v11  ;;  %v1576_v11 = vadd.s32 8, %v11162_v30 }
 0x3c5   : > { %v2247_v8 = vpop.permute.xlu1 %2246  ;;  %v9870_v15 = vpop.permute.xlu0 %9869 }
 0x3c6   : > { %8122 = vmatmul.mubr.msk.f32.gmra.mrb[104].mxu0 %vm1689_vm0, %v2239_v60  ;;  %v14504_v60 = vlaneseq }
 0x3c7   : > { %8124 = vmatprep.mubr.msk.f32.mxu0 %vm1689_vm0, %v2241_v54  ;;  %v1578_v54 = vadd.s32 24, %v11162_v30 }
 0x3c9   : > { %v2251_v46 = vpop.permute.xlu1 %2250 }
 0x3ca   : > { %8125 = vmatmul.mubr.msk.f32.gmra.mrb[106].mxu0 %vm1689_vm0, %v2243_v62  ;;  %v11877_v62 = vand.u32 127, %v14504_v60 }
 0x3cb   : > { %8127 = vmatprep.mubr.msk.f32.mxu0 %vm1689_vm0, %v2245_v56 }
 0x3cc   : > { %vm1594_vm2 = vcmp.le.s32.totalorder %v11877_v62, %v1576_v11  ;;  %vm1593_vm3 = vcmp.le.s32.totalorder %v11877_v62, %v11162_v30  ;;  %vm1596_vm4 = vcmp.le.s32.totalorder %v11877_v62, %v1578_v54  ;;  %v1582_v54 = vadd.s32 56, %v11162_v30 }
 0x3cd   : > { %v9865_v37 = vpop.permute.xlu1 %9864 }
 0x3ce   : > { %v9867_v59 = vunpack.i.h.bf16 %v9865_v37  ;;  %v9866_v51 = vunpack.i.l.bf16 %v9865_v37  ;;  %8128 = vmatmul.mubr.msk.f32.gmra.mrb[108].mxu0 %vm1689_vm0, %v2247_v8  ;;  %v14337_v8 = vmov -1e+30   ;;  %v1580_v37 = vadd.s32 40, %v11162_v30 }
 0x3cf   : > { %8130 = vmatprep.mubr.msk.f32.mxu0 %vm1689_vm0, %v2249_v23  ;;  %v11884_v56 = vsel %vm1594_vm2, 0.0, %v14337_v8  ;;  %v11899_v43 = vsel %vm1596_vm4, 0.0, %v14337_v8  ;;  %vm1600_vm7 = vcmp.le.s32.totalorder %v11877_v62, %v1582_v54 }
 0x3d0   : > { %v11871_v19 = vpack.c.bf16 %v9867_v59, %v9866_v51  ;;  %14505 = vst [vmem:[#allocation86_spill] sm:$0xff] %v11884_v56  ;;  %v1577_v59 = vadd.s32 16, %v11162_v30  ;;  %vm1598_vm5 = vcmp.le.s32.totalorder %v11877_v62, %v1580_v37  ;;  %v1584_v37 = vadd.s32 72, %v11162_v30 }
 0x3d1   : > { %v11911_v48 = vsel %vm1598_vm5, 0.0, %v14337_v8  ;;  %v11928_v45 = vsel %vm1600_vm7, 0.0, %v14337_v8 }
 0x3d2   : > { %8131 = vmatmul.mubr.msk.f32.gmra.mrb[110].mxu0 %vm1689_vm0, %v2251_v46  ;;  %8734 = vmatprep.subr.bf16.mxu1 %v11871_v19  ;;  %v11887_v46 = vsel %vm1593_vm3, 0.0, %v14337_v8  ;;  %vm1595_vm6 = vcmp.le.s32.totalorder %v11877_v62, %v1577_v59  ;;  %v1581_v59 = vadd.s32 48, %v11162_v30  ;;  %vm1602_vm9 = vcmp.le.s32.totalorder %v11877_v62, %v1584_v37 }
 0x3d3   : > { %14506 = vst [vmem:[#allocation87_spill] sm:$0xff] %v11887_v46  ;;  %v11914_v25 = vsel %vm1595_vm6, 0.0, %v14337_v8  ;;  %v11946_v17 = vsel %vm1602_vm9, 0.0, %v14507_v57 }
 0x3d4   : > { %vm1599_vm10 = vcmp.le.s32.totalorder %v11877_v62, %v1581_v59  ;;  %v1588_v59 = vadd.s32 104, %v11162_v30 }
 0x3d5   : > { %v11949_v37 = vsel %vm1599_vm10, 0.0, %v14507_v57 }
 0x3d6   : > { %vm1606_vm13 = vcmp.le.s32.totalorder %v11877_v62, %v1588_v59 }
 0x3d7   : > { %v11981_v41 = vsel %vm1606_vm13, 0.0, %v14507_v57 }
 0x413   : > { %v7999_v23 = vpop.f32.mrb[0].mxu1 }
 0x414   : > { %v11893_v51 = vadd.f32 %v7999_v23, %v11884_v56  ;;  %v1852_v11 = vpop.f32.mrb[1].mxu1  ;;  %v1579_v23 = vadd.s32 32, %v11162_v30 }
 0x415   : > { %v11896_v60 = vadd.f32 %v1852_v11, %v11887_v46 }
 0x416   : > { %1933 = vmax.xlane.f32.xlu1 %v11893_v51  ;;  %vm1597_vm8 = vcmp.le.s32.totalorder %v11877_v62, %v1579_v23  ;;  %v1586_v23 = vadd.s32 88, %v11162_v30 }
 0x417   : > { %v8002_v18 = vpop.f32.mrb[2].mxu1  ;;  %1931 = vmax.xlane.f32.xlu0 %v11896_v60  ;;  %v11931_v54 = vsel %vm1597_vm8, 0.0, %v14337_v8 }
 0x418   : > { %v11908_v58 = vadd.f32 %v8002_v18, %v11899_v43  ;;  %v1862_v11 = vpop.f32.mrb[3].mxu1  ;;  %vm1604_vm11 = vcmp.le.s32.totalorder %v11877_v62, %v1586_v23 }
 0x419   : > { %v11925_v42 = vadd.f32 %v1862_v11, %v11914_v25  ;;  %v11964_v0 = vsel %vm1604_vm11, 0.0, %v14507_v57 }
 0x41b   : > { %v8005_v32 = vpop.f32.mrb[4].mxu1  ;;  %1937 = vmax.xlane.f32.xlu0 %v11908_v58 }
 0x41c   : > { %v11922_v18 = vadd.f32 %v8005_v32, %v11911_v48  ;;  %v1872_v6 = vpop.f32.mrb[5].mxu1  ;;  %v1583_v32 = vadd.s32 64, %v11162_v30 }
 0x41d   : > { %v11943_v8 = vadd.f32 %v1872_v6, %v11931_v54 }
 0x41e   : > { %1941 = vmax.xlane.f32.xlu1 %v11922_v18  ;;  %vm1601_vm12 = vcmp.le.s32.totalorder %v11877_v62, %v1583_v32 }
 0x41f   : > { %v8008_v52 = vpop.f32.mrb[6].mxu1  ;;  %1935 = vmax.xlane.f32.xlu0 %v11925_v42  ;;  %v11967_v23 = vsel %vm1601_vm12, 0.0, %v14507_v57 }
 0x420   : > { %v11940_v11 = vadd.f32 %v8008_v52, %v11928_v45  ;;  %v1882_v44 = vpop.f32.mrb[7].mxu1  ;;  %v1585_v52 = vadd.s32 80, %v11162_v30 }
 0x421   : > { %v11961_v47 = vadd.f32 %v1882_v44, %v11949_v37 }
 0x422   : > { %1945 = vmax.xlane.f32.xlu1 %v11940_v11  ;;  %vm1603_vm14 = vcmp.le.s32.totalorder %v11877_v62, %v1585_v52  ;;  %v1590_v52 = vadd.s32 120, %v11162_v30 }
 0x423   : > { %v8011_v12 = vpop.f32.mrb[8].mxu1  ;;  %1939 = vmax.xlane.f32.xlu0 %v11943_v8  ;;  %v11984_v55 = vsel %vm1603_vm14, 0.0, %v14507_v57 }
 0x424   : > { %v11958_v6 = vadd.f32 %v8011_v12, %v11946_v17  ;;  %v1892_v49 = vpop.f32.mrb[9].mxu1  ;;  %v1587_v12 = vadd.s32 96, %v11162_v30  ;;  %vm1608_vm2 = vcmp.le.s32.totalorder %v11877_v62, %v1590_v52 }
 0x425   : > { %v11978_v16 = vadd.f32 %v1892_v49, %v11967_v23  ;;  %v12007_v3 = vsel %vm1608_vm2, 0.0, %v14507_v57 }
 0x426   : > { %1949 = vmax.xlane.f32.xlu1 %v11958_v6  ;;  %vm1605_vm15 = vcmp.le.s32.totalorder %v11877_v62, %v1587_v12  ;;  %v1589_v12 = vadd.s32 112, %v11162_v30 }
 0x427   : > { %v8014_v32 = vpop.f32.mrb[10].mxu1  ;;  %1943 = vmax.xlane.f32.xlu0 %v11961_v47  ;;  %v11997_v35 = vsel %vm1605_vm15, 0.0, %v14507_v57 }
 0x428   : > { %v11975_v44 = vadd.f32 %v8014_v32, %v11964_v0  ;;  %v1902_v7 = vpop.f32.mrb[11].mxu1  ;;  %vm1607_vm3 = vcmp.le.s32.totalorder %v11877_v62, %v1589_v12 }
 0x429   : > { %v11994_v1 = vadd.f32 %v1902_v7, %v11984_v55  ;;  %v12015_v52 = vsel %vm1607_vm3, 0.0, %v14507_v57 }
 0x42a   : > { %1953 = vmax.xlane.f32.xlu1 %v11975_v44 }
 0x42b   : > { %v8017_v59 = vpop.f32.mrb[12].mxu1  ;;  %1947 = vmax.xlane.f32.xlu0 %v11978_v16 }
 0x42c   : > { %v11991_v32 = vadd.f32 %v8017_v59, %v11981_v41  ;;  %v1912_v49 = vpop.f32.mrb[13].mxu1 }
 0x42d   : > { %v12004_v59 = vadd.f32 %v1912_v49, %v11997_v35 }
 0x42e   : > { %1957 = vmax.xlane.f32.xlu1 %v11991_v32 }
 0x42f   : > { %v8020_v24 = vpop.f32.mrb[14].mxu1  ;;  %1951 = vmax.xlane.f32.xlu0 %v11994_v1 }
 0x430   : > { %v1922_v26 = vpop.f32.mrb[15].mxu1  ;;  %v12012_v7 = vadd.f32 %v8020_v24, %v12007_v3 }
 0x431   : > { %v12019_v30 = vadd.f32 %v1922_v26, %v12015_v52 }
 0x433   : > { %1955 = vmax.xlane.f32.xlu0 %v12004_v59 }
 0x437   : > { %1961 = vmax.xlane.f32.xlu0 %v12012_v7 }
 0x43b   : > { %1959 = vmax.xlane.f32.xlu0 %v12019_v30 }
 0x489   : > { %v8111_v49 = vpop.f32.mrb[96].mxu0 }
 0x48a   : > { %v12023_v5 = vadd.f32 %v8111_v49, %v11884_v56  ;;  %v2414_v62 = vpop.f32.mrb[97].mxu0 }
 0x48b   : > { %v12026_v12 = vadd.f32 %v2414_v62, %v11887_v46  ;;  %v14509_v46 = vpack.i.bf16 %v11728_v40, %v11719_v31  ;;  %v14511_v40 = vpack.i.bf16 %v11699_v13, %v11689_v20  ;;  %v14513_v20 = vpack.i.bf16 %v11792_v27, %v11788_v50 }
 0x48c   : > { %2495 = vmax.xlane.f32.xlu1 %v12023_v5  ;;  %v9872_v27 = vunpack.i.h.bf16 %v9870_v15  ;;  %v9871_v50 = vunpack.i.l.bf16 %v9870_v15 }
 0x48d   : > { %14508 = vst [vmem:[#allocation88_spill] sm:$0xff] %v12026_v12  ;;  %v12029_v24 = vpop.f32.mrb[98].mxu0  ;;  %2493 = vmax.xlane.f32.xlu0 %v12026_v12 }
 0x48e   : > { %v12032_v57 = vpop.f32.mrb[99].mxu0  ;;  %v8737_v15 = vpack.c.bf16 %v9872_v27, %v9871_v50 }
 0x48f   : > { %v12114_v50 = vadd.f32 %v12032_v57, %v11914_v25  ;;  %v12126_v57 = vadd.f32 %v12029_v24, %v11899_v43 }
 0x491   : > { %v12034_v26 = vpop.f32.mrb[100].mxu0 }
 0x492   : > { %v12036_v53 = vpop.f32.mrb[101].mxu0 }
 0x495   : > { %v12038_v2 = vpop.f32.mrb[102].mxu0 }
 0x496   : > { %v12040_v49 = vpop.f32.mrb[103].mxu0 }
 0x499   : > { %v12042_v56 = vpop.f32.mrb[104].mxu0 }
 0x49a   : > { %v12044_v62 = vpop.f32.mrb[105].mxu0 }
 0x49d   : > { %9879 = vrot.lane.b32.xlu1 %v14509_v46, %s10565_s16  ;;  %v12050_v28 = vpop.f32.mrb[106].mxu0 }
 0x49e   : > { %v12052_v63 = vpop.f32.mrb[107].mxu0 }
 0x4a1   : > { %9884 = vrot.lane.b32.xlu1 %v14510_v22, %s10565_s16  ;;  %v12058_v14 = vpop.f32.mrb[108].mxu0 }
 0x4a2   : > { %v12060_v29 = vpop.f32.mrb[109].mxu0 }
 0x4a3   : > { %v1934_v9 = vpop.xlane.xlu1 %1933  ;;  %9874 = vrot.lane.b32.xlu0 %v14511_v40, %s10565_s16 }
 0x4a4   : > { %v1964_v31 = vsub.f32 %v11893_v51, %v1934_v9  ;;  %v1932_v46 = vpop.xlane.xlu0 %1931 }
 0x4a5   : > { %v1963_v38 = vsub.f32 %v11896_v60, %v1932_v46  ;;  %9889 = vrot.lane.b32.xlu1 %v14512_v10, %s10565_s16  ;;  %v12072_v21 = vpop.f32.mrb[110].mxu0 }
 0x4a6   : > { %v1981_v22 = vmul.f32 1.442695, %v1964_v31  ;;  %v12074_v4 = vpop.f32.mrb[111].mxu0 }
 0x4a7   : > { %v1979_v61 = vmul.f32 1.442695, %v1963_v38 }
 0x4a8   : > { %v1938_v12 = vpop.xlane.xlu0 %1937 }
 0x4a9   : > { %10015 = vpow2.f32 %v1979_v61  ;;  %9894 = vrot.lane.b32.xlu1 %v14513_v20, %s10565_s16  ;;  %v1966_v13 = vsub.f32 %v11908_v58, %v1938_v12 }
 0x4aa   : > { %10017 = vpow2.f32 %v1981_v22 }
 0x4ab   : > { %v1942_v9 = vpop.xlane.xlu1 %1941  ;;  %v1985_v38 = vmul.f32 1.442695, %v1966_v13 }
 0x4ac   : > { %v1936_v51 = vpop.xlane.xlu0 %1935  ;;  %v1968_v61 = vsub.f32 %v11922_v18, %v1942_v9 }
 0x4ad   : > { %v1965_v33 = vsub.f32 %v11925_v42, %v1936_v51  ;;  %9899 = vrot.lane.b32.xlu1 %v14514_v36, %s10565_s16 }
 0x4ae   : > { %v1989_v12 = vmul.f32 1.442695, %v1968_v61 }
 0x4af   : > { %v1983_v60 = vmul.f32 1.442695, %v1965_v33  ;;  %v1946_v40 = vpop.xlane.xlu1 %1945 }
 0x4b0   : > { %v1940_v31 = vpop.xlane.xlu0 %1939  ;;  %v1970_v42 = vsub.f32 %v11940_v11, %v1946_v40 }
 0x4b1   : > { %10019 = vpow2.f32 %v1983_v60  ;;  %v1967_v58 = vsub.f32 %v11943_v8, %v1940_v31 }
 0x4b2   : > { %10021 = vpow2.f32 %v1985_v38  ;;  %v1993_v8 = vmul.f32 1.442695, %v1970_v42 }
 0x4b3   : > { %v12089_v46 = vpop.eup %10015  ;;  %v1987_v10 = vmul.f32 1.442695, %v1967_v58  ;;  %v1950_v39 = vpop.xlane.xlu1 %1949 }
 0x4b4   : > { %v12091_v34 = vpop.eup %10017  ;;  %8053 = vmatprep.mubr.f32.mxu1 %v12089_v46  ;;  %v1944_v18 = vpop.xlane.xlu0 %1943  ;;  %v1972_v20 = vsub.f32 %v11958_v6, %v1950_v39 }
 0x4b5   : > { %10023 = vpow2.f32 %v1987_v10  ;;  %v1969_v22 = vsub.f32 %v11961_v47, %v1944_v18  ;;  %8054 = vmatmul.mubr.f32.vlgmr.msra.gmra.mrb[16].mxu1 %v12091_v34 }
 0x4b6   : > { %10025 = vpow2.f32 %v1989_v12  ;;  %8736 = vmatpush3.bf16.msra.mxu1 %v11871_v19  ;;  %v1997_v33 = vmul.f32 1.442695, %v1972_v20 }
 0x4b7   : > { %v1991_v11 = vmul.f32 1.442695, %v1969_v22  ;;  %8738 = vmatprep.subr.bf16.mxu1 %v8737_v15  ;;  %v1954_v13 = vpop.xlane.xlu1 %1953 }
 0x4b8   : > { %v1948_v9 = vpop.xlane.xlu0 %1947  ;;  %v1974_v47 = vsub.f32 %v11975_v44, %v1954_v13 }
 0x4b9   : > { %10027 = vpow2.f32 %v1991_v11  ;;  %v1971_v51 = vsub.f32 %v11978_v16, %v1948_v9  ;;  %v12150_v9 = vadd.f32 %v12034_v26, %v11911_v48  ;;  %v12165_v26 = vadd.f32 %v12040_v49, %v11949_v37 }
 0x4ba   : > { %10029 = vpow2.f32 %v1993_v8  ;;  %8740 = vmatpush3.bf16.msra.mxu1 %v8737_v15  ;;  %v2001_v16 = vmul.f32 1.442695, %v1974_v47  ;;  %v12138_v15 = vadd.f32 %v12036_v53, %v11931_v54  ;;  %v12159_v53 = vadd.f32 %v12044_v62, %v11967_v23 }
 0x4bb   : > { %v12100_v36 = vpop.eup %10019  ;;  %v1995_v38 = vmul.f32 1.442695, %v1971_v51  ;;  %v1958_v61 = vpop.xlane.xlu1 %1957  ;;  %v12182_v49 = vadd.f32 %v12042_v56, %v11946_v17  ;;  %v12199_v56 = vadd.f32 %v12060_v29, %v11997_v35 }
 0x4bc   : > { %v12102_v60 = vpop.eup %10021  ;;  %v1952_v6 = vpop.xlane.xlu0 %1951  ;;  %8056 = vmatprep.mubr.f32.mxu1 %v12100_v36  ;;  %v1976_v40 = vsub.f32 %v11991_v32, %v1958_v61  ;;  %v12204_v61 = vadd.f32 %v12058_v14, %v11981_v41  ;;  %v14515_v14 = vld [vmem:[#allocation88_spill] sm:$0xff] }
 0x4bd   : > { %10031 = vpow2.f32 %v1995_v38  ;;  %v1973_v19 = vsub.f32 %v11994_v1, %v1952_v6  ;;  %8057 = vmatmul.mubr.f32.gmra.mrb[18].mxu1 %v12102_v60  ;;  %v12194_v38 = vadd.f32 %v12050_v28, %v11964_v0  ;;  %v12214_v28 = vadd.f32 %v12072_v21, %v12007_v3 }
 0x4be   : > { %10033 = vpow2.f32 %v1997_v33  ;;  %v2005_v12 = vmul.f32 1.442695, %v1976_v40  ;;  %v12173_v33 = vadd.f32 %v12038_v2, %v11928_v45  ;;  %v12189_v2 = vadd.f32 %v12052_v63, %v11984_v55 }
 0x4bf   : > { %v12108_v44 = vpop.eup %10023  ;;  %v1999_v31 = vmul.f32 1.442695, %v1973_v19  ;;  %v12209_v63 = vadd.f32 %v12074_v4, %v12015_v52 }
 0x4c0   : > { %v12110_v27 = vpop.eup %10025  ;;  %v1956_v58 = vpop.xlane.xlu0 %1955  ;;  %8059 = vmatprep.mubr.f32.mxu1 %v12108_v44 }
 0x4c1   : > { %10035 = vpow2.f32 %v1999_v31  ;;  %v1975_v1 = vsub.f32 %v12004_v59, %v1956_v58  ;;  %8060 = vmatmul.mubr.f32.gmra.mrb[20].mxu1 %v12110_v27 }
 0x4c2   : > { %10037 = vpow2.f32 %v2001_v16  ;;  %2497 = vmax.xlane.f32.xlu0 %v12114_v50 }
 0x4c3   : > { %v12120_v32 = vpop.eup %10027  ;;  %v2003_v42 = vmul.f32 1.442695, %v1975_v1 }
 0x4c4   : > { %v12122_v10 = vpop.eup %10029  ;;  %v1962_v39 = vpop.xlane.xlu0 %1961  ;;  %8062 = vmatprep.mubr.f32.mxu1 %v12120_v32 }
 0x4c5   : > { %10039 = vpow2.f32 %v2003_v42  ;;  %8063 = vmatmul.mubr.f32.gmra.mrb[22].mxu1 %v12122_v10  ;;  %v1978_v59 = vsub.f32 %v12012_v7, %v1962_v39 }
 0x4c6   : > { %10041 = vpow2.f32 %v2005_v12  ;;  %2499 = vmax.xlane.f32.xlu0 %v12126_v57 }
 0x4c7   : > { %v12132_v18 = vpop.eup %10031  ;;  %v2009_v20 = vmul.f32 1.442695, %v1978_v59 }
 0x4c8   : > { %v12134_v22 = vpop.eup %10033  ;;  %v1960_v24 = vpop.xlane.xlu0 %1959  ;;  %8065 = vmatprep.mubr.f32.mxu1 %v12132_v18 }
 0x4c9   : > { %v1977_v8 = vsub.f32 %v12019_v30, %v1960_v24  ;;  %8066 = vmatmul.mubr.f32.gmra.mrb[24].mxu1 %v12134_v22 }
 0x4ca   : > { %2501 = vmax.xlane.f32.xlu0 %v12138_v15 }
 0x4cb   : > { %v12144_v7 = vpop.eup %10035  ;;  %v2007_v11 = vmul.f32 1.442695, %v1977_v8 }
 0x4cc   : > { %v12146_v13 = vpop.eup %10037  ;;  %8068 = vmatprep.mubr.f32.mxu1 %v12144_v7 }
 0x4cd   : > { %10043 = vpow2.f32 %v2007_v11  ;;  %8069 = vmatmul.mubr.f32.gmra.mrb[26].mxu1 %v12146_v13 }
 0x4ce   : > { %10045 = vpow2.f32 %v2009_v20  ;;  %2503 = vmax.xlane.f32.xlu0 %v12150_v9 }
 0x4cf   : > { %v12155_v30 = vpop.eup %10039 }
 0x4d0   : > { %v12161_v51 = vpop.eup %10041  ;;  %8071 = vmatprep.mubr.f32.mxu1 %v12155_v30 }
 0x4d1   : > { %8072 = vmatmul.mubr.f32.gmra.mrb[28].mxu1 %v12161_v51  ;;  %2509 = vmax.xlane.f32.xlu1 %v12159_v53 }
 0x4d2   : > { %2505 = vmax.xlane.f32.xlu0 %v12165_v26 }
 0x4d6   : > { %2507 = vmax.xlane.f32.xlu0 %v12173_v33 }
 0x4d7   : > { %v12176_v62 = vpop.eup %10043 }
 0x4d8   : > { %v12178_v47 = vpop.eup %10045  ;;  %8074 = vmatprep.mubr.f32.mxu1 %v12176_v62 }
 0x4d9   : > { %8075 = vmatmul.mubr.f32.gmra.mrb[30].mxu1 %v12178_v47 }
 0x4da   : > { %2511 = vmax.xlane.f32.xlu0 %v12182_v49 }
 0x4de   : > { %2513 = vmax.xlane.f32.xlu0 %v12189_v2 }
 0x4e2   : > { %2515 = vmax.xlane.f32.xlu0 %v12194_v38 }
 0x4e6   : > { %2517 = vmax.xlane.f32.xlu0 %v12199_v56 }
 0x4ea   : > { %2519 = vmax.xlane.f32.xlu0 %v12204_v61 }
 0x4ee   : > { %2521 = vmax.xlane.f32.xlu0 %v12209_v63 }
 0x4f2   : > { %2523 = vmax.xlane.f32.xlu0 %v12214_v28 }
 0x519   : > { %v2496_v29 = vpop.xlane.xlu1 %2495 }
 0x51a   : > { %v2526_v6 = vsub.f32 %v12023_v5, %v2496_v29  ;;  %v2494_v19 = vpop.xlane.xlu0 %2493 }
 0x51b   : > { %v2525_v16 = vsub.f32 %v14515_v14, %v2494_v19 }
 0x51c   : > { %v2543_v58 = vmul.f32 1.442695, %v2526_v6 }
 0x51d   : > { %v2541_v40 = vmul.f32 1.442695, %v2525_v16  ;;  %v9880_v31 = vpop.permute.xlu1 %9879 }
 0x51e   : > { %v9882_v1 = vunpack.i.h.bf16 %v9880_v31  ;;  %v9875_v4 = vpop.permute.xlu0 %9874  ;;  %v9881_v12 = vunpack.i.l.bf16 %v9880_v31 }
 0x51f   : > { %10047 = vpow2.f32 %v2541_v40  ;;  %v9877_v42 = vunpack.i.h.bf16 %v9875_v4  ;;  %v9876_v39 = vunpack.i.l.bf16 %v9875_v4 }
 0x520   : > { %10049 = vpow2.f32 %v2543_v58  ;;  %v8745_v20 = vpack.c.bf16 %v9882_v1, %v9881_v12 }
 0x521   : > { %v9885_v59 = vpop.permute.xlu1 %9884  ;;  %v8741_v21 = vpack.c.bf16 %v9877_v42, %v9876_v39 }
 0x522   : > { %v9887_v24 = vunpack.i.h.bf16 %v9885_v59  ;;  %v9886_v8 = vunpack.i.l.bf16 %v9885_v59  ;;  %v14516_v59 = vld [vmem:[#allocation64_spill] sm:$0xff] }
 0x523   : > { %8742 = vmatprep.subr.bf16.mxu1 %v8741_v21 }
 0x524   : > { %8744 = vmatpush3.bf16.msra.mxu1 %v8741_v21  ;;  %v8749_v19 = vpack.c.bf16 %v9887_v24, %v9886_v8  ;;  %v14517_v21 = vld [vmem:[#allocation67_spill] sm:$0xff]  ;;  %v14518_v24 = vld [vmem:[#allocation70_spill] sm:$0xff]  ;;  %v14519_v8 = vld [vmem:[#allocation73_spill] sm:$0xff] }
 0x525   : > { %v9890_v5 = vpop.permute.xlu1 %9889  ;;  %8746 = vmatprep.subr.bf16.mxu1 %v8745_v20 }
 0x526   : > { %v9892_v11 = vunpack.i.h.bf16 %v9890_v5  ;;  %v9891_v29 = vunpack.i.l.bf16 %v9890_v5  ;;  %v14521_v5 = vld [vmem:[#allocation79_spill] sm:$0xff] }
 0x528   : > { %8748 = vmatpush3.bf16.msra.mxu1 %v8745_v20  ;;  %v8753_v31 = vpack.c.bf16 %v9892_v11, %v9891_v29  ;;  %v14520_v20 = vld [vmem:[#allocation76_spill] sm:$0xff] }
 0x529   : > { %v10048_v6 = vpop.eup %10047  ;;  %v9895_v14 = vpop.permute.xlu1 %9894  ;;  %8750 = vmatprep.subr.bf16.mxu1 %v8749_v19 }
 0x52a   : > { %2573 = vadd.xlane.f32.xlu0 %v10048_v6  ;;  %8165 = vmatprep.mubr.f32.mxu1 %v10048_v6  ;;  %v9897_v16 = vunpack.i.h.bf16 %v9895_v14  ;;  %v9896_v40 = vunpack.i.l.bf16 %v9895_v14  ;;  %v10050_v58 = vpop.eup %10049 }
 0x52c   : > { %8752 = vmatpush3.bf16.msra.mxu1 %v8749_v19  ;;  %v8757_v42 = vpack.c.bf16 %v9897_v16, %v9896_v40  ;;  %v14522_v19 = vld [vmem:[#allocation82_spill] sm:$0xff]  ;;  %v14523_v40 = vld [vmem:[#allocation85_spill] sm:$0xff] }
 0x52d   : > { %v9900_v4 = vpop.permute.xlu1 %9899  ;;  %8754 = vmatprep.subr.bf16.mxu1 %v8753_v31 }
 0x52e   : > { %2575 = vadd.xlane.f32.xlu0 %v10050_v58  ;;  %v9902_v1 = vunpack.i.h.bf16 %v9900_v4  ;;  %v9901_v12 = vunpack.i.l.bf16 %v9900_v4 }
 0x530   : > { %8756 = vmatpush3.bf16.msra.mxu1 %v8753_v31  ;;  %v8761_v39 = vpack.c.bf16 %v9902_v1, %v9901_v12 }
 0x531   : > { %8758 = vmatprep.subr.bf16.mxu1 %v8757_v42 }
 0x534   : > { %8760 = vmatpush3.bf16.msra.mxu1 %v8757_v42 }
 0x535   : > { %8762 = vmatprep.subr.bf16.mxu1 %v8761_v39 }
 0x538   : > { %8764 = vmatpush3.bf16.msra.mxu1 %v8761_v39 }
 0x539   : > { %8846 = vmatprep.subr.bf16.mxu1 %v14516_v59 }
 0x53b   : > { %8166 = vmatmul.mubr.f32.vlgmr.msra.gmra.mrb[32].mxu1 %v10050_v58 }
 0x53c   : > { %8848 = vmatpush3.bf16.msra.mxu1 %v14516_v59 }
 0x53d   : > { %8850 = vmatprep.subr.bf16.mxu1 %v14517_v21 }
 0x540   : > { %8852 = vmatpush3.bf16.msra.mxu1 %v14517_v21 }
 0x541   : > { %8854 = vmatprep.subr.bf16.mxu1 %v14518_v24 }
 0x544   : > { %8856 = vmatpush3.bf16.msra.mxu1 %v14518_v24 }
 0x545   : > { %8858 = vmatprep.subr.bf16.mxu1 %v14519_v8 }
 0x548   : > { %8860 = vmatpush3.bf16.msra.mxu1 %v14519_v8 }
 0x549   : > { %8862 = vmatprep.subr.bf16.mxu1 %v14520_v20 }
 0x54c   : > { %8864 = vmatpush3.bf16.msra.mxu1 %v14520_v20 }
 0x54d   : > { %8866 = vmatprep.subr.bf16.mxu1 %v14521_v5 }
 0x54f   : > { %v2498_v11 = vpop.xlane.xlu0 %2497 }
 0x550   : > { %v2527_v29 = vsub.f32 %v12114_v50, %v2498_v11  ;;  %8868 = vmatpush3.bf16.msra.mxu1 %v14521_v5 }
 0x551   : > { %8870 = vmatprep.subr.bf16.mxu1 %v14522_v19 }
 0x552   : > { %v2545_v6 = vmul.f32 1.442695, %v2527_v29 }
 0x553   : > { %v2500_v14 = vpop.xlane.xlu0 %2499 }
 0x554   : > { %10051 = vpow2.f32 %v2545_v6  ;;  %v2528_v16 = vsub.f32 %v12126_v57, %v2500_v14  ;;  %8872 = vmatpush3.bf16.msra.mxu1 %v14522_v19 }
 0x555   : > { %8874 = vmatprep.subr.bf16.mxu1 %v14523_v40 }
 0x556   : > { %v2547_v31 = vmul.f32 1.442695, %v2528_v16 }
 0x557   : > { %v2502_v58 = vpop.xlane.xlu0 %2501 }
 0x558   : > { %10053 = vpow2.f32 %v2547_v31  ;;  %v2529_v4 = vsub.f32 %v12138_v15, %v2502_v58  ;;  %8876 = vmatpush3.bf16.msra.mxu1 %v14523_v40 }
 0x55a   : > { %v2549_v50 = vmul.f32 1.442695, %v2529_v4 }
 0x55b   : > { %v2504_v1 = vpop.xlane.xlu0 %2503 }
 0x55c   : > { %10055 = vpow2.f32 %v2549_v50  ;;  %v2530_v12 = vsub.f32 %v12150_v9, %v2504_v1 }
 0x55e   : > { %v10052_v42 = vpop.eup %10051  ;;  %v2551_v39 = vmul.f32 1.442695, %v2530_v12  ;;  %v2510_v59 = vpop.xlane.xlu1 %2509 }
 0x55f   : > { %v2533_v57 = vsub.f32 %v12159_v53, %v2510_v59  ;;  %2577 = vadd.xlane.f32.xlu1 %v10052_v42  ;;  %v2506_v21 = vpop.xlane.xlu0 %2505  ;;  %8168 = vmatprep.mubr.f32.mxu1 %v10052_v42 }
 0x560   : > { %10057 = vpow2.f32 %v2551_v39  ;;  %v2531_v24 = vsub.f32 %v12165_v26, %v2506_v21 }
 0x561   : > { %v2557_v20 = vmul.f32 1.442695, %v2533_v57 }
 0x562   : > { %v10054_v8 = vpop.eup %10053  ;;  %v2553_v15 = vmul.f32 1.442695, %v2531_v24 }
 0x563   : > { %2579 = vadd.xlane.f32.xlu0 %v10054_v8  ;;  %v2508_v5 = vpop.xlane.xlu0 %2507  ;;  %8169 = vmatmul.mubr.f32.gmra.mrb[34].mxu1 %v10054_v8 }
 0x564   : > { %10059 = vpow2.f32 %v2553_v15  ;;  %v2532_v9 = vsub.f32 %v12173_v33, %v2508_v5 }
 0x565   : > { %10061 = vpow2.f32 %v2557_v20 }
 0x566   : > { %v10056_v11 = vpop.eup %10055  ;;  %v2555_v29 = vmul.f32 1.442695, %v2532_v9 }
 0x567   : > { %2581 = vadd.xlane.f32.xlu1 %v10056_v11  ;;  %v2512_v53 = vpop.xlane.xlu0 %2511  ;;  %8171 = vmatprep.mubr.f32.mxu1 %v10056_v11  ;;  %v1644_v11 = vld [vmem:[#allocation7 + $0x98] sm:$0xff] }
 0x568   : > { %10063 = vpow2.f32 %v2555_v29  ;;  %v2534_v19 = vsub.f32 %v12182_v49, %v2512_v53  ;;  %v1641_v29 = vld [vmem:[#allocation7 + $0x80] sm:$0xff] }
 0x56a   : > { %v10058_v6 = vpop.eup %10057  ;;  %v2559_v26 = vmul.f32 1.442695, %v2534_v19  ;;  %v1643_v19 = vld [vmem:[#allocation7 + $0x90] sm:$0xff] }
 0x56b   : > { %2583 = vadd.xlane.f32.xlu0 %v10058_v6  ;;  %v2514_v14 = vpop.xlane.xlu0 %2513  ;;  %8172 = vmatmul.mubr.f32.gmra.mrb[36].mxu1 %v10058_v6  ;;  %v8767_v6 = vpack.c.bf16 %v1643_v19, %v1641_v29 }
 0x56c   : > { %10065 = vpow2.f32 %v2559_v26  ;;  %v2535_v16 = vsub.f32 %v12189_v2, %v2514_v14  ;;  %v1648_v26 = vld [vmem:[#allocation7 + $0xb8] sm:$0xff]  ;;  %v1645_v14 = vld [vmem:[#allocation7 + $0xa0] sm:$0xff] }
 0x56e   : > { %v10060_v40 = vpop.eup %10059  ;;  %v2561_v31 = vmul.f32 1.442695, %v2535_v16 }
 0x56f   : > { %2585 = vadd.xlane.f32.xlu1 %v10060_v40  ;;  %v2516_v33 = vpop.xlane.xlu0 %2515  ;;  %8174 = vmatprep.mubr.f32.mxu1 %v10060_v40  ;;  %v10062_v4 = vpop.eup %10061 }
 0x570   : > { %10067 = vpow2.f32 %v2561_v31  ;;  %v2536_v58 = vsub.f32 %v12194_v38, %v2516_v33  ;;  %v1647_v31 = vld [vmem:[#allocation7 + $0xb0] sm:$0xff] }
 0x572   : > { %v10064_v50 = vpop.eup %10063  ;;  %v2563_v1 = vmul.f32 1.442695, %v2536_v58 }
 0x573   : > { %2589 = vadd.xlane.f32.xlu1 %v10062_v4  ;;  %2587 = vadd.xlane.f32.xlu0 %v10064_v50  ;;  %v2518_v49 = vpop.xlane.xlu0 %2517 }
 0x574   : > { %10069 = vpow2.f32 %v2563_v1  ;;  %v2537_v12 = vsub.f32 %v12199_v56, %v2518_v49  ;;  %8175 = vmatmul.mubr.f32.gmra.mrb[38].mxu1 %v10064_v50  ;;  %v1652_v50 = vld [vmem:[#allocation7 + $0xd8] sm:$0xff]  ;;  %v1649_v1 = vld [vmem:[#allocation7 + $0xc0] sm:$0xff] }
 0x575   : > { %8177 = vmatprep.mubr.f32.mxu1 %v10062_v4  ;;  %v1650_v4 = vld [vmem:[#allocation7 + $0xc8] sm:$0xff] }
 0x576   : > { %v10066_v2 = vpop.eup %10065  ;;  %v2565_v42 = vmul.f32 1.442695, %v2537_v12  ;;  %v8773_v12 = vpack.c.bf16 %v1652_v50, %v1650_v4 }
 0x577   : > { %2591 = vadd.xlane.f32.xlu0 %v10066_v2  ;;  %v2520_v39 = vpop.xlane.xlu0 %2519 }
 0x578   : > { %10071 = vpow2.f32 %v2565_v42  ;;  %v2538_v59 = vsub.f32 %v12204_v61, %v2520_v39  ;;  %8178 = vmatmul.mubr.f32.gmra.mrb[40].mxu1 %v10066_v2  ;;  %v1642_v61 = vld [vmem:[#allocation7 + $0x88] sm:$0xff]  ;;  %v1651_v2 = vld [vmem:[#allocation7 + $0xd0] sm:$0xff] }
 0x579   : > { %v8765_v53 = vpack.c.bf16 %v1644_v11, %v1642_v61  ;;  %v8775_v42 = vpack.c.bf16 %v1651_v2, %v1649_v1  ;;  %v1654_v39 = vld [vmem:[#allocation7 + $0xe8] sm:$0xff]  ;;  %v1625_v2 = vld [vmem:[#allocation7] sm:$0xff] }
 0x57a   : > { %v10068_v38 = vpop.eup %10067  ;;  %v2567_v57 = vmul.f32 1.442695, %v2538_v59  ;;  %v1656_v59 = vld [vmem:[#allocation7 + $0xf8] sm:$0xff] }
 0x57b   : > { %2593 = vadd.xlane.f32.xlu1 %v10068_v38  ;;  %v2522_v21 = vpop.xlane.xlu0 %2521  ;;  %8180 = vmatprep.mubr.f32.mxu1 %v10068_v38 }
 0x57c   : > { %10073 = vpow2.f32 %v2567_v57  ;;  %v2539_v24 = vsub.f32 %v12209_v63, %v2522_v21  ;;  %8766 = vmatprep.subr.bf16.mxu0 %v8765_v53  ;;  %v1646_v63 = vld [vmem:[#allocation7 + $0xa8] sm:$0xff]  ;;  %v8777_v57 = vpack.c.bf16 %v1656_v59, %v1654_v39  ;;  %v1653_v21 = vld [vmem:[#allocation7 + $0xe0] sm:$0xff]  ;;  %v1632_v59 = vld [vmem:[#allocation7 + $0x38] sm:$0xff] }
 0x57d   : > { %8768 = vmatpush1.bf16.msra.mxu0 %v8767_v6  ;;  %v8769_v40 = vpack.c.bf16 %v1648_v26, %v1646_v63  ;;  %v14527_v6 = vld [vmem:[#allocation48_spill] sm:$0xff]  ;;  %v14533_v26 = vld [vmem:[#allocation45_spill] sm:$0xff]  ;;  %v1630_v39 = vld [vmem:[#allocation7 + $0x28] sm:$0xff] }
 0x57e   : > { %v10070_v8 = vpop.eup %10069  ;;  %v2569_v56 = vmul.f32 1.442695, %v2539_v24  ;;  %v1655_v24 = vld [vmem:[#allocation7 + $0xf0] sm:$0xff] }
 0x57f   : > { %2595 = vadd.xlane.f32.xlu0 %v10070_v8  ;;  %v2524_v15 = vpop.xlane.xlu0 %2523  ;;  %8181 = vmatmul.mubr.f32.gmra.mrb[42].mxu1 %v10070_v8 }
 0x580   : > { %10075 = vpow2.f32 %v2569_v56  ;;  %v2540_v20 = vsub.f32 %v12214_v28, %v2524_v15  ;;  %v8771_v28 = vpack.c.bf16 %v1647_v31, %v1645_v14  ;;  %8770 = vmatprep.subr.bf16.mxu0 %v8769_v40  ;;  %v8779_v56 = vpack.c.bf16 %v1655_v24, %v1653_v21  ;;  %v14534_v14 = vld [vmem:[#allocation44_spill] sm:$0xff]  ;;  %v14537_v40 = vld [vmem:[#allocation50_spill] sm:$0xff] }
 0x582   : > { %v10072_v5 = vpop.eup %10071  ;;  %v2571_v9 = vmul.f32 1.442695, %v2540_v20  ;;  %8772 = vmatpush1.bf16.msra.mxu0 %v8771_v28  ;;  %v1626_v20 = vld [vmem:[#allocation7 + $0x8] sm:$0xff] }
 0x583   : > { %2597 = vadd.xlane.f32.xlu1 %v10072_v5  ;;  %8183 = vmatprep.mubr.f32.mxu1 %v10072_v5  ;;  %v1628_v5 = vld [vmem:[#allocation7 + $0x18] sm:$0xff] }
 0x584   : > { %10077 = vpow2.f32 %v2571_v9  ;;  %8774 = vmatprep.subr.bf16.mxu0 %v8773_v12  ;;  %v14374_v9 = vmov 0.0   ;;  %v8781_v61 = vpack.c.bf16 %v1628_v5, %v1626_v20  ;;  %v8785_v5 = vpack.c.bf16 %v1632_v59, %v1630_v39  ;;  %v14539_v39 = vld [vmem:[#allocation40_spill] sm:$0xff] }
 0x585   : > { %2958 = vmatprep.mubr.f32.mxu0 %v14374_v9 }
 0x586   : > { %v10074_v16 = vpop.eup %10073  ;;  %8776 = vmatpush1.bf16.msra.mxu0 %v8775_v42  ;;  %v1627_v42 = vld [vmem:[#allocation7 + $0x10] sm:$0xff] }
 0x587   : > { %2599 = vadd.xlane.f32.xlu0 %v10074_v16  ;;  %8184 = vmatmul.mubr.f32.gmra.mrb[44].mxu1 %v10074_v16  ;;  %v14535_v16 = vpack.i.bf16 %v14533_v26, %v14534_v14  ;;  %v8783_v24 = vpack.c.bf16 %v1627_v42, %v1625_v2  ;;  %v1635_v26 = vld [vmem:[#allocation7 + $0x50] sm:$0xff]  ;;  %v1638_v14 = vld [vmem:[#allocation7 + $0x68] sm:$0xff] }
 0x588   : > { %v12249_v33 = vpop.f32.mrb[16].mxu1  ;;  %8778 = vmatprep.subr.bf16.mxu0 %v8777_v57 }
 0x589   : > { %v12251_v58 = vpop.f32.mrb[17].mxu1 }
 0x58a   : > { %v10076_v49 = vpop.eup %10075  ;;  %8780 = vmatpush1.bf16.msra.mxu0 %v8779_v56 }
 0x58b   : > { %2601 = vadd.xlane.f32.xlu1 %v10076_v49  ;;  %8186 = vmatprep.mubr.f32.mxu1 %v10076_v49 }
 0x58c   : > { %8782 = vmatprep.subr.bf16.mxu0 %v8781_v61  ;;  %v1629_v61 = vld [vmem:[#allocation7 + $0x20] sm:$0xff] }
 0x58e   : > { %v10078_v38 = vpop.eup %10077 }
 0x58f   : > { %2011 = vadd.xlane.f32.xlu1 %v12089_v46  ;;  %2603 = vadd.xlane.f32.xlu0 %v10078_v38 }
 0x590   : > { %v12254_v8 = vpop.f32.mrb[18].mxu1  ;;  %8187 = vmatmul.mubr.f32.gmra.mrb[46].mxu1 %v10078_v38 }
 0x591   : > { %v12256_v15 = vpop.f32.mrb[19].mxu1 }
 0x593   : > { %2015 = vadd.xlane.f32.xlu1 %v12100_v36  ;;  %2013 = vadd.xlane.f32.xlu0 %v12091_v34 }
 0x594   : > { %v12261_v46 = vpop.f32.mrb[20].mxu1 }
 0x595   : > { %v12263_v11 = vpop.f32.mrb[21].mxu1 }
 0x597   : > { %2019 = vadd.xlane.f32.xlu1 %v12108_v44  ;;  %2017 = vadd.xlane.f32.xlu0 %v12102_v60 }
 0x598   : > { %v12267_v29 = vpop.f32.mrb[22].mxu1 }
 0x599   : > { %v12269_v53 = vpop.f32.mrb[23].mxu1 }
 0x59b   : > { %2023 = vadd.xlane.f32.xlu1 %v12120_v32  ;;  %2021 = vadd.xlane.f32.xlu0 %v12110_v27 }
 0x59c   : > { %v12273_v36 = vpop.f32.mrb[24].mxu1 }
 0x59d   : > { %v12275_v34 = vpop.f32.mrb[25].mxu1 }
 0x59f   : > { %2027 = vadd.xlane.f32.xlu1 %v12132_v18  ;;  %2025 = vadd.xlane.f32.xlu0 %v12122_v10  ;;  %v14524_v18 = vld [vmem:[#allocation39_spill] sm:$0xff] }
 0x5a0   : > { %v12279_v19 = vpop.f32.mrb[26].mxu1 }
 0x5a1   : > { %v12281_v44 = vpop.f32.mrb[27].mxu1 }
 0x5a3   : > { %2031 = vadd.xlane.f32.xlu1 %v12144_v7  ;;  %2029 = vadd.xlane.f32.xlu0 %v12134_v22  ;;  %v14525_v22 = vld [vmem:[#allocation37_spill] sm:$0xff] }
 0x5a4   : > { %v12285_v60 = vpop.f32.mrb[28].mxu1  ;;  %v14526_v7 = vpack.i.bf16 %v14524_v18, %v14525_v22  ;;  %v1631_v18 = vld [vmem:[#allocation7 + $0x30] sm:$0xff]  ;;  %v1634_v22 = vld [vmem:[#allocation7 + $0x48] sm:$0xff] }
 0x5a5   : > { %v12287_v32 = vpop.f32.mrb[29].mxu1 }
 0x5a7   : > { %2035 = vadd.xlane.f32.xlu1 %v12155_v30  ;;  %2033 = vadd.xlane.f32.xlu0 %v12146_v13  ;;  %v14528_v30 = vld [vmem:[#allocation47_spill] sm:$0xff]  ;;  %v14530_v13 = vld [vmem:[#allocation42_spill] sm:$0xff] }
 0x5a8   : > { %v14529_v63 = vpack.i.bf16 %v14527_v6, %v14528_v30  ;;  %v8787_v30 = vpack.c.bf16 %v1631_v18, %v1629_v61 }
 0x5ab   : > { %2039 = vadd.xlane.f32.xlu1 %v12176_v62  ;;  %2037 = vadd.xlane.f32.xlu0 %v12161_v51  ;;  %v14531_v62 = vld [vmem:[#allocation41_spill] sm:$0xff] }
 0x5ac   : > { %v12293_v27 = vpop.f32.mrb[30].mxu1  ;;  %v14532_v51 = vpack.i.bf16 %v14530_v13, %v14531_v62 }
 0x5ad   : > { %v12295_v10 = vpop.f32.mrb[31].mxu1 }
 0x5af   : > { %2041 = vadd.xlane.f32.xlu0 %v12178_v47  ;;  %v14536_v47 = vld [vmem:[#allocation51_spill] sm:$0xff] }
 0x5b0   : > { %v14538_v31 = vpack.i.bf16 %v14536_v47, %v14537_v40 }
 0x5b7   : > { %v2574_v4 = vpop.xlane.xlu0 %2573 }
 0x5b8   : > { %10079 = vrcp.f32 %v2574_v4  ;;  %v1637_v4 = vld [vmem:[#allocation7 + $0x60] sm:$0xff] }
 0x5bb   : > { %v2576_v1 = vpop.xlane.xlu0 %2575 }
 0x5bc   : > { %9904 = vrot.lane.b32.xlu1 %v14526_v7, %s10565_s16  ;;  %10081 = vrcp.f32 %v2576_v1  ;;  %v1636_v7 = vld [vmem:[#allocation7 + $0x58] sm:$0xff]  ;;  %v1639_v1 = vld [vmem:[#allocation7 + $0x70] sm:$0xff] }
 0x5bd   : > { %v8789_v62 = vpack.c.bf16 %v1636_v7, %v1634_v22  ;;  %v8795_v2 = vpack.c.bf16 %v1639_v1, %v1637_v4 }
 0x5c0   : > { %9919 = vrot.lane.b32.xlu1 %v14529_v63, %s10565_s16 }
 0x5c2   : > { %v10080_v57 = vpop.eup %10079 }
 0x5c5   : > { %9909 = vrot.lane.b32.xlu0 %v14532_v51, %s10565_s16  ;;  %v1633_v51 = vld [vmem:[#allocation7 + $0x40] sm:$0xff] }
 0x5c6   : > { %v10082_v6 = vpop.eup %10081  ;;  %v8791_v47 = vpack.c.bf16 %v1635_v26, %v1633_v51 }
 0x5c9   : > { %9914 = vrot.lane.b32.xlu0 %v14535_v16, %s10565_s16  ;;  %v1640_v16 = vld [vmem:[#allocation7 + $0x78] sm:$0xff] }
 0x5cd   : > { %9924 = vrot.lane.b32.xlu0 %v14538_v31, %s10565_s16  ;;  %v8793_v31 = vpack.c.bf16 %v1640_v16, %v1638_v14 }
 0x5ec   : > { %v2578_v28 = vpop.xlane.xlu1 %2577 }
 0x5ed   : > { %10083 = vrcp.f32 %v2578_v28 }
 0x5f4   : > { %v2582_v50 = vpop.xlane.xlu1 %2581 }
 0x5f7   : > { %v10084_v7 = vpop.eup %10083 }
 0x5fc   : > { %v12318_v49 = vpop.xlane.xlu1 %2585 }
 0x600   : > { %v12320_v12 = vpop.xlane.xlu1 %2589 }
 0x608   : > { %v12322_v56 = vpop.xlane.xlu1 %2593 }
 0x60e   : > { %v8167_v38 = vpop.f32.mrb[32].mxu1 }
 0x60f   : > { %v2735_v21 = vpop.f32.mrb[33].mxu1  ;;  %v2831_v63 = vmul.f32 %v10082_v6, %v8167_v38 }
 0x610   : > { %v2830_v20 = vmul.f32 %v10080_v57, %v2735_v21  ;;  %v12326_v13 = vpop.xlane.xlu1 %2597 }
 0x612   : > { %7574 = vmatmul.mubr.msk.f32.vlgmr.msra.gmra.mrb[112].mxu0 %vm1689_vm0, %v2830_v20  ;;  %v2580_v20 = vpop.xlane.xlu0 %2579 }
 0x613   : > { %8784 = vmatpush1.bf16.msra.mxu0 %v8783_v24  ;;  %2964 = vmatprep.mubr.f32.mxu0 %v14374_v9  ;;  %10085 = vrcp.f32 %v2580_v20 }
 0x614   : > { %8786 = vmatprep.subr.bf16.mxu0 %v8785_v5  ;;  %10087 = vrcp.f32 %v2582_v50 }
 0x616   : > { %7575 = vmatmul.mubr.msk.f32.gmra.mrb[114].mxu0 %vm1689_vm0, %v2831_v63  ;;  %v2584_v18 = vpop.xlane.xlu0 %2583 }
 0x617   : > { %8788 = vmatpush1.bf16.msra.mxu0 %v8787_v30  ;;  %2970 = vmatprep.mubr.f32.mxu0 %v14374_v9  ;;  %10089 = vrcp.f32 %v2584_v18 }
 0x618   : > { %v12330_v40 = vpop.xlane.xlu1 %2601  ;;  %8790 = vmatprep.subr.bf16.mxu0 %v8789_v62  ;;  %10091 = vrcp.f32 %v12318_v49 }
 0x61b   : > { %8792 = vmatpush1.bf16.msra.mxu0 %v8791_v47  ;;  %v2588_v47 = vpop.xlane.xlu0 %2587 }
 0x61c   : > { %v12332_v42 = vpop.xlane.xlu1 %2011  ;;  %8794 = vmatprep.subr.bf16.mxu0 %v8793_v31  ;;  %10093 = vrcp.f32 %v2588_v47 }
 0x61d   : > { %v10086_v62 = vpop.eup %10085  ;;  %10095 = vrcp.f32 %v12320_v12 }
 0x61e   : > { %v10088_v16 = vpop.eup %10087 }
 0x61f   : > { %8796 = vmatpush1.bf16.msra.mxu0 %v8795_v2  ;;  %v2592_v20 = vpop.xlane.xlu0 %2591 }
 0x620   : > { %8799 = vmatprep.subr.msk.bf16.mxu0 %vm11514_vm1, %v14539_v39  ;;  %v12337_v38 = vpop.xlane.xlu1 %2015  ;;  %10097 = vrcp.f32 %v2592_v20 }
 0x621   : > { %v10090_v2 = vpop.eup %10089  ;;  %10099 = vrcp.f32 %v12322_v56 }
 0x623   : > { %v2596_v12 = vpop.xlane.xlu0 %2595 }
 0x624   : > { %v12339_v57 = vpop.xlane.xlu1 %2019  ;;  %10101 = vrcp.f32 %v2596_v12 }
 0x625   : > { %10103 = vrcp.f32 %v12326_v13 }
 0x628   : > { %v12341_v21 = vpop.xlane.xlu1 %2023 }
 0x62c   : > { %v12343_v24 = vpop.xlane.xlu1 %2027 }
 0x630   : > { %v12345_v5 = vpop.xlane.xlu1 %2031 }
 0x634   : > { %v12347_v61 = vpop.xlane.xlu1 %2035 }
 0x636   : > { %v8170_v22 = vpop.f32.mrb[34].mxu1 }
 0x637   : > { %v2745_v6 = vpop.f32.mrb[35].mxu1  ;;  %v2833_v28 = vmul.f32 %v10086_v62, %v8170_v22  ;;  %v10092_v22 = vpop.eup %10091 }
 0x638   : > { %v2832_v30 = vmul.f32 %v10084_v7, %v2745_v6  ;;  %v12349_v63 = vpop.xlane.xlu1 %2039  ;;  %v10094_v62 = vpop.eup %10093 }
 0x63a   : > { %7576 = vmatmul.mubr.msk.f32.gmra.mrb[116].mxu0 %vm1689_vm0, %v2832_v30 }
 0x63b   : > { %2976 = vmatprep.mubr.f32.mxu0 %v14374_v9 }
 0x63c   : > { %v9905_v51 = vpop.permute.xlu1 %9904 }
 0x63d   : > { %v9907_v26 = vunpack.i.h.bf16 %v9905_v51  ;;  %v9906_v14 = vunpack.i.l.bf16 %v9905_v51 }
 0x63e   : > { %v8173_v50 = vpop.f32.mrb[36].mxu1  ;;  %7577 = vmatmul.mubr.msk.f32.gmra.mrb[118].mxu0 %vm1689_vm0, %v2833_v28 }
 0x63f   : > { %v12355_v31 = vpack.c.bf16 %v9907_v26, %v9906_v14  ;;  %v2755_v4 = vpop.f32.mrb[37].mxu1  ;;  %2982 = vmatprep.mubr.f32.mxu0 %v14374_v9  ;;  %v2835_v49 = vmul.f32 %v10090_v2, %v8173_v50  ;;  %v10096_v26 = vpop.eup %10095 }
 0x640   : > { %v2834_v1 = vmul.f32 %v10088_v16, %v2755_v4  ;;  %v10098_v47 = vpop.eup %10097 }
 0x641   : > { %8895 = vmatprep.subr.msk.bf16.mxu1 %vm11514_vm1, %v12355_v31  ;;  %v10100_v56 = vpop.eup %10099 }
 0x642   : > { %7578 = vmatmul.mubr.msk.f32.gmra.mrb[120].mxu0 %vm1689_vm0, %v2834_v1  ;;  %v2600_v1 = vpop.xlane.xlu0 %2599 }
 0x643   : > { %2988 = vmatprep.mubr.f32.mxu0 %v14374_v9  ;;  %10105 = vrcp.f32 %v2600_v1  ;;  %v14541_v1 = vld [vmem:[#allocation43_spill] sm:$0xff] }
 0x644   : > { %10107 = vrcp.f32 %v12330_v40 }
 0x646   : > { %7579 = vmatmul.mubr.msk.f32.gmra.mrb[122].mxu0 %vm1689_vm0, %v2835_v49 }
 0x647   : > { %v8176_v18 = vpop.f32.mrb[38].mxu1  ;;  %2994 = vmatprep.mubr.f32.mxu0 %v14374_v9 }
 0x648   : > { %v2765_v7 = vpop.f32.mrb[39].mxu1  ;;  %v2837_v51 = vmul.f32 %v10094_v62, %v8176_v18  ;;  %v10102_v18 = vpop.eup %10101 }
 0x649   : > { %v2836_v6 = vmul.f32 %v10092_v22, %v2765_v7  ;;  %v2604_v7 = vpop.xlane.xlu0 %2603  ;;  %v10104_v13 = vpop.eup %10103 }
 0x64a   : > { %10109 = vrcp.f32 %v2604_v7 }
 0x64b   : > { %v8179_v30 = vpop.f32.mrb[40].mxu1  ;;  %7580 = vmatmul.mubr.msk.f32.gmra.mrb[124].mxu0 %vm1689_vm0, %v2836_v6  ;;  %10111 = vrcp.f32 %v12332_v42 }
 0x64c   : > { %v2775_v28 = vpop.f32.mrb[41].mxu1  ;;  %3000 = vmatprep.mubr.f32.mxu0 %v14374_v9  ;;  %v2839_v4 = vmul.f32 %v10098_v47, %v8179_v30 }
 0x64d   : > { %v2838_v14 = vmul.f32 %v10096_v26, %v2775_v28  ;;  %v10106_v62 = vpop.eup %10105 }
 0x64e   : > { %v10108_v40 = vpop.eup %10107 }
 0x64f   : > { %7581 = vmatmul.mubr.msk.f32.gmra.mrb[126].mxu0 %vm1689_vm0, %v2837_v51  ;;  %v2014_v51 = vpop.xlane.xlu0 %2013 }
 0x650   : > { %3006 = vmatprep.mubr.f32.mxu0 %v14374_v9  ;;  %10113 = vrcp.f32 %v2014_v51 }
 0x651   : > { %10115 = vrcp.f32 %v12337_v38 }
 0x652   : > { %v8182_v50 = vpop.f32.mrb[42].mxu1 }
 0x653   : > { %7582 = vmatmul.mubr.msk.f32.gmra.mrb[128].mxu0 %vm1689_vm0, %v2838_v14  ;;  %v2785_v16 = vpop.f32.mrb[43].mxu1  ;;  %v2841_v22 = vmul.f32 %v10102_v18, %v8182_v50  ;;  %v2018_v42 = vpop.xlane.xlu0 %2017  ;;  %v14543_v18 = vld [vmem:[#allocation49_spill] sm:$0xff] }
 0x654   : > { %3012 = vmatprep.mubr.f32.mxu0 %v14374_v9  ;;  %v2840_v2 = vmul.f32 %v10100_v56, %v2785_v16  ;;  %v10110_v14 = vpop.eup %10109  ;;  %10117 = vrcp.f32 %v2018_v42 }
 0x655   : > { %v10112_v16 = vpop.eup %10111  ;;  %10119 = vrcp.f32 %v12339_v57 }
 0x656   : > { %v2204_v47 = vmul.f32 %v10112_v16, %v12251_v58 }
 0x657   : > { %7583 = vmatmul.mubr.msk.f32.gmra.mrb[130].mxu0 %vm1689_vm0, %v2839_v4  ;;  %v2022_v38 = vpop.xlane.xlu0 %2021 }
 0x658   : > { %3018 = vmatprep.mubr.f32.mxu0 %v14374_v9  ;;  %10121 = vrcp.f32 %v2022_v38  ;;  %v14550_v38 = vld [vmem:[#allocation23_spill] sm:$0xff] }
 0x659   : > { %10123 = vrcp.f32 %v12341_v21 }
 0x65a   : > { %v8185_v49 = vpop.f32.mrb[44].mxu1  ;;  %v10114_v4 = vpop.eup %10113 }
 0x65b   : > { %7584 = vmatmul.mubr.msk.f32.gmra.mrb[132].mxu0 %vm1689_vm0, %v2840_v2  ;;  %v2795_v20 = vpop.f32.mrb[45].mxu1  ;;  %v2843_v12 = vmul.f32 %v10106_v62, %v8185_v49  ;;  %v2205_v56 = vmul.f32 %v10114_v4, %v12249_v33  ;;  %v10116_v2 = vpop.eup %10115  ;;  %v14545_v62 = vld [vmem:[#allocation55_spill] sm:$0xff] }
 0x65c   : > { %3024 = vmatprep.mubr.f32.mxu0 %v14374_v9  ;;  %v2842_v6 = vmul.f32 %v10104_v13, %v2795_v20  ;;  %v2206_v58 = vmul.f32 %v10116_v2, %v12256_v15  ;;  %v2026_v33 = vpop.xlane.xlu0 %2025  ;;  %v14544_v13 = vld [vmem:[#allocation52_spill] sm:$0xff]  ;;  %v14552_v2 = vld [vmem:[#allocation25_spill] sm:$0xff] }
 0x65d   : > { %10125 = vrcp.f32 %v2026_v33 }
 0x65e   : > { %v10118_v57 = vpop.eup %10117  ;;  %10127 = vrcp.f32 %v12343_v24 }
 0x65f   : > { %7585 = vmatmul.mubr.msk.f32.gmra.mrb[134].mxu0 %vm1689_vm0, %v2841_v22  ;;  %v2207_v49 = vmul.f32 %v10118_v57, %v12254_v8  ;;  %v10120_v20 = vpop.eup %10119  ;;  %v14553_v57 = vld [vmem:[#allocation26_spill] sm:$0xff] }
 0x660   : > { %3030 = vmatprep.mubr.f32.mxu0 %v14374_v9  ;;  %v2208_v15 = vmul.f32 %v10120_v20, %v12263_v11  ;;  %v2030_v8 = vpop.xlane.xlu0 %2029  ;;  %v12515_v33 = vmul.f32 0.0625, %v14553_v57  ;;  %v14555_v20 = vld [vmem:[#allocation28_spill] sm:$0xff] }
 0x661   : > { %10129 = vrcp.f32 %v2030_v8 }
 0x662   : > { %v10122_v21 = vpop.eup %10121  ;;  %10131 = vrcp.f32 %v12345_v5 }
 0x663   : > { %v8188_v30 = vpop.f32.mrb[46].mxu1  ;;  %7586 = vmatmul.mubr.msk.f32.gmra.mrb[136].mxu0 %vm1689_vm0, %v2842_v6  ;;  %v2209_v22 = vmul.f32 %v10122_v21, %v12261_v46  ;;  %v10124_v7 = vpop.eup %10123  ;;  %v14556_v21 = vld [vmem:[#allocation29_spill] sm:$0xff] }
 0x664   : > { %v2805_v28 = vpop.f32.mrb[47].mxu1  ;;  %3036 = vmatprep.mubr.f32.mxu0 %v14374_v9  ;;  %v2845_v50 = vmul.f32 %v10110_v14, %v8188_v30  ;;  %v2210_v11 = vmul.f32 %v10124_v7, %v12269_v53  ;;  %v2034_v46 = vpop.xlane.xlu0 %2033  ;;  %v14547_v14 = vld [vmem:[#allocation61_spill] sm:$0xff]  ;;  %v12528_v8 = vmul.f32 0.0625, %v14556_v21  ;;  %v14558_v7 = vld [vmem:[#allocation31_spill] sm:$0xff] }
 0x665   : > { %v2844_v26 = vmul.f32 %v10108_v40, %v2805_v28  ;;  %10133 = vrcp.f32 %v2034_v46 }
 0x666   : > { %10135 = vrcp.f32 %v12347_v61 }
 0x667   : > { %7587 = vmatmul.mubr.msk.f32.gmra.mrb[138].mxu0 %vm1689_vm0, %v2843_v12  ;;  %v10126_v24 = vpop.eup %10125  ;;  %v14546_v12 = vld [vmem:[#allocation58_spill] sm:$0xff] }
 0x668   : > { %3042 = vmatprep.mubr.f32.mxu0 %v14374_v9  ;;  %v2211_v6 = vmul.f32 %v10126_v24, %v12267_v29  ;;  %v10128_v30 = vpop.eup %10127  ;;  %v2038_v29 = vpop.xlane.xlu0 %2037  ;;  %v14559_v24 = vld [vmem:[#allocation32_spill] sm:$0xff] }
 0x669   : > { %v2212_v53 = vmul.f32 %v10128_v30, %v12275_v34  ;;  %10137 = vrcp.f32 %v2038_v29  ;;  %v12545_v46 = vmul.f32 0.0625, %v14559_v24  ;;  %v14561_v30 = vld [vmem:[#allocation34_spill] sm:$0xff]  ;;  %v14570_v24 = vld [vmem:[#allocation56_spill] sm:$0xff] }
 0x66a   : > { %10139 = vrcp.f32 %v12349_v63 }
 0x66b   : > { %7588 = vmatmul.mubr.msk.f32.gmra.mrb[140].mxu0 %vm1689_vm0, %v2844_v26  ;;  %v10130_v5 = vpop.eup %10129 }
 0x66c   : > { %3048 = vmatprep.mubr.f32.mxu0 %v14374_v9  ;;  %v2213_v28 = vmul.f32 %v10130_v5, %v12273_v36  ;;  %v10132_v51 = vpop.eup %10131  ;;  %v2042_v36 = vpop.xlane.xlu0 %2041  ;;  %v14562_v5 = vld [vmem:[#allocation35_spill] sm:$0xff] }
 0x66d   : > { %v2214_v34 = vmul.f32 %v10132_v51, %v12281_v44  ;;  %10141 = vrcp.f32 %v2042_v36  ;;  %v12558_v29 = vmul.f32 0.0625, %v14562_v5 }
 0x66f   : > { %7589 = vmatmul.mubr.msk.f32.gmra.mrb[142].mxu0 %vm1689_vm0, %v2845_v50  ;;  %v10134_v61 = vpop.eup %10133 }
 0x670   : > { %3167 = vmatprep.mubr.f32.mxu0 %v14374_v9  ;;  %v2215_v40 = vmul.f32 %v10134_v61, %v12279_v19  ;;  %v10136_v26 = vpop.eup %10135 }
 0x671   : > { %v2216_v44 = vmul.f32 %v10136_v26, %v12287_v32 }
 0x673   : > { %7590 = vmatmul.mubr.msk.f32.vlgmr.msra.gmra.mrb[112].mxu0 %vm1689_vm0, %v2204_v47  ;;  %v10138_v63 = vpop.eup %10137  ;;  %v14548_v47 = vld [vmem:[#allocation21_spill] sm:$0xff] }
 0x674   : > { %8802 = vmatpush3.bf16.xpose.msk.msra.mxu0 %vm11514_vm1, %v14539_v39  ;;  %3173 = vmatprep.mubr.f32.mxu0 %v14374_v9  ;;  %v14542_v39 = vld [vmem:[#allocation46_spill] sm:$0xff]  ;;  %v2217_v19 = vmul.f32 %v10138_v63, %v12285_v60  ;;  %v10140_v42 = vpop.eup %10139  ;;  %v12489_v60 = vmul.f32 0.0625, %v14548_v47 }
 0x675   : > { %8805 = vmatprep.subr.msk.bf16.mxu0 %vm11514_vm1, %v14541_v1  ;;  %v2218_v32 = vmul.f32 %v10140_v42, %v12295_v10  ;;  %v14549_v10 = vld [vmem:[#allocation22_spill] sm:$0xff] }
 0x676   : > { %v12495_v4 = vmul.f32 0.0625, %v14549_v10 }
 0x677   : > { %7591 = vmatmul.mubr.msk.f32.gmra.mrb[114].mxu0 %vm1689_vm0, %v2205_v56  ;;  %v10142_v50 = vpop.eup %10141 }
 0x678   : > { %3179 = vmatprep.mubr.f32.mxu0 %v14374_v9  ;;  %v2219_v16 = vmul.f32 %v10142_v50, %v12293_v27  ;;  %v14551_v27 = vld [vmem:[#allocation24_spill] sm:$0xff] }
 0x679   : > { %v12505_v56 = vmul.f32 0.0625, %v14551_v27  ;;  %v14566_v27 = vld [vmem:[#allocation54_spill] sm:$0xff] }
 0x67b   : > { %7592 = vmatmul.mubr.msk.f32.gmra.mrb[116].mxu0 %vm1689_vm0, %v2206_v58  ;;  %v12508_v58 = vmul.f32 0.0625, %v14552_v2  ;;  %v14567_v2 = vld [vmem:[#allocation53_spill] sm:$0xff] }
 0x67c   : > { %8808 = vmatpush3.bf16.xpose.msk.msra.mxu0 %vm11514_vm1, %v14541_v1  ;;  %3185 = vmatprep.mubr.f32.mxu0 %v14374_v9  ;;  %v12498_v1 = vmul.f32 0.0625, %v14550_v38  ;;  %v14568_v57 = vpack.i.bf16 %v14566_v27, %v14567_v2  ;;  %v14587_v2 = vld [vmem:[#allocation75_spill] sm:$0xff] }
 0x67d   : > { %8811 = vmatprep.subr.msk.bf16.mxu0 %vm11514_vm1, %v14542_v39 }
 0x67f   : > { %7593 = vmatmul.mubr.msk.f32.gmra.mrb[118].mxu0 %vm1689_vm0, %v2207_v49 }
 0x680   : > { %3191 = vmatprep.mubr.f32.mxu0 %v14374_v9 }
 0x683   : > { %7594 = vmatmul.mubr.msk.f32.gmra.mrb[120].mxu0 %vm1689_vm0, %v2208_v15  ;;  %v12525_v15 = vmul.f32 0.0625, %v14555_v20 }
 0x684   : > { %8814 = vmatpush3.bf16.xpose.msk.msra.mxu0 %vm11514_vm1, %v14542_v39  ;;  %3197 = vmatprep.mubr.f32.mxu0 %v14374_v9  ;;  %v14554_v39 = vld [vmem:[#allocation27_spill] sm:$0xff] }
 0x685   : > { %8817 = vmatprep.subr.msk.bf16.mxu0 %vm11514_vm1, %v14543_v18  ;;  %v12518_v49 = vmul.f32 0.0625, %v14554_v39 }
 0x687   : > { %7595 = vmatmul.mubr.msk.f32.gmra.mrb[122].mxu0 %vm1689_vm0, %v2209_v22 }
 0x688   : > { %3203 = vmatprep.mubr.f32.mxu0 %v14374_v9 }
 0x68b   : > { %7596 = vmatmul.mubr.msk.f32.gmra.mrb[124].mxu0 %vm1689_vm0, %v2210_v11  ;;  %v12538_v11 = vmul.f32 0.0625, %v14558_v7  ;;  %v14569_v7 = vld [vmem:[#allocation57_spill] sm:$0xff] }
 0x68c   : > { %8820 = vmatpush3.bf16.xpose.msk.msra.mxu0 %vm11514_vm1, %v14543_v18  ;;  %3209 = vmatprep.mubr.f32.mxu0 %v14374_v9  ;;  %v14557_v18 = vld [vmem:[#allocation30_spill] sm:$0xff] }
 0x68d   : > { %8823 = vmatprep.subr.msk.bf16.mxu0 %vm11514_vm1, %v14544_v13  ;;  %v12535_v22 = vmul.f32 0.0625, %v14557_v18 }
 0x68f   : > { %7597 = vmatmul.mubr.msk.f32.gmra.mrb[126].mxu0 %vm1689_vm0, %v2211_v6 }
 0x690   : > { %3215 = vmatprep.mubr.f32.mxu0 %v14374_v9 }
 0x693   : > { %7598 = vmatmul.mubr.msk.f32.gmra.mrb[128].mxu0 %vm1689_vm0, %v2212_v53  ;;  %v12555_v53 = vmul.f32 0.0625, %v14561_v30 }
 0x694   : > { %8826 = vmatpush3.bf16.xpose.msk.msra.mxu0 %vm11514_vm1, %v14544_v13  ;;  %3221 = vmatprep.mubr.f32.mxu0 %v14374_v9  ;;  %v14560_v13 = vld [vmem:[#allocation33_spill] sm:$0xff] }
 0x695   : > { %8829 = vmatprep.subr.msk.bf16.mxu0 %vm11514_vm1, %v14545_v62  ;;  %v12548_v6 = vmul.f32 0.0625, %v14560_v13  ;;  %v14571_v13 = vpack.i.bf16 %v14569_v7, %v14570_v24 }
 0x697   : > { %7599 = vmatmul.mubr.msk.f32.gmra.mrb[130].mxu0 %vm1689_vm0, %v2213_v28 }
 0x698   : > { %3227 = vmatprep.mubr.f32.mxu0 %v14374_v9 }
 0x69b   : > { %7600 = vmatmul.mubr.msk.f32.gmra.mrb[132].mxu0 %vm1689_vm0, %v2214_v34  ;;  %v14564_v34 = vld [vmem:[#allocation86_spill] sm:$0xff] }
 0x69c   : > { %8832 = vmatpush3.bf16.xpose.msk.msra.mxu0 %vm11514_vm1, %v14545_v62  ;;  %3233 = vmatprep.mubr.f32.mxu0 %v14374_v9  ;;  %v14563_v62 = vld [vmem:[#allocation36_spill] sm:$0xff] }
 0x69d   : > { %8835 = vmatprep.subr.msk.bf16.mxu0 %vm11514_vm1, %v14546_v12  ;;  %v12565_v28 = vmul.f32 0.0625, %v14563_v62 }
 0x69f   : > { %7601 = vmatmul.mubr.msk.f32.gmra.mrb[134].mxu0 %vm1689_vm0, %v2215_v40 }
 0x6a0   : > { %3239 = vmatprep.mubr.f32.mxu0 %v14374_v9 }
 0x6a3   : > { %7602 = vmatmul.mubr.msk.f32.gmra.mrb[136].mxu0 %vm1689_vm0, %v2216_v44 }
 0x6a4   : > { %8838 = vmatpush3.bf16.xpose.msk.msra.mxu0 %vm11514_vm1, %v14546_v12  ;;  %3245 = vmatprep.mubr.f32.mxu0 %v14374_v9  ;;  %v14565_v12 = vld [vmem:[#allocation87_spill] sm:$0xff] }
 0x6a5   : > { %8841 = vmatprep.subr.msk.bf16.mxu0 %vm11514_vm1, %v14547_v14 }
 0x6a7   : > { %7603 = vmatmul.mubr.msk.f32.gmra.mrb[138].mxu0 %vm1689_vm0, %v2217_v19 }
 0x6a8   : > { %3251 = vmatprep.mubr.f32.mxu0 %v14374_v9 }
 0x6ab   : > { %7604 = vmatmul.mubr.msk.f32.gmra.mrb[140].mxu0 %vm1689_vm0, %v2218_v32 }
 0x6ac   : > { %8844 = vmatpush3.bf16.xpose.msk.msra.mxu0 %vm11514_vm1, %v14547_v14  ;;  %3257 = vmatprep.mubr.f32.mxu0 %v14374_v9 }
 0x6af   : > { %7605 = vmatmul.mubr.msk.f32.gmra.mrb[142].mxu0 %vm1689_vm0, %v2219_v16 }
 0x6b0   : > { %8221 = vmatprep.mubr.msk.f32.mxu0 %vm1689_vm0, %v12489_v60 }
 0x6b3   : > { %8222 = vmatmul.mubr.msk.f32.vlgmr.msra.gmra.mrb[144].mxu0 %vm1689_vm0, %v12495_v4 }
 0x6b4   : > { %8224 = vmatprep.mubr.msk.f32.mxu0 %vm1689_vm0, %v12498_v1 }
 0x6b7   : > { %8225 = vmatmul.mubr.msk.f32.gmra.mrb[146].mxu0 %vm1689_vm0, %v12505_v56 }
 0x6b8   : > { %8227 = vmatprep.mubr.msk.f32.mxu0 %vm1689_vm0, %v12508_v58 }
 0x6bb   : > { %8228 = vmatmul.mubr.msk.f32.gmra.mrb[148].mxu0 %vm1689_vm0, %v12515_v33 }
 0x6bc   : > { %8230 = vmatprep.mubr.msk.f32.mxu0 %vm1689_vm0, %v12518_v49 }
 0x6bf   : > { %8231 = vmatmul.mubr.msk.f32.gmra.mrb[150].mxu0 %vm1689_vm0, %v12525_v15 }
 0x6c0   : > { %8233 = vmatprep.mubr.msk.f32.mxu0 %vm1689_vm0, %v12528_v8 }
 0x6c3   : > { %8234 = vmatmul.mubr.msk.f32.gmra.mrb[152].mxu0 %vm1689_vm0, %v12535_v22 }
 0x6c4   : > { %8236 = vmatprep.mubr.msk.f32.mxu0 %vm1689_vm0, %v12538_v11 }
 0x6c7   : > { %8237 = vmatmul.mubr.msk.f32.gmra.mrb[154].mxu0 %vm1689_vm0, %v12545_v46 }
 0x6c8   : > { %8239 = vmatprep.mubr.msk.f32.mxu0 %vm1689_vm0, %v12548_v6 }
 0x6cb   : > { %8240 = vmatmul.mubr.msk.f32.gmra.mrb[156].mxu0 %vm1689_vm0, %v12555_v53 }
 0x6cc   : > { %8242 = vmatprep.mubr.msk.f32.mxu0 %vm1689_vm0, %v12558_v29 }
 0x6cf   : > { %8243 = vmatmul.mubr.msk.f32.gmra.mrb[158].mxu0 %vm1689_vm0, %v12565_v28 }
 0x6d0   : > { %3906 = vmatprep.mubr.f32.mxu0 %v14374_v9  ;;  %v14599_v9 = vld [vmem:[#allocation77_spill] sm:$0xff] }
 0x786   : > { %v8223_v51 = vpop.f32.mrb[144].mxu0 }
 0x787   : > { %v12571_v61 = vadd.f32 %v8223_v51, %v14564_v34  ;;  %v3426_v36 = vpop.f32.mrb[145].mxu0 }
 0x788   : > { %v12574_v40 = vadd.f32 %v3426_v36, %v14565_v12 }
 0x789   : > { %3507 = vmax.xlane.f32.xlu0 %v12571_v61 }
 0x78a   : > { %v8226_v26 = vpop.f32.mrb[146].mxu0  ;;  %3505 = vmax.xlane.f32.xlu1 %v12574_v40 }
 0x78b   : > { %v3436_v44 = vpop.f32.mrb[147].mxu0  ;;  %v12595_v30 = vadd.f32 %v8226_v26, %v11899_v43 }
 0x78c   : > { %v12579_v63 = vadd.f32 %v3436_v44, %v11914_v25 }
 0x78e   : > { %v8229_v14 = vpop.f32.mrb[148].mxu0  ;;  %3509 = vmax.xlane.f32.xlu0 %v12579_v63 }
 0x78f   : > { %v3446_v19 = vpop.f32.mrb[149].mxu0  ;;  %v12599_v5 = vadd.f32 %v8229_v14, %v11911_v48 }
 0x790   : > { %v12583_v42 = vadd.f32 %v3446_v19, %v11931_v54 }
 0x792   : > { %v8232_v32 = vpop.f32.mrb[150].mxu0  ;;  %3513 = vmax.xlane.f32.xlu0 %v12583_v42 }
 0x793   : > { %v3456_v50 = vpop.f32.mrb[151].mxu0  ;;  %v12603_v62 = vadd.f32 %v8232_v32, %v11928_v45 }
 0x794   : > { %v12611_v36 = vadd.f32 %v3456_v50, %v11949_v37 }
 0x796   : > { %v8235_v16 = vpop.f32.mrb[152].mxu0 }
 0x797   : > { %v3466_v47 = vpop.f32.mrb[153].mxu0  ;;  %v12619_v44 = vadd.f32 %v8235_v16, %v11946_v17 }
 0x798   : > { %v12627_v19 = vadd.f32 %v3466_v47, %v11967_v23  ;;  %v14572_v47 = vld [vmem:[#allocation60_spill] sm:$0xff] }
 0x79a   : > { %v8238_v10 = vpop.f32.mrb[154].mxu0 }
 0x79b   : > { %v3476_v38 = vpop.f32.mrb[155].mxu0  ;;  %9929 = vrot.lane.b32.xlu1 %v14568_v57, %s10565_s16  ;;  %v12606_v51 = vadd.f32 %v8238_v10, %v11964_v0  ;;  %v14573_v10 = vld [vmem:[#allocation59_spill] sm:$0xff] }
 0x79c   : > { %v12631_v32 = vadd.f32 %v3476_v38, %v11984_v55  ;;  %v14574_v27 = vpack.i.bf16 %v14572_v47, %v14573_v10  ;;  %v9920_v38 = vpop.permute.xlu1 %9919 }
 0x79e   : > { %v8241_v39 = vpop.f32.mrb[156].mxu0 }
 0x79f   : > { %v3486_v20 = vpop.f32.mrb[157].mxu0  ;;  %v12614_v26 = vadd.f32 %v8241_v39, %v11981_v41 }
 0x7a0   : > { %v12635_v50 = vadd.f32 %v3486_v20, %v11997_v35 }
 0x7a2   : > { %v8244_v21 = vpop.f32.mrb[158].mxu0 }
 0x7a3   : > { %v3496_v18 = vpop.f32.mrb[159].mxu0  ;;  %v12639_v16 = vadd.f32 %v8244_v21, %v12007_v3 }
 0x7a4   : > { %v12622_v14 = vadd.f32 %v3496_v18, %v12015_v52 }
 0x7a8   : > { %9934 = vrot.lane.b32.xlu0 %v14571_v13, %s10565_s16 }
 0x7bf   : > { %3511 = vmax.xlane.f32.xlu1 %v12595_v30 }
 0x7c3   : > { %3515 = vmax.xlane.f32.xlu1 %v12599_v5 }
 0x7c7   : > { %3527 = vmax.xlane.f32.xlu0 %v12606_v51  ;;  %3519 = vmax.xlane.f32.xlu1 %v12603_v62 }
 0x7cb   : > { %3531 = vmax.xlane.f32.xlu0 %v12614_v26  ;;  %3517 = vmax.xlane.f32.xlu1 %v12611_v36 }
 0x7cf   : > { %3533 = vmax.xlane.f32.xlu0 %v12622_v14  ;;  %3523 = vmax.xlane.f32.xlu1 %v12619_v44 }
 0x7d3   : > { %3521 = vmax.xlane.f32.xlu1 %v12627_v19 }
 0x7d7   : > { %3525 = vmax.xlane.f32.xlu1 %v12631_v32 }
 0x7db   : > { %3529 = vmax.xlane.f32.xlu1 %v12635_v50 }
 0x7df   : > { %3535 = vmax.xlane.f32.xlu1 %v12639_v16 }
 0x7e5   : > { %9939 = vrot.lane.b32.xlu0 %v14574_v27, %s10565_s16 }
 0x7e9   : > { %4035 = vrot.lane.b32.xlu0 %v12489_v60, %s10565_s16  ;;  %v9910_v60 = vpop.permute.xlu0 %9909 }
 0x7ea   : > { %v9912_v27 = vunpack.i.h.bf16 %v9910_v60 }
 0x7ed   : > { %4039 = vrot.lane.b32.xlu0 %v12498_v1, %s10565_s16  ;;  %v14576_v1 = vld [vmem:[#allocation62_spill] sm:$0xff] }
 0x7f0   : > { %4037 = vrot.lane.b32.xlu1 %v12495_v4, %s10565_s16  ;;  %v14575_v4 = vld [vmem:[#allocation63_spill] sm:$0xff] }
 0x7f1   : > { %4043 = vrot.lane.b32.xlu0 %v12508_v58, %s10565_s16  ;;  %v9915_v58 = vpop.permute.xlu0 %9914 }
 0x7f4   : > { %4041 = vrot.lane.b32.xlu1 %v12505_v56, %s10565_s16  ;;  %v14577_v56 = vpack.i.bf16 %v14575_v4, %v14576_v1  ;;  %v9911_v4 = vunpack.i.l.bf16 %v9910_v60  ;;  %v9916_v60 = vunpack.i.l.bf16 %v9915_v58 }
 0x7f5   : > { %4047 = vrot.lane.b32.xlu0 %v12518_v49, %s10565_s16  ;;  %v14579_v49 = vld [vmem:[#allocation65_spill] sm:$0xff] }
 0x7f8   : > { %4045 = vrot.lane.b32.xlu1 %v12515_v33, %s10565_s16  ;;  %v14578_v33 = vld [vmem:[#allocation66_spill] sm:$0xff] }
 0x7f9   : > { %4051 = vrot.lane.b32.xlu0 %v12528_v8, %s10565_s16  ;;  %v14581_v8 = vld [vmem:[#allocation69_spill] sm:$0xff] }
 0x7fc   : > { %4049 = vrot.lane.b32.xlu1 %v12525_v15, %s10565_s16  ;;  %v14580_v15 = vpack.i.bf16 %v14578_v33, %v14579_v49  ;;  %v9922_v49 = vunpack.i.h.bf16 %v9920_v38 }
 0x7fd   : > { %4055 = vrot.lane.b32.xlu0 %v12538_v11, %s10565_s16 }
 0x800   : > { %4053 = vrot.lane.b32.xlu1 %v12535_v22, %s10565_s16  ;;  %v14582_v22 = vld [vmem:[#allocation68_spill] sm:$0xff] }
 0x801   : > { %4059 = vrot.lane.b32.xlu0 %v12548_v6, %s10565_s16  ;;  %v14583_v11 = vpack.i.bf16 %v14581_v8, %v14582_v22  ;;  %v14585_v6 = vld [vmem:[#allocation71_spill] sm:$0xff] }
 0x804   : > { %4057 = vrot.lane.b32.xlu1 %v12545_v46, %s10565_s16  ;;  %v14584_v46 = vld [vmem:[#allocation72_spill] sm:$0xff] }
 0x805   : > { %4063 = vrot.lane.b32.xlu0 %v12558_v29, %s10565_s16  ;;  %v9925_v29 = vpop.permute.xlu0 %9924 }
 0x806   : > { %v9926_v22 = vunpack.i.l.bf16 %v9925_v29 }
 0x808   : > { %4061 = vrot.lane.b32.xlu1 %v12555_v53, %s10565_s16  ;;  %v14586_v53 = vpack.i.bf16 %v14584_v46, %v14585_v6 }
 0x809   : > { %9944 = vrot.lane.b32.xlu0 %v14577_v56, %s10565_s16 }
 0x80c   : > { %4065 = vrot.lane.b32.xlu1 %v12565_v28, %s10565_s16  ;;  %v14588_v28 = vld [vmem:[#allocation74_spill] sm:$0xff] }
 0x80d   : > { %9949 = vrot.lane.b32.xlu0 %v14580_v15, %s10565_s16  ;;  %v14589_v57 = vpack.i.bf16 %v14587_v2, %v14588_v28  ;;  %v9921_v15 = vunpack.i.l.bf16 %v9920_v38 }
 0x80f   : > { %v8911_v8 = vpack.c.bf16 %v9922_v49, %v9921_v15 }
 0x810   : > { %9954 = vrot.lane.b32.xlu1 %v14583_v11, %s10565_s16 }
 0x811   : > { %9959 = vrot.lane.b32.xlu0 %v14586_v53, %s10565_s16 }
 0x815   : > { %9964 = vrot.lane.b32.xlu0 %v14589_v57, %s10565_s16 }
 0x816   : > { %v3508_v39 = vpop.xlane.xlu0 %3507 }
 0x817   : > { %v3538_v20 = vsub.f32 %v12571_v61, %v3508_v39  ;;  %v3506_v21 = vpop.xlane.xlu1 %3505  ;;  %v8899_v61 = vpack.c.bf16 %v9912_v27, %v9911_v4 }
 0x818   : > { %v3537_v18 = vsub.f32 %v12574_v40, %v3506_v21 }
 0x819   : > { %v3555_v7 = vmul.f32 1.442695, %v3538_v20 }
 0x81a   : > { %v3553_v24 = vmul.f32 1.442695, %v3537_v18 }
 0x81b   : > { %v3510_v13 = vpop.xlane.xlu0 %3509 }
 0x81c   : > { %10143 = vpow2.f32 %v3553_v24  ;;  %v3539_v47 = vsub.f32 %v12579_v63, %v3510_v13  ;;  %v9917_v63 = vunpack.i.h.bf16 %v9915_v58  ;;  %v9930_v58 = vpop.permute.xlu1 %9929 }
 0x81d   : > { %10145 = vpow2.f32 %v3555_v7  ;;  %v9932_v6 = vunpack.i.h.bf16 %v9930_v58  ;;  %v9931_v53 = vunpack.i.l.bf16 %v9930_v58 }
 0x81e   : > { %v3557_v10 = vmul.f32 1.442695, %v3539_v47  ;;  %v8905_v33 = vpack.c.bf16 %v9917_v63, %v9916_v60 }
 0x81f   : > { %v3514_v46 = vpop.xlane.xlu0 %3513  ;;  %v8923_v38 = vpack.c.bf16 %v9932_v6, %v9931_v53 }
 0x820   : > { %10147 = vpow2.f32 %v3557_v10  ;;  %v3541_v28 = vsub.f32 %v12583_v42, %v3514_v46 }
 0x822   : > { %v3561_v21 = vmul.f32 1.442695, %v3541_v28 }
 0x823   : > { %v9935_v2 = vpop.permute.xlu0 %9934 }
 0x824   : > { %v9936_v57 = vunpack.i.l.bf16 %v9935_v2 }
 0x826   : > { %v12701_v1 = vpop.eup %10143 }
 0x827   : > { %v12703_v56 = vpop.eup %10145  ;;  %8277 = vmatprep.mubr.f32.mxu1 %v12701_v1 }
 0x828   : > { %8278 = vmatmul.mubr.f32.vlgmr.msra.gmra.mrb[48].mxu1 %v12703_v56 }
 0x829   : > { %8898 = vmatpush3.bf16.xpose.msk.msra.mxu1 %vm11514_vm1, %v12355_v31  ;;  %v9927_v31 = vunpack.i.h.bf16 %v9925_v29  ;;  %v9937_v29 = vunpack.i.h.bf16 %v9935_v2 }
 0x82a   : > { %v12710_v40 = vpop.eup %10147  ;;  %8901 = vmatprep.subr.msk.bf16.mxu1 %vm11514_vm1, %v8899_v61 }
 0x82b   : > { %8280 = vmatprep.mubr.f32.mxu1 %v12710_v40  ;;  %v8917_v11 = vpack.c.bf16 %v9927_v31, %v9926_v22  ;;  %v8929_v7 = vpack.c.bf16 %v9937_v29, %v9936_v57 }
 0x831   : > { %8904 = vmatpush3.bf16.xpose.msk.msra.mxu1 %vm11514_vm1, %v8899_v61 }
 0x832   : > { %8907 = vmatprep.subr.msk.bf16.mxu1 %vm11514_vm1, %v8905_v33 }
 0x839   : > { %8910 = vmatpush3.bf16.xpose.msk.msra.mxu1 %vm11514_vm1, %v8905_v33 }
 0x83a   : > { %8913 = vmatprep.subr.msk.bf16.mxu1 %vm11514_vm1, %v8911_v8 }
 0x841   : > { %8916 = vmatpush3.bf16.xpose.msk.msra.mxu1 %vm11514_vm1, %v8911_v8 }
 0x842   : > { %8919 = vmatprep.subr.msk.bf16.mxu1 %vm11514_vm1, %v8917_v11 }
 0x849   : > { %8922 = vmatpush3.bf16.xpose.msk.msra.mxu1 %vm11514_vm1, %v8917_v11 }
 0x84a   : > { %8925 = vmatprep.subr.msk.bf16.mxu1 %vm11514_vm1, %v8923_v38 }
 0x84c   : > { %v3512_v39 = vpop.xlane.xlu1 %3511 }
 0x84d   : > { %v3540_v20 = vsub.f32 %v12595_v30, %v3512_v39 }
 0x84f   : > { %v3559_v18 = vmul.f32 1.442695, %v3540_v20 }
 0x850   : > { %v3516_v24 = vpop.xlane.xlu1 %3515 }
 0x851   : > { %10149 = vpow2.f32 %v3559_v18  ;;  %v3542_v13 = vsub.f32 %v12599_v5, %v3516_v24  ;;  %8928 = vmatpush3.bf16.xpose.msk.msra.mxu1 %vm11514_vm1, %v8923_v38 }
 0x852   : > { %10151 = vpow2.f32 %v3561_v21  ;;  %8931 = vmatprep.subr.msk.bf16.mxu1 %vm11514_vm1, %v8929_v7 }
 0x853   : > { %v3563_v42 = vmul.f32 1.442695, %v3542_v13 }
 0x854   : > { %v3528_v47 = vpop.xlane.xlu0 %3527  ;;  %v3520_v10 = vpop.xlane.xlu1 %3519 }
 0x855   : > { %10153 = vpow2.f32 %v3563_v42  ;;  %v3544_v30 = vsub.f32 %v12603_v62, %v3520_v10  ;;  %v3548_v46 = vsub.f32 %v12606_v51, %v3528_v47 }
 0x857   : > { %v3567_v63 = vmul.f32 1.442695, %v3544_v30  ;;  %v3575_v29 = vmul.f32 1.442695, %v3548_v46 }
 0x858   : > { %v3532_v27 = vpop.xlane.xlu0 %3531  ;;  %v3518_v4 = vpop.xlane.xlu1 %3517 }
 0x859   : > { %v3543_v61 = vsub.f32 %v12611_v36, %v3518_v4  ;;  %8934 = vmatpush3.bf16.xpose.msk.msra.mxu1 %vm11514_vm1, %v8929_v7  ;;  %v3550_v57 = vsub.f32 %v12614_v26, %v3532_v27 }
 0x85b   : > { %v12742_v5 = vpop.eup %10149  ;;  %v3565_v60 = vmul.f32 1.442695, %v3543_v61  ;;  %v3579_v26 = vmul.f32 1.442695, %v3550_v57 }
 0x85c   : > { %v12744_v33 = vpop.eup %10151  ;;  %v3534_v49 = vpop.xlane.xlu0 %3533  ;;  %8281 = vmatmul.mubr.f32.gmra.mrb[50].mxu1 %v12742_v5 }
 0x85d   : > { %v3524_v15 = vpop.xlane.xlu1 %3523  ;;  %8283 = vmatprep.mubr.f32.mxu1 %v12744_v33  ;;  %10155 = vpow2.f32 %v3565_v60  ;;  %v3551_v51 = vsub.f32 %v12622_v14, %v3534_v49 }
 0x85e   : > { %v3546_v62 = vsub.f32 %v12619_v44, %v3524_v15  ;;  %10157 = vpow2.f32 %v3567_v63 }
 0x85f   : > { %v12749_v8 = vpop.eup %10153  ;;  %v3581_v59 = vmul.f32 1.442695, %v3551_v51 }
 0x860   : > { %v9940_v36 = vpop.permute.xlu0 %9939  ;;  %8284 = vmatmul.mubr.f32.gmra.mrb[52].mxu1 %v12749_v8  ;;  %v3571_v6 = vmul.f32 1.442695, %v3546_v62 }
 0x861   : > { %v3522_v31 = vpop.xlane.xlu1 %3521  ;;  %v9942_v22 = vunpack.i.h.bf16 %v9940_v36  ;;  %v9941_v11 = vunpack.i.l.bf16 %v9940_v36 }
 0x862   : > { %v3545_v58 = vsub.f32 %v12627_v19, %v3522_v31 }
 0x863   : > { %v8935_v53 = vpack.c.bf16 %v9942_v22, %v9941_v11 }
 0x864   : > { %v3569_v38 = vmul.f32 1.442695, %v3545_v58  ;;  %v4036_v2 = vpop.permute.xlu0 %4035 }
 0x865   : > { %v3526_v28 = vpop.xlane.xlu1 %3525  ;;  %8937 = vmatprep.subr.msk.bf16.mxu1 %vm11514_vm1, %v8935_v53 }
 0x866   : > { %10159 = vpow2.f32 %v3569_v38  ;;  %v3547_v44 = vsub.f32 %v12631_v32, %v3526_v28  ;;  %8940 = vmatpush3.bf16.xpose.msk.msra.mxu1 %vm11514_vm1, %v8935_v53 }
 0x867   : > { %10161 = vpow2.f32 %v3571_v6  ;;  %v12761_v39 = vpop.eup %10155 }
 0x868   : > { %v3573_v19 = vmul.f32 1.442695, %v3547_v44  ;;  %v4040_v20 = vpop.permute.xlu0 %4039  ;;  %v12763_v18 = vpop.eup %10157  ;;  %8286 = vmatprep.mubr.f32.mxu1 %v12761_v39 }
 0x869   : > { %v3530_v21 = vpop.xlane.xlu1 %3529  ;;  %8287 = vmatmul.mubr.f32.gmra.mrb[54].mxu1 %v12763_v18 }
 0x86a   : > { %10163 = vpow2.f32 %v3573_v19  ;;  %v3549_v32 = vsub.f32 %v12635_v50, %v3530_v21 }
 0x86b   : > { %10165 = vpow2.f32 %v3575_v29 }
 0x86c   : > { %v3577_v7 = vmul.f32 1.442695, %v3549_v32  ;;  %v4044_v24 = vpop.permute.xlu0 %4043 }
 0x86d   : > { %v3536_v14 = vpop.xlane.xlu1 %3535 }
 0x86e   : > { %10167 = vpow2.f32 %v3577_v7  ;;  %v3552_v13 = vsub.f32 %v12639_v16, %v3536_v14 }
 0x86f   : > { %10169 = vpow2.f32 %v3579_v26 }
 0x870   : > { %v12769_v42 = vpop.eup %10159  ;;  %10171 = vpow2.f32 %v3581_v59  ;;  %v3583_v47 = vmul.f32 1.442695, %v3552_v13  ;;  %v4048_v30 = vpop.permute.xlu0 %4047 }
 0x871   : > { %v12771_v10 = vpop.eup %10161  ;;  %8289 = vmatprep.mubr.f32.mxu1 %v12769_v42  ;;  %v4038_v50 = vpop.permute.xlu1 %4037 }
 0x872   : > { %10173 = vpow2.f32 %v3583_v47  ;;  %8290 = vmatmul.mubr.f32.gmra.mrb[56].mxu1 %v12771_v10 }
 0x874   : > { %v12775_v27 = vpop.eup %10163  ;;  %v4052_v61 = vpop.permute.xlu0 %4051 }
 0x875   : > { %v12777_v4 = vpop.eup %10165  ;;  %8292 = vmatprep.mubr.f32.mxu1 %v12775_v27  ;;  %v4042_v16 = vpop.permute.xlu1 %4041 }
 0x876   : > { %8293 = vmatmul.mubr.f32.gmra.mrb[58].mxu1 %v12777_v4 }
 0x878   : > { %v12781_v63 = vpop.eup %10167  ;;  %v4056_v49 = vpop.permute.xlu0 %4055 }
 0x879   : > { %v12783_v60 = vpop.eup %10169  ;;  %8295 = vmatprep.mubr.f32.mxu1 %v12781_v63  ;;  %v4046_v15 = vpop.permute.xlu1 %4045 }
 0x87a   : > { %v12786_v62 = vpop.eup %10171  ;;  %8296 = vmatmul.mubr.f32.gmra.mrb[60].mxu1 %v12783_v60 }
 0x87b   : > { %8298 = vmatprep.mubr.f32.mxu1 %v12786_v62 }
 0x87c   : > { %v12790_v36 = vpop.eup %10173  ;;  %v4060_v31 = vpop.permute.xlu0 %4059 }
 0x87d   : > { %v4050_v22 = vpop.permute.xlu1 %4049 }
 0x87e   : > { %8299 = vmatmul.mubr.f32.gmra.mrb[62].mxu1 %v12790_v36 }
 0x87f   : > { %8333 = vmatprep.mubr.msk.f32.mxu1 %vm1689_vm0, %v4036_v2 }
 0x880   : > { %v4064_v11 = vpop.permute.xlu0 %4063 }
 0x881   : > { %v4054_v58 = vpop.permute.xlu1 %4053 }
 0x882   : > { %8334 = vmatmul.mubr.msk.f32.vlgmr.msra.gmra.mrb[64].mxu1 %vm1689_vm0, %v4038_v50 }
 0x883   : > { %8336 = vmatprep.mubr.msk.f32.mxu1 %vm1689_vm0, %v4040_v20 }
 0x884   : > { %v9945_v46 = vpop.permute.xlu0 %9944 }
 0x885   : > { %v4058_v6 = vpop.permute.xlu1 %4057  ;;  %v9947_v53 = vunpack.i.h.bf16 %v9945_v46  ;;  %v9946_v38 = vunpack.i.l.bf16 %v9945_v46 }
 0x886   : > { %8337 = vmatmul.mubr.msk.f32.gmra.mrb[66].mxu1 %vm1689_vm0, %v4042_v16 }
 0x887   : > { %8339 = vmatprep.mubr.msk.f32.mxu1 %vm1689_vm0, %v4044_v24  ;;  %v8941_v28 = vpack.c.bf16 %v9947_v53, %v9946_v38 }
 0x888   : > { %v9950_v44 = vpop.permute.xlu0 %9949 }
 0x889   : > { %v4062_v29 = vpop.permute.xlu1 %4061  ;;  %v9952_v57 = vunpack.i.h.bf16 %v9950_v44  ;;  %v9951_v51 = vunpack.i.l.bf16 %v9950_v44  ;;  %8942 = vmatprep.subr.bf16.mxu1 %v8941_v28 }
 0x88a   : > { %8340 = vmatmul.mubr.msk.f32.gmra.mrb[68].mxu1 %vm1689_vm0, %v4046_v15 }
 0x88b   : > { %8342 = vmatprep.mubr.msk.f32.mxu1 %vm1689_vm0, %v4048_v30  ;;  %8944 = vmatpush3.bf16.msra.mxu1 %v8941_v28  ;;  %v8945_v2 = vpack.c.bf16 %v9952_v57, %v9951_v51 }
 0x88c   : > { %v9960_v19 = vpop.permute.xlu0 %9959 }
 0x88d   : > { %v4066_v20 = vpop.permute.xlu1 %4065  ;;  %8946 = vmatprep.subr.bf16.mxu1 %v8945_v2  ;;  %v9962_v32 = vunpack.i.h.bf16 %v9960_v19  ;;  %v9961_v26 = vunpack.i.l.bf16 %v9960_v19 }
 0x88e   : > { %8343 = vmatmul.mubr.msk.f32.gmra.mrb[70].mxu1 %vm1689_vm0, %v4050_v22 }
 0x88f   : > { %8345 = vmatprep.mubr.msk.f32.mxu1 %vm1689_vm0, %v4052_v61  ;;  %8948 = vmatpush3.bf16.msra.mxu1 %v8945_v2  ;;  %v8953_v13 = vpack.c.bf16 %v9962_v32, %v9961_v26 }
 0x890   : > { %v9965_v24 = vpop.permute.xlu0 %9964 }
 0x891   : > { %v9955_v21 = vpop.permute.xlu1 %9954  ;;  %v9967_v47 = vunpack.i.h.bf16 %v9965_v24  ;;  %v9966_v30 = vunpack.i.l.bf16 %v9965_v24 }
 0x892   : > { %v9957_v59 = vunpack.i.h.bf16 %v9955_v21  ;;  %v9956_v7 = vunpack.i.l.bf16 %v9955_v21  ;;  %8346 = vmatmul.mubr.msk.f32.gmra.mrb[72].mxu1 %vm1689_vm0, %v4054_v58 }
 0x893   : > { %8348 = vmatprep.mubr.msk.f32.mxu1 %vm1689_vm0, %v4056_v49  ;;  %v8957_v50 = vpack.c.bf16 %v9967_v47, %v9966_v30 }
 0x894   : > { %v8949_v14 = vpack.c.bf16 %v9957_v59, %v9956_v7 }
 0x896   : > { %8349 = vmatmul.mubr.msk.f32.gmra.mrb[74].mxu1 %vm1689_vm0, %v4058_v6  ;;  %8950 = vmatprep.subr.bf16.mxu1 %v8949_v14 }
 0x897   : > { %8351 = vmatprep.mubr.msk.f32.mxu1 %vm1689_vm0, %v4060_v31  ;;  %8952 = vmatpush3.bf16.msra.mxu1 %v8949_v14 }
 0x898   : > { %8954 = vmatprep.subr.bf16.mxu1 %v8953_v13 }
 0x89a   : > { %8352 = vmatmul.mubr.msk.f32.gmra.mrb[76].mxu1 %vm1689_vm0, %v4062_v29 }
 0x89b   : > { %8354 = vmatprep.mubr.msk.f32.mxu1 %vm1689_vm0, %v4064_v11  ;;  %8956 = vmatpush3.bf16.msra.mxu1 %v8953_v13 }
 0x89c   : > { %8958 = vmatprep.subr.bf16.mxu1 %v8957_v50 }
 0x89e   : > { %8355 = vmatmul.mubr.msk.f32.gmra.mrb[78].mxu1 %vm1689_vm0, %v4066_v20 }
 0x89f   : > { %8960 = vmatpush3.bf16.msra.mxu1 %v8957_v50  ;;  %v14595_v50 = vld [vmem:[#allocation81_spill] sm:$0xff] }
 0x8fb   : > { %v12809_v61 = vpop.f32.mrb[48].mxu1 }
 0x8fc   : > { %v12811_v16 = vpop.f32.mrb[49].mxu1 }
 0x92f   : > { %v12813_v49 = vpop.f32.mrb[50].mxu1 }
 0x930   : > { %v12815_v15 = vpop.f32.mrb[51].mxu1 }
 0x933   : > { %v12817_v31 = vpop.f32.mrb[52].mxu1 }
 0x934   : > { %v12819_v22 = vpop.f32.mrb[53].mxu1 }
 0x93c   : > { %v12821_v58 = vpop.f32.mrb[54].mxu1 }
 0x93d   : > { %v12823_v11 = vpop.f32.mrb[55].mxu1 }
 0x945   : > { %v12825_v46 = vpop.f32.mrb[56].mxu1 }
 0x946   : > { %v12827_v6 = vpop.f32.mrb[57].mxu1 }
 0x949   : > { %v12829_v53 = vpop.f32.mrb[58].mxu1 }
 0x94a   : > { %14590 = vst [vmem:[#allocation88_spill] sm:$0xff] %v12829_v53  ;;  %v12831_v38 = vpop.f32.mrb[59].mxu1 }
 0x94d   : > { %v12833_v28 = vpop.f32.mrb[60].mxu1 }
 0x94e   : > { %14591 = vst [vmem:[#allocation64_spill] sm:$0xff] %v12833_v28  ;;  %v12835_v44 = vpop.f32.mrb[61].mxu1 }
 0x94f   : > { %14592 = vst [vmem:[#allocation67_spill] sm:$0xff] %v12835_v44 }
 0x951   : > { %v12837_v29 = vpop.f32.mrb[62].mxu1 }
 0x952   : > { %14593 = vst [vmem:[#allocation70_spill] sm:$0xff] %v12837_v29  ;;  %v12839_v57 = vpop.f32.mrb[63].mxu1 }
 0x953   : > { %14594 = vst [vmem:[#allocation73_spill] sm:$0xff] %v12839_v57 }
 0x955   : > { %v8335_v51 = vpop.f32.mrb[64].mxu1 }
 0x956   : > { %v12842_v2 = vadd.f32 %v8335_v51, %v14564_v34  ;;  %v4229_v19 = vpop.f32.mrb[65].mxu1  ;;  %v14596_v51 = vld [vmem:[#allocation80_spill] sm:$0xff] }
 0x957   : > { %v12845_v20 = vadd.f32 %v4229_v19, %v14565_v12  ;;  %v14597_v19 = vpack.i.bf16 %v14595_v50, %v14596_v51  ;;  %v1665_v51 = vld [vmem:[#allocation7 + $0x140] sm:$0xff] }
 0x958   : > { %4310 = vmax.xlane.f32.xlu0 %v12842_v2 }
 0x959   : > { %v8338_v21 = vpop.f32.mrb[66].mxu1  ;;  %4308 = vmax.xlane.f32.xlu1 %v12845_v20 }
 0x95a   : > { %v12850_v32 = vadd.f32 %v8338_v21, %v11899_v43  ;;  %v4239_v26 = vpop.f32.mrb[67].mxu1  ;;  %v14598_v21 = vld [vmem:[#allocation78_spill] sm:$0xff] }
 0x95b   : > { %v14600_v29 = vpack.i.bf16 %v14598_v21, %v14599_v9  ;;  %v12868_v44 = vadd.f32 %v4239_v26, %v11914_v25  ;;  %v1672_v21 = vld [vmem:[#allocation7 + $0x178] sm:$0xff] }
 0x95d   : > { %v8341_v59 = vpop.f32.mrb[68].mxu1  ;;  %4314 = vmax.xlane.f32.xlu1 %v12850_v32 }
 0x95e   : > { %v4249_v7 = vpop.f32.mrb[69].mxu1  ;;  %v12872_v53 = vadd.f32 %v8341_v59, %v11911_v48 }
 0x95f   : > { %v12880_v9 = vadd.f32 %v4249_v7, %v11931_v54 }
 0x961   : > { %v12853_v24 = vpop.f32.mrb[70].mxu1 }
 0x962   : > { %v4259_v34 = vpop.f32.mrb[71].mxu1 }
 0x963   : > { %v12875_v50 = vadd.f32 %v4259_v34, %v11949_v37  ;;  %v1662_v34 = vld [vmem:[#allocation7 + $0x128] sm:$0xff] }
 0x965   : > { %v8347_v14 = vpop.f32.mrb[72].mxu1 }
 0x966   : > { %v4269_v13 = vpop.f32.mrb[73].mxu1  ;;  %v12888_v25 = vadd.f32 %v8347_v14, %v11946_v17  ;;  %v1664_v14 = vld [vmem:[#allocation7 + $0x138] sm:$0xff] }
 0x969   : > { %v8350_v12 = vpop.f32.mrb[74].mxu1 }
 0x96a   : > { %v4279_v47 = vpop.f32.mrb[75].mxu1  ;;  %v12896_v54 = vadd.f32 %v8350_v12, %v11964_v0  ;;  %v1658_v0 = vld [vmem:[#allocation7 + $0x108] sm:$0xff]  ;;  %v1663_v12 = vld [vmem:[#allocation7 + $0x130] sm:$0xff] }
 0x96b   : > { %v12892_v48 = vadd.f32 %v4279_v47, %v11984_v55  ;;  %v14601_v55 = vld [vmem:[#allocation84_spill] sm:$0xff] }
 0x96d   : > { %v12855_v30 = vpop.f32.mrb[76].mxu1 }
 0x96e   : > { %9974 = vrot.lane.b32.xlu0 %v14597_v19, %s10565_s16  ;;  %v4289_v43 = vpop.f32.mrb[77].mxu1  ;;  %9969 = vrot.lane.b32.xlu1 %v14600_v29, %s10565_s16  ;;  %v12883_v29 = vadd.f32 %v4269_v13, %v11967_v23  ;;  %v14602_v23 = vld [vmem:[#allocation83_spill] sm:$0xff]  ;;  %v8881_v13 = vpack.c.bf16 %v1664_v14, %v1662_v34  ;;  %v1667_v19 = vld [vmem:[#allocation7 + $0x150] sm:$0xff] }
 0x96f   : > { %v12900_v37 = vadd.f32 %v4289_v43, %v11997_v35  ;;  %v14603_v26 = vpack.i.bf16 %v14601_v55, %v14602_v23  ;;  %v1660_v35 = vld [vmem:[#allocation7 + $0x118] sm:$0xff]  ;;  %v8887_v43 = vpack.c.bf16 %v1667_v19, %v1665_v51  ;;  %v1669_v23 = vld [vmem:[#allocation7 + $0x160] sm:$0xff] }
 0x970   : > { %v8877_v59 = vpack.c.bf16 %v1660_v35, %v1658_v0  ;;  %v12920_v0 = vadd.f32 %v12853_v24, %v11928_v45 }
 0x971   : > { %v12865_v57 = vpop.f32.mrb[78].mxu1 }
 0x972   : > { %v4299_v28 = vpop.f32.mrb[79].mxu1  ;;  %8878 = vmatprep.subr.bf16.mxu0 %v8877_v59  ;;  %v12931_v35 = vadd.f32 %v12865_v57, %v12007_v3 }
 0x973   : > { %v12904_v17 = vadd.f32 %v4299_v28, %v12015_v52  ;;  %v1657_v52 = vld [vmem:[#allocation7 + $0x100] sm:$0xff]  ;;  %v1659_v28 = vld [vmem:[#allocation7 + $0x110] sm:$0xff] }
 0x974   : > { %v8879_v7 = vpack.c.bf16 %v1659_v28, %v1657_v52 }
 0x976   : > { %8880 = vmatpush1.bf16.msra.mxu0 %v8879_v7 }
 0x977   : > { %8882 = vmatprep.subr.bf16.mxu0 %v8881_v13 }
 0x98d   : > { %4312 = vmax.xlane.f32.xlu0 %v12868_v44 }
 0x991   : > { %4318 = vmax.xlane.f32.xlu0 %v12872_v53 }
 0x992   : > { %4320 = vmax.xlane.f32.xlu1 %v12875_v50 }
 0x995   : > { %4316 = vmax.xlane.f32.xlu0 %v12880_v9 }
 0x996   : > { %4324 = vmax.xlane.f32.xlu1 %v12883_v29 }
 0x99a   : > { %4326 = vmax.xlane.f32.xlu1 %v12888_v25 }
 0x99e   : > { %4328 = vmax.xlane.f32.xlu1 %v12892_v48 }
 0x9a2   : > { %4330 = vmax.xlane.f32.xlu1 %v12896_v54 }
 0x9a6   : > { %4332 = vmax.xlane.f32.xlu1 %v12900_v37 }
 0x9aa   : > { %4336 = vmax.xlane.f32.xlu1 %v12904_v17 }
 0x9ab   : > { %9979 = vrot.lane.b32.xlu0 %v14603_v26, %s10565_s16  ;;  %v1671_v26 = vld [vmem:[#allocation7 + $0x170] sm:$0xff] }
 0x9ae   : > { %3585 = vadd.xlane.f32.xlu1 %v12701_v1  ;;  %v1661_v1 = vld [vmem:[#allocation7 + $0x120] sm:$0xff] }
 0x9b2   : > { %3589 = vadd.xlane.f32.xlu1 %v12710_v40  ;;  %v8883_v40 = vpack.c.bf16 %v1663_v12, %v1661_v1 }
 0x9b4   : > { %8884 = vmatpush1.bf16.msra.mxu0 %v8883_v40 }
 0x9b6   : > { %3593 = vadd.xlane.f32.xlu1 %v12744_v33  ;;  %v1666_v33 = vld [vmem:[#allocation7 + $0x148] sm:$0xff] }
 0x9ba   : > { %3597 = vadd.xlane.f32.xlu1 %v12761_v39  ;;  %v1668_v39 = vld [vmem:[#allocation7 + $0x158] sm:$0xff] }
 0x9bb   : > { %v8885_v47 = vpack.c.bf16 %v1668_v39, %v1666_v33 }
 0x9bd   : > { %8886 = vmatprep.subr.bf16.mxu0 %v8885_v47 }
 0x9be   : > { %3601 = vadd.xlane.f32.xlu1 %v12769_v42  ;;  %8888 = vmatpush1.bf16.msra.mxu0 %v8887_v43  ;;  %v1670_v42 = vld [vmem:[#allocation7 + $0x168] sm:$0xff] }
 0x9bf   : > { %v8889_v55 = vpack.c.bf16 %v1672_v21, %v1670_v42 }
 0x9c1   : > { %8890 = vmatprep.subr.bf16.mxu0 %v8889_v55 }
 0x9c2   : > { %3605 = vadd.xlane.f32.xlu1 %v12775_v27  ;;  %v8891_v27 = vpack.c.bf16 %v1671_v26, %v1669_v23 }
 0x9c4   : > { %8892 = vmatpush1.bf16.msra.mxu0 %v8891_v27 }
 0x9c6   : > { %3609 = vadd.xlane.f32.xlu1 %v12781_v63  ;;  %v12926_v63 = vadd.f32 %v12855_v30, %v11981_v41 }
 0x9ca   : > { %4322 = vmax.xlane.f32.xlu0 %v12920_v0  ;;  %3613 = vadd.xlane.f32.xlu1 %v12786_v62 }
 0x9ce   : > { %4334 = vmax.xlane.f32.xlu0 %v12926_v63 }
 0x9d2   : > { %4338 = vmax.xlane.f32.xlu0 %v12931_v35 }
 0x9d6   : > { %3587 = vadd.xlane.f32.xlu0 %v12703_v56 }
 0x9da   : > { %3591 = vadd.xlane.f32.xlu0 %v12742_v5 }
 0x9de   : > { %3595 = vadd.xlane.f32.xlu0 %v12749_v8 }
 0x9e2   : > { %3599 = vadd.xlane.f32.xlu0 %v12763_v18 }
 0x9e5   : > { %v4311_v45 = vpop.xlane.xlu0 %4310 }
 0x9e6   : > { %v4341_v41 = vsub.f32 %v12842_v2, %v4311_v45  ;;  %3603 = vadd.xlane.f32.xlu0 %v12771_v10  ;;  %v4309_v62 = vpop.xlane.xlu1 %4308 }
 0x9e7   : > { %v4340_v24 = vsub.f32 %v12845_v20, %v4309_v62 }
 0x9e8   : > { %v4358_v3 = vmul.f32 1.442695, %v4341_v41 }
 0x9e9   : > { %v4356_v57 = vmul.f32 1.442695, %v4340_v24  ;;  %v9975_v5 = vpop.permute.xlu0 %9974 }
 0x9ea   : > { %10175 = vpow2.f32 %v4358_v3  ;;  %3607 = vadd.xlane.f32.xlu0 %v12777_v4  ;;  %v4315_v56 = vpop.xlane.xlu1 %4314  ;;  %v9977_v18 = vunpack.i.h.bf16 %v9975_v5  ;;  %v9976_v59 = vunpack.i.l.bf16 %v9975_v5 }
 0x9eb   : > { %10177 = vpow2.f32 %v4356_v57  ;;  %v4343_v8 = vsub.f32 %v12850_v32, %v4315_v56 }
 0x9ec   : > { %v8965_v28 = vpack.c.bf16 %v9977_v18, %v9976_v59 }
 0x9ed   : > { %v4362_v30 = vmul.f32 1.442695, %v4343_v8 }
 0x9ee   : > { %3611 = vadd.xlane.f32.xlu0 %v12783_v60  ;;  %v9970_v2 = vpop.permute.xlu1 %9969 }
 0x9ef   : > { %10179 = vpow2.f32 %v4362_v30  ;;  %v9972_v10 = vunpack.i.h.bf16 %v9970_v2  ;;  %v9971_v52 = vunpack.i.l.bf16 %v9970_v2 }
 0x9f1   : > { %v8961_v20 = vpack.c.bf16 %v9972_v10, %v9971_v52  ;;  %v14604_v52 = vmov 0.0  }
 0x9f2   : > { %3615 = vadd.xlane.f32.xlu0 %v12790_v36 }
 0x9f3   : > { %8962 = vmatprep.subr.bf16.mxu1 %v8961_v20 }
 0x9f4   : > { %v10176_v4 = vpop.eup %10175  ;;  %8964 = vmatpush3.bf16.msra.mxu1 %v8961_v20  ;;  %v1676_v20 = vld [vmem:[#allocation7 + $0x198] sm:$0xff] }
 0x9f5   : > { %v10178_v7 = vpop.eup %10177  ;;  %8966 = vmatprep.subr.bf16.mxu1 %v8965_v28 }
 0x9f6   : > { %4390 = vadd.xlane.f32.xlu0 %v10176_v4  ;;  %4388 = vadd.xlane.f32.xlu1 %v10178_v7 }
 0x9f7   : > { %8389 = vmatprep.mubr.f32.mxu1 %v10178_v7  ;;  %v1675_v7 = vld [vmem:[#allocation7 + $0x190] sm:$0xff] }
 0x9f8   : > { %8968 = vmatpush3.bf16.msra.mxu1 %v8965_v28  ;;  %v1673_v28 = vld [vmem:[#allocation7 + $0x180] sm:$0xff] }
 0x9f9   : > { %v10180_v32 = vpop.eup %10179 }
 0x9fa   : > { %4394 = vadd.xlane.f32.xlu0 %v10180_v32 }
 0xa1a   : > { %v4313_v60 = vpop.xlane.xlu0 %4312 }
 0xa1b   : > { %v4342_v34 = vsub.f32 %v12868_v44, %v4313_v60  ;;  %v8975_v60 = vpack.c.bf16 %v1675_v7, %v1673_v28  ;;  %v1685_v7 = vld [vmem:[#allocation7 + $0x1e0] sm:$0xff] }
 0xa1d   : > { %v4360_v14 = vmul.f32 1.442695, %v4342_v34 }
 0xa1e   : > { %v4319_v13 = vpop.xlane.xlu0 %4318 }
 0xa1f   : > { %10181 = vpow2.f32 %v4360_v14  ;;  %v4345_v36 = vsub.f32 %v12872_v53, %v4319_v13  ;;  %v4321_v1 = vpop.xlane.xlu1 %4320 }
 0xa20   : > { %v4346_v40 = vsub.f32 %v12875_v50, %v4321_v1 }
 0xa21   : > { %v4366_v12 = vmul.f32 1.442695, %v4345_v36 }
 0xa22   : > { %v4317_v33 = vpop.xlane.xlu0 %4316  ;;  %v4368_v19 = vmul.f32 1.442695, %v4346_v40 }
 0xa23   : > { %10183 = vpow2.f32 %v4366_v12  ;;  %v4344_v39 = vsub.f32 %v12880_v9, %v4317_v33  ;;  %v4325_v47 = vpop.xlane.xlu1 %4324 }
 0xa24   : > { %v4348_v44 = vsub.f32 %v12883_v29, %v4325_v47 }
 0xa25   : > { %v4364_v51 = vmul.f32 1.442695, %v4344_v39 }
 0xa26   : > { %v9980_v43 = vpop.permute.xlu0 %9979  ;;  %v4372_v26 = vmul.f32 1.442695, %v4348_v44 }
 0xa27   : > { %10185 = vpow2.f32 %v4364_v51  ;;  %v9982_v42 = vunpack.i.h.bf16 %v9980_v43  ;;  %v9981_v21 = vunpack.i.l.bf16 %v9980_v43  ;;  %v4327_v55 = vpop.xlane.xlu1 %4326 }
 0xa28   : > { %10187 = vpow2.f32 %v4368_v19  ;;  %v4349_v34 = vsub.f32 %v12888_v25, %v4327_v55 }
 0xa29   : > { %v10182_v23 = vpop.eup %10181  ;;  %v8969_v53 = vpack.c.bf16 %v9982_v42, %v9981_v21  ;;  %10189 = vpow2.f32 %v4372_v26 }
 0xa2a   : > { %4392 = vadd.xlane.f32.xlu1 %v10182_v23 }
 0xa2b   : > { %v4329_v50 = vpop.xlane.xlu1 %4328  ;;  %8970 = vmatprep.subr.bf16.mxu1 %v8969_v53 }
 0xa2c   : > { %v4350_v27 = vsub.f32 %v12892_v48, %v4329_v50  ;;  %8972 = vmatpush3.bf16.msra.mxu1 %v8969_v53 }
 0xa2d   : > { %v10184_v9 = vpop.eup %10183 }
 0xa2e   : > { %4398 = vadd.xlane.f32.xlu0 %v10184_v9  ;;  %v4376_v45 = vmul.f32 1.442695, %v4350_v27  ;;  %v1678_v27 = vld [vmem:[#allocation7 + $0x1a8] sm:$0xff] }
 0xa2f   : > { %v4331_v41 = vpop.xlane.xlu1 %4330  ;;  %8390 = vmatmul.mubr.f32.vlgmr.msra.gmra.mrb[80].mxu1 %v10176_v4 }
 0xa30   : > { %8392 = vmatprep.mubr.f32.mxu1 %v10182_v23  ;;  %10191 = vpow2.f32 %v4376_v45  ;;  %v4351_v1 = vsub.f32 %v12896_v54, %v4331_v41  ;;  %v1677_v45 = vld [vmem:[#allocation7 + $0x1a0] sm:$0xff] }
 0xa31   : > { %v10186_v29 = vpop.eup %10185 }
 0xa32   : > { %4396 = vadd.xlane.f32.xlu1 %v10186_v29  ;;  %v10188_v3 = vpop.eup %10187  ;;  %v4378_v40 = vmul.f32 1.442695, %v4351_v1 }
 0xa33   : > { %v4333_v62 = vpop.xlane.xlu1 %4332  ;;  %8393 = vmatmul.mubr.f32.gmra.mrb[82].mxu1 %v10180_v32  ;;  %v10190_v5 = vpop.eup %10189 }
 0xa34   : > { %v4352_v24 = vsub.f32 %v12900_v37, %v4333_v62  ;;  %8395 = vmatprep.mubr.f32.mxu1 %v10186_v29  ;;  %v1679_v29 = vld [vmem:[#allocation7 + $0x1b0] sm:$0xff] }
 0xa35   : > { %v8979_v62 = vpack.c.bf16 %v1679_v29, %v1677_v45 }
 0xa36   : > { %v4380_v57 = vmul.f32 1.442695, %v4352_v24  ;;  %4400 = vadd.xlane.f32.xlu1 %v10188_v3 }
 0xa37   : > { %v4337_v48 = vpop.xlane.xlu1 %4336  ;;  %8396 = vmatmul.mubr.f32.gmra.mrb[84].mxu1 %v10184_v9  ;;  %v1680_v9 = vld [vmem:[#allocation7 + $0x1b8] sm:$0xff] }
 0xa38   : > { %10193 = vpow2.f32 %v4380_v57  ;;  %v4354_v56 = vsub.f32 %v12904_v17, %v4337_v48  ;;  %8398 = vmatprep.mubr.f32.mxu1 %v10188_v3  ;;  %v1674_v17 = vld [vmem:[#allocation7 + $0x188] sm:$0xff] }
 0xa39   : > { %v8973_v4 = vpack.c.bf16 %v1676_v20, %v1674_v17  ;;  %v1688_v17 = vld [vmem:[#allocation7 + $0x1f8] sm:$0xff] }
 0xa3a   : > { %v4384_v8 = vmul.f32 1.442695, %v4354_v56  ;;  %4404 = vadd.xlane.f32.xlu1 %v10190_v5  ;;  %v10192_v18 = vpop.eup %10191 }
 0xa3b   : > { %v3586_v30 = vpop.xlane.xlu1 %3585  ;;  %8974 = vmatprep.subr.bf16.mxu0 %v8973_v4 }
 0xa3c   : > { %10195 = vpow2.f32 %v4384_v8  ;;  %v1684_v8 = vld [vmem:[#allocation7 + $0x1d8] sm:$0xff] }
 0xa3d   : > { %10197 = vrcp.f32 %v3586_v30  ;;  %v1681_v30 = vld [vmem:[#allocation7 + $0x1c0] sm:$0xff] }
 0xa3e   : > { %4408 = vadd.xlane.f32.xlu1 %v10192_v18 }
 0xa3f   : > { %v3590_v47 = vpop.xlane.xlu1 %3589 }
 0xa42   : > { %v10194_v2 = vpop.eup %10193 }
 0xa43   : > { %4412 = vadd.xlane.f32.xlu1 %v10194_v2 }
 0xa46   : > { %v10196_v37 = vpop.eup %10195 }
 0xa47   : > { %v10198_v59 = vpop.eup %10197  ;;  %4416 = vadd.xlane.f32.xlu1 %v10196_v37 }
 0xa48   : > { %v3778_v10 = vmul.f32 %v10198_v59, %v12811_v16  ;;  %v4374_v16 = vmul.f32 1.442695, %v4349_v34 }
 0xa4a   : > { %7638 = vmatmul.mubr.msk.f32.vlgmr.msra.gmra.mrb[112].mxu0 %vm1689_vm0, %v3778_v10 }
 0xa4b   : > { %3912 = vmatprep.mubr.f32.mxu0 %v14604_v52  ;;  %8976 = vmatpush1.bf16.msra.mxu0 %v8975_v60 }
 0xa57   : > { %v4323_v32 = vpop.xlane.xlu0 %4322 }
 0xa58   : > { %v4347_v14 = vsub.f32 %v12920_v0, %v4323_v32  ;;  %v1687_v32 = vld [vmem:[#allocation7 + $0x1f0] sm:$0xff] }
 0xa59   : > { %v8987_v34 = vpack.c.bf16 %v1687_v32, %v1685_v7 }
 0xa5a   : > { %v4370_v13 = vmul.f32 1.442695, %v4347_v14 }
 0xa5b   : > { %v4335_v36 = vpop.xlane.xlu0 %4334 }
 0xa5c   : > { %10199 = vpow2.f32 %v4370_v13  ;;  %v4353_v33 = vsub.f32 %v12926_v63, %v4335_v36  ;;  %v3594_v63 = vpop.xlane.xlu1 %3593 }
 0xa5d   : > { %10201 = vpow2.f32 %v4374_v16 }
 0xa5e   : > { %10203 = vpow2.f32 %v4378_v40  ;;  %v4382_v51 = vmul.f32 1.442695, %v4353_v33 }
 0xa5f   : > { %v4339_v12 = vpop.xlane.xlu0 %4338 }
 0xa60   : > { %v4355_v25 = vsub.f32 %v12931_v35, %v4339_v12  ;;  %v3598_v53 = vpop.xlane.xlu1 %3597 }
 0xa62   : > { %v4386_v19 = vmul.f32 1.442695, %v4355_v25 }
 0xa63   : > { %v3588_v39 = vpop.xlane.xlu0 %3587 }
 0xa64   : > { %10205 = vrcp.f32 %v3588_v39  ;;  %v3602_v57 = vpop.xlane.xlu1 %3601 }
 0xa65   : > { %10207 = vrcp.f32 %v3590_v47  ;;  %v14605_v47 = vld [vmem:[#allocation88_spill] sm:$0xff] }
 0xa66   : > { %v10200_v0 = vpop.eup %10199  ;;  %10209 = vpow2.f32 %v4382_v51 }
 0xa67   : > { %4402 = vadd.xlane.f32.xlu0 %v10200_v0  ;;  %8399 = vmatmul.mubr.f32.gmra.mrb[86].mxu1 %v10200_v0  ;;  %v3592_v54 = vpop.xlane.xlu0 %3591  ;;  %v10202_v43 = vpop.eup %10201 }
 0xa68   : > { %8401 = vmatprep.mubr.f32.mxu1 %v10190_v5  ;;  %10211 = vrcp.f32 %v3592_v54  ;;  %v10204_v44 = vpop.eup %10203  ;;  %v1682_v5 = vld [vmem:[#allocation7 + $0x1c8] sm:$0xff]  ;;  %v3606_v20 = vpop.xlane.xlu1 %3605 }
 0xa69   : > { %10213 = vpow2.f32 %v4386_v19 }
 0xa6a   : > { %10215 = vrcp.f32 %v3594_v63  ;;  %v14608_v63 = vld [vmem:[#allocation73_spill] sm:$0xff] }
 0xa6b   : > { %4406 = vadd.xlane.f32.xlu0 %v10202_v43  ;;  %8402 = vmatmul.mubr.f32.gmra.mrb[88].mxu1 %v10202_v43  ;;  %v3596_v35 = vpop.xlane.xlu0 %3595 }
 0xa6c   : > { %8404 = vmatprep.mubr.f32.mxu1 %v10192_v18  ;;  %10217 = vrcp.f32 %v3596_v35  ;;  %v8981_v18 = vpack.c.bf16 %v1684_v8, %v1682_v5  ;;  %v14609_v35 = vld [vmem:[#allocation70_spill] sm:$0xff] }
 0xa6d   : > { %10219 = vrcp.f32 %v3598_v53 }
 0xa6e   : > { %v10206_v42 = vpop.eup %10205 }
 0xa6f   : > { %4410 = vadd.xlane.f32.xlu0 %v10204_v44  ;;  %8405 = vmatmul.mubr.f32.gmra.mrb[90].mxu1 %v10204_v44  ;;  %v3779_v21 = vmul.f32 %v10206_v42, %v12809_v61  ;;  %v10208_v55 = vpop.eup %10207  ;;  %v8977_v61 = vpack.c.bf16 %v1680_v9, %v1678_v27  ;;  %v3600_v24 = vpop.xlane.xlu0 %3599 }
 0xa70   : > { %8407 = vmatprep.mubr.f32.mxu1 %v10194_v2  ;;  %v10210_v23 = vpop.eup %10209  ;;  %v3780_v26 = vmul.f32 %v10208_v55, %v12815_v15  ;;  %10221 = vrcp.f32 %v3600_v24  ;;  %v1683_v2 = vld [vmem:[#allocation7 + $0x1d0] sm:$0xff] }
 0xa71   : > { %7639 = vmatmul.mubr.msk.f32.gmra.mrb[114].mxu0 %vm1689_vm0, %v3779_v21  ;;  %8978 = vmatprep.subr.bf16.mxu0 %v8977_v61  ;;  %10223 = vrcp.f32 %v3602_v57 }
 0xa72   : > { %3918 = vmatprep.mubr.f32.mxu0 %v14604_v52  ;;  %v10212_v50 = vpop.eup %10211  ;;  %8980 = vmatpush1.bf16.msra.mxu0 %v8979_v62 }
 0xa73   : > { %4414 = vadd.xlane.f32.xlu0 %v10210_v23  ;;  %8408 = vmatmul.mubr.f32.gmra.mrb[92].mxu1 %v10210_v23  ;;  %v10214_v41 = vpop.eup %10213  ;;  %v3781_v3 = vmul.f32 %v10212_v50, %v12813_v49  ;;  %v8983_v49 = vpack.c.bf16 %v1683_v2, %v1681_v30 }
 0xa74   : > { %8410 = vmatprep.mubr.f32.mxu1 %v10196_v37  ;;  %v10216_v15 = vpop.eup %10215  ;;  %v3604_v37 = vpop.xlane.xlu0 %3603  ;;  %8982 = vmatprep.subr.bf16.mxu0 %v8981_v18 }
 0xa75   : > { %7640 = vmatmul.mubr.msk.f32.gmra.mrb[116].mxu0 %vm1689_vm0, %v3780_v26  ;;  %v3782_v48 = vmul.f32 %v10216_v15, %v12819_v22  ;;  %10225 = vrcp.f32 %v3604_v37  ;;  %v1686_v22 = vld [vmem:[#allocation7 + $0x1e8] sm:$0xff] }
 0xa76   : > { %3924 = vmatprep.mubr.f32.mxu0 %v14604_v52  ;;  %v10218_v56 = vpop.eup %10217  ;;  %8984 = vmatpush1.bf16.msra.mxu0 %v8983_v49  ;;  %v8985_v4 = vpack.c.bf16 %v1688_v17, %v1686_v22  ;;  %10227 = vrcp.f32 %v3606_v20 }
 0xa77   : > { %4418 = vadd.xlane.f32.xlu0 %v10214_v41  ;;  %8411 = vmatmul.mubr.f32.gmra.mrb[94].mxu1 %v10214_v41  ;;  %v3783_v59 = vmul.f32 %v10218_v56, %v12817_v31  ;;  %v10220_v10 = vpop.eup %10219 }
 0xa78   : > { %v3784_v28 = vmul.f32 %v10220_v10, %v12823_v11  ;;  %8986 = vmatprep.subr.bf16.mxu0 %v8985_v4  ;;  %v3608_v31 = vpop.xlane.xlu0 %3607  ;;  %v3610_v11 = vpop.xlane.xlu1 %3609 }
 0xa79   : > { %7641 = vmatmul.mubr.msk.f32.gmra.mrb[118].mxu0 %vm1689_vm0, %v3781_v3  ;;  %10229 = vrcp.f32 %v3608_v31 }
 0xa7a   : > { %3930 = vmatprep.mubr.f32.mxu0 %v14604_v52  ;;  %v10222_v60 = vpop.eup %10221  ;;  %8988 = vmatpush1.bf16.msra.mxu0 %v8987_v34  ;;  %10231 = vrcp.f32 %v3610_v11 }
 0xa7b   : > { %v3785_v14 = vmul.f32 %v10222_v60, %v12821_v58  ;;  %v10224_v13 = vpop.eup %10223 }
 0xa7c   : > { %v3786_v36 = vmul.f32 %v10224_v13, %v12827_v6  ;;  %v3612_v1 = vpop.xlane.xlu0 %3611  ;;  %v3614_v58 = vpop.xlane.xlu1 %3613 }
 0xa7d   : > { %7642 = vmatmul.mubr.msk.f32.gmra.mrb[120].mxu0 %vm1689_vm0, %v3782_v48  ;;  %10233 = vrcp.f32 %v3612_v1 }
 0xa7e   : > { %3936 = vmatprep.mubr.f32.mxu0 %v14604_v52  ;;  %10235 = vrcp.f32 %v3614_v58 }
 0xa7f   : > { %v10226_v16 = vpop.eup %10225 }
 0xa80   : > { %v3787_v12 = vmul.f32 %v10226_v16, %v12825_v46  ;;  %v10228_v40 = vpop.eup %10227  ;;  %v3616_v6 = vpop.xlane.xlu0 %3615  ;;  %v14606_v46 = vld [vmem:[#allocation67_spill] sm:$0xff] }
 0xa81   : > { %7643 = vmatmul.mubr.msk.f32.gmra.mrb[122].mxu0 %vm1689_vm0, %v3783_v59  ;;  %v3788_v33 = vmul.f32 %v10228_v40, %v12831_v38  ;;  %10237 = vrcp.f32 %v3616_v6  ;;  %v14607_v38 = vld [vmem:[#allocation64_spill] sm:$0xff] }
 0xa82   : > { %3942 = vmatprep.mubr.f32.mxu0 %v14604_v52 }
 0xa83   : > { %v10230_v39 = vpop.eup %10229  ;;  %v4389_v55 = vpop.xlane.xlu1 %4388 }
 0xa84   : > { %v3789_v51 = vmul.f32 %v10230_v39, %v14605_v47  ;;  %v10232_v25 = vpop.eup %10231  ;;  %10239 = vrcp.f32 %v4389_v55  ;;  %v4391_v23 = vpop.xlane.xlu0 %4390 }
 0xa85   : > { %7644 = vmatmul.mubr.msk.f32.gmra.mrb[124].mxu0 %vm1689_vm0, %v3784_v28  ;;  %v3790_v0 = vmul.f32 %v10232_v25, %v14606_v46  ;;  %10241 = vrcp.f32 %v4391_v23  ;;  %v4934_v23 = vld [vmem:[%s14293_s3] sm:$0x3] }
 0xa86   : > { %3948 = vmatprep.mubr.f32.mxu0 %v14604_v52 }
 0xa87   : > { %v10234_v19 = vpop.eup %10233 }
 0xa88   : > { %v3791_v54 = vmul.f32 %v10234_v19, %v14607_v38  ;;  %v10236_v43 = vpop.eup %10235  ;;  %v4395_v26 = vpop.xlane.xlu0 %4394 }
 0xa89   : > { %7645 = vmatmul.mubr.msk.f32.gmra.mrb[126].mxu0 %vm1689_vm0, %v3785_v14  ;;  %v3792_v44 = vmul.f32 %v10236_v43, %v14608_v63 }
 0xa8a   : > { %3954 = vmatprep.mubr.f32.mxu0 %v14604_v52 }
 0xa8b   : > { %v10238_v42 = vpop.eup %10237 }
 0xa8c   : > { %v3793_v21 = vmul.f32 %v10238_v42, %v14609_v35 }
 0xa8d   : > { %7646 = vmatmul.mubr.msk.f32.gmra.mrb[128].mxu0 %vm1689_vm0, %v3786_v36 }
 0xa8e   : > { %3960 = vmatprep.mubr.f32.mxu0 %v14604_v52  ;;  %v10240_v27 = vpop.eup %10239 }
 0xa8f   : > { %v10242_v29 = vpop.eup %10241 }
 0xa91   : > { %7647 = vmatmul.mubr.msk.f32.gmra.mrb[130].mxu0 %vm1689_vm0, %v3787_v12 }
 0xa92   : > { %3966 = vmatprep.mubr.f32.mxu0 %v14604_v52 }
 0xa95   : > { %7648 = vmatmul.mubr.msk.f32.gmra.mrb[132].mxu0 %vm1689_vm0, %v3788_v33 }
 0xa96   : > { %3972 = vmatprep.mubr.f32.mxu0 %v14604_v52 }
 0xa99   : > { %7649 = vmatmul.mubr.msk.f32.gmra.mrb[134].mxu0 %vm1689_vm0, %v3789_v51 }
 0xa9a   : > { %3978 = vmatprep.mubr.f32.mxu0 %v14604_v52 }
 0xa9d   : > { %7650 = vmatmul.mubr.msk.f32.gmra.mrb[136].mxu0 %vm1689_vm0, %v3790_v0 }
 0xa9e   : > { %3984 = vmatprep.mubr.f32.mxu0 %v14604_v52 }
 0xaa1   : > { %7651 = vmatmul.mubr.msk.f32.gmra.mrb[138].mxu0 %vm1689_vm0, %v3791_v54 }
 0xaa2   : > { %3990 = vmatprep.mubr.f32.mxu0 %v14604_v52 }
 0xaa5   : > { %7652 = vmatmul.mubr.msk.f32.gmra.mrb[140].mxu0 %vm1689_vm0, %v3792_v44 }
 0xaa6   : > { %3996 = vmatprep.mubr.f32.mxu0 %v14604_v52 }
 0xaa9   : > { %7653 = vmatmul.mubr.msk.f32.gmra.mrb[142].mxu0 %vm1689_vm0, %v3793_v21 }
 0xaaa   : > { %4773 = vmatprep.mubr.f32.mxu0 %v14604_v52 }
 0xab7   : > { %v4393_v53 = vpop.xlane.xlu1 %4392 }
 0xab8   : > { %10243 = vrcp.f32 %v4393_v53  ;;  %v14610_v53 = vld [vmem:[#allocation20_spill] sm:$0xff] }
 0xab9   : > { %10245 = vrcp.f32 %v4395_v26  ;;  %v13041_v26 = vrot.slane %v4934_v23, %v14610_v53 }
 0xabb   : > { %v4399_v3 = vpop.xlane.xlu0 %4398 }
 0xabf   : > { %v4397_v41 = vpop.xlane.xlu1 %4396 }
 0xac0   : > { %10247 = vrcp.f32 %v4397_v41 }
 0xac1   : > { %10249 = vrcp.f32 %v4399_v3 }
 0xac2   : > { %v10244_v57 = vpop.eup %10243 }
 0xac3   : > { %v10246_v5 = vpop.eup %10245  ;;  %v4401_v37 = vpop.xlane.xlu1 %4400 }
 0xac4   : > { %10251 = vrcp.f32 %v4401_v37 }
 0xac7   : > { %v4405_v10 = vpop.xlane.xlu1 %4404 }
 0xaca   : > { %v10248_v30 = vpop.eup %10247 }
 0xacb   : > { %v10250_v2 = vpop.eup %10249  ;;  %v4409_v7 = vpop.xlane.xlu1 %4408 }
 0xace   : > { %v10252_v20 = vpop.eup %10251 }
 0xad0   : > { %v4413_v1 = vpop.xlane.xlu1 %4412 }
 0xad4   : > { %v4417_v46 = vpop.xlane.xlu1 %4416 }
 0xaf4   : > { %v4403_v59 = vpop.xlane.xlu0 %4402 }
 0xaf5   : > { %10253 = vrcp.f32 %v4403_v59 }
 0xaf6   : > { %10255 = vrcp.f32 %v4405_v10  ;;  %v10308_v10 = vld [vmem:[%s10859_s12 + $0x28] sm:$0xff] }
 0xaf8   : > { %v4407_v22 = vpop.xlane.xlu0 %4406 }
 0xaf9   : > { %10257 = vrcp.f32 %v4407_v22 }
 0xafa   : > { %10259 = vrcp.f32 %v4409_v7  ;;  %v10309_v7 = vld [vmem:[%s10859_s12 + $0x30] sm:$0xff] }
 0xafc   : > { %v4411_v14 = vpop.xlane.xlu0 %4410 }
 0xafd   : > { %10261 = vrcp.f32 %v4411_v14 }
 0xafe   : > { %10263 = vrcp.f32 %v4413_v1 }
 0xaff   : > { %v10254_v60 = vpop.eup %10253 }
 0xb00   : > { %v10256_v11 = vpop.eup %10255  ;;  %v4415_v39 = vpop.xlane.xlu0 %4414 }
 0xb01   : > { %10265 = vrcp.f32 %v4415_v39 }
 0xb02   : > { %v8391_v50 = vpop.f32.mrb[80].mxu1  ;;  %10267 = vrcp.f32 %v4417_v46 }
 0xb03   : > { %v4550_v9 = vpop.f32.mrb[81].mxu1  ;;  %v4646_v24 = vmul.f32 %v10242_v29, %v8391_v50  ;;  %v10258_v40 = vpop.eup %10257 }
 0xb04   : > { %v4645_v45 = vmul.f32 %v10240_v27, %v4550_v9  ;;  %v10260_v47 = vpop.eup %10259  ;;  %v4419_v38 = vpop.xlane.xlu0 %4418  ;;  %v14611_v27 = vld [vmem:[#allocation19_spill] sm:$0xff] }
 0xb05   : > { %10269 = vrcp.f32 %v4419_v38  ;;  %v13044_v9 = vrot.slane %v4934_v23, %v14611_v27 }
 0xb06   : > { %v8394_v61 = vpop.f32.mrb[82].mxu1  ;;  %7686 = vmatmul.mubr.msk.f32.vlgmr.msra.gmra.mrb[112].mxu0 %vm1689_vm0, %v4645_v45  ;;  %v10303_v45 = vld [vmem:[%s10859_s12] sm:$0xff] }
 0xb07   : > { %v4560_v62 = vpop.f32.mrb[83].mxu1  ;;  %4779 = vmatprep.mubr.f32.mxu0 %v14604_v52  ;;  %v4648_v8 = vmul.f32 %v10246_v5, %v8394_v61  ;;  %v10262_v0 = vpop.eup %10261 }
 0xb08   : > { %v4647_v56 = vmul.f32 %v10244_v57, %v4560_v62  ;;  %v10264_v54 = vpop.eup %10263 }
 0xb0a   : > { %v8397_v15 = vpop.f32.mrb[84].mxu1  ;;  %7687 = vmatmul.mubr.msk.f32.gmra.mrb[114].mxu0 %vm1689_vm0, %v4646_v24 }
 0xb0b   : > { %v4570_v48 = vpop.f32.mrb[85].mxu1  ;;  %4785 = vmatprep.mubr.f32.mxu0 %v14604_v52  ;;  %v4650_v49 = vmul.f32 %v10250_v2, %v8397_v15  ;;  %v10266_v63 = vpop.eup %10265  ;;  %v10305_v15 = vld [vmem:[%s10859_s12 + $0x10] sm:$0xff] }
 0xb0c   : > { %v4649_v18 = vmul.f32 %v10248_v30, %v4570_v48  ;;  %v10268_v42 = vpop.eup %10267 }
 0xb0e   : > { %7688 = vmatmul.mubr.msk.f32.gmra.mrb[116].mxu0 %vm1689_vm0, %v4647_v56  ;;  %v10306_v56 = vld [vmem:[%s10859_s12 + $0x18] sm:$0xff] }
 0xb0f   : > { %4791 = vmatprep.mubr.f32.mxu0 %v14604_v52  ;;  %v10270_v21 = vpop.eup %10269 }
 0xb12   : > { %7689 = vmatmul.mubr.msk.f32.gmra.mrb[118].mxu0 %vm1689_vm0, %v4648_v8 }
 0xb13   : > { %4797 = vmatprep.mubr.f32.mxu0 %v14604_v52 }
 0xb16   : > { %7690 = vmatmul.mubr.msk.f32.gmra.mrb[120].mxu0 %vm1689_vm0, %v4649_v18 }
 0xb17   : > { %4803 = vmatprep.mubr.f32.mxu0 %v14604_v52 }
 0xb1a   : > { %7691 = vmatmul.mubr.msk.f32.gmra.mrb[122].mxu0 %vm1689_vm0, %v4650_v49  ;;  %v10307_v49 = vld [vmem:[%s10859_s12 + $0x20] sm:$0xff] }
 0xb1b   : > { %4809 = vmatprep.mubr.f32.mxu0 %v14604_v52 }
 0xb3a   : > { %v8400_v17 = vpop.f32.mrb[86].mxu1 }
 0xb3b   : > { %v4580_v28 = vpop.f32.mrb[87].mxu1  ;;  %v4652_v31 = vmul.f32 %v10254_v60, %v8400_v17 }
 0xb3c   : > { %v4651_v4 = vmul.f32 %v10252_v20, %v4580_v28 }
 0xb3e   : > { %v8403_v32 = vpop.f32.mrb[88].mxu1  ;;  %7692 = vmatmul.mubr.msk.f32.gmra.mrb[124].mxu0 %vm1689_vm0, %v4651_v4 }
 0xb3f   : > { %v4590_v34 = vpop.f32.mrb[89].mxu1  ;;  %4815 = vmatprep.mubr.f32.mxu0 %v14604_v52  ;;  %v4654_v33 = vmul.f32 %v10258_v40, %v8403_v32  ;;  %v10312_v40 = vld [vmem:[%s10859_s12 + $0x48] sm:$0xff] }
 0xb40   : > { %v4653_v16 = vmul.f32 %v10256_v11, %v4590_v34  ;;  %v10310_v34 = vld [vmem:[%s10859_s12 + $0x38] sm:$0xff] }
 0xb42   : > { %v8406_v13 = vpop.f32.mrb[90].mxu1  ;;  %7693 = vmatmul.mubr.msk.f32.gmra.mrb[126].mxu0 %vm1689_vm0, %v4652_v31 }
 0xb43   : > { %v4600_v36 = vpop.f32.mrb[91].mxu1  ;;  %4821 = vmatprep.mubr.f32.mxu0 %v14604_v52  ;;  %v4656_v19 = vmul.f32 %v10262_v0, %v8406_v13  ;;  %v10314_v0 = vld [vmem:[%s10859_s12 + $0x58] sm:$0xff] }
 0xb44   : > { %v4655_v25 = vmul.f32 %v10260_v47, %v4600_v36 }
 0xb46   : > { %v8409_v12 = vpop.f32.mrb[92].mxu1  ;;  %7694 = vmatmul.mubr.msk.f32.gmra.mrb[128].mxu0 %vm1689_vm0, %v4653_v16  ;;  %v10311_v16 = vld [vmem:[%s10859_s12 + $0x40] sm:$0xff] }
 0xb47   : > { %v4610_v58 = vpop.f32.mrb[93].mxu1  ;;  %4827 = vmatprep.mubr.f32.mxu0 %v14604_v52  ;;  %v4658_v44 = vmul.f32 %v10266_v63, %v8409_v12 }
 0xb48   : > { %v4657_v43 = vmul.f32 %v10264_v54, %v4610_v58 }
 0xb4a   : > { %v8412_v6 = vpop.f32.mrb[94].mxu1  ;;  %7695 = vmatmul.mubr.msk.f32.gmra.mrb[130].mxu0 %vm1689_vm0, %v4654_v33 }
 0xb4b   : > { %v4620_v51 = vpop.f32.mrb[95].mxu1  ;;  %4833 = vmatprep.mubr.f32.mxu0 %v14604_v52  ;;  %v4660_v55 = vmul.f32 %v10270_v21, %v8412_v6 }
 0xb4c   : > { %v4659_v35 = vmul.f32 %v10268_v42, %v4620_v51  ;;  %v10313_v51 = vld [vmem:[%s10859_s12 + $0x50] sm:$0xff]  ;;  %v10315_v42 = vld [vmem:[%s10859_s12 + $0x60] sm:$0xff] }
 0xb4e   : > { %7696 = vmatmul.mubr.msk.f32.gmra.mrb[132].mxu0 %vm1689_vm0, %v4655_v25 }
 0xb4f   : > { %4839 = vmatprep.mubr.f32.mxu0 %v14604_v52 }
 0xb52   : > { %7697 = vmatmul.mubr.msk.f32.gmra.mrb[134].mxu0 %vm1689_vm0, %v4656_v19 }
 0xb53   : > { %4845 = vmatprep.mubr.f32.mxu0 %v14604_v52 }
 0xb56   : > { %7698 = vmatmul.mubr.msk.f32.gmra.mrb[136].mxu0 %vm1689_vm0, %v4657_v43 }
 0xb57   : > { %4851 = vmatprep.mubr.f32.mxu0 %v14604_v52 }
 0xb5a   : > { %7699 = vmatmul.mubr.msk.f32.gmra.mrb[138].mxu0 %vm1689_vm0, %v4658_v44 }
 0xb5b   : > { %4857 = vmatprep.mubr.f32.mxu0 %v14604_v52 }
 0xb5e   : > { %7700 = vmatmul.mubr.msk.f32.gmra.mrb[140].mxu0 %vm1689_vm0, %v4659_v35 }
 0xb5f   : > { %4863 = vmatprep.mubr.f32.mxu0 %v14604_v52  ;;  %v10304_v52 = vld [vmem:[%s10859_s12 + $0x8] sm:$0xff] }
 0xb62   : > { %7701 = vmatmul.mubr.msk.f32.gmra.mrb[142].mxu0 %vm1689_vm0, %v4660_v55  ;;  %v10316_v55 = vld [vmem:[%s10859_s12 + $0x68] sm:$0xff] }
 0xbd9   : > { %v4775_v50 = vpop.f32.mrb[112].mxu0 }
 0xbda   : > { %v4902_v41 = vadd.f32 %v10303_v45, %v4775_v50  ;;  %v4777_v61 = vpop.f32.mrb[113].mxu0 }
 0xbdb   : > { %v4903_v29 = vadd.f32 %v10304_v52, %v4777_v61  ;;  %v10317_v61 = vld [vmem:[%s10859_s12 + $0x70] sm:$0xff] }
 0xbdc   : > { %v13049_v62 = vadd.f32 %v13041_v26, %v4902_v41 }
 0xbdd   : > { %v13052_v24 = vadd.f32 %v13044_v9, %v4903_v29  ;;  %v4781_v3 = vpop.f32.mrb[114].mxu0 }
 0xbde   : > { %14612 = vst [vmem:[#allocation76_spill] sm:$0xff] %v13049_v62  ;;  %v4904_v57 = vadd.f32 %v10305_v15, %v4781_v3  ;;  %v4783_v48 = vpop.f32.mrb[115].mxu0  ;;  %v10318_v3 = vld [vmem:[%s10859_s12 + $0x78] sm:$0xff] }
 0xbdf   : > { %14613 = vst [vmem:[#allocation79_spill] sm:$0xff] %v13052_v24  ;;  %v4905_v5 = vadd.f32 %v10306_v56, %v4783_v48  ;;  %v4980_v8 = vadd.f32 %v13052_v24, %v13049_v62 }
 0xbe0   : > { %v13059_v30 = vadd.f32 %v13041_v26, %v4904_v57 }
 0xbe1   : > { %v13062_v18 = vadd.f32 %v13044_v9, %v4905_v5  ;;  %4981 = vadd.xlane.f32.xlu1 %v4980_v8  ;;  %v4787_v2 = vpop.f32.mrb[116].mxu0  ;;  %v10319_v8 = vld [vmem:[%s10859_s12 + $0x80] sm:$0xff] }
 0xbe2   : > { %14614 = vst [vmem:[#allocation82_spill] sm:$0xff] %v13059_v30  ;;  %v4906_v37 = vadd.f32 %v10307_v49, %v4787_v2  ;;  %v4789_v59 = vpop.f32.mrb[117].mxu0 }
 0xbe3   : > { %14615 = vst [vmem:[#allocation85_spill] sm:$0xff] %v13062_v18  ;;  %v4907_v22 = vadd.f32 %v10308_v10, %v4789_v59  ;;  %v4983_v17 = vadd.f32 %v13062_v18, %v13059_v30 }
 0xbe4   : > { %v13069_v20 = vadd.f32 %v13041_v26, %v4906_v37  ;;  %v10320_v37 = vld [vmem:[%s10859_s12 + $0x88] sm:$0xff] }
 0xbe5   : > { %v13072_v28 = vadd.f32 %v13044_v9, %v4907_v22  ;;  %4984 = vadd.xlane.f32.xlu0 %v4983_v17  ;;  %v4793_v4 = vpop.f32.mrb[118].mxu0 }
 0xbe6   : > { %14616 = vst [vmem:[#allocation39_spill] sm:$0xff] %v13069_v20  ;;  %v4908_v32 = vadd.f32 %v10309_v7, %v4793_v4  ;;  %v4795_v60 = vpop.f32.mrb[119].mxu0  ;;  %v10321_v7 = vld [vmem:[%s10859_s12 + $0x90] sm:$0xff] }
 0xbe7   : > { %14617 = vst [vmem:[#allocation37_spill] sm:$0xff] %v13072_v28  ;;  %v4909_v31 = vadd.f32 %v10310_v34, %v4795_v60  ;;  %v4986_v14 = vadd.f32 %v13072_v28, %v13069_v20  ;;  %v10322_v34 = vld [vmem:[%s10859_s12 + $0x98] sm:$0xff] }
 0xbe8   : > { %v13079_v13 = vadd.f32 %v13041_v26, %v4908_v32 }
 0xbe9   : > { %v13082_v11 = vadd.f32 %v13044_v9, %v4909_v31  ;;  %4987 = vadd.xlane.f32.xlu1 %v4986_v14  ;;  %v4799_v36 = vpop.f32.mrb[120].mxu0 }
 0xbea   : > { %14618 = vst [vmem:[#allocation48_spill] sm:$0xff] %v13079_v13  ;;  %v4910_v1 = vadd.f32 %v10311_v16, %v4799_v36  ;;  %v4801_v12 = vpop.f32.mrb[121].mxu0 }
 0xbeb   : > { %14619 = vst [vmem:[#allocation47_spill] sm:$0xff] %v13082_v11  ;;  %v4911_v58 = vadd.f32 %v10312_v40, %v4801_v12  ;;  %v4989_v33 = vadd.f32 %v13082_v11, %v13079_v13  ;;  %v10323_v12 = vld [vmem:[%s10859_s12 + $0xa0] sm:$0xff] }
 0xbec   : > { %v13089_v39 = vadd.f32 %v13041_v26, %v4910_v1 }
 0xbed   : > { %v13092_v6 = vadd.f32 %v13044_v9, %v4911_v58  ;;  %4990 = vadd.xlane.f32.xlu0 %v4989_v33  ;;  %v4805_v47 = vpop.f32.mrb[122].mxu0  ;;  %v10324_v33 = vld [vmem:[%s10859_s12 + $0xa8] sm:$0xff] }
 0xbee   : > { %14620 = vst [vmem:[#allocation42_spill] sm:$0xff] %v13089_v39  ;;  %v4912_v25 = vadd.f32 %v10313_v51, %v4805_v47  ;;  %v4807_v46 = vpop.f32.mrb[123].mxu0 }
 0xbef   : > { %14621 = vst [vmem:[#allocation41_spill] sm:$0xff] %v13092_v6  ;;  %v4913_v19 = vadd.f32 %v10314_v0, %v4807_v46  ;;  %v4992_v38 = vadd.f32 %v13092_v6, %v13089_v39 }
 0xbf0   : > { %v13099_v54 = vadd.f32 %v13041_v26, %v4912_v25 }
 0xbf1   : > { %v13102_v43 = vadd.f32 %v13044_v9, %v4913_v19  ;;  %4993 = vadd.xlane.f32.xlu1 %v4992_v38  ;;  %v10325_v19 = vld [vmem:[%s10859_s12 + $0xb0] sm:$0xff] }
 0xbf2   : > { %14622 = vst [vmem:[#allocation45_spill] sm:$0xff] %v13099_v54 }
 0xbf3   : > { %14623 = vst [vmem:[#allocation44_spill] sm:$0xff] %v13102_v43  ;;  %v4995_v63 = vadd.f32 %v13102_v43, %v13099_v54 }
 0xbf5   : > { %4996 = vadd.xlane.f32.xlu0 %v4995_v63 }
 0xc11   : > { %v4811_v44 = vpop.f32.mrb[124].mxu0 }
 0xc12   : > { %v4914_v35 = vadd.f32 %v10315_v42, %v4811_v44  ;;  %v4813_v21 = vpop.f32.mrb[125].mxu0  ;;  %v10326_v44 = vld [vmem:[%s10859_s12 + $0xb8] sm:$0xff] }
 0xc13   : > { %v4915_v23 = vadd.f32 %v10316_v55, %v4813_v21 }
 0xc14   : > { %v13109_v50 = vadd.f32 %v13041_v26, %v4914_v35 }
 0xc15   : > { %v13112_v45 = vadd.f32 %v13044_v9, %v4915_v23  ;;  %v4817_v41 = vpop.f32.mrb[126].mxu0 }
 0xc16   : > { %14624 = vst [vmem:[#allocation51_spill] sm:$0xff] %v13109_v50  ;;  %v4916_v52 = vadd.f32 %v10317_v61, %v4817_v41  ;;  %v4819_v29 = vpop.f32.mrb[127].mxu0  ;;  %v10327_v41 = vld [vmem:[%s10859_s12 + $0xc0] sm:$0xff] }
 0xc17   : > { %14625 = vst [vmem:[#allocation50_spill] sm:$0xff] %v13112_v45  ;;  %v4917_v15 = vadd.f32 %v10318_v3, %v4819_v29  ;;  %v4998_v57 = vadd.f32 %v13112_v45, %v13109_v50  ;;  %v10328_v29 = vld [vmem:[%s10859_s12 + $0xc8] sm:$0xff] }
 0xc18   : > { %v13119_v48 = vadd.f32 %v13041_v26, %v4916_v52 }
 0xc19   : > { %v13122_v56 = vadd.f32 %v13044_v9, %v4917_v15  ;;  %4999 = vadd.xlane.f32.xlu1 %v4998_v57  ;;  %v4823_v5 = vpop.f32.mrb[128].mxu0 }
 0xc1a   : > { %14626 = vst [vmem:[#allocation40_spill] sm:$0xff] %v13119_v48  ;;  %v4918_v2 = vadd.f32 %v10319_v8, %v4823_v5  ;;  %v4825_v49 = vpop.f32.mrb[129].mxu0 }
 0xc1b   : > { %14627 = vst [vmem:[#allocation38_spill] sm:$0xff] %v13122_v56  ;;  %v4919_v59 = vadd.f32 %v10320_v37, %v4825_v49  ;;  %v5001_v10 = vadd.f32 %v13122_v56, %v13119_v48 }
 0xc1c   : > { %v13129_v22 = vadd.f32 %v13041_v26, %v4918_v2  ;;  %v10329_v2 = vld [vmem:[%s10859_s12 + $0xd0] sm:$0xff] }
 0xc1d   : > { %v13132_v17 = vadd.f32 %v13044_v9, %v4919_v59  ;;  %5002 = vadd.xlane.f32.xlu0 %v5001_v10  ;;  %v4829_v4 = vpop.f32.mrb[130].mxu0  ;;  %v10330_v59 = vld [vmem:[%s10859_s12 + $0xd8] sm:$0xff] }
 0xc1e   : > { %14628 = vst [vmem:[#allocation43_spill] sm:$0xff] %v13129_v22  ;;  %v4920_v32 = vadd.f32 %v10321_v7, %v4829_v4  ;;  %v4831_v60 = vpop.f32.mrb[131].mxu0 }
 0xc1f   : > { %14629 = vst [vmem:[#allocation46_spill] sm:$0xff] %v13132_v17  ;;  %v4921_v31 = vadd.f32 %v10322_v34, %v4831_v60  ;;  %v5004_v14 = vadd.f32 %v13132_v17, %v13129_v22  ;;  %v10331_v34 = vld [vmem:[%s10859_s12 + $0xe0] sm:$0xff] }
 0xc20   : > { %v13139_v36 = vadd.f32 %v13041_v26, %v4920_v32 }
 0xc21   : > { %v13142_v16 = vadd.f32 %v13044_v9, %v4921_v31  ;;  %5005 = vadd.xlane.f32.xlu1 %v5004_v14  ;;  %v4835_v1 = vpop.f32.mrb[132].mxu0 }
 0xc22   : > { %14630 = vst [vmem:[#allocation49_spill] sm:$0xff] %v13139_v36  ;;  %v4922_v40 = vadd.f32 %v10323_v12, %v4835_v1  ;;  %v4837_v58 = vpop.f32.mrb[133].mxu0  ;;  %v10332_v1 = vld [vmem:[%s10859_s12 + $0xe8] sm:$0xff] }
 0xc23   : > { %14631 = vst [vmem:[#allocation52_spill] sm:$0xff] %v13142_v16  ;;  %v4923_v47 = vadd.f32 %v10324_v33, %v4837_v58  ;;  %v5007_v51 = vadd.f32 %v13142_v16, %v13139_v36 }
 0xc24   : > { %v13149_v25 = vadd.f32 %v13041_v26, %v4922_v40 }
 0xc25   : > { %v13152_v46 = vadd.f32 %v13044_v9, %v4923_v47  ;;  %5008 = vadd.xlane.f32.xlu0 %v5007_v51  ;;  %v4841_v0 = vpop.f32.mrb[134].mxu0  ;;  %v10333_v51 = vld [vmem:[%s10859_s12 + $0xf0] sm:$0xff] }
 0xc26   : > { %14632 = vst [vmem:[#allocation55_spill] sm:$0xff] %v13149_v25  ;;  %v4924_v38 = vadd.f32 %v10325_v19, %v4841_v0  ;;  %v4843_v63 = vpop.f32.mrb[135].mxu0 }
 0xc27   : > { %14633 = vst [vmem:[#allocation58_spill] sm:$0xff] %v13152_v46  ;;  %v4925_v42 = vadd.f32 %v10326_v44, %v4843_v63  ;;  %v5010_v35 = vadd.f32 %v13152_v46, %v13149_v25 }
 0xc28   : > { %v13159_v21 = vadd.f32 %v13041_v26, %v4924_v38  ;;  %v10334_v38 = vld [vmem:[%s10859_s12 + $0xf8] sm:$0xff]  ;;  %s10478_s12 = scalar_lea.vmem %s14243_s26, 4096 }
 0xc29   : > { %v13162_v55 = vadd.f32 %v13044_v9, %v4925_v42  ;;  %5011 = vadd.xlane.f32.xlu1 %v5010_v35  ;;  %v4847_v23 = vpop.f32.mrb[136].mxu0  ;;  %p10479_p3 = scmp.ne.s32.totalorder %s14243_s26, %s10478_s12  ;;  %p10486_p2 = scmp.lt.s32.totalorder %s10484_s5, %s10478_s12 }
 0xc2a   : > { %14634 = vst [vmem:[#allocation61_spill] sm:$0xff] %v13159_v21  ;;  %v4926_v61 = vadd.f32 %v10327_v41, %v4847_v23  ;;  %v4849_v52 = vpop.f32.mrb[137].mxu0  ;;  %v5323_v41 = vld [vmem:[#allocation8 + $0x8] sm:$0xff] }
 0xc2b   : > { %14635 = vst [vmem:[#allocation21_spill] sm:$0xff] %v13162_v55  ;;  %v4927_v3 = vadd.f32 %v10328_v29, %v4849_v52  ;;  %v5013_v15 = vadd.f32 %v13162_v55, %v13159_v21  ;;  %v5325_v52 = vld [vmem:[#allocation8 + $0x18] sm:$0xff]  ;;  %p10480_p5 = pnand %p10479_p3, %p10798_p10  ;;  %p10487_p1 = por %p10486_p2, %p10485_p12 }
 0xc2c   : > { %v13169_v57 = vadd.f32 %v13041_v26, %v4926_v61  ;;  %v5331_v61 = vld [vmem:[#allocation8 + $0x48] sm:$0xff] }
 0xc2d   : > { %v13172_v5 = vadd.f32 %v13044_v9, %v4927_v3  ;;  %5014 = vadd.xlane.f32.xlu0 %v5013_v15  ;;  %v4853_v8 = vpop.f32.mrb[138].mxu0  ;;  %v8989_v29 = vpack.c.bf16 %v5331_v61, %v5323_v41  ;;  %v5333_v3 = vld [vmem:[#allocation8 + $0x58] sm:$0xff]  ;;  %v5322_v15 = vld [vmem:[#allocation8] sm:$0xff]  ;;  %p10481_p7 = pneg %p10480_p5 }
 0xc2e   : > { %14636 = vst [vmem:[#allocation22_spill] sm:$0xff] %v13169_v57  ;;  %v4928_v49 = vadd.f32 %v10329_v2, %v4853_v8  ;;  %v4855_v37 = vpop.f32.mrb[139].mxu0  ;;  %v5330_v8 = vld [vmem:[#allocation8 + $0x40] sm:$0xff]  ;;  %v9053_v2 = vpack.c.bf16 %v5333_v3, %v5325_v52  ;;  %v5356_v52 = vld [vmem:[#allocation8 + $0x110] sm:$0xff] }
 0xc2f   : > { %14637 = vst [vmem:[#allocation23_spill] sm:$0xff] %v13172_v5  ;;  %v4929_v10 = vadd.f32 %v10330_v59, %v4855_v37  ;;  %v5016_v4 = vadd.f32 %v13172_v5, %v13169_v57  ;;  %v5324_v37 = vld [vmem:[#allocation8 + $0x10] sm:$0xff]  ;;  %v5339_v59 = vld [vmem:[#allocation8 + $0x88] sm:$0xff]  ;;  %8990 = vmatprep.subr.bf16.mxu1 %v8989_v29  ;;  %v5362_v61 = vld [vmem:[#allocation8 + $0x140] sm:$0xff]  ;;  %p10488_p13 = pnand %p10487_p1, %p10481_p7 }
 0xc30   : > { %v13179_v7 = vadd.f32 %v13041_v26, %v4928_v49  ;;  %v8991_v49 = vpack.c.bf16 %v5330_v8, %v5322_v15  ;;  %9054 = vmatprep.subr.bf16.mxu0 %v9053_v2  ;;  %v5364_v29 = vld [vmem:[#allocation8 + $0x150] sm:$0xff]  ;;  %v5371_v15 = vld [vmem:[#allocation8 + $0x188] sm:$0xff]  ;;  %v5373_v2 = vld [vmem:[#allocation8 + $0x198] sm:$0xff] }
 0xc31   : > { %v13182_v32 = vadd.f32 %v13044_v9, %v4929_v10  ;;  %5017 = vadd.xlane.f32.xlu1 %v5016_v4  ;;  %v4859_v60 = vpop.f32.mrb[140].mxu0  ;;  %v5347_v10 = vld [vmem:[#allocation8 + $0xc8] sm:$0xff]  ;;  %v5341_v4 = vld [vmem:[#allocation8 + $0x98] sm:$0xff] }
 0xc32   : > { %14638 = vst [vmem:[#allocation24_spill] sm:$0xff] %v13179_v7  ;;  %v4930_v31 = vadd.f32 %v10331_v34, %v4859_v60  ;;  %v4861_v14 = vpop.f32.mrb[141].mxu0  ;;  %v5349_v60 = vld [vmem:[#allocation8 + $0xd8] sm:$0xff]  ;;  %8992 = vmatpush1.bf16.msra.mxu1 %v8991_v49  ;;  %v8993_v34 = vpack.c.bf16 %v5347_v10, %v5339_v59  ;;  %v5379_v8 = vld [vmem:[#allocation8 + $0x1c8] sm:$0xff]  ;;  %v9063_v49 = vpack.c.bf16 %v5364_v29, %v5356_v52  ;;  %v5370_v59 = vld [vmem:[#allocation8 + $0x180] sm:$0xff] }
 0xc33   : > { %14639 = vst [vmem:[#allocation25_spill] sm:$0xff] %v13182_v32  ;;  %v4931_v12 = vadd.f32 %v10332_v1, %v4861_v14  ;;  %v5019_v40 = vadd.f32 %v13182_v32, %v13179_v7  ;;  %v5338_v14 = vld [vmem:[#allocation8 + $0x80] sm:$0xff] }
 0xc34   : > { %v13189_v58 = vadd.f32 %v13041_v26, %v4930_v31  ;;  %v9057_v31 = vpack.c.bf16 %v5349_v60, %v5341_v4  ;;  %v5346_v1 = vld [vmem:[#allocation8 + $0xc0] sm:$0xff]  ;;  %8994 = vmatprep.subr.bf16.mxu1 %v8993_v34  ;;  %v5372_v4 = vld [vmem:[#allocation8 + $0x190] sm:$0xff]  ;;  %v5387_v34 = vld [vmem:[#allocation8 + $0x208] sm:$0xff] }
 0xc35   : > { %v13192_v33 = vadd.f32 %v13044_v9, %v4931_v12  ;;  %5020 = vadd.xlane.f32.xlu0 %v5019_v40  ;;  %v4865_v47 = vpop.f32.mrb[142].mxu0  ;;  %v5340_v12 = vld [vmem:[#allocation8 + $0x90] sm:$0xff]  ;;  %v8995_v40 = vpack.c.bf16 %v5346_v1, %v5338_v14  ;;  %v5389_v14 = vld [vmem:[#allocation8 + $0x218] sm:$0xff] }
 0xc36   : > { %14640 = vst [vmem:[#allocation26_spill] sm:$0xff] %v13189_v58  ;;  %v4932_v0 = vadd.f32 %v10333_v51, %v4865_v47  ;;  %v4867_v19 = vpop.f32.mrb[143].mxu0  ;;  %v5348_v47 = vld [vmem:[#allocation8 + $0xd0] sm:$0xff]  ;;  %v5355_v51 = vld [vmem:[#allocation8 + $0x108] sm:$0xff]  ;;  %v5397_v1 = vld [vmem:[#allocation8 + $0x258] sm:$0xff] }
 0xc37   : > { %14641 = vst [vmem:[#allocation27_spill] sm:$0xff] %v13192_v33  ;;  %v4933_v63 = vadd.f32 %v10334_v38, %v4867_v19  ;;  %v5022_v44 = vadd.f32 %v13192_v33, %v13189_v58  ;;  %v9059_v19 = vpack.c.bf16 %v5348_v47, %v5340_v12  ;;  %8996 = vmatpush1.bf16.msra.mxu1 %v8995_v40  ;;  %v5380_v60 = vld [vmem:[#allocation8 + $0x1d0] sm:$0xff] }
 0xc38   : > { %v13199_v42 = vadd.f32 %v13041_v26, %v4932_v0  ;;  %v5332_v26 = vld [vmem:[#allocation8 + $0x50] sm:$0xff]  ;;  %v5363_v0 = vld [vmem:[#allocation8 + $0x148] sm:$0xff]  ;;  %v9067_v40 = vpack.c.bf16 %v5380_v60, %v5372_v4 }
 0xc39   : > { %v13202_v35 = vadd.f32 %v13044_v9, %v4933_v63  ;;  %5023 = vadd.xlane.f32.xlu1 %v5022_v44  ;;  %v9055_v9 = vpack.c.bf16 %v5332_v26, %v5324_v37  ;;  %v8997_v38 = vpack.c.bf16 %v5363_v0, %v5355_v51  ;;  %v5357_v63 = vld [vmem:[#allocation8 + $0x118] sm:$0xff]  ;;  %v9001_v37 = vpack.c.bf16 %v5379_v8, %v5371_v15  ;;  %v5386_v51 = vld [vmem:[#allocation8 + $0x200] sm:$0xff] }
 0xc3a   : > { %14642 = vst [vmem:[#allocation28_spill] sm:$0xff] %v13199_v42  ;;  %v5365_v44 = vld [vmem:[#allocation8 + $0x158] sm:$0xff]  ;;  %v5394_v0 = vld [vmem:[#allocation8 + $0x240] sm:$0xff] }
 0xc3b   : > { %14643 = vst [vmem:[#allocation29_spill] sm:$0xff] %v13202_v35  ;;  %v5025_v23 = vadd.f32 %v13202_v35, %v13199_v42  ;;  %9056 = vmatpush1.bf16.msra.mxu0 %v9055_v9  ;;  %v9061_v41 = vpack.c.bf16 %v5365_v44, %v5357_v63  ;;  %8998 = vmatprep.subr.bf16.mxu1 %v8997_v38  ;;  %v5381_v26 = vld [vmem:[#allocation8 + $0x1d8] sm:$0xff]  ;;  %v5378_v9 = vld [vmem:[#allocation8 + $0x1c0] sm:$0xff]  ;;  %v5396_v63 = vld [vmem:[#allocation8 + $0x250] sm:$0xff] }
 0xc3c   : > { %9058 = vmatprep.subr.bf16.mxu0 %v9057_v31  ;;  %v9065_v10 = vpack.c.bf16 %v5381_v26, %v5373_v2  ;;  %v5395_v31 = vld [vmem:[#allocation8 + $0x248] sm:$0xff]  ;;  %v9003_v12 = vpack.c.bf16 %v5378_v9, %v5370_v59  ;;  %v9069_v38 = vpack.c.bf16 %v5397_v1, %v5389_v14  ;;  %v9007_v52 = vpack.c.bf16 %v5394_v0, %v5386_v51  ;;  %v5402_v15 = vld [vmem:[#allocation8 + $0x280] sm:$0xff]  ;;  %v5404_v2 = vld [vmem:[#allocation8 + $0x290] sm:$0xff] }
 0xc3d   : > { %5026 = vadd.xlane.f32.xlu0 %v5025_v23  ;;  %v5354_v23 = vld [vmem:[#allocation8 + $0x100] sm:$0xff]  ;;  %v9005_v47 = vpack.c.bf16 %v5395_v31, %v5387_v34  ;;  %v5403_v44 = vld [vmem:[#allocation8 + $0x288] sm:$0xff]  ;;  %v5421_v9 = vld [vmem:[#allocation8 + $0x318] sm:$0xff] }
 0xc3e   : > { %v8999_v3 = vpack.c.bf16 %v5362_v61, %v5354_v23  ;;  %v5411_v23 = vld [vmem:[#allocation8 + $0x2c8] sm:$0xff]  ;;  %v5413_v61 = vld [vmem:[#allocation8 + $0x2d8] sm:$0xff]  ;;  %v5410_v8 = vld [vmem:[#allocation8 + $0x2c0] sm:$0xff] }
 0xc3f   : > { %9060 = vmatpush1.bf16.msra.mxu0 %v9059_v19  ;;  %v5388_v19 = vld [vmem:[#allocation8 + $0x210] sm:$0xff]  ;;  %v5419_v26 = vld [vmem:[#allocation8 + $0x308] sm:$0xff]  ;;  %v9011_v4 = vpack.c.bf16 %v5410_v8, %v5402_v15  ;;  %v5418_v31 = vld [vmem:[#allocation8 + $0x300] sm:$0xff] }
 0xc40   : > { %9062 = vmatprep.subr.bf16.mxu0 %v9061_v41  ;;  %9000 = vmatpush1.bf16.msra.mxu1 %v8999_v3  ;;  %v5405_v41 = vld [vmem:[#allocation8 + $0x298] sm:$0xff]  ;;  %v9071_v29 = vpack.c.bf16 %v5396_v63, %v5388_v19  ;;  %v9009_v3 = vpack.c.bf16 %v5411_v23, %v5403_v44  ;;  %v5427_v59 = vld [vmem:[#allocation8 + $0x348] sm:$0xff]  ;;  %v5426_v14 = vld [vmem:[#allocation8 + $0x340] sm:$0xff] }
 0xc41   : > { %9002 = vmatprep.subr.bf16.mxu1 %v9001_v37  ;;  %v5412_v37 = vld [vmem:[#allocation8 + $0x2d0] sm:$0xff]  ;;  %v9013_v34 = vpack.c.bf16 %v5427_v59, %v5419_v26  ;;  %v5443_v51 = vld [vmem:[#allocation8 + $0x3c8] sm:$0xff]  ;;  %v5437_v0 = vld [vmem:[#allocation8 + $0x398] sm:$0xff] }
 0xc42   : > { %v9075_v60 = vpack.c.bf16 %v5412_v37, %v5404_v2  ;;  %v5420_v1 = vld [vmem:[#allocation8 + $0x310] sm:$0xff]  ;;  %v5445_v19 = vld [vmem:[#allocation8 + $0x3d8] sm:$0xff]  ;;  %v5434_v23 = vld [vmem:[#allocation8 + $0x380] sm:$0xff] }
 0xc43   : > { %9064 = vmatpush1.bf16.msra.mxu0 %v9063_v49  ;;  %v9073_v49 = vpack.c.bf16 %v5413_v61, %v5405_v41  ;;  %v5442_v41 = vld [vmem:[#allocation8 + $0x3c0] sm:$0xff]  ;;  %v5436_v61 = vld [vmem:[#allocation8 + $0x390] sm:$0xff]  ;;  %v5459_v15 = vld [vmem:[#allocation8 + $0x448] sm:$0xff] }
 0xc44   : > { %9066 = vmatprep.subr.bf16.mxu0 %v9065_v10  ;;  %9004 = vmatpush1.bf16.msra.mxu1 %v9003_v12  ;;  %v5429_v10 = vld [vmem:[#allocation8 + $0x358] sm:$0xff]  ;;  %v9019_v26 = vpack.c.bf16 %v5442_v41, %v5434_v23 }
 0xc45   : > { %9006 = vmatprep.subr.bf16.mxu1 %v9005_v47  ;;  %v9077_v12 = vpack.c.bf16 %v5429_v10, %v5421_v9  ;;  %v5435_v47 = vld [vmem:[#allocation8 + $0x388] sm:$0xff]  ;;  %v5453_v2 = vld [vmem:[#allocation8 + $0x418] sm:$0xff]  ;;  %v5450_v10 = vld [vmem:[#allocation8 + $0x400] sm:$0xff] }
 0xc46   : > { %v9017_v44 = vpack.c.bf16 %v5443_v51, %v5435_v47  ;;  %v5469_v51 = vld [vmem:[#allocation8 + $0x498] sm:$0xff] }
 0xc47   : > { %9068 = vmatpush1.bf16.msra.mxu0 %v9067_v40  ;;  %v5428_v40 = vld [vmem:[#allocation8 + $0x350] sm:$0xff] }
 0xc48   : > { %9070 = vmatprep.subr.bf16.mxu0 %v9069_v38  ;;  %9008 = vmatpush1.bf16.msra.mxu1 %v9007_v52  ;;  %v9015_v38 = vpack.c.bf16 %v5426_v14, %v5418_v31  ;;  %v9079_v63 = vpack.c.bf16 %v5428_v40, %v5420_v1  ;;  %v9081_v52 = vpack.c.bf16 %v5445_v19, %v5437_v0  ;;  %v5460_v1 = vld [vmem:[#allocation8 + $0x450] sm:$0xff]  ;;  %v5475_v40 = vld [vmem:[#allocation8 + $0x4c8] sm:$0xff]  ;;  %v5477_v0 = vld [vmem:[#allocation8 + $0x4d8] sm:$0xff] }
 0xc49   : > { %9010 = vmatprep.subr.bf16.mxu1 %v9009_v3  ;;  %v5451_v3 = vld [vmem:[#allocation8 + $0x408] sm:$0xff] }
 0xc4a   : > { %v9021_v9 = vpack.c.bf16 %v5459_v15, %v5451_v3 }
 0xc4b   : > { %9072 = vmatpush1.bf16.msra.mxu0 %v9071_v29  ;;  %v5444_v29 = vld [vmem:[#allocation8 + $0x3d0] sm:$0xff] }
 0xc4c   : > { %9074 = vmatprep.subr.bf16.mxu0 %v9073_v49  ;;  %9012 = vmatpush1.bf16.msra.mxu1 %v9011_v4  ;;  %v5461_v49 = vld [vmem:[#allocation8 + $0x458] sm:$0xff]  ;;  %v9083_v59 = vpack.c.bf16 %v5444_v29, %v5436_v61  ;;  %v5458_v4 = vld [vmem:[#allocation8 + $0x440] sm:$0xff]  ;;  %v5468_v29 = vld [vmem:[#allocation8 + $0x490] sm:$0xff] }
 0xc4d   : > { %9014 = vmatprep.subr.bf16.mxu1 %v9013_v34  ;;  %v9085_v14 = vpack.c.bf16 %v5461_v49, %v5453_v2  ;;  %v5466_v61 = vld [vmem:[#allocation8 + $0x480] sm:$0xff]  ;;  %v9089_v2 = vpack.c.bf16 %v5477_v0, %v5469_v51  ;;  %v5476_v49 = vld [vmem:[#allocation8 + $0x4d0] sm:$0xff] }
 0xc4e   : > { %v5490_v51 = vld [vmem:[#allocation8 + $0x540] sm:$0xff] }
 0xc4f   : > { %9076 = vmatpush1.bf16.msra.mxu0 %v9075_v60  ;;  %v5452_v60 = vld [vmem:[#allocation8 + $0x410] sm:$0xff] }
 0xc50   : > { %9078 = vmatprep.subr.bf16.mxu0 %v9077_v12  ;;  %9016 = vmatpush1.bf16.msra.mxu1 %v9015_v38  ;;  %v5467_v12 = vld [vmem:[#allocation8 + $0x488] sm:$0xff]  ;;  %v9087_v23 = vpack.c.bf16 %v5460_v1, %v5452_v60 }
 0xc51   : > { %9018 = vmatprep.subr.bf16.mxu1 %v9017_v44  ;;  %v9023_v44 = vpack.c.bf16 %v5458_v4, %v5450_v10  ;;  %v9025_v41 = vpack.c.bf16 %v5475_v40, %v5467_v12 }
 0xc53   : > { %9080 = vmatpush1.bf16.msra.mxu0 %v9079_v63 }
 0xc54   : > { %9082 = vmatprep.subr.bf16.mxu0 %v9081_v52  ;;  %9020 = vmatpush1.bf16.msra.mxu1 %v9019_v26  ;;  %v5474_v52 = vld [vmem:[#allocation8 + $0x4c0] sm:$0xff]  ;;  %v5491_v26 = vld [vmem:[#allocation8 + $0x548] sm:$0xff] }
 0xc55   : > { %9022 = vmatprep.subr.bf16.mxu1 %v9021_v9  ;;  %v5493_v9 = vld [vmem:[#allocation8 + $0x558] sm:$0xff]  ;;  %v9027_v12 = vpack.c.bf16 %v5474_v52, %v5466_v61 }
 0xc57   : > { %9084 = vmatpush1.bf16.msra.mxu0 %v9083_v59  ;;  %v5485_v59 = vld [vmem:[#allocation8 + $0x518] sm:$0xff] }
 0xc58   : > { %9086 = vmatprep.subr.bf16.mxu0 %v9085_v14  ;;  %9024 = vmatpush1.bf16.msra.mxu1 %v9023_v44  ;;  %v9091_v14 = vpack.c.bf16 %v5476_v49, %v5468_v29 }
 0xc59   : > { %9026 = vmatprep.subr.bf16.mxu1 %v9025_v41 }
 0xc5b   : > { %9088 = vmatpush1.bf16.msra.mxu0 %v9087_v23 }
 0xc5c   : > { %9090 = vmatprep.subr.bf16.mxu0 %v9089_v2  ;;  %9028 = vmatpush1.bf16.msra.mxu1 %v9027_v12 }
 0xc5f   : > { %9092 = vmatpush1.bf16.msra.mxu0 %v9091_v14 }
 0xc6e   : > { %v4982_v8 = vpop.xlane.xlu1 %4981 }
 0xc6f   : > { %v5028_v37 = vmul.f32 0.00390625, %v4982_v8 }
 0xc71   : > { %v13207_v34 = vsub.f32 %v13049_v62, %v5028_v37  ;;  %v13210_v31 = vsub.f32 %v13052_v24, %v5028_v37  ;;  %v5483_v37 = vld [vmem:[#allocation8 + $0x508] sm:$0xff] }
 0xc72   : > { %v4985_v47 = vpop.xlane.xlu0 %4984  ;;  %v9029_v40 = vpack.c.bf16 %v5491_v26, %v5483_v37 }
 0xc73   : > { %v5076_v19 = vmul.f32 %v13207_v34, %v13207_v34  ;;  %v5077_v38 = vmul.f32 %v13210_v31, %v13210_v31  ;;  %v5029_v63 = vmul.f32 0.00390625, %v4985_v47  ;;  %v5482_v47 = vld [vmem:[#allocation8 + $0x500] sm:$0xff] }
 0xc74   : > { %v9031_v61 = vpack.c.bf16 %v5490_v51, %v5482_v47  ;;  %9030 = vmatprep.subr.bf16.mxu1 %v9029_v40 }
 0xc75   : > { %v13217_v3 = vsub.f32 %v13059_v30, %v5029_v63  ;;  %v13220_v15 = vsub.f32 %v13062_v18, %v5029_v63  ;;  %v5108_v8 = vadd.f32 %v5077_v38, %v5076_v19  ;;  %v9093_v63 = vpack.c.bf16 %v5493_v9, %v5485_v59  ;;  %v5484_v18 = vld [vmem:[#allocation8 + $0x510] sm:$0xff]  ;;  %v5449_v30 = vld [vmem:[#allocation8 + $0x3f8] sm:$0xff] }
 0xc76   : > { %v4988_v10 = vpop.xlane.xlu1 %4987  ;;  %9032 = vmatpush1.bf16.msra.mxu1 %v9031_v61 }
 0xc77   : > { %v5078_v4 = vmul.f32 %v13217_v3, %v13217_v3  ;;  %v5079_v60 = vmul.f32 %v13220_v15, %v13220_v15  ;;  %v5030_v1 = vmul.f32 0.00390625, %v4988_v10  ;;  %5109 = vadd.xlane.f32.xlu1 %v5108_v8  ;;  %v5492_v10 = vld [vmem:[#allocation8 + $0x550] sm:$0xff]  ;;  %9094 = vmatprep.subr.bf16.mxu0 %v9093_v63 }
 0xc78   : > { %v9095_v52 = vpack.c.bf16 %v5492_v10, %v5484_v18 }
 0xc79   : > { %v13227_v0 = vsub.f32 %v13069_v20, %v5030_v1  ;;  %v13230_v19 = vsub.f32 %v13072_v28, %v5030_v1  ;;  %v5111_v38 = vadd.f32 %v5079_v60, %v5078_v4  ;;  %v5392_v20 = vld [vmem:[#allocation8 + $0x230] sm:$0xff] }
 0xc7a   : > { %v4991_v8 = vpop.xlane.xlu0 %4990  ;;  %9096 = vmatpush1.bf16.msra.mxu0 %v9095_v52  ;;  %v5509_v52 = vld [vmem:[#allocation8 + $0x5d8] sm:$0xff] }
 0xc7b   : > { %v5080_v44 = vmul.f32 %v13227_v0, %v13227_v0  ;;  %v5081_v23 = vmul.f32 %v13230_v19, %v13230_v19  ;;  %v5031_v41 = vmul.f32 0.00390625, %v4991_v8  ;;  %5112 = vadd.xlane.f32.xlu0 %v5111_v38  ;;  %v5499_v8 = vld [vmem:[#allocation8 + $0x588] sm:$0xff] }
 0xc7d   : > { %v13237_v29 = vsub.f32 %v13079_v13, %v5031_v41  ;;  %v13240_v2 = vsub.f32 %v13082_v11, %v5031_v41  ;;  %v5114_v49 = vadd.f32 %v5081_v23, %v5080_v44  ;;  %v5507_v44 = vld [vmem:[#allocation8 + $0x5c8] sm:$0xff]  ;;  %v5501_v23 = vld [vmem:[#allocation8 + $0x598] sm:$0xff]  ;;  %v5342_v13 = vld [vmem:[#allocation8 + $0xa0] sm:$0xff] }
 0xc7e   : > { %v4994_v37 = vpop.xlane.xlu1 %4993  ;;  %v9033_v61 = vpack.c.bf16 %v5507_v44, %v5499_v8 }
 0xc7f   : > { %v5082_v26 = vmul.f32 %v13237_v29, %v13237_v29  ;;  %v5083_v59 = vmul.f32 %v13240_v2, %v13240_v2  ;;  %v5032_v9 = vmul.f32 0.00390625, %v4994_v37  ;;  %5115 = vadd.xlane.f32.xlu1 %v5114_v49  ;;  %v5498_v49 = vld [vmem:[#allocation8 + $0x580] sm:$0xff] }
 0xc80   : > { %v5506_v37 = vld [vmem:[#allocation8 + $0x5c0] sm:$0xff]  ;;  %9034 = vmatprep.subr.bf16.mxu1 %v9033_v61  ;;  %v5539_v61 = vld [vmem:[#allocation8 + $0x6c8] sm:$0xff] }
 0xc81   : > { %v13247_v18 = vsub.f32 %v13089_v39, %v5032_v9  ;;  %v13250_v4 = vsub.f32 %v13092_v6, %v5032_v9  ;;  %v5117_v60 = vadd.f32 %v5083_v59, %v5082_v26  ;;  %v9097_v26 = vpack.c.bf16 %v5509_v52, %v5501_v23  ;;  %v5500_v9 = vld [vmem:[#allocation8 + $0x590] sm:$0xff]  ;;  %v5353_v6 = vld [vmem:[#allocation8 + $0xf8] sm:$0xff] }
 0xc82   : > { %v4997_v1 = vpop.xlane.xlu0 %4996  ;;  %v9035_v59 = vpack.c.bf16 %v5506_v37, %v5498_v49  ;;  %v5524_v23 = vld [vmem:[#allocation8 + $0x650] sm:$0xff]  ;;  %v5533_v49 = vld [vmem:[#allocation8 + $0x698] sm:$0xff] }
 0xc83   : > { %v5084_v12 = vmul.f32 %v13247_v18, %v13247_v18  ;;  %v5085_v14 = vmul.f32 %v13250_v4, %v13250_v4  ;;  %v5033_v40 = vmul.f32 0.00390625, %v4997_v1  ;;  %5118 = vadd.xlane.f32.xlu0 %v5117_v60  ;;  %v5508_v60 = vld [vmem:[#allocation8 + $0x5d0] sm:$0xff]  ;;  %9098 = vmatprep.subr.bf16.mxu0 %v9097_v26  ;;  %v5541_v26 = vld [vmem:[#allocation8 + $0x6d8] sm:$0xff] }
 0xc84   : > { %v9099_v1 = vpack.c.bf16 %v5508_v60, %v5500_v9  ;;  %9036 = vmatpush1.bf16.msra.mxu1 %v9035_v59  ;;  %v5530_v59 = vld [vmem:[#allocation8 + $0x680] sm:$0xff]  ;;  %v9105_v60 = vpack.c.bf16 %v5541_v26, %v5533_v49  ;;  %v5571_v26 = vld [vmem:[#allocation8 + $0x7c8] sm:$0xff] }
 0xc85   : > { %v13257_v47 = vsub.f32 %v13099_v54, %v5033_v40  ;;  %v13260_v51 = vsub.f32 %v13102_v43, %v5033_v40  ;;  %v5120_v38 = vadd.f32 %v5085_v14, %v5084_v12  ;;  %v5515_v12 = vld [vmem:[#allocation8 + $0x608] sm:$0xff]  ;;  %v5517_v40 = vld [vmem:[#allocation8 + $0x618] sm:$0xff]  ;;  %v5516_v54 = vld [vmem:[#allocation8 + $0x610] sm:$0xff] }
 0xc86   : > { %v5523_v14 = vld [vmem:[#allocation8 + $0x648] sm:$0xff]  ;;  %9100 = vmatpush1.bf16.msra.mxu0 %v9099_v1  ;;  %v5525_v43 = vld [vmem:[#allocation8 + $0x658] sm:$0xff]  ;;  %v9103_v52 = vpack.c.bf16 %v5524_v23, %v5516_v54  ;;  %v5538_v9 = vld [vmem:[#allocation8 + $0x6c0] sm:$0xff] }
 0xc87   : > { %v5086_v63 = vmul.f32 %v13257_v47, %v13257_v47  ;;  %v5087_v10 = vmul.f32 %v13260_v51, %v13260_v51  ;;  %5121 = vadd.xlane.f32.xlu1 %v5120_v38  ;;  %v9037_v38 = vpack.c.bf16 %v5523_v14, %v5515_v12  ;;  %v9101_v8 = vpack.c.bf16 %v5525_v43, %v5517_v40  ;;  %v5532_v12 = vld [vmem:[#allocation8 + $0x690] sm:$0xff]  ;;  %v5547_v40 = vld [vmem:[#allocation8 + $0x708] sm:$0xff] }
 0xc88   : > { %v9043_v1 = vpack.c.bf16 %v5538_v9, %v5530_v59  ;;  %v5540_v14 = vld [vmem:[#allocation8 + $0x6d0] sm:$0xff]  ;;  %v5555_v54 = vld [vmem:[#allocation8 + $0x748] sm:$0xff]  ;;  %v5565_v59 = vld [vmem:[#allocation8 + $0x798] sm:$0xff] }
 0xc89   : > { %v5123_v41 = vadd.f32 %v5087_v10, %v5086_v63  ;;  %v5514_v63 = vld [vmem:[#allocation8 + $0x600] sm:$0xff]  ;;  %9038 = vmatprep.subr.bf16.mxu1 %v9037_v38  ;;  %9102 = vmatprep.subr.bf16.mxu0 %v9101_v8  ;;  %v9107_v43 = vpack.c.bf16 %v5540_v14, %v5532_v12  ;;  %v5549_v38 = vld [vmem:[#allocation8 + $0x718] sm:$0xff] }
 0xc8a   : > { %v5522_v10 = vld [vmem:[#allocation8 + $0x640] sm:$0xff]  ;;  %9104 = vmatpush1.bf16.msra.mxu0 %v9103_v52 }
 0xc8b   : > { %5124 = vadd.xlane.f32.xlu0 %v5123_v41  ;;  %v9039_v44 = vpack.c.bf16 %v5522_v10, %v5514_v63  ;;  %v5531_v41 = vld [vmem:[#allocation8 + $0x688] sm:$0xff]  ;;  %9106 = vmatprep.subr.bf16.mxu0 %v9105_v60  ;;  %v9045_v63 = vpack.c.bf16 %v5555_v54, %v5547_v40  ;;  %v5557_v10 = vld [vmem:[#allocation8 + $0x758] sm:$0xff]  ;;  %v5546_v8 = vld [vmem:[#allocation8 + $0x700] sm:$0xff] }
 0xc8c   : > { %v9041_v37 = vpack.c.bf16 %v5539_v61, %v5531_v41  ;;  %v9109_v23 = vpack.c.bf16 %v5557_v10, %v5549_v38  ;;  %v5548_v41 = vld [vmem:[#allocation8 + $0x710] sm:$0xff]  ;;  %v5573_v60 = vld [vmem:[#allocation8 + $0x7d8] sm:$0xff]  ;;  %v5570_v12 = vld [vmem:[#allocation8 + $0x7c0] sm:$0xff] }
 0xc8d   : > { %9040 = vmatpush1.bf16.msra.mxu1 %v9039_v44  ;;  %v5554_v44 = vld [vmem:[#allocation8 + $0x740] sm:$0xff]  ;;  %v5556_v61 = vld [vmem:[#allocation8 + $0x750] sm:$0xff]  ;;  %v9113_v14 = vpack.c.bf16 %v5573_v60, %v5565_v59 }
 0xc8e   : > { %9042 = vmatprep.subr.bf16.mxu1 %v9041_v37  ;;  %9108 = vmatpush1.bf16.msra.mxu0 %v9107_v43  ;;  %v9047_v52 = vpack.c.bf16 %v5554_v44, %v5546_v8  ;;  %v9111_v49 = vpack.c.bf16 %v5556_v61, %v5548_v41  ;;  %v5563_v37 = vld [vmem:[#allocation8 + $0x788] sm:$0xff]  ;;  %v5564_v40 = vld [vmem:[#allocation8 + $0x790] sm:$0xff] }
 0xc8f   : > { %9110 = vmatprep.subr.bf16.mxu0 %v9109_v23  ;;  %v9049_v9 = vpack.c.bf16 %v5571_v26, %v5563_v37  ;;  %v5572_v54 = vld [vmem:[#allocation8 + $0x7d0] sm:$0xff] }
 0xc90   : > { %v9115_v38 = vpack.c.bf16 %v5572_v54, %v5564_v40  ;;  %v5337_v54 = vld [vmem:[#allocation8 + $0x78] sm:$0xff] }
 0xc91   : > { %9044 = vmatpush1.bf16.msra.mxu1 %v9043_v1  ;;  %v5562_v1 = vld [vmem:[#allocation8 + $0x780] sm:$0xff] }
 0xc92   : > { %9046 = vmatprep.subr.bf16.mxu1 %v9045_v63  ;;  %9112 = vmatpush1.bf16.msra.mxu0 %v9111_v49  ;;  %v9051_v43 = vpack.c.bf16 %v5570_v12, %v5562_v1  ;;  %v5327_v12 = vld [vmem:[#allocation8 + $0x28] sm:$0xff] }
 0xc93   : > { %9114 = vmatprep.subr.bf16.mxu0 %v9113_v14  ;;  %v5335_v14 = vld [vmem:[#allocation8 + $0x68] sm:$0xff] }
 0xc94   : > { %v9117_v40 = vpack.c.bf16 %v5335_v14, %v5327_v12 }
 0xc95   : > { %9048 = vmatpush1.bf16.msra.mxu1 %v9047_v52 }
 0xc96   : > { %9050 = vmatprep.subr.bf16.mxu1 %v9049_v9  ;;  %9116 = vmatpush1.bf16.msra.mxu0 %v9115_v38 }
 0xc99   : > { %9052 = vmatpush1.bf16.msra.mxu1 %v9051_v43  ;;  %v5329_v43 = vld [vmem:[#allocation8 + $0x38] sm:$0xff] }
 0xc9a   : > { %9118 = vmatprep.subr.bf16.mxu1 %v9117_v40 }
 0xca6   : > { %v5000_v63 = vpop.xlane.xlu1 %4999 }
 0xca7   : > { %v5034_v10 = vmul.f32 0.00390625, %v5000_v63 }
 0xca9   : > { %v13267_v8 = vsub.f32 %v13109_v50, %v5034_v10  ;;  %v13270_v44 = vsub.f32 %v13112_v45, %v5034_v10 }
 0xcaa   : > { %v5003_v23 = vpop.xlane.xlu0 %5002 }
 0xcab   : > { %v5088_v52 = vmul.f32 %v13267_v8, %v13267_v8  ;;  %v5089_v41 = vmul.f32 %v13270_v44, %v13270_v44  ;;  %v5035_v61 = vmul.f32 0.00390625, %v5003_v23  ;;  %v9181_v23 = vpack.c.bf16 %v5337_v54, %v5329_v43 }
 0xcad   : > { %v13277_v49 = vsub.f32 %v13119_v48, %v5035_v61  ;;  %v13280_v37 = vsub.f32 %v13122_v56, %v5035_v61  ;;  %v5126_v26 = vadd.f32 %v5089_v41, %v5088_v52  ;;  %9182 = vmatprep.subr.bf16.mxu0 %v9181_v23  ;;  %v5351_v56 = vld [vmem:[#allocation8 + $0xe8] sm:$0xff] }
 0xcae   : > { %v5006_v59 = vpop.xlane.xlu1 %5005 }
 0xcaf   : > { %v5090_v9 = vmul.f32 %v13277_v49, %v13277_v49  ;;  %v5091_v60 = vmul.f32 %v13280_v37, %v13280_v37  ;;  %v5036_v1 = vmul.f32 0.00390625, %v5006_v59  ;;  %5127 = vadd.xlane.f32.xlu1 %v5126_v26 }
 0xcb1   : > { %v13287_v38 = vsub.f32 %v13129_v22, %v5036_v1  ;;  %v13290_v63 = vsub.f32 %v13132_v17, %v5036_v1  ;;  %v5129_v10 = vadd.f32 %v5091_v60, %v5090_v9  ;;  %v5328_v17 = vld [vmem:[#allocation8 + $0x30] sm:$0xff] }
 0xcb2   : > { %v5009_v52 = vpop.xlane.xlu0 %5008  ;;  %v5336_v22 = vld [vmem:[#allocation8 + $0x70] sm:$0xff] }
 0xcb3   : > { %v5092_v41 = vmul.f32 %v13287_v38, %v13287_v38  ;;  %v5093_v61 = vmul.f32 %v13290_v63, %v13290_v63  ;;  %v5037_v26 = vmul.f32 0.00390625, %v5009_v52  ;;  %5130 = vadd.xlane.f32.xlu0 %v5129_v10  ;;  %v9183_v39 = vpack.c.bf16 %v5336_v22, %v5328_v17 }
 0xcb5   : > { %v13297_v59 = vsub.f32 %v13139_v36, %v5037_v26  ;;  %v13300_v12 = vsub.f32 %v13142_v16, %v5037_v26  ;;  %v5132_v1 = vadd.f32 %v5093_v61, %v5092_v41 }
 0xcb6   : > { %v5012_v9 = vpop.xlane.xlu1 %5011 }
 0xcb7   : > { %v5094_v60 = vmul.f32 %v13297_v59, %v13297_v59  ;;  %v5095_v14 = vmul.f32 %v13300_v12, %v13300_v12  ;;  %v5038_v43 = vmul.f32 0.00390625, %v5012_v9  ;;  %5133 = vadd.xlane.f32.xlu1 %v5132_v1 }
 0xcb9   : > { %v13307_v40 = vsub.f32 %v13149_v25, %v5038_v43  ;;  %v13310_v54 = vsub.f32 %v13152_v46, %v5038_v43  ;;  %v5135_v10 = vadd.f32 %v5095_v14, %v5094_v60 }
 0xcba   : > { %v5015_v23 = vpop.xlane.xlu0 %5014 }
 0xcbb   : > { %v5096_v52 = vmul.f32 %v13307_v40, %v13307_v40  ;;  %v5097_v41 = vmul.f32 %v13310_v54, %v13310_v54  ;;  %v5039_v61 = vmul.f32 0.00390625, %v5015_v23  ;;  %5136 = vadd.xlane.f32.xlu0 %v5135_v10 }
 0xcbd   : > { %v13317_v26 = vsub.f32 %v13159_v21, %v5039_v61  ;;  %v13320_v1 = vsub.f32 %v13162_v55, %v5039_v61  ;;  %v5138_v9 = vadd.f32 %v5097_v41, %v5096_v52 }
 0xcbe   : > { %v5018_v25 = vpop.xlane.xlu1 %5017 }
 0xcbf   : > { %v5098_v60 = vmul.f32 %v13317_v26, %v13317_v26  ;;  %v5099_v14 = vmul.f32 %v13320_v1, %v13320_v1  ;;  %v5040_v43 = vmul.f32 0.00390625, %v5018_v25  ;;  %5139 = vadd.xlane.f32.xlu1 %v5138_v9 }
 0xcc1   : > { %v13327_v46 = vsub.f32 %v13169_v57, %v5040_v43  ;;  %v13330_v10 = vsub.f32 %v13172_v5, %v5040_v43  ;;  %v5141_v23 = vadd.f32 %v5099_v14, %v5098_v60 }
 0xcc2   : > { %v5021_v21 = vpop.xlane.xlu0 %5020 }
 0xcc3   : > { %v5100_v52 = vmul.f32 %v13327_v46, %v13327_v46  ;;  %v5101_v41 = vmul.f32 %v13330_v10, %v13330_v10  ;;  %v5041_v61 = vmul.f32 0.00390625, %v5021_v21  ;;  %5142 = vadd.xlane.f32.xlu0 %v5141_v23 }
 0xcc5   : > { %v13337_v55 = vsub.f32 %v13179_v7, %v5041_v61  ;;  %v13340_v25 = vsub.f32 %v13182_v32, %v5041_v61  ;;  %v5144_v9 = vadd.f32 %v5101_v41, %v5100_v52 }
 0xcc6   : > { %v5024_v57 = vpop.xlane.xlu1 %5023 }
 0xcc7   : > { %v5102_v60 = vmul.f32 %v13337_v55, %v13337_v55  ;;  %v5103_v14 = vmul.f32 %v13340_v25, %v13340_v25  ;;  %v5042_v43 = vmul.f32 0.00390625, %v5024_v57  ;;  %5145 = vadd.xlane.f32.xlu1 %v5144_v9 }
 0xcc9   : > { %v13347_v5 = vsub.f32 %v13189_v58, %v5042_v43  ;;  %v13350_v21 = vsub.f32 %v13192_v33, %v5042_v43  ;;  %v5147_v23 = vadd.f32 %v5103_v14, %v5102_v60 }
 0xcca   : > { %v5027_v7 = vpop.xlane.xlu0 %5026 }
 0xccb   : > { %v5104_v52 = vmul.f32 %v13347_v5, %v13347_v5  ;;  %v5105_v41 = vmul.f32 %v13350_v21, %v13350_v21  ;;  %v5043_v61 = vmul.f32 0.00390625, %v5027_v7  ;;  %5148 = vadd.xlane.f32.xlu0 %v5147_v23 }
 0xccd   : > { %v13357_v32 = vsub.f32 %v13199_v42, %v5043_v61  ;;  %v13360_v57 = vsub.f32 %v13202_v35, %v5043_v61  ;;  %v5150_v9 = vadd.f32 %v5105_v41, %v5104_v52  ;;  %v4978_v41 = vld [vmem:[%s14300_s10] sm:$0x3] }
 0xccf   : > { %v5106_v43 = vmul.f32 %v13357_v32, %v13357_v32  ;;  %v5107_v60 = vmul.f32 %v13360_v57, %v13360_v57  ;;  %5151 = vadd.xlane.f32.xlu1 %v5150_v9 }
 0xcd1   : > { %v5153_v14 = vadd.f32 %v5107_v60, %v5106_v43 }
 0xcd3   : > { %5154 = vadd.xlane.f32.xlu0 %v5153_v14 }
 0xd04   : > { %v5110_v33 = vpop.xlane.xlu1 %5109 }
 0xd05   : > { %v5156_v58 = vmul.f32 0.00390625, %v5110_v33  ;;  %v4979_v33 = vld [vmem:[%s14301_s11] sm:$0x3] }
 0xd07   : > { %v5172_v7 = vadd.f32 1e-05, %v5156_v58  ;;  %v13373_v58 = vrot.slane %v4978_v41, %v14610_v53 }
 0xd08   : > { %v5113_v23 = vpop.xlane.xlu0 %5112 }
 0xd09   : > { %10271 = vrsqrt.f32 %v5172_v7  ;;  %v5157_v42 = vmul.f32 0.00390625, %v5113_v23  ;;  %v13381_v7 = vrot.slane %v4979_v33, %v14610_v53  ;;  %v5326_v23 = vld [vmem:[#allocation8 + $0x20] sm:$0xff] }
 0xd0b   : > { %v5173_v16 = vadd.f32 1e-05, %v5157_v42  ;;  %v13376_v42 = vrot.slane %v4978_v41, %v14611_v27 }
 0xd0c   : > { %v5116_v36 = vpop.xlane.xlu1 %5115 }
 0xd0d   : > { %10273 = vrsqrt.f32 %v5173_v16  ;;  %v5158_v61 = vmul.f32 0.00390625, %v5116_v36 }
 0xd0f   : > { %v5174_v52 = vadd.f32 1e-05, %v5158_v61  ;;  %v5334_v61 = vld [vmem:[#allocation8 + $0x60] sm:$0xff] }
 0xd10   : > { %v5119_v35 = vpop.xlane.xlu0 %5118 }
 0xd11   : > { %10275 = vrsqrt.f32 %v5174_v52  ;;  %v5159_v9 = vmul.f32 0.00390625, %v5119_v35  ;;  %v13384_v35 = vrot.slane %v4979_v33, %v14611_v27 }
 0xd13   : > { %v10272_v16 = vpop.eup %10271  ;;  %v5175_v36 = vadd.f32 1e-05, %v5159_v9 }
 0xd14   : > { %v5204_v43 = vmul.f32 %v10272_v16, %v13207_v34  ;;  %v5122_v60 = vpop.xlane.xlu1 %5121  ;;  %v5205_v14 = vmul.f32 %v10272_v16, %v13210_v31  ;;  %v5343_v34 = vld [vmem:[#allocation8 + $0xa8] sm:$0xff]  ;;  %v9119_v16 = vpack.c.bf16 %v5334_v61, %v5326_v23 }
 0xd15   : > { %10277 = vrsqrt.f32 %v5175_v36  ;;  %v5160_v52 = vmul.f32 0.00390625, %v5122_v60  ;;  %v9121_v11 = vpack.c.bf16 %v5351_v56, %v5343_v34  ;;  %v5359_v34 = vld [vmem:[#allocation8 + $0x128] sm:$0xff] }
 0xd16   : > { %v5248_v41 = vmul.f32 %v13376_v42, %v5205_v14  ;;  %v5247_v9 = vmul.f32 %v13373_v58, %v5204_v43  ;;  %v5345_v14 = vld [vmem:[#allocation8 + $0xb8] sm:$0xff] }
 0xd17   : > { %v10274_v48 = vpop.eup %10273  ;;  %v5176_v31 = vadd.f32 1e-05, %v5160_v52  ;;  %v5350_v52 = vld [vmem:[#allocation8 + $0xe0] sm:$0xff] }
 0xd18   : > { %v5125_v45 = vpop.xlane.xlu0 %5124  ;;  %v13389_v50 = vadd.f32 %v13384_v35, %v5248_v41  ;;  %v13392_v33 = vadd.f32 %v13381_v7, %v5247_v9  ;;  %v5207_v36 = vmul.f32 %v10274_v48, %v13220_v15  ;;  %v5206_v60 = vmul.f32 %v10274_v48, %v13217_v3  ;;  %v5344_v41 = vld [vmem:[#allocation8 + $0xb0] sm:$0xff] }
 0xd19   : > { %10279 = vrsqrt.f32 %v5176_v31  ;;  %v5161_v43 = vmul.f32 0.00390625, %v5125_v45  ;;  %v5352_v15 = vld [vmem:[#allocation8 + $0xf0] sm:$0xff]  ;;  %v9185_v45 = vpack.c.bf16 %v5353_v6, %v5345_v14  ;;  %v5367_v31 = vld [vmem:[#allocation8 + $0x168] sm:$0xff] }
 0xd1a   : > { %5684 = vmatprep.mubr.f32.mxu1 %v13389_v50  ;;  %5845 = vmatprep.mubr.f32.mxu0 %v13389_v50  ;;  %v5250_v23 = vmul.f32 %v13376_v42, %v5207_v36  ;;  %v5249_v61 = vmul.f32 %v13373_v58, %v5206_v60  ;;  %v9123_v36 = vpack.c.bf16 %v5350_v52, %v5342_v13 }
 0xd1b   : > { %v10276_v9 = vpop.eup %10275  ;;  %v5177_v48 = vadd.f32 1e-05, %v5161_v43  ;;  %5685 = vmatmul.mubr.f32.vlgmr.msra.gmra.mrb[96].mxu1 %v13392_v33  ;;  %5846 = vmatmul.mubr.f32.vlgmr.msra.gmra.mrb[160].mxu0 %v13392_v33  ;;  %v9187_v60 = vpack.c.bf16 %v5352_v15, %v5344_v41  ;;  %v5361_v43 = vld [vmem:[#allocation8 + $0x138] sm:$0xff]  ;;  %v5360_v41 = vld [vmem:[#allocation8 + $0x130] sm:$0xff] }
 0xd1c   : > { %v13403_v56 = vadd.f32 %v13384_v35, %v5250_v23  ;;  %v13406_v22 = vadd.f32 %v13381_v7, %v5249_v61  ;;  %v5209_v17 = vmul.f32 %v10276_v9, %v13230_v19  ;;  %v5208_v3 = vmul.f32 %v10276_v9, %v13227_v0  ;;  %9120 = vmatpush1.bf16.msra.mxu1 %v9119_v16  ;;  %v5369_v19 = vld [vmem:[#allocation8 + $0x178] sm:$0xff]  ;;  %v5358_v23 = vld [vmem:[#allocation8 + $0x120] sm:$0xff]  ;;  %v5368_v15 = vld [vmem:[#allocation8 + $0x170] sm:$0xff] }
 0xd1d   : > { %10281 = vrsqrt.f32 %v5177_v48  ;;  %9184 = vmatpush1.bf16.msra.mxu0 %v9183_v39  ;;  %9122 = vmatprep.subr.bf16.mxu1 %v9121_v11  ;;  %v5366_v0 = vld [vmem:[#allocation8 + $0x160] sm:$0xff]  ;;  %v9125_v11 = vpack.c.bf16 %v5367_v31, %v5359_v34  ;;  %v9189_v9 = vpack.c.bf16 %v5369_v19, %v5361_v43  ;;  %v5383_v31 = vld [vmem:[#allocation8 + $0x1e8] sm:$0xff] }
 0xd1e   : > { %5690 = vmatprep.mubr.f32.mxu1 %v13403_v56  ;;  %5851 = vmatprep.mubr.f32.mxu0 %v13403_v56  ;;  %v5252_v6 = vmul.f32 %v13376_v42, %v5209_v17  ;;  %v5251_v14 = vmul.f32 %v13373_v58, %v5208_v3  ;;  %v9127_v48 = vpack.c.bf16 %v5366_v0, %v5358_v23  ;;  %v5375_v17 = vld [vmem:[#allocation8 + $0x1a8] sm:$0xff]  ;;  %v5382_v23 = vld [vmem:[#allocation8 + $0x1e0] sm:$0xff]  ;;  %v5376_v0 = vld [vmem:[#allocation8 + $0x1b0] sm:$0xff] }
 0xd1f   : > { %v10278_v16 = vpop.eup %10277  ;;  %5691 = vmatmul.mubr.f32.gmra.mrb[98].mxu1 %v13406_v22  ;;  %5852 = vmatmul.mubr.f32.gmra.mrb[162].mxu0 %v13406_v22 }
 0xd20   : > { %v13417_v13 = vadd.f32 %v13384_v35, %v5252_v6  ;;  %v13420_v39 = vadd.f32 %v13381_v7, %v5251_v14  ;;  %v5211_v61 = vmul.f32 %v10278_v16, %v13240_v2  ;;  %v5210_v52 = vmul.f32 %v10278_v16, %v13237_v29  ;;  %9186 = vmatprep.subr.bf16.mxu0 %v9185_v45  ;;  %v5377_v2 = vld [vmem:[#allocation8 + $0x1b8] sm:$0xff]  ;;  %v5384_v16 = vld [vmem:[#allocation8 + $0x1f0] sm:$0xff] }
 0xd21   : > { %9124 = vmatpush1.bf16.msra.mxu1 %v9123_v36  ;;  %9188 = vmatpush1.bf16.msra.mxu0 %v9187_v60  ;;  %v5385_v6 = vld [vmem:[#allocation8 + $0x1f8] sm:$0xff]  ;;  %v9191_v45 = vpack.c.bf16 %v5368_v15, %v5360_v41  ;;  %v5374_v36 = vld [vmem:[#allocation8 + $0x1a0] sm:$0xff]  ;;  %v5391_v41 = vld [vmem:[#allocation8 + $0x228] sm:$0xff] }
 0xd22   : > { %5696 = vmatprep.mubr.f32.mxu1 %v13417_v13  ;;  %5857 = vmatprep.mubr.f32.mxu0 %v13417_v13  ;;  %v5254_v3 = vmul.f32 %v13376_v42, %v5211_v61  ;;  %v5253_v34 = vmul.f32 %v13373_v58, %v5210_v52  ;;  %v9129_v61 = vpack.c.bf16 %v5383_v31, %v5375_v17 }
 0xd23   : > { %v10280_v29 = vpop.eup %10279  ;;  %5697 = vmatmul.mubr.f32.gmra.mrb[100].mxu1 %v13420_v39  ;;  %5858 = vmatmul.mubr.f32.gmra.mrb[164].mxu0 %v13420_v39  ;;  %v9193_v52 = vpack.c.bf16 %v5385_v6, %v5377_v2 }
 0xd24   : > { %v13431_v60 = vadd.f32 %v13384_v35, %v5254_v3  ;;  %v13434_v43 = vadd.f32 %v13381_v7, %v5253_v34  ;;  %v5213_v14 = vmul.f32 %v10280_v29, %v13250_v4  ;;  %v5212_v19 = vmul.f32 %v10280_v29, %v13247_v18  ;;  %9126 = vmatprep.subr.bf16.mxu1 %v9125_v11  ;;  %v5399_v4 = vld [vmem:[#allocation8 + $0x268] sm:$0xff]  ;;  %v5393_v34 = vld [vmem:[#allocation8 + $0x238] sm:$0xff]  ;;  %v5390_v29 = vld [vmem:[#allocation8 + $0x220] sm:$0xff] }
 0xd25   : > { %9190 = vmatprep.subr.bf16.mxu0 %v9189_v9  ;;  %9128 = vmatpush1.bf16.msra.mxu1 %v9127_v48  ;;  %v5401_v18 = vld [vmem:[#allocation8 + $0x278] sm:$0xff]  ;;  %v9131_v9 = vpack.c.bf16 %v5382_v23, %v5374_v36  ;;  %v9195_v48 = vpack.c.bf16 %v5384_v16, %v5376_v0  ;;  %v5400_v36 = vld [vmem:[#allocation8 + $0x270] sm:$0xff]  ;;  %v5407_v23 = vld [vmem:[#allocation8 + $0x2a8] sm:$0xff] }
 0xd26   : > { %5702 = vmatprep.mubr.f32.mxu1 %v13431_v60  ;;  %5863 = vmatprep.mubr.f32.mxu0 %v13431_v60  ;;  %v5256_v15 = vmul.f32 %v13376_v42, %v5213_v14  ;;  %v5255_v3 = vmul.f32 %v13373_v58, %v5212_v19  ;;  %v5398_v14 = vld [vmem:[#allocation8 + $0x260] sm:$0xff]  ;;  %v9133_v19 = vpack.c.bf16 %v5399_v4, %v5391_v41  ;;  %v5415_v16 = vld [vmem:[#allocation8 + $0x2e8] sm:$0xff] }
 0xd27   : > { %v10282_v11 = vpop.eup %10281  ;;  %5703 = vmatmul.mubr.f32.gmra.mrb[102].mxu1 %v13434_v43  ;;  %5864 = vmatmul.mubr.f32.gmra.mrb[166].mxu0 %v13434_v43  ;;  %v9197_v28 = vpack.c.bf16 %v5401_v18, %v5393_v34  ;;  %v5414_v4 = vld [vmem:[#allocation8 + $0x2e0] sm:$0xff]  ;;  %v9137_v34 = vpack.c.bf16 %v5415_v16, %v5407_v23  ;;  %v5424_v23 = vld [vmem:[#allocation8 + $0x330] sm:$0xff]  ;;  %v5439_v16 = vld [vmem:[#allocation8 + $0x3a8] sm:$0xff] }
 0xd28   : > { %v13445_v17 = vadd.f32 %v13384_v35, %v5256_v15  ;;  %v13448_v31 = vadd.f32 %v13381_v7, %v5255_v3  ;;  %v5215_v2 = vmul.f32 %v10282_v11, %v13260_v51  ;;  %v5214_v6 = vmul.f32 %v10282_v11, %v13257_v47  ;;  %9192 = vmatpush1.bf16.msra.mxu0 %v9191_v45  ;;  %v5409_v47 = vld [vmem:[#allocation8 + $0x2b8] sm:$0xff]  ;;  %v5406_v3 = vld [vmem:[#allocation8 + $0x2a0] sm:$0xff]  ;;  %v5408_v11 = vld [vmem:[#allocation8 + $0x2b0] sm:$0xff] }
 0xd29   : > { %9130 = vmatprep.subr.bf16.mxu1 %v9129_v61  ;;  %9194 = vmatprep.subr.bf16.mxu0 %v9193_v52  ;;  %v5417_v45 = vld [vmem:[#allocation8 + $0x2f8] sm:$0xff]  ;;  %v9135_v61 = vpack.c.bf16 %v5398_v14, %v5390_v29  ;;  %v9199_v15 = vpack.c.bf16 %v5400_v36, %v5392_v20  ;;  %v5431_v29 = vld [vmem:[#allocation8 + $0x368] sm:$0xff]  ;;  %v9139_v20 = vpack.c.bf16 %v5414_v4, %v5406_v3 }
 0xd2a   : > { %5708 = vmatprep.mubr.f32.mxu1 %v13445_v17  ;;  %5869 = vmatprep.mubr.f32.mxu0 %v13445_v17  ;;  %v5258_v0 = vmul.f32 %v13376_v42, %v5215_v2  ;;  %v5257_v51 = vmul.f32 %v13373_v58, %v5214_v6  ;;  %v9201_v18 = vpack.c.bf16 %v5417_v45, %v5409_v47  ;;  %v5416_v2 = vld [vmem:[#allocation8 + $0x2f0] sm:$0xff]  ;;  %v5423_v6 = vld [vmem:[#allocation8 + $0x328] sm:$0xff]  ;;  %v5425_v14 = vld [vmem:[#allocation8 + $0x338] sm:$0xff] }
 0xd2b   : > { %5709 = vmatmul.mubr.f32.gmra.mrb[104].mxu1 %v13448_v31  ;;  %5870 = vmatmul.mubr.f32.gmra.mrb[168].mxu0 %v13448_v31  ;;  %v5447_v47 = vld [vmem:[#allocation8 + $0x3e8] sm:$0xff]  ;;  %v5441_v45 = vld [vmem:[#allocation8 + $0x3b8] sm:$0xff] }
 0xd2c   : > { %v13459_v52 = vadd.f32 %v13384_v35, %v5258_v0  ;;  %v13462_v41 = vadd.f32 %v13381_v7, %v5257_v51  ;;  %9132 = vmatpush1.bf16.msra.mxu1 %v9131_v9  ;;  %9196 = vmatpush1.bf16.msra.mxu0 %v9195_v48  ;;  %v5433_v0 = vld [vmem:[#allocation8 + $0x378] sm:$0xff]  ;;  %v5422_v9 = vld [vmem:[#allocation8 + $0x320] sm:$0xff]  ;;  %v5432_v51 = vld [vmem:[#allocation8 + $0x370] sm:$0xff]  ;;  %v9145_v3 = vpack.c.bf16 %v5447_v47, %v5439_v16 }
 0xd2d   : > { %9134 = vmatprep.subr.bf16.mxu1 %v9133_v19  ;;  %9198 = vmatprep.subr.bf16.mxu0 %v9197_v28  ;;  %v9203_v28 = vpack.c.bf16 %v5416_v2, %v5408_v11  ;;  %v5430_v48 = vld [vmem:[#allocation8 + $0x360] sm:$0xff]  ;;  %v9141_v19 = vpack.c.bf16 %v5431_v29, %v5423_v6  ;;  %v9205_v36 = vpack.c.bf16 %v5433_v0, %v5425_v14  ;;  %v5455_v11 = vld [vmem:[#allocation8 + $0x428] sm:$0xff]  ;;  %v5457_v6 = vld [vmem:[#allocation8 + $0x438] sm:$0xff] }
 0xd2e   : > { %14644 = vst [vmem:[#allocation30_spill] sm:$0xff] %v13462_v41  ;;  %5714 = vmatprep.mubr.f32.mxu1 %v13459_v52  ;;  %5875 = vmatprep.mubr.f32.mxu0 %v13459_v52  ;;  %v9143_v24 = vpack.c.bf16 %v5430_v48, %v5422_v9  ;;  %v9207_v62 = vpack.c.bf16 %v5432_v51, %v5424_v23  ;;  %v5463_v2 = vld [vmem:[#allocation8 + $0x468] sm:$0xff]  ;;  %v5465_v29 = vld [vmem:[#allocation8 + $0x478] sm:$0xff] }
 0xd2f   : > { %5715 = vmatmul.mubr.f32.gmra.mrb[106].mxu1 %v13462_v41  ;;  %5876 = vmatmul.mubr.f32.gmra.mrb[170].mxu0 %v13462_v41  ;;  %v9209_v4 = vpack.c.bf16 %v5449_v30, %v5441_v45  ;;  %v9149_v9 = vpack.c.bf16 %v5463_v2, %v5455_v11  ;;  %v9213_v48 = vpack.c.bf16 %v5465_v29, %v5457_v6  ;;  %v5471_v23 = vld [vmem:[#allocation8 + $0x4a8] sm:$0xff]  ;;  %v5473_v51 = vld [vmem:[#allocation8 + $0x4b8] sm:$0xff] }
 0xd30   : > { %9136 = vmatpush1.bf16.msra.mxu1 %v9135_v61  ;;  %9200 = vmatpush1.bf16.msra.mxu0 %v9199_v15  ;;  %v5438_v61 = vld [vmem:[#allocation8 + $0x3a0] sm:$0xff]  ;;  %v5479_v30 = vld [vmem:[#allocation8 + $0x4e8] sm:$0xff]  ;;  %v5481_v16 = vld [vmem:[#allocation8 + $0x4f8] sm:$0xff] }
 0xd31   : > { %9138 = vmatprep.subr.bf16.mxu1 %v9137_v34  ;;  %9202 = vmatprep.subr.bf16.mxu0 %v9201_v18  ;;  %v5446_v15 = vld [vmem:[#allocation8 + $0x3e0] sm:$0xff]  ;;  %v5440_v34 = vld [vmem:[#allocation8 + $0x3b0] sm:$0xff]  ;;  %v5487_v11 = vld [vmem:[#allocation8 + $0x528] sm:$0xff] }
 0xd32   : > { %v5448_v18 = vld [vmem:[#allocation8 + $0x3f0] sm:$0xff]  ;;  %v9147_v14 = vpack.c.bf16 %v5446_v15, %v5438_v61  ;;  %v5478_v61 = vld [vmem:[#allocation8 + $0x4e0] sm:$0xff]  ;;  %v5495_v2 = vld [vmem:[#allocation8 + $0x568] sm:$0xff] }
 0xd33   : > { %v9211_v0 = vpack.c.bf16 %v5448_v18, %v5440_v34  ;;  %v5472_v34 = vld [vmem:[#allocation8 + $0x4b0] sm:$0xff]  ;;  %v5489_v6 = vld [vmem:[#allocation8 + $0x538] sm:$0xff] }
 0xd34   : > { %9140 = vmatpush1.bf16.msra.mxu1 %v9139_v20  ;;  %9204 = vmatpush1.bf16.msra.mxu0 %v9203_v28  ;;  %v5454_v20 = vld [vmem:[#allocation8 + $0x420] sm:$0xff]  ;;  %v5480_v18 = vld [vmem:[#allocation8 + $0x4f0] sm:$0xff]  ;;  %v5497_v29 = vld [vmem:[#allocation8 + $0x578] sm:$0xff] }
 0xd35   : > { %9142 = vmatprep.subr.bf16.mxu1 %v9141_v19  ;;  %9206 = vmatprep.subr.bf16.mxu0 %v9205_v36  ;;  %v5462_v28 = vld [vmem:[#allocation8 + $0x460] sm:$0xff]  ;;  %v5456_v19 = vld [vmem:[#allocation8 + $0x430] sm:$0xff] }
 0xd36   : > { %v5464_v36 = vld [vmem:[#allocation8 + $0x470] sm:$0xff]  ;;  %v9151_v45 = vpack.c.bf16 %v5462_v28, %v5454_v20  ;;  %v5486_v20 = vld [vmem:[#allocation8 + $0x520] sm:$0xff] }
 0xd37   : > { %v5494_v28 = vld [vmem:[#allocation8 + $0x560] sm:$0xff] }
 0xd38   : > { %9144 = vmatpush1.bf16.msra.mxu1 %v9143_v24  ;;  %9208 = vmatpush1.bf16.msra.mxu0 %v9207_v62  ;;  %v9215_v24 = vpack.c.bf16 %v5464_v36, %v5456_v19  ;;  %v5470_v62 = vld [vmem:[#allocation8 + $0x4a0] sm:$0xff]  ;;  %v5488_v36 = vld [vmem:[#allocation8 + $0x530] sm:$0xff] }
 0xd39   : > { %9146 = vmatprep.subr.bf16.mxu1 %v9145_v3  ;;  %9210 = vmatprep.subr.bf16.mxu0 %v9209_v4  ;;  %v9153_v3 = vpack.c.bf16 %v5479_v30, %v5471_v23  ;;  %v9217_v4 = vpack.c.bf16 %v5481_v16, %v5473_v51  ;;  %v5496_v23 = vld [vmem:[#allocation8 + $0x570] sm:$0xff]  ;;  %v5503_v30 = vld [vmem:[#allocation8 + $0x5a8] sm:$0xff]  ;;  %v5505_v16 = vld [vmem:[#allocation8 + $0x5b8] sm:$0xff] }
 0xd3a   : > { %v5511_v51 = vld [vmem:[#allocation8 + $0x5e8] sm:$0xff] }
 0xd3c   : > { %v5128_v47 = vpop.xlane.xlu1 %5127  ;;  %9148 = vmatpush1.bf16.msra.mxu1 %v9147_v14  ;;  %9212 = vmatpush1.bf16.msra.mxu0 %v9211_v0  ;;  %v9155_v14 = vpack.c.bf16 %v5478_v61, %v5470_v62  ;;  %v9219_v0 = vpack.c.bf16 %v5480_v18, %v5472_v34  ;;  %v5502_v62 = vld [vmem:[#allocation8 + $0x5a0] sm:$0xff]  ;;  %v5512_v34 = vld [vmem:[#allocation8 + $0x5f0] sm:$0xff]  ;;  %v5519_v18 = vld [vmem:[#allocation8 + $0x628] sm:$0xff] }
 0xd3d   : > { %v5162_v15 = vmul.f32 0.00390625, %v5128_v47  ;;  %9150 = vmatprep.subr.bf16.mxu1 %v9149_v9  ;;  %9214 = vmatprep.subr.bf16.mxu0 %v9213_v48  ;;  %v9157_v9 = vpack.c.bf16 %v5495_v2, %v5487_v11  ;;  %v9221_v48 = vpack.c.bf16 %v5497_v29, %v5489_v6  ;;  %v5513_v47 = vld [vmem:[#allocation8 + $0x5f8] sm:$0xff]  ;;  %v5510_v61 = vld [vmem:[#allocation8 + $0x5e0] sm:$0xff]  ;;  %v5527_v11 = vld [vmem:[#allocation8 + $0x668] sm:$0xff] }
 0xd3e   : > { %v5521_v2 = vld [vmem:[#allocation8 + $0x638] sm:$0xff] }
 0xd3f   : > { %v5178_v27 = vadd.f32 1e-05, %v5162_v15  ;;  %v5529_v6 = vld [vmem:[#allocation8 + $0x678] sm:$0xff] }
 0xd40   : > { %v5131_v53 = vpop.xlane.xlu0 %5130  ;;  %9152 = vmatpush1.bf16.msra.mxu1 %v9151_v45  ;;  %9216 = vmatpush1.bf16.msra.mxu0 %v9215_v24  ;;  %v9159_v45 = vpack.c.bf16 %v5494_v28, %v5486_v20  ;;  %v9223_v24 = vpack.c.bf16 %v5496_v23, %v5488_v36  ;;  %v9229_v28 = vpack.c.bf16 %v5529_v6, %v5521_v2  ;;  %v5520_v36 = vld [vmem:[#allocation8 + $0x630] sm:$0xff]  ;;  %v5542_v2 = vld [vmem:[#allocation8 + $0x6e0] sm:$0xff] }
 0xd41   : > { %10283 = vrsqrt.f32 %v5178_v27  ;;  %v5163_v19 = vmul.f32 0.00390625, %v5131_v53  ;;  %9154 = vmatprep.subr.bf16.mxu1 %v9153_v3  ;;  %9218 = vmatprep.subr.bf16.mxu0 %v9217_v4  ;;  %v9161_v27 = vpack.c.bf16 %v5511_v51, %v5503_v30  ;;  %v9225_v3 = vpack.c.bf16 %v5513_v47, %v5505_v16  ;;  %v5504_v4 = vld [vmem:[#allocation8 + $0x5b0] sm:$0xff]  ;;  %v5535_v30 = vld [vmem:[#allocation8 + $0x6a8] sm:$0xff] }
 0xd42   : > { %v5528_v23 = vld [vmem:[#allocation8 + $0x670] sm:$0xff]  ;;  %v5543_v51 = vld [vmem:[#allocation8 + $0x6e8] sm:$0xff] }
 0xd43   : > { %v5179_v15 = vadd.f32 1e-05, %v5163_v19  ;;  %v5544_v6 = vld [vmem:[#allocation8 + $0x6f0] sm:$0xff] }
 0xd44   : > { %v5134_v41 = vpop.xlane.xlu1 %5133  ;;  %9156 = vmatpush1.bf16.msra.mxu1 %v9155_v14  ;;  %9220 = vmatpush1.bf16.msra.mxu0 %v9219_v0  ;;  %v9163_v14 = vpack.c.bf16 %v5510_v61, %v5502_v62  ;;  %v9227_v0 = vpack.c.bf16 %v5512_v34, %v5504_v4  ;;  %v5537_v61 = vld [vmem:[#allocation8 + $0x6b8] sm:$0xff]  ;;  %v9169_v4 = vpack.c.bf16 %v5543_v51, %v5535_v30  ;;  %v5534_v34 = vld [vmem:[#allocation8 + $0x6a0] sm:$0xff] }
 0xd45   : > { %10285 = vrsqrt.f32 %v5179_v15  ;;  %v5164_v53 = vmul.f32 0.00390625, %v5134_v41  ;;  %9158 = vmatprep.subr.bf16.mxu1 %v9157_v9  ;;  %9222 = vmatprep.subr.bf16.mxu0 %v9221_v48  ;;  %v9165_v41 = vpack.c.bf16 %v5527_v11, %v5519_v18  ;;  %v5518_v9 = vld [vmem:[#allocation8 + $0x620] sm:$0xff]  ;;  %v5553_v51 = vld [vmem:[#allocation8 + $0x738] sm:$0xff] }
 0xd46   : > { %v5526_v48 = vld [vmem:[#allocation8 + $0x660] sm:$0xff] }
 0xd47   : > { %v5180_v29 = vadd.f32 1e-05, %v5164_v53  ;;  %v9167_v62 = vpack.c.bf16 %v5526_v48, %v5518_v9  ;;  %v5545_v53 = vld [vmem:[#allocation8 + $0x6f8] sm:$0xff]  ;;  %v5551_v9 = vld [vmem:[#allocation8 + $0x728] sm:$0xff] }
 0xd48   : > { %v5137_v19 = vpop.xlane.xlu0 %5136  ;;  %9160 = vmatpush1.bf16.msra.mxu1 %v9159_v45  ;;  %9224 = vmatpush1.bf16.msra.mxu0 %v9223_v24  ;;  %v5559_v48 = vld [vmem:[#allocation8 + $0x768] sm:$0xff] }
 0xd49   : > { %10287 = vrsqrt.f32 %v5180_v29  ;;  %v5165_v20 = vmul.f32 0.00390625, %v5137_v19  ;;  %9162 = vmatprep.subr.bf16.mxu1 %v9161_v27  ;;  %9226 = vmatprep.subr.bf16.mxu0 %v9225_v3  ;;  %v9231_v3 = vpack.c.bf16 %v5528_v23, %v5520_v36  ;;  %v9233_v19 = vpack.c.bf16 %v5545_v53, %v5537_v61 }
 0xd4a   : > { %v9171_v23 = vpack.c.bf16 %v5542_v2, %v5534_v34  ;;  %v5552_v34 = vld [vmem:[#allocation8 + $0x730] sm:$0xff] }
 0xd4b   : > { %v10284_v16 = vpop.eup %10283  ;;  %v5181_v47 = vadd.f32 1e-05, %v5165_v20 }
 0xd4c   : > { %v5140_v15 = vpop.xlane.xlu1 %5139  ;;  %v5217_v45 = vmul.f32 %v10284_v16, %v13270_v44  ;;  %v5216_v24 = vmul.f32 %v10284_v16, %v13267_v8  ;;  %9164 = vmatpush1.bf16.msra.mxu1 %v9163_v14  ;;  %9228 = vmatpush1.bf16.msra.mxu0 %v9227_v0  ;;  %v5536_v44 = vld [vmem:[#allocation8 + $0x6b0] sm:$0xff] }
 0xd4d   : > { %10289 = vrsqrt.f32 %v5181_v47  ;;  %v5166_v27 = vmul.f32 0.00390625, %v5140_v15  ;;  %9166 = vmatprep.subr.bf16.mxu1 %v9165_v41  ;;  %9230 = vmatprep.subr.bf16.mxu0 %v9229_v28  ;;  %v9235_v30 = vpack.c.bf16 %v5544_v6, %v5536_v44  ;;  %v5561_v47 = vld [vmem:[#allocation8 + $0x778] sm:$0xff]  ;;  %v5558_v15 = vld [vmem:[#allocation8 + $0x760] sm:$0xff]  ;;  %v5567_v6 = vld [vmem:[#allocation8 + $0x7a8] sm:$0xff] }
 0xd4e   : > { %v5260_v18 = vmul.f32 %v13376_v42, %v5217_v45  ;;  %v5259_v11 = vmul.f32 %v13373_v58, %v5216_v24  ;;  %v9237_v2 = vpack.c.bf16 %v5561_v47, %v5553_v51  ;;  %v5566_v51 = vld [vmem:[#allocation8 + $0x7a0] sm:$0xff] }
 0xd4f   : > { %v10286_v8 = vpop.eup %10285  ;;  %v5182_v29 = vadd.f32 1e-05, %v5166_v27 }
 0xd50   : > { %v5143_v14 = vpop.xlane.xlu0 %5142  ;;  %v13473_v0 = vadd.f32 %v13384_v35, %v5260_v18  ;;  %v13476_v20 = vadd.f32 %v13381_v7, %v5259_v11  ;;  %v5219_v41 = vmul.f32 %v10286_v8, %v13280_v37  ;;  %v5218_v28 = vmul.f32 %v10286_v8, %v13277_v49  ;;  %9168 = vmatpush1.bf16.msra.mxu1 %v9167_v62  ;;  %v5550_v49 = vld [vmem:[#allocation8 + $0x720] sm:$0xff]  ;;  %v5560_v18 = vld [vmem:[#allocation8 + $0x770] sm:$0xff] }
 0xd51   : > { %10291 = vrsqrt.f32 %v5182_v29  ;;  %v5167_v36 = vmul.f32 0.00390625, %v5143_v14  ;;  %9232 = vmatpush1.bf16.msra.mxu0 %v9231_v3  ;;  %9170 = vmatprep.subr.bf16.mxu1 %v9169_v4  ;;  %v9173_v62 = vpack.c.bf16 %v5559_v48, %v5551_v9  ;;  %v9175_v44 = vpack.c.bf16 %v5558_v15, %v5550_v49  ;;  %v5575_v29 = vld [vmem:[#allocation8 + $0x7e8] sm:$0xff]  ;;  %v5568_v15 = vld [vmem:[#allocation8 + $0x7b0] sm:$0xff] }
 0xd52   : > { %5720 = vmatprep.mubr.f32.mxu1 %v13473_v0  ;;  %5881 = vmatprep.mubr.f32.mxu0 %v13473_v0  ;;  %v5262_v16 = vmul.f32 %v13376_v42, %v5219_v41  ;;  %v5261_v37 = vmul.f32 %v13373_v58, %v5218_v28  ;;  %v9239_v28 = vpack.c.bf16 %v5560_v18, %v5552_v34 }
 0xd53   : > { %v10288_v45 = vpop.eup %10287  ;;  %v5183_v24 = vadd.f32 1e-05, %v5167_v36  ;;  %5721 = vmatmul.mubr.f32.gmra.mrb[108].mxu1 %v13476_v20  ;;  %5882 = vmatmul.mubr.f32.gmra.mrb[172].mxu0 %v13476_v20  ;;  %v9177_v47 = vpack.c.bf16 %v5575_v29, %v5567_v6 }
 0xd54   : > { %v5146_v61 = vpop.xlane.xlu1 %5145  ;;  %v13487_v53 = vadd.f32 %v13384_v35, %v5262_v16  ;;  %v13490_v27 = vadd.f32 %v13381_v7, %v5261_v37  ;;  %v5221_v3 = vmul.f32 %v10288_v45, %v13290_v63  ;;  %v5220_v4 = vmul.f32 %v10288_v45, %v13287_v38  ;;  %9234 = vmatprep.subr.bf16.mxu0 %v9233_v19  ;;  %v5569_v38 = vld [vmem:[#allocation8 + $0x7b8] sm:$0xff]  ;;  %v5574_v16 = vld [vmem:[#allocation8 + $0x7e0] sm:$0xff] }
 0xd55   : > { %10293 = vrsqrt.f32 %v5183_v24  ;;  %v5168_v11 = vmul.f32 0.00390625, %v5146_v61  ;;  %9172 = vmatpush1.bf16.msra.mxu1 %v9171_v23  ;;  %9236 = vmatpush1.bf16.msra.mxu0 %v9235_v30  ;;  %v5577_v19 = vld [vmem:[#allocation8 + $0x7f8] sm:$0xff]  ;;  %v5576_v24 = vld [vmem:[#allocation8 + $0x7f0] sm:$0xff] }
 0xd56   : > { %5726 = vmatprep.mubr.f32.mxu1 %v13487_v53  ;;  %5887 = vmatprep.mubr.f32.mxu0 %v13487_v53  ;;  %v5264_v8 = vmul.f32 %v13376_v42, %v5221_v3  ;;  %v5263_v63 = vmul.f32 %v13373_v58, %v5220_v4  ;;  %v9241_v49 = vpack.c.bf16 %v5577_v19, %v5569_v38 }
 0xd57   : > { %v10290_v14 = vpop.eup %10289  ;;  %v5184_v41 = vadd.f32 1e-05, %v5168_v11  ;;  %5727 = vmatmul.mubr.f32.gmra.mrb[110].mxu1 %v13490_v27  ;;  %5888 = vmatmul.mubr.f32.gmra.mrb[174].mxu0 %v13490_v27  ;;  %v9179_v4 = vpack.c.bf16 %v5574_v16, %v5566_v51 }
 0xd58   : > { %v5149_v9 = vpop.xlane.xlu0 %5148  ;;  %v13501_v48 = vadd.f32 %v13384_v35, %v5264_v8  ;;  %v13504_v36 = vadd.f32 %v13381_v7, %v5263_v63  ;;  %v5223_v23 = vmul.f32 %v10290_v14, %v13300_v12  ;;  %v5222_v30 = vmul.f32 %v10290_v14, %v13297_v59  ;;  %9174 = vmatprep.subr.bf16.mxu1 %v9173_v62  ;;  %v6393_v59 = vld [vmem:[#allocation10 + $0x8] sm:$0xff]  ;;  %v6395_v62 = vld [vmem:[#allocation10 + $0x18] sm:$0xff] }
 0xd59   : > { %10295 = vrsqrt.f32 %v5184_v41  ;;  %v5169_v37 = vmul.f32 0.00390625, %v5149_v9  ;;  %9238 = vmatprep.subr.bf16.mxu0 %v9237_v2  ;;  %9176 = vmatpush1.bf16.msra.mxu1 %v9175_v44  ;;  %v9243_v8 = vpack.c.bf16 %v5576_v24, %v5568_v15  ;;  %v9245_v63 = vpack.c.bf16 %v6395_v62, %v6393_v59 }
 0xd5a   : > { %5732 = vmatprep.mubr.f32.mxu1 %v13501_v48  ;;  %5893 = vmatprep.mubr.f32.mxu0 %v13501_v48  ;;  %v5266_v45 = vmul.f32 %v13376_v42, %v5223_v23  ;;  %v5265_v12 = vmul.f32 %v13373_v58, %v5222_v30 }
 0xd5b   : > { %v10292_v61 = vpop.eup %10291  ;;  %v5185_v3 = vadd.f32 1e-05, %v5169_v37  ;;  %5733 = vmatmul.mubr.f32.gmra.mrb[112].mxu1 %v13504_v36  ;;  %5894 = vmatmul.mubr.f32.gmra.mrb[176].mxu0 %v13504_v36 }
 0xd5c   : > { %v5152_v34 = vpop.xlane.xlu1 %5151  ;;  %v13515_v18 = vadd.f32 %v13384_v35, %v5266_v45  ;;  %v13518_v11 = vadd.f32 %v13381_v7, %v5265_v12  ;;  %v5225_v2 = vmul.f32 %v10292_v61, %v13310_v54  ;;  %v5224_v44 = vmul.f32 %v10292_v61, %v13307_v40  ;;  %9240 = vmatpush1.bf16.msra.mxu0 %v9239_v28 }
 0xd5d   : > { %10297 = vrsqrt.f32 %v5185_v3  ;;  %v5170_v6 = vmul.f32 0.00390625, %v5152_v34  ;;  %9178 = vmatprep.subr.bf16.mxu1 %v9177_v47  ;;  %9242 = vmatprep.subr.bf16.mxu0 %v9241_v49 }
 0xd5e   : > { %5738 = vmatprep.mubr.f32.mxu1 %v13515_v18  ;;  %5899 = vmatprep.mubr.f32.mxu0 %v13515_v18  ;;  %v5268_v29 = vmul.f32 %v13376_v42, %v5225_v2  ;;  %v5267_v38 = vmul.f32 %v13373_v58, %v5224_v44 }
 0xd5f   : > { %v10294_v19 = vpop.eup %10293  ;;  %v5186_v14 = vadd.f32 1e-05, %v5170_v6  ;;  %5739 = vmatmul.mubr.f32.gmra.mrb[114].mxu1 %v13518_v11  ;;  %5900 = vmatmul.mubr.f32.gmra.mrb[178].mxu0 %v13518_v11 }
 0xd60   : > { %v5155_v40 = vpop.xlane.xlu0 %5154  ;;  %v13529_v54 = vadd.f32 %v13384_v35, %v5268_v29  ;;  %v13532_v41 = vadd.f32 %v13381_v7, %v5267_v38  ;;  %v5227_v28 = vmul.f32 %v10294_v19, %v13320_v1  ;;  %v5226_v9 = vmul.f32 %v10294_v19, %v13317_v26  ;;  %9180 = vmatpush1.bf16.msra.mxu1 %v9179_v4 }
 0xd61   : > { %10299 = vrsqrt.f32 %v5186_v14  ;;  %v5171_v23 = vmul.f32 0.00390625, %v5155_v40  ;;  %9244 = vmatpush1.bf16.msra.mxu0 %v9243_v8  ;;  %9246 = vmatprep.subr.bf16.mxu1 %v9245_v63 }
 0xd62   : > { %5744 = vmatprep.mubr.f32.mxu1 %v13529_v54  ;;  %5905 = vmatprep.mubr.f32.mxu0 %v13529_v54  ;;  %v5270_v30 = vmul.f32 %v13376_v42, %v5227_v28  ;;  %v5269_v51 = vmul.f32 %v13373_v58, %v5226_v9  ;;  %v6398_v28 = vld [vmem:[#allocation10 + $0x30] sm:$0xff]  ;;  %v6401_v9 = vld [vmem:[#allocation10 + $0x48] sm:$0xff] }
 0xd63   : > { %v10296_v16 = vpop.eup %10295  ;;  %v5187_v37 = vadd.f32 1e-05, %v5171_v23  ;;  %5745 = vmatmul.mubr.f32.gmra.mrb[116].mxu1 %v13532_v41  ;;  %5906 = vmatmul.mubr.f32.gmra.mrb[180].mxu0 %v13532_v41  ;;  %v6403_v23 = vld [vmem:[#allocation10 + $0x58] sm:$0xff] }
 0xd64   : > { %v13543_v26 = vadd.f32 %v13384_v35, %v5270_v30  ;;  %v13546_v1 = vadd.f32 %v13381_v7, %v5269_v51  ;;  %v5229_v47 = vmul.f32 %v10296_v16, %v13330_v10  ;;  %v5228_v49 = vmul.f32 %v10296_v16, %v13327_v46  ;;  %v6400_v16 = vld [vmem:[#allocation10 + $0x40] sm:$0xff] }
 0xd65   : > { %10301 = vrsqrt.f32 %v5187_v37  ;;  %v9253_v51 = vpack.c.bf16 %v6403_v23, %v6401_v9  ;;  %v6405_v37 = vld [vmem:[#allocation10 + $0x68] sm:$0xff]  ;;  %v6428_v9 = vld [vmem:[#allocation10 + $0x120] sm:$0xff]  ;;  %v6430_v23 = vld [vmem:[#allocation10 + $0x130] sm:$0xff] }
 0xd66   : > { %5750 = vmatprep.mubr.f32.mxu1 %v13543_v26  ;;  %5911 = vmatprep.mubr.f32.mxu0 %v13543_v26  ;;  %v5272_v15 = vmul.f32 %v13376_v42, %v5229_v47  ;;  %v5271_v45 = vmul.f32 %v13373_v58, %v5228_v49  ;;  %v6407_v47 = vld [vmem:[#allocation10 + $0x78] sm:$0xff]  ;;  %v6404_v49 = vld [vmem:[#allocation10 + $0x60] sm:$0xff] }
 0xd67   : > { %v10298_v12 = vpop.eup %10297  ;;  %5751 = vmatmul.mubr.f32.gmra.mrb[118].mxu1 %v13546_v1  ;;  %5912 = vmatmul.mubr.f32.gmra.mrb[182].mxu0 %v13546_v1 }
 0xd68   : > { %v13557_v24 = vadd.f32 %v13384_v35, %v5272_v15  ;;  %v13560_v10 = vadd.f32 %v13381_v7, %v5271_v45  ;;  %v5231_v46 = vmul.f32 %v10298_v12, %v13340_v25  ;;  %v5230_v59 = vmul.f32 %v10298_v12, %v13337_v55  ;;  %v6406_v15 = vld [vmem:[#allocation10 + $0x70] sm:$0xff]  ;;  %v6409_v45 = vld [vmem:[#allocation10 + $0x88] sm:$0xff]  ;;  %v6411_v12 = vld [vmem:[#allocation10 + $0x98] sm:$0xff] }
 0xd6a   : > { %5756 = vmatprep.mubr.f32.mxu1 %v13557_v24  ;;  %5917 = vmatprep.mubr.f32.mxu0 %v13557_v24  ;;  %v5274_v62 = vmul.f32 %v13376_v42, %v5231_v46  ;;  %v5273_v61 = vmul.f32 %v13373_v58, %v5230_v59  ;;  %v6408_v46 = vld [vmem:[#allocation10 + $0x80] sm:$0xff]  ;;  %v6410_v59 = vld [vmem:[#allocation10 + $0x90] sm:$0xff] }
 0xd6b   : > { %v10300_v3 = vpop.eup %10299  ;;  %5757 = vmatmul.mubr.f32.gmra.mrb[120].mxu1 %v13560_v10  ;;  %5918 = vmatmul.mubr.f32.gmra.mrb[184].mxu0 %v13560_v10 }
 0xd6c   : > { %v13571_v4 = vadd.f32 %v13384_v35, %v5274_v62  ;;  %v13574_v25 = vadd.f32 %v13381_v7, %v5273_v61  ;;  %v5233_v55 = vmul.f32 %v10300_v3, %v13350_v21  ;;  %v5232_v34 = vmul.f32 %v10300_v3, %v13347_v5  ;;  %v6413_v62 = vld [vmem:[#allocation10 + $0xa8] sm:$0xff]  ;;  %v6415_v61 = vld [vmem:[#allocation10 + $0xb8] sm:$0xff]  ;;  %v6412_v3 = vld [vmem:[#allocation10 + $0xa0] sm:$0xff] }
 0xd6e   : > { %5762 = vmatprep.mubr.f32.mxu1 %v13571_v4  ;;  %5923 = vmatprep.mubr.f32.mxu0 %v13571_v4  ;;  %v5276_v2 = vmul.f32 %v13376_v42, %v5233_v55  ;;  %v5275_v44 = vmul.f32 %v13373_v58, %v5232_v34  ;;  %v6414_v55 = vld [vmem:[#allocation10 + $0xb0] sm:$0xff]  ;;  %v6417_v34 = vld [vmem:[#allocation10 + $0xc8] sm:$0xff] }
 0xd6f   : > { %v10302_v6 = vpop.eup %10301  ;;  %5763 = vmatmul.mubr.f32.gmra.mrb[122].mxu1 %v13574_v25  ;;  %5924 = vmatmul.mubr.f32.gmra.mrb[186].mxu0 %v13574_v25 }
 0xd70   : > { %v13585_v8 = vadd.f32 %v13384_v35, %v5276_v2  ;;  %v13588_v21 = vadd.f32 %v13381_v7, %v5275_v44  ;;  %v5235_v5 = vmul.f32 %v10302_v6, %v13360_v57  ;;  %v5234_v63 = vmul.f32 %v10302_v6, %v13357_v32  ;;  %v6392_v32 = vld [vmem:[#allocation10] sm:$0xff]  ;;  %v6394_v57 = vld [vmem:[#allocation10 + $0x10] sm:$0xff]  ;;  %v6419_v2 = vld [vmem:[#allocation10 + $0xd8] sm:$0xff] }
 0xd71   : > { %v6416_v44 = vld [vmem:[#allocation10 + $0xc0] sm:$0xff]  ;;  %v6418_v6 = vld [vmem:[#allocation10 + $0xd0] sm:$0xff] }
 0xd72   : > { %5768 = vmatprep.mubr.f32.mxu1 %v13585_v8  ;;  %5929 = vmatprep.mubr.f32.mxu0 %v13585_v8  ;;  %v5278_v29 = vmul.f32 %v13376_v42, %v5235_v5  ;;  %v5277_v38 = vmul.f32 %v13373_v58, %v5234_v63  ;;  %v6397_v58 = vld [vmem:[#allocation10 + $0x28] sm:$0xff]  ;;  %v6399_v42 = vld [vmem:[#allocation10 + $0x38] sm:$0xff]  ;;  %v14645_v5 = vld [vmem:[#allocation30_spill] sm:$0xff] }
 0xd73   : > { %5769 = vmatmul.mubr.f32.gmra.mrb[124].mxu1 %v13588_v21  ;;  %5930 = vmatmul.mubr.f32.gmra.mrb[188].mxu0 %v13588_v21  ;;  %v9249_v40 = vpack.c.bf16 %v6399_v42, %v6397_v58  ;;  %v6421_v63 = vld [vmem:[#allocation10 + $0xe8] sm:$0xff]  ;;  %v6427_v58 = vld [vmem:[#allocation10 + $0x118] sm:$0xff] }
 0xd74   : > { %v13599_v19 = vadd.f32 %v13384_v35, %v5278_v29  ;;  %v13602_v14 = vadd.f32 %v13381_v7, %v5277_v38  ;;  %v9247_v35 = vpack.c.bf16 %v6394_v57, %v6392_v32  ;;  %v6396_v7 = vld [vmem:[#allocation10 + $0x20] sm:$0xff]  ;;  %v6423_v29 = vld [vmem:[#allocation10 + $0xf8] sm:$0xff]  ;;  %v6422_v32 = vld [vmem:[#allocation10 + $0xf0] sm:$0xff] }
 0xd75   : > { %v9251_v30 = vpack.c.bf16 %v6398_v28, %v6396_v7  ;;  %v6420_v38 = vld [vmem:[#allocation10 + $0xe0] sm:$0xff]  ;;  %v6425_v57 = vld [vmem:[#allocation10 + $0x108] sm:$0xff]  ;;  %v6431_v28 = vld [vmem:[#allocation10 + $0x138] sm:$0xff] }
 0xd76   : > { %5774 = vmatprep.mubr.f32.mxu1 %v13599_v19  ;;  %5935 = vmatprep.mubr.f32.mxu0 %v13599_v19  ;;  %v9275_v42 = vpack.c.bf16 %v6422_v32, %v6420_v38  ;;  %v6429_v7 = vld [vmem:[#allocation10 + $0x128] sm:$0xff]  ;;  %v6456_v38 = vld [vmem:[#allocation10 + $0x200] sm:$0xff]  ;;  %v6458_v32 = vld [vmem:[#allocation10 + $0x210] sm:$0xff] }
 0xd77   : > { %5775 = vmatmul.mubr.f32.gmra.mrb[126].mxu1 %v13602_v14  ;;  %5936 = vmatmul.mubr.f32.gmra.mrb[190].mxu0 %v13602_v14 }
 0xd78   : > { %6006 = vmatprep.mubr.f32.mxu1 %v13389_v50  ;;  %6167 = vmatprep.mubr.f32.mxu0 %v13389_v50  ;;  %v6402_v50 = vld [vmem:[#allocation10 + $0x50] sm:$0xff] }
 0xd7b   : > { %6007 = vmatmul.mubr.f32.vlgmr.msra.gmra.mrb[128].mxu1 %v13392_v33  ;;  %6168 = vmatmul.mubr.f32.vlgmr.msra.gmra.mrb[192].mxu0 %v13392_v33  ;;  %v9255_v33 = vpack.c.bf16 %v6402_v50, %v6400_v16  ;;  %v6432_v16 = vld [vmem:[#allocation10 + $0x140] sm:$0xff]  ;;  %v6434_v50 = vld [vmem:[#allocation10 + $0x150] sm:$0xff] }
 0xd7c   : > { %6012 = vmatprep.mubr.f32.mxu1 %v13403_v56  ;;  %6173 = vmatprep.mubr.f32.mxu0 %v13403_v56  ;;  %v9257_v56 = vpack.c.bf16 %v6407_v47, %v6405_v37  ;;  %v6437_v37 = vld [vmem:[#allocation10 + $0x168] sm:$0xff]  ;;  %v6439_v47 = vld [vmem:[#allocation10 + $0x178] sm:$0xff] }
 0xd7d   : > { %9248 = vmatpush1.bf16.msra.mxu1 %v9247_v35  ;;  %v6424_v35 = vld [vmem:[#allocation10 + $0x100] sm:$0xff] }
 0xd7e   : > { %9250 = vmatprep.subr.bf16.mxu1 %v9249_v40  ;;  %v6426_v40 = vld [vmem:[#allocation10 + $0x110] sm:$0xff] }
 0xd7f   : > { %6013 = vmatmul.mubr.f32.gmra.mrb[130].mxu1 %v13406_v22  ;;  %6174 = vmatmul.mubr.f32.gmra.mrb[194].mxu0 %v13406_v22  ;;  %v9259_v22 = vpack.c.bf16 %v6406_v15, %v6404_v49  ;;  %v6441_v49 = vld [vmem:[#allocation10 + $0x188] sm:$0xff]  ;;  %v6443_v15 = vld [vmem:[#allocation10 + $0x198] sm:$0xff] }
 0xd80   : > { %6018 = vmatprep.mubr.f32.mxu1 %v13417_v13  ;;  %6179 = vmatprep.mubr.f32.mxu0 %v13417_v13  ;;  %v9261_v13 = vpack.c.bf16 %v6411_v12, %v6409_v45  ;;  %v6440_v45 = vld [vmem:[#allocation10 + $0x180] sm:$0xff]  ;;  %v6442_v12 = vld [vmem:[#allocation10 + $0x190] sm:$0xff] }
 0xd81   : > { %9252 = vmatpush1.bf16.msra.mxu1 %v9251_v30  ;;  %v6433_v30 = vld [vmem:[#allocation10 + $0x148] sm:$0xff] }
 0xd82   : > { %9254 = vmatprep.subr.bf16.mxu1 %v9253_v51  ;;  %v6435_v51 = vld [vmem:[#allocation10 + $0x158] sm:$0xff] }
 0xd83   : > { %6019 = vmatmul.mubr.f32.gmra.mrb[132].mxu1 %v13420_v39  ;;  %6180 = vmatmul.mubr.f32.gmra.mrb[196].mxu0 %v13420_v39  ;;  %v9263_v39 = vpack.c.bf16 %v6410_v59, %v6408_v46  ;;  %v6444_v46 = vld [vmem:[#allocation10 + $0x1a0] sm:$0xff]  ;;  %v6446_v59 = vld [vmem:[#allocation10 + $0x1b0] sm:$0xff] }
 0xd84   : > { %6024 = vmatprep.mubr.f32.mxu1 %v13431_v60  ;;  %6185 = vmatprep.mubr.f32.mxu0 %v13431_v60  ;;  %v9265_v60 = vpack.c.bf16 %v6415_v61, %v6413_v62  ;;  %v6449_v62 = vld [vmem:[#allocation10 + $0x1c8] sm:$0xff]  ;;  %v6451_v61 = vld [vmem:[#allocation10 + $0x1d8] sm:$0xff] }
 0xd85   : > { %9256 = vmatpush1.bf16.msra.mxu1 %v9255_v33  ;;  %v6436_v33 = vld [vmem:[#allocation10 + $0x160] sm:$0xff] }
 0xd86   : > { %9258 = vmatprep.subr.bf16.mxu1 %v9257_v56  ;;  %v6438_v56 = vld [vmem:[#allocation10 + $0x170] sm:$0xff] }
 0xd87   : > { %6025 = vmatmul.mubr.f32.gmra.mrb[134].mxu1 %v13434_v43  ;;  %6186 = vmatmul.mubr.f32.gmra.mrb[198].mxu0 %v13434_v43  ;;  %v9267_v43 = vpack.c.bf16 %v6414_v55, %v6412_v3  ;;  %v6453_v3 = vld [vmem:[#allocation10 + $0x1e8] sm:$0xff]  ;;  %v6455_v55 = vld [vmem:[#allocation10 + $0x1f8] sm:$0xff] }
 0xd88   : > { %6030 = vmatprep.mubr.f32.mxu1 %v13445_v17  ;;  %6191 = vmatprep.mubr.f32.mxu0 %v13445_v17  ;;  %v9269_v17 = vpack.c.bf16 %v6419_v2, %v6417_v34  ;;  %v6452_v34 = vld [vmem:[#allocation10 + $0x1e0] sm:$0xff]  ;;  %v6454_v2 = vld [vmem:[#allocation10 + $0x1f0] sm:$0xff] }
 0xd89   : > { %9260 = vmatpush1.bf16.msra.mxu1 %v9259_v22  ;;  %v6445_v22 = vld [vmem:[#allocation10 + $0x1a8] sm:$0xff] }
 0xd8a   : > { %9262 = vmatprep.subr.bf16.mxu1 %v9261_v13  ;;  %v6447_v13 = vld [vmem:[#allocation10 + $0x1b8] sm:$0xff] }
 0xd8b   : > { %6031 = vmatmul.mubr.f32.gmra.mrb[136].mxu1 %v13448_v31  ;;  %6192 = vmatmul.mubr.f32.gmra.mrb[200].mxu0 %v13448_v31  ;;  %v9271_v31 = vpack.c.bf16 %v6418_v6, %v6416_v44  ;;  %v14647_v44 = vld [vmem:[#allocation20_spill] sm:$0xff] }
 0xd8c   : > { %6036 = vmatprep.mubr.f32.mxu1 %v13459_v52  ;;  %6197 = vmatprep.mubr.f32.mxu0 %v13459_v52  ;;  %v9273_v52 = vpack.c.bf16 %v6423_v29, %v6421_v63 }
 0xd8d   : > { %9264 = vmatpush1.bf16.msra.mxu1 %v9263_v39  ;;  %v6448_v39 = vld [vmem:[#allocation10 + $0x1c0] sm:$0xff] }
 0xd8e   : > { %9266 = vmatprep.subr.bf16.mxu1 %v9265_v60  ;;  %v6450_v60 = vld [vmem:[#allocation10 + $0x1d0] sm:$0xff] }
 0xd8f   : > { %6037 = vmatmul.mubr.f32.gmra.mrb[138].mxu1 %v14645_v5  ;;  %6198 = vmatmul.mubr.f32.gmra.mrb[202].mxu0 %v14645_v5 }
 0xd90   : > { %6042 = vmatprep.mubr.f32.mxu1 %v13473_v0  ;;  %6203 = vmatprep.mubr.f32.mxu0 %v13473_v0  ;;  %v9277_v0 = vpack.c.bf16 %v6427_v58, %v6425_v57  ;;  %v6461_v58 = vld [vmem:[#allocation10 + $0x228] sm:$0xff] }
 0xd91   : > { %9268 = vmatpush1.bf16.msra.mxu1 %v9267_v43  ;;  %v6457_v43 = vld [vmem:[#allocation10 + $0x208] sm:$0xff] }
 0xd92   : > { %9270 = vmatprep.subr.bf16.mxu1 %v9269_v17  ;;  %v6459_v17 = vld [vmem:[#allocation10 + $0x218] sm:$0xff] }
 0xd93   : > { %6043 = vmatmul.mubr.f32.gmra.mrb[140].mxu1 %v13476_v20  ;;  %6204 = vmatmul.mubr.f32.gmra.mrb[204].mxu0 %v13476_v20  ;;  %v9279_v20 = vpack.c.bf16 %v6426_v40, %v6424_v35 }
 0xd94   : > { %6048 = vmatprep.mubr.f32.mxu1 %v13487_v53  ;;  %6209 = vmatprep.mubr.f32.mxu0 %v13487_v53  ;;  %v9281_v53 = vpack.c.bf16 %v6431_v28, %v6429_v7  ;;  %v9311_v7 = vpack.c.bf16 %v6458_v32, %v6456_v38  ;;  %v6474_v38 = vld [vmem:[#allocation10 + $0x290] sm:$0xff] }
 0xd95   : > { %9272 = vmatpush1.bf16.msra.mxu1 %v9271_v31 }
 0xd96   : > { %9274 = vmatprep.subr.bf16.mxu1 %v9273_v52 }
 0xd97   : > { %6049 = vmatmul.mubr.f32.gmra.mrb[142].mxu1 %v13490_v27  ;;  %6210 = vmatmul.mubr.f32.gmra.mrb[206].mxu0 %v13490_v27  ;;  %v9283_v27 = vpack.c.bf16 %v6430_v23, %v6428_v9 }
 0xd98   : > { %6054 = vmatprep.mubr.f32.mxu1 %v13501_v48  ;;  %6215 = vmatprep.mubr.f32.mxu0 %v13501_v48  ;;  %v9285_v48 = vpack.c.bf16 %v6435_v51, %v6433_v30  ;;  %v6460_v30 = vld [vmem:[#allocation10 + $0x220] sm:$0xff]  ;;  %v6462_v51 = vld [vmem:[#allocation10 + $0x230] sm:$0xff] }
 0xd99   : > { %9276 = vmatpush1.bf16.msra.mxu1 %v9275_v42  ;;  %v6463_v42 = vld [vmem:[#allocation10 + $0x238] sm:$0xff] }
 0xd9a   : > { %9278 = vmatprep.subr.bf16.mxu1 %v9277_v0  ;;  %v9313_v23 = vpack.c.bf16 %v6463_v42, %v6461_v58  ;;  %v6479_v58 = vld [vmem:[#allocation10 + $0x2b8] sm:$0xff] }
 0xd9b   : > { %6055 = vmatmul.mubr.f32.gmra.mrb[144].mxu1 %v13504_v36  ;;  %6216 = vmatmul.mubr.f32.gmra.mrb[208].mxu0 %v13504_v36  ;;  %v9287_v36 = vpack.c.bf16 %v6434_v50, %v6432_v16  ;;  %v6467_v16 = vld [vmem:[#allocation10 + $0x258] sm:$0xff] }
 0xd9c   : > { %6060 = vmatprep.mubr.f32.mxu1 %v13515_v18  ;;  %6221 = vmatprep.mubr.f32.mxu0 %v13515_v18  ;;  %v9289_v18 = vpack.c.bf16 %v6439_v47, %v6437_v37 }
 0xd9d   : > { %9280 = vmatpush1.bf16.msra.mxu1 %v9279_v20 }
 0xd9e   : > { %9282 = vmatprep.subr.bf16.mxu1 %v9281_v53 }
 0xd9f   : > { %6061 = vmatmul.mubr.f32.gmra.mrb[146].mxu1 %v13518_v11  ;;  %6222 = vmatmul.mubr.f32.gmra.mrb[210].mxu0 %v13518_v11  ;;  %v9291_v11 = vpack.c.bf16 %v6438_v56, %v6436_v33 }
 0xda0   : > { %6066 = vmatprep.mubr.f32.mxu1 %v13529_v54  ;;  %6227 = vmatprep.mubr.f32.mxu0 %v13529_v54  ;;  %v9293_v54 = vpack.c.bf16 %v6443_v15, %v6441_v49 }
 0xda1   : > { %9284 = vmatpush1.bf16.msra.mxu1 %v9283_v27 }
 0xda2   : > { %9286 = vmatprep.subr.bf16.mxu1 %v9285_v48  ;;  %v6465_v48 = vld [vmem:[#allocation10 + $0x248] sm:$0xff] }
 0xda3   : > { %6067 = vmatmul.mubr.f32.gmra.mrb[148].mxu1 %v13532_v41  ;;  %6228 = vmatmul.mubr.f32.gmra.mrb[212].mxu0 %v13532_v41  ;;  %v9295_v41 = vpack.c.bf16 %v6442_v12, %v6440_v45  ;;  %v9317_v15 = vpack.c.bf16 %v6467_v16, %v6465_v48  ;;  %v6469_v12 = vld [vmem:[#allocation10 + $0x268] sm:$0xff] }
 0xda4   : > { %6072 = vmatprep.mubr.f32.mxu1 %v13543_v26  ;;  %6233 = vmatprep.mubr.f32.mxu0 %v13543_v26  ;;  %v9297_v26 = vpack.c.bf16 %v6447_v13, %v6445_v22  ;;  %v6471_v22 = vld [vmem:[#allocation10 + $0x278] sm:$0xff]  ;;  %v6481_v16 = vld [vmem:[#allocation10 + $0x2c8] sm:$0xff] }
 0xda5   : > { %9288 = vmatpush1.bf16.msra.mxu1 %v9287_v36  ;;  %v9315_v36 = vpack.c.bf16 %v6462_v51, %v6460_v30  ;;  %v6476_v51 = vld [vmem:[#allocation10 + $0x2a0] sm:$0xff] }
 0xda6   : > { %9290 = vmatprep.subr.bf16.mxu1 %v9289_v18 }
 0xda7   : > { %6073 = vmatmul.mubr.f32.gmra.mrb[150].mxu1 %v13546_v1  ;;  %6234 = vmatmul.mubr.f32.gmra.mrb[214].mxu0 %v13546_v1  ;;  %v9299_v1 = vpack.c.bf16 %v6446_v59, %v6444_v46 }
 0xda8   : > { %6078 = vmatprep.mubr.f32.mxu1 %v13557_v24  ;;  %6239 = vmatprep.mubr.f32.mxu0 %v13557_v24  ;;  %v9301_v24 = vpack.c.bf16 %v6451_v61, %v6449_v62 }
 0xda9   : > { %9292 = vmatpush1.bf16.msra.mxu1 %v9291_v11  ;;  %v6464_v11 = vld [vmem:[#allocation10 + $0x240] sm:$0xff] }
 0xdaa   : > { %9294 = vmatprep.subr.bf16.mxu1 %v9293_v54  ;;  %v6466_v54 = vld [vmem:[#allocation10 + $0x250] sm:$0xff] }
 0xdab   : > { %6079 = vmatmul.mubr.f32.gmra.mrb[152].mxu1 %v13560_v10  ;;  %6240 = vmatmul.mubr.f32.gmra.mrb[216].mxu0 %v13560_v10  ;;  %v9303_v10 = vpack.c.bf16 %v6450_v60, %v6448_v39  ;;  %v9319_v46 = vpack.c.bf16 %v6466_v54, %v6464_v11  ;;  %v6468_v39 = vld [vmem:[#allocation10 + $0x260] sm:$0xff]  ;;  %v6470_v60 = vld [vmem:[#allocation10 + $0x270] sm:$0xff]  ;;  %v6485_v11 = vld [vmem:[#allocation10 + $0x2e8] sm:$0xff] }
 0xdac   : > { %6084 = vmatprep.mubr.f32.mxu1 %v13571_v4  ;;  %6245 = vmatprep.mubr.f32.mxu0 %v13571_v4  ;;  %v9305_v4 = vpack.c.bf16 %v6455_v55, %v6453_v3  ;;  %v6473_v55 = vld [vmem:[#allocation10 + $0x288] sm:$0xff]  ;;  %v6487_v54 = vld [vmem:[#allocation10 + $0x2f8] sm:$0xff] }
 0xdad   : > { %9296 = vmatpush1.bf16.msra.mxu1 %v9295_v41 }
 0xdae   : > { %9298 = vmatprep.subr.bf16.mxu1 %v9297_v26 }
 0xdaf   : > { %6085 = vmatmul.mubr.f32.gmra.mrb[154].mxu1 %v13574_v25  ;;  %6246 = vmatmul.mubr.f32.gmra.mrb[218].mxu0 %v13574_v25  ;;  %v9307_v25 = vpack.c.bf16 %v6454_v2, %v6452_v34 }
 0xdb0   : > { %6090 = vmatprep.mubr.f32.mxu1 %v13585_v8  ;;  %6251 = vmatprep.mubr.f32.mxu0 %v13585_v8  ;;  %v9309_v8 = vpack.c.bf16 %v6459_v17, %v6457_v43  ;;  %v9323_v43 = vpack.c.bf16 %v6470_v60, %v6468_v39  ;;  %v6493_v39 = vld [vmem:[#allocation10 + $0x328] sm:$0xff]  ;;  %v6495_v60 = vld [vmem:[#allocation10 + $0x338] sm:$0xff] }
 0xdb1   : > { %9300 = vmatpush1.bf16.msra.mxu1 %v9299_v1 }
 0xdb2   : > { %9302 = vmatprep.subr.bf16.mxu1 %v9301_v24  ;;  %v9321_v24 = vpack.c.bf16 %v6471_v22, %v6469_v12  ;;  %v9337_v12 = vpack.c.bf16 %v6487_v54, %v6485_v11  ;;  %v6484_v22 = vld [vmem:[#allocation10 + $0x2e0] sm:$0xff] }
 0xdb3   : > { %6091 = vmatmul.mubr.f32.gmra.mrb[156].mxu1 %v13588_v21  ;;  %6252 = vmatmul.mubr.f32.gmra.mrb[220].mxu0 %v13588_v21  ;;  %v13675_v21 = vld [vmem:[%s14646_s27] sm:$0xff] }
 0xdb4   : > { %6096 = vmatprep.mubr.f32.mxu1 %v13599_v19  ;;  %6257 = vmatprep.mubr.f32.mxu0 %v13599_v19  ;;  %v13679_v6 = vrot.slane %v13675_v21, %v14647_v44  ;;  %v14648_v19 = vld [vmem:[#allocation19_spill] sm:$0xff] }
 0xdb5   : > { %9304 = vmatpush1.bf16.msra.mxu1 %v9303_v10  ;;  %v13683_v5 = vrot.slane %v13675_v21, %v14648_v19  ;;  %v6475_v10 = vld [vmem:[#allocation10 + $0x298] sm:$0xff]  ;;  %v6541_v44 = vld [vmem:[#allocation10 + $0x4a8] sm:$0xff] }
 0xdb6   : > { %9306 = vmatprep.subr.bf16.mxu1 %v9305_v4 }
 0xdb7   : > { %6097 = vmatmul.mubr.f32.gmra.mrb[158].mxu1 %v13602_v14  ;;  %6258 = vmatmul.mubr.f32.gmra.mrb[222].mxu0 %v13602_v14 }
 0xdb9   : > { %9308 = vmatpush1.bf16.msra.mxu1 %v9307_v25 }
 0xdba   : > { %9310 = vmatprep.subr.bf16.mxu1 %v9309_v8 }
 0xdee   : > { %v5686_v63 = vpop.f32.mrb[96].mxu1  ;;  %v13685_v29 = vpop.f32.mrb[160].mxu0 }
 0xdef   : > { %v5687_v14 = vadd.f32 %v5686_v63, %v13679_v6  ;;  %v5688_v31 = vpop.f32.mrb[97].mxu1  ;;  %v13688_v52 = vpop.f32.mrb[161].mxu0 }
 0xdf0   : > { %v5689_v57 = vadd.f32 %v5688_v31, %v13683_v5  ;;  %v6472_v31 = vld [vmem:[#allocation10 + $0x280] sm:$0xff] }
 0xdf1   : > { %v6264_v28 = vmax.f32 %v5687_v14, 0.0  ;;  %v9325_v14 = vpack.c.bf16 %v6475_v10, %v6473_v55  ;;  %v9345_v55 = vpack.c.bf16 %v6495_v60, %v6493_v39  ;;  %v6492_v10 = vld [vmem:[#allocation10 + $0x320] sm:$0xff] }
 0xdf2   : > { %v6265_v0 = vmax.f32 %v5689_v57, 0.0  ;;  %v5692_v35 = vpop.f32.mrb[98].mxu1  ;;  %v13691_v40 = vpop.f32.mrb[162].mxu0  ;;  %v6477_v57 = vld [vmem:[#allocation10 + $0x2a8] sm:$0xff] }
 0xdf3   : > { %v5693_v20 = vadd.f32 %v5692_v35, %v13679_v6  ;;  %v5694_v53 = vpop.f32.mrb[99].mxu1  ;;  %v13694_v9 = vpop.f32.mrb[163].mxu0  ;;  %v9329_v30 = vpack.c.bf16 %v6479_v58, %v6477_v57  ;;  %v6500_v58 = vld [vmem:[#allocation10 + $0x360] sm:$0xff] }
 0xdf4   : > { %v5695_v27 = vadd.f32 %v5694_v53, %v13683_v5  ;;  %6724 = vmatprep.mubr.f32.mxu1 %v6265_v0 }
 0xdf5   : > { %6725 = vmatmul.mubr.f32.vlgmr.msra.gmra.mrb[160].mxu1 %v6264_v28  ;;  %v6272_v18 = vmax.f32 %v5693_v20, 0.0 }
 0xdf6   : > { %v6273_v50 = vmax.f32 %v5695_v27, 0.0  ;;  %v5698_v37 = vpop.f32.mrb[100].mxu1  ;;  %v13697_v47 = vpop.f32.mrb[164].mxu0  ;;  %9312 = vmatpush1.bf16.msra.mxu1 %v9311_v7  ;;  %v9327_v7 = vpack.c.bf16 %v6474_v38, %v6472_v31  ;;  %v6478_v27 = vld [vmem:[#allocation10 + $0x2b0] sm:$0xff]  ;;  %v6501_v31 = vld [vmem:[#allocation10 + $0x368] sm:$0xff]  ;;  %v6503_v38 = vld [vmem:[#allocation10 + $0x378] sm:$0xff] }
 0xdf7   : > { %v5699_v33 = vadd.f32 %v5698_v37, %v13679_v6  ;;  %v5700_v56 = vpop.f32.mrb[101].mxu1  ;;  %v13700_v49 = vpop.f32.mrb[165].mxu0  ;;  %9314 = vmatprep.subr.bf16.mxu1 %v9313_v23  ;;  %v9353_v57 = vpack.c.bf16 %v6503_v38, %v6501_v31 }
 0xdf8   : > { %v5701_v45 = vadd.f32 %v5700_v56, %v13683_v5  ;;  %6730 = vmatprep.mubr.f32.mxu1 %v6273_v50  ;;  %v6483_v50 = vld [vmem:[#allocation10 + $0x2d8] sm:$0xff]  ;;  %v6480_v56 = vld [vmem:[#allocation10 + $0x2c0] sm:$0xff] }
 0xdf9   : > { %6731 = vmatmul.mubr.f32.gmra.mrb[162].mxu1 %v6272_v18  ;;  %v6280_v59 = vmax.f32 %v5699_v33, 0.0  ;;  %v9333_v33 = vpack.c.bf16 %v6483_v50, %v6481_v16  ;;  %v6508_v50 = vld [vmem:[#allocation10 + $0x3a0] sm:$0xff] }
 0xdfa   : > { %v6281_v13 = vmax.f32 %v5701_v45, 0.0  ;;  %v5704_v41 = vpop.f32.mrb[102].mxu1  ;;  %v13703_v26 = vpop.f32.mrb[166].mxu0  ;;  %9316 = vmatpush1.bf16.msra.mxu1 %v9315_v36  ;;  %v9331_v36 = vpack.c.bf16 %v6478_v27, %v6476_v51  ;;  %v6509_v51 = vld [vmem:[#allocation10 + $0x3a8] sm:$0xff]  ;;  %v6511_v27 = vld [vmem:[#allocation10 + $0x3b8] sm:$0xff] }
 0xdfb   : > { %v5705_v62 = vadd.f32 %v5704_v41, %v13679_v6  ;;  %v5706_v61 = vpop.f32.mrb[103].mxu1  ;;  %v13706_v1 = vpop.f32.mrb[167].mxu0  ;;  %9318 = vmatprep.subr.bf16.mxu1 %v9317_v15  ;;  %v6482_v15 = vld [vmem:[#allocation10 + $0x2d0] sm:$0xff]  ;;  %v6489_v41 = vld [vmem:[#allocation10 + $0x308] sm:$0xff]  ;;  %v9361_v16 = vpack.c.bf16 %v6511_v27, %v6509_v51 }
 0xdfc   : > { %v5707_v3 = vadd.f32 %v5706_v61, %v13683_v5  ;;  %6736 = vmatprep.mubr.f32.mxu1 %v6281_v13  ;;  %v9335_v45 = vpack.c.bf16 %v6482_v15, %v6480_v56  ;;  %v6486_v13 = vld [vmem:[#allocation10 + $0x2f0] sm:$0xff]  ;;  %v6488_v61 = vld [vmem:[#allocation10 + $0x300] sm:$0xff] }
 0xdfd   : > { %6737 = vmatmul.mubr.f32.gmra.mrb[164].mxu1 %v6280_v59  ;;  %v6288_v17 = vmax.f32 %v5705_v62, 0.0  ;;  %v9339_v59 = vpack.c.bf16 %v6486_v13, %v6484_v22  ;;  %v6512_v22 = vld [vmem:[#allocation10 + $0x3c0] sm:$0xff]  ;;  %v6514_v13 = vld [vmem:[#allocation10 + $0x3d0] sm:$0xff] }
 0xdfe   : > { %v6289_v4 = vmax.f32 %v5707_v3, 0.0  ;;  %v5710_v34 = vpop.f32.mrb[104].mxu1  ;;  %v13709_v2 = vpop.f32.mrb[168].mxu0  ;;  %9320 = vmatpush1.bf16.msra.mxu1 %v9319_v46  ;;  %v6491_v46 = vld [vmem:[#allocation10 + $0x318] sm:$0xff]  ;;  %v9367_v39 = vpack.c.bf16 %v6514_v13, %v6512_v22 }
 0xdff   : > { %v5711_v25 = vadd.f32 %v5710_v34, %v13679_v6  ;;  %v5712_v8 = vpop.f32.mrb[105].mxu1  ;;  %v13712_v63 = vpop.f32.mrb[169].mxu0  ;;  %9322 = vmatprep.subr.bf16.mxu1 %v9321_v24  ;;  %v9341_v62 = vpack.c.bf16 %v6491_v46, %v6489_v41  ;;  %v6490_v24 = vld [vmem:[#allocation10 + $0x310] sm:$0xff]  ;;  %v6497_v34 = vld [vmem:[#allocation10 + $0x348] sm:$0xff] }
 0xe00   : > { %v5713_v32 = vadd.f32 %v5712_v8, %v13683_v5  ;;  %6742 = vmatprep.mubr.f32.mxu1 %v6289_v4  ;;  %v9343_v3 = vpack.c.bf16 %v6490_v24, %v6488_v61  ;;  %v6494_v4 = vld [vmem:[#allocation10 + $0x330] sm:$0xff]  ;;  %v6496_v8 = vld [vmem:[#allocation10 + $0x340] sm:$0xff]  ;;  %v6517_v46 = vld [vmem:[#allocation10 + $0x3e8] sm:$0xff] }
 0xe01   : > { %6743 = vmatmul.mubr.f32.gmra.mrb[166].mxu1 %v6288_v17  ;;  %v6296_v28 = vmax.f32 %v5711_v25, 0.0  ;;  %v9347_v17 = vpack.c.bf16 %v6494_v4, %v6492_v10 }
 0xe02   : > { %v6297_v42 = vmax.f32 %v5713_v32, 0.0  ;;  %v5716_v0 = vpop.f32.mrb[106].mxu1  ;;  %v13715_v35 = vpop.f32.mrb[170].mxu0  ;;  %9324 = vmatpush1.bf16.msra.mxu1 %v9323_v43  ;;  %v6499_v43 = vld [vmem:[#allocation10 + $0x358] sm:$0xff] }
 0xe03   : > { %v5717_v20 = vadd.f32 %v5716_v0, %v13679_v6  ;;  %v5718_v53 = vpop.f32.mrb[107].mxu1  ;;  %v13718_v23 = vpop.f32.mrb[171].mxu0  ;;  %9326 = vmatprep.subr.bf16.mxu1 %v9325_v14  ;;  %v9349_v25 = vpack.c.bf16 %v6499_v43, %v6497_v34  ;;  %v6498_v14 = vld [vmem:[#allocation10 + $0x350] sm:$0xff]  ;;  %v6505_v0 = vld [vmem:[#allocation10 + $0x388] sm:$0xff]  ;;  %v6516_v34 = vld [vmem:[#allocation10 + $0x3e0] sm:$0xff] }
 0xe04   : > { %v5719_v48 = vadd.f32 %v5718_v53, %v13683_v5  ;;  %6748 = vmatprep.mubr.f32.mxu1 %v6297_v42  ;;  %v9351_v32 = vpack.c.bf16 %v6498_v14, %v6496_v8  ;;  %v6502_v42 = vld [vmem:[#allocation10 + $0x370] sm:$0xff]  ;;  %v6504_v53 = vld [vmem:[#allocation10 + $0x380] sm:$0xff]  ;;  %v6523_v8 = vld [vmem:[#allocation10 + $0x418] sm:$0xff] }
 0xe05   : > { %6749 = vmatmul.mubr.f32.gmra.mrb[168].mxu1 %v6296_v28  ;;  %v6304_v18 = vmax.f32 %v5717_v20, 0.0  ;;  %v9355_v28 = vpack.c.bf16 %v6502_v42, %v6500_v58  ;;  %v6518_v43 = vld [vmem:[#allocation10 + $0x3f0] sm:$0xff] }
 0xe06   : > { %v6305_v37 = vmax.f32 %v5719_v48, 0.0  ;;  %9328 = vmatpush1.bf16.msra.mxu1 %v9327_v7  ;;  %v6507_v7 = vld [vmem:[#allocation10 + $0x398] sm:$0xff] }
 0xe07   : > { %9330 = vmatprep.subr.bf16.mxu1 %v9329_v30  ;;  %v9357_v20 = vpack.c.bf16 %v6507_v7, %v6505_v0  ;;  %v6506_v30 = vld [vmem:[#allocation10 + $0x390] sm:$0xff] }
 0xe08   : > { %6754 = vmatprep.mubr.f32.mxu1 %v6305_v37  ;;  %v9359_v48 = vpack.c.bf16 %v6506_v30, %v6504_v53  ;;  %v6510_v37 = vld [vmem:[#allocation10 + $0x3b0] sm:$0xff] }
 0xe09   : > { %6755 = vmatmul.mubr.f32.gmra.mrb[170].mxu1 %v6304_v18  ;;  %v6515_v18 = vld [vmem:[#allocation10 + $0x3d8] sm:$0xff]  ;;  %v9363_v15 = vpack.c.bf16 %v6510_v37, %v6508_v50 }
 0xe0a   : > { %9332 = vmatpush1.bf16.msra.mxu1 %v9331_v36  ;;  %v6513_v36 = vld [vmem:[#allocation10 + $0x3c8] sm:$0xff] }
 0xe0b   : > { %9334 = vmatprep.subr.bf16.mxu1 %v9333_v33 }
 0xe0e   : > { %9336 = vmatpush1.bf16.msra.mxu1 %v9335_v45 }
 0xe0f   : > { %9338 = vmatprep.subr.bf16.mxu1 %v9337_v12  ;;  %v9365_v12 = vpack.c.bf16 %v6515_v18, %v6513_v36 }
 0xe12   : > { %9340 = vmatpush1.bf16.msra.mxu1 %v9339_v59  ;;  %v6519_v59 = vld [vmem:[#allocation10 + $0x3f8] sm:$0xff] }
 0xe13   : > { %9342 = vmatprep.subr.bf16.mxu1 %v9341_v62  ;;  %v9369_v4 = vpack.c.bf16 %v6519_v59, %v6517_v46 }
 0xe16   : > { %9344 = vmatpush1.bf16.msra.mxu1 %v9343_v3 }
 0xe17   : > { %9346 = vmatprep.subr.bf16.mxu1 %v9345_v55 }
 0xe1a   : > { %9348 = vmatpush1.bf16.msra.mxu1 %v9347_v17 }
 0xe1b   : > { %9350 = vmatprep.subr.bf16.mxu1 %v9349_v25  ;;  %v6521_v25 = vld [vmem:[#allocation10 + $0x408] sm:$0xff] }
 0xe1c   : > { %v9373_v7 = vpack.c.bf16 %v6523_v8, %v6521_v25 }
 0xe1e   : > { %9352 = vmatpush1.bf16.msra.mxu1 %v9351_v32  ;;  %v9371_v32 = vpack.c.bf16 %v6518_v43, %v6516_v34 }
 0xe1f   : > { %9354 = vmatprep.subr.bf16.mxu1 %v9353_v57 }
 0xe22   : > { %9356 = vmatpush1.bf16.msra.mxu1 %v9355_v28 }
 0xe23   : > { %9358 = vmatprep.subr.bf16.mxu1 %v9357_v20 }
 0xe26   : > { %v5722_v33 = vpop.f32.mrb[108].mxu1  ;;  %v13721_v56 = vpop.f32.mrb[172].mxu0  ;;  %9360 = vmatpush1.bf16.msra.mxu1 %v9359_v48 }
 0xe27   : > { %v5723_v11 = vadd.f32 %v5722_v33, %v13679_v6  ;;  %v5724_v54 = vpop.f32.mrb[109].mxu1  ;;  %v13724_v45 = vpop.f32.mrb[173].mxu0  ;;  %9362 = vmatprep.subr.bf16.mxu1 %v9361_v16 }
 0xe28   : > { %v5725_v41 = vadd.f32 %v5724_v54, %v13683_v5 }
 0xe29   : > { %v6312_v60 = vmax.f32 %v5723_v11, 0.0 }
 0xe2a   : > { %v6313_v62 = vmax.f32 %v5725_v41, 0.0  ;;  %v5728_v61 = vpop.f32.mrb[110].mxu1  ;;  %v13727_v24 = vpop.f32.mrb[174].mxu0  ;;  %9364 = vmatpush1.bf16.msra.mxu1 %v9363_v15 }
 0xe2b   : > { %v5729_v3 = vadd.f32 %v5728_v61, %v13679_v6  ;;  %v5730_v55 = vpop.f32.mrb[111].mxu1  ;;  %v13730_v10 = vpop.f32.mrb[175].mxu0  ;;  %9366 = vmatprep.subr.bf16.mxu1 %v9365_v12 }
 0xe2c   : > { %v5731_v17 = vadd.f32 %v5730_v55, %v13683_v5  ;;  %6760 = vmatprep.mubr.f32.mxu1 %v6313_v62 }
 0xe2d   : > { %6761 = vmatmul.mubr.f32.gmra.mrb[172].mxu1 %v6312_v60  ;;  %v6320_v57 = vmax.f32 %v5729_v3, 0.0 }
 0xe2e   : > { %v6321_v14 = vmax.f32 %v5731_v17, 0.0  ;;  %v5734_v31 = vpop.f32.mrb[112].mxu1  ;;  %v13733_v38 = vpop.f32.mrb[176].mxu0  ;;  %9368 = vmatpush1.bf16.msra.mxu1 %v9367_v39 }
 0xe2f   : > { %v5735_v58 = vadd.f32 %v5734_v31, %v13679_v6  ;;  %v5736_v42 = vpop.f32.mrb[113].mxu1  ;;  %v13736_v0 = vpop.f32.mrb[177].mxu0  ;;  %9370 = vmatprep.subr.bf16.mxu1 %v9369_v4 }
 0xe30   : > { %v5737_v28 = vadd.f32 %v5736_v42, %v13683_v5  ;;  %6766 = vmatprep.mubr.f32.mxu1 %v6321_v14 }
 0xe31   : > { %6767 = vmatmul.mubr.f32.gmra.mrb[174].mxu1 %v6320_v57  ;;  %v6328_v51 = vmax.f32 %v5735_v58, 0.0 }
 0xe32   : > { %v6329_v20 = vmax.f32 %v5737_v28, 0.0  ;;  %v5740_v53 = vpop.f32.mrb[114].mxu1  ;;  %v13739_v30 = vpop.f32.mrb[178].mxu0  ;;  %9372 = vmatpush1.bf16.msra.mxu1 %v9371_v32 }
 0xe33   : > { %v5741_v27 = vadd.f32 %v5740_v53, %v13679_v6  ;;  %v5742_v48 = vpop.f32.mrb[115].mxu1  ;;  %v13742_v16 = vpop.f32.mrb[179].mxu0  ;;  %9374 = vmatprep.subr.bf16.mxu1 %v9373_v7  ;;  %v14649_v7 = vld [vmem:[#allocation18_spill] sm:$0xff] }
 0xe34   : > { %v5743_v50 = vadd.f32 %v5742_v48, %v13683_v5  ;;  %6772 = vmatprep.mubr.f32.mxu1 %v6329_v20  ;;  %v5594_v28 = vsub.s32 3, %v14649_v7  ;;  %v5590_v48 = vsub.s32 2, %v14649_v7 }
 0xe35   : > { %6773 = vmatmul.mubr.f32.gmra.mrb[176].mxu1 %v6328_v51  ;;  %v6336_v33 = vmax.f32 %v5741_v27, 0.0 }
 0xe36   : > { %v6337_v37 = vmax.f32 %v5743_v50, 0.0  ;;  %v5746_v36 = vpop.f32.mrb[116].mxu1  ;;  %v13745_v18 = vpop.f32.mrb[180].mxu0 }
 0xe37   : > { %v5747_v15 = vadd.f32 %v5746_v36, %v13679_v6  ;;  %v5748_v11 = vpop.f32.mrb[117].mxu1  ;;  %v13748_v54 = vpop.f32.mrb[181].mxu0 }
 0xe38   : > { %v5749_v12 = vadd.f32 %v5748_v11, %v13683_v5  ;;  %6778 = vmatprep.mubr.f32.mxu1 %v6337_v37 }
 0xe39   : > { %6779 = vmatmul.mubr.f32.gmra.mrb[178].mxu1 %v6336_v33  ;;  %v6344_v46 = vmax.f32 %v5747_v15, 0.0  ;;  %v13777_v15 = vrot.slane %v13675_v21, %v5594_v28  ;;  %v6527_v28 = vld [vmem:[#allocation10 + $0x438] sm:$0xff] }
 0xe3a   : > { %v6345_v22 = vmax.f32 %v5749_v12, 0.0  ;;  %v5752_v13 = vpop.f32.mrb[118].mxu1  ;;  %v13751_v41 = vpop.f32.mrb[182].mxu0 }
 0xe3b   : > { %v5753_v59 = vadd.f32 %v5752_v13, %v13679_v6  ;;  %v5754_v62 = vpop.f32.mrb[119].mxu1  ;;  %v13754_v61 = vpop.f32.mrb[183].mxu0  ;;  %v5880_v19 = vadd.f32 %v13718_v23, %v13777_v15 }
 0xe3c   : > { %v5755_v39 = vadd.f32 %v5754_v62, %v13683_v5  ;;  %6784 = vmatprep.mubr.f32.mxu1 %v6345_v22 }
 0xe3d   : > { %6785 = vmatmul.mubr.f32.gmra.mrb[180].mxu1 %v6344_v46  ;;  %v6352_v4 = vmax.f32 %v5753_v59, 0.0  ;;  %v13783_v46 = vrot.slane %v13675_v21, %v5590_v48 }
 0xe3e   : > { %v6353_v60 = vmax.f32 %v5755_v39, 0.0  ;;  %v5758_v3 = vpop.f32.mrb[120].mxu1  ;;  %v13757_v55 = vpop.f32.mrb[184].mxu0 }
 0xe3f   : > { %v5759_v34 = vadd.f32 %v5758_v3, %v13679_v6  ;;  %v5760_v43 = vpop.f32.mrb[121].mxu1  ;;  %v13760_v17 = vpop.f32.mrb[185].mxu0  ;;  %v5850_v3 = vadd.f32 %v13688_v52, %v13777_v15  ;;  %v5848_v21 = vadd.f32 %v13685_v29, %v13783_v46  ;;  %v5854_v48 = vadd.f32 %v13691_v40, %v13783_v46 }
 0xe40   : > { %v5761_v25 = vadd.f32 %v5760_v43, %v13683_v5  ;;  %6790 = vmatprep.mubr.f32.mxu1 %v6353_v60 }
 0xe41   : > { %6791 = vmatmul.mubr.f32.gmra.mrb[182].mxu1 %v6352_v4  ;;  %v6360_v32 = vmax.f32 %v5759_v34, 0.0  ;;  %v6267_v52 = vmax.f32 %v5850_v3, 0.0 }
 0xe42   : > { %v6361_v8 = vmax.f32 %v5761_v25, 0.0  ;;  %v5764_v14 = vpop.f32.mrb[122].mxu1  ;;  %v13763_v31 = vpop.f32.mrb[186].mxu0 }
 0xe43   : > { %v5765_v57 = vadd.f32 %v5764_v14, %v13679_v6  ;;  %v5766_v58 = vpop.f32.mrb[123].mxu1  ;;  %v13766_v42 = vpop.f32.mrb[187].mxu0 }
 0xe44   : > { %v5767_v20 = vadd.f32 %v5766_v58, %v13683_v5  ;;  %6796 = vmatprep.mubr.f32.mxu1 %v6361_v8  ;;  %v6525_v58 = vld [vmem:[#allocation10 + $0x428] sm:$0xff] }
 0xe45   : > { %6797 = vmatmul.mubr.f32.gmra.mrb[184].mxu1 %v6360_v32  ;;  %v6368_v50 = vmax.f32 %v5765_v57, 0.0  ;;  %v6520_v32 = vld [vmem:[#allocation10 + $0x400] sm:$0xff]  ;;  %v6522_v57 = vld [vmem:[#allocation10 + $0x410] sm:$0xff] }
 0xe46   : > { %v6369_v53 = vmax.f32 %v5767_v20, 0.0  ;;  %v5770_v51 = vpop.f32.mrb[124].mxu1  ;;  %v13770_v27 = vpop.f32.mrb[188].mxu0  ;;  %v9375_v29 = vpack.c.bf16 %v6522_v57, %v6520_v32  ;;  %v6528_v32 = vld [vmem:[#allocation10 + $0x440] sm:$0xff]  ;;  %v6530_v57 = vld [vmem:[#allocation10 + $0x450] sm:$0xff] }
 0xe47   : > { %v5771_v37 = vadd.f32 %v5770_v51, %v13679_v6  ;;  %v5772_v36 = vpop.f32.mrb[125].mxu1  ;;  %v13774_v33 = vpop.f32.mrb[189].mxu0  ;;  %v6266_v51 = vmax.f32 %v5848_v21, 0.0 }
 0xe48   : > { %v5773_v11 = vadd.f32 %v5772_v36, %v13683_v5  ;;  %6802 = vmatprep.mubr.f32.mxu1 %v6369_v53  ;;  %v9377_v36 = vpack.c.bf16 %v6527_v28, %v6525_v58  ;;  %v6533_v58 = vld [vmem:[#allocation10 + $0x468] sm:$0xff]  ;;  %v6535_v28 = vld [vmem:[#allocation10 + $0x478] sm:$0xff] }
 0xe49   : > { %6803 = vmatmul.mubr.f32.gmra.mrb[186].mxu1 %v6368_v50  ;;  %v6376_v59 = vmax.f32 %v5771_v37, 0.0 }
 0xe4a   : > { %v6377_v12 = vmax.f32 %v5773_v11, 0.0  ;;  %v5776_v22 = vpop.f32.mrb[126].mxu1  ;;  %v13780_v13 = vpop.f32.mrb[190].mxu0  ;;  %v6526_v11 = vld [vmem:[#allocation10 + $0x430] sm:$0xff] }
 0xe4b   : > { %v5777_v62 = vadd.f32 %v5776_v22, %v13679_v6  ;;  %v5778_v39 = vpop.f32.mrb[127].mxu1  ;;  %v13786_v60 = vpop.f32.mrb[191].mxu0  ;;  %v5862_v22 = vadd.f32 %v13700_v49, %v13777_v15 }
 0xe4c   : > { %v5779_v4 = vadd.f32 %v5778_v39, %v13683_v5  ;;  %6808 = vmatprep.mubr.f32.mxu1 %v6377_v12  ;;  %v5856_v5 = vadd.f32 %v13694_v9, %v13777_v15  ;;  %v6524_v9 = vld [vmem:[#allocation10 + $0x420] sm:$0xff] }
 0xe4d   : > { %6809 = vmatmul.mubr.f32.gmra.mrb[188].mxu1 %v6376_v59  ;;  %v6384_v8 = vmax.f32 %v5777_v62, 0.0  ;;  %v6529_v59 = vld [vmem:[#allocation10 + $0x448] sm:$0xff]  ;;  %v6531_v62 = vld [vmem:[#allocation10 + $0x458] sm:$0xff]  ;;  %v9379_v40 = vpack.c.bf16 %v6526_v11, %v6524_v9 }
 0xe4e   : > { %v6385_v34 = vmax.f32 %v5779_v4, 0.0  ;;  %v13791_v43 = vpop.f32.mrb[128].mxu1  ;;  %v13793_v25 = vpop.f32.mrb[192].mxu0  ;;  %v6275_v12 = vmax.f32 %v5856_v5, 0.0  ;;  %v6274_v4 = vmax.f32 %v5854_v48, 0.0  ;;  %v9381_v49 = vpack.c.bf16 %v6531_v62, %v6529_v59 }
 0xe4f   : > { %v13797_v6 = vpop.f32.mrb[129].mxu1  ;;  %v13799_v14 = vpop.f32.mrb[193].mxu0  ;;  %v5868_v5 = vadd.f32 %v13706_v1, %v13777_v15  ;;  %v9385_v1 = vpack.c.bf16 %v6535_v28, %v6533_v58  ;;  %v5874_v62 = vadd.f32 %v13712_v63, %v13777_v15  ;;  %v6536_v58 = vld [vmem:[#allocation10 + $0x480] sm:$0xff]  ;;  %v6538_v28 = vld [vmem:[#allocation10 + $0x490] sm:$0xff] }
 0xe50   : > { %6814 = vmatprep.mubr.f32.mxu1 %v6385_v34  ;;  %v5860_v34 = vadd.f32 %v13697_v47, %v13783_v46  ;;  %v9383_v47 = vpack.c.bf16 %v6530_v57, %v6528_v32 }
 0xe51   : > { %6815 = vmatmul.mubr.f32.gmra.mrb[190].mxu1 %v6384_v8  ;;  %v6291_v59 = vmax.f32 %v5868_v5, 0.0 }
 0xe52   : > { %v13803_v20 = vpop.f32.mrb[130].mxu1  ;;  %v13805_v53 = vpop.f32.mrb[194].mxu0  ;;  %6885 = vmatprep.mubr.f32.mxu1 %v6267_v52  ;;  %v6283_v52 = vmax.f32 %v5862_v22, 0.0  ;;  %v6282_v48 = vmax.f32 %v5860_v34, 0.0  ;;  %v6534_v22 = vld [vmem:[#allocation10 + $0x470] sm:$0xff] }
 0xe53   : > { %v13809_v50 = vpop.f32.mrb[131].mxu1  ;;  %v13811_v37 = vpop.f32.mrb[195].mxu0 }
 0xe55   : > { %6886 = vmatmul.mubr.f32.vlgmr.msra.gmra.mrb[160].mxu1 %v6266_v51 }
 0xe56   : > { %v13815_v39 = vpop.f32.mrb[132].mxu1  ;;  %v13817_v3 = vpop.f32.mrb[196].mxu0  ;;  %6891 = vmatprep.mubr.f32.mxu1 %v6275_v12  ;;  %9376 = vmatpush1.bf16.msra.mxu1 %v9375_v29  ;;  %v6532_v12 = vld [vmem:[#allocation10 + $0x460] sm:$0xff] }
 0xe57   : > { %v13821_v21 = vpop.f32.mrb[133].mxu1  ;;  %v13823_v8 = vpop.f32.mrb[197].mxu0  ;;  %9378 = vmatprep.subr.bf16.mxu1 %v9377_v36  ;;  %v5866_v36 = vadd.f32 %v13703_v26, %v13783_v46  ;;  %v9387_v26 = vpack.c.bf16 %v6534_v22, %v6532_v12 }
 0xe59   : > { %6892 = vmatmul.mubr.f32.gmra.mrb[162].mxu1 %v6274_v4  ;;  %v6537_v4 = vld [vmem:[#allocation10 + $0x488] sm:$0xff]  ;;  %v6290_v32 = vmax.f32 %v5866_v36, 0.0 }
 0xe5a   : > { %v13827_v29 = vpop.f32.mrb[134].mxu1  ;;  %v13829_v51 = vpop.f32.mrb[198].mxu0  ;;  %6897 = vmatprep.mubr.f32.mxu1 %v6283_v52  ;;  %9380 = vmatpush1.bf16.msra.mxu1 %v9379_v40  ;;  %v6539_v52 = vld [vmem:[#allocation10 + $0x498] sm:$0xff] }
 0xe5b   : > { %14650 = vst [vmem:[#allocation31_spill] sm:$0xff] %v13829_v51  ;;  %v13833_v9 = vpop.f32.mrb[135].mxu1  ;;  %v13835_v11 = vpop.f32.mrb[199].mxu0  ;;  %9382 = vmatprep.subr.bf16.mxu1 %v9381_v49  ;;  %v5872_v49 = vadd.f32 %v13709_v2, %v13783_v46  ;;  %v9389_v63 = vpack.c.bf16 %v6539_v52, %v6537_v4  ;;  %v9391_v2 = vpack.c.bf16 %v6538_v28, %v6536_v58  ;;  %v6540_v4 = vld [vmem:[#allocation10 + $0x4a0] sm:$0xff]  ;;  %v6542_v52 = vld [vmem:[#allocation10 + $0x4b0] sm:$0xff] }
 0xe5c   : > { %v6544_v28 = vld [vmem:[#allocation10 + $0x4c0] sm:$0xff] }
 0xe5d   : > { %6898 = vmatmul.mubr.f32.gmra.mrb[164].mxu1 %v6282_v48  ;;  %v6299_v48 = vmax.f32 %v5874_v62, 0.0  ;;  %v6298_v12 = vmax.f32 %v5872_v49, 0.0 }
 0xe5e   : > { %v13839_v40 = vpop.f32.mrb[136].mxu1  ;;  %v13841_v34 = vpop.f32.mrb[200].mxu0  ;;  %6903 = vmatprep.mubr.f32.mxu1 %v6291_v59  ;;  %9384 = vmatpush1.bf16.msra.mxu1 %v9383_v47  ;;  %v6543_v59 = vld [vmem:[#allocation10 + $0x4b8] sm:$0xff] }
 0xe5f   : > { %14651 = vst [vmem:[#allocation32_spill] sm:$0xff] %v13841_v34  ;;  %v13845_v57 = vpop.f32.mrb[137].mxu1  ;;  %v13847_v5 = vpop.f32.mrb[201].mxu0  ;;  %9386 = vmatprep.subr.bf16.mxu1 %v9385_v1  ;;  %v5878_v1 = vadd.f32 %v13715_v35, %v13783_v46  ;;  %v9393_v23 = vpack.c.bf16 %v6543_v59, %v6541_v44  ;;  %v5886_v34 = vadd.f32 %v13724_v45, %v13777_v15  ;;  %v6546_v59 = vld [vmem:[#allocation10 + $0x4d0] sm:$0xff] }
 0xe60   : > { %14652 = vst [vmem:[#allocation33_spill] sm:$0xff] %v13847_v5  ;;  %v9395_v35 = vpack.c.bf16 %v6542_v52, %v6540_v4  ;;  %v5884_v44 = vadd.f32 %v13721_v56, %v13783_v46  ;;  %v9399_v56 = vpack.c.bf16 %v6546_v59, %v6544_v28  ;;  %v6548_v52 = vld [vmem:[#allocation10 + $0x4e0] sm:$0xff] }
 0xe61   : > { %6904 = vmatmul.mubr.f32.gmra.mrb[166].mxu1 %v6290_v32  ;;  %v6307_v32 = vmax.f32 %v5880_v19, 0.0  ;;  %v6306_v58 = vmax.f32 %v5878_v1, 0.0  ;;  %v6552_v59 = vld [vmem:[#allocation10 + $0x500] sm:$0xff] }
 0xe62   : > { %v13851_v47 = vpop.f32.mrb[138].mxu1  ;;  %v13853_v36 = vpop.f32.mrb[202].mxu0  ;;  %6909 = vmatprep.mubr.f32.mxu1 %v6299_v48  ;;  %9388 = vmatpush1.bf16.msra.mxu1 %v9387_v26  ;;  %v6547_v48 = vld [vmem:[#allocation10 + $0x4d8] sm:$0xff]  ;;  %v6314_v4 = vmax.f32 %v5884_v44, 0.0 }
 0xe63   : > { %14653 = vst [vmem:[#allocation34_spill] sm:$0xff] %v13853_v36  ;;  %v13857_v22 = vpop.f32.mrb[139].mxu1  ;;  %v13859_v62 = vpop.f32.mrb[203].mxu0  ;;  %9390 = vmatprep.subr.bf16.mxu1 %v9389_v63  ;;  %v6545_v36 = vld [vmem:[#allocation10 + $0x4c8] sm:$0xff] }
 0xe64   : > { %14654 = vst [vmem:[#allocation35_spill] sm:$0xff] %v13859_v62  ;;  %v9397_v45 = vpack.c.bf16 %v6547_v48, %v6545_v36  ;;  %v5892_v62 = vadd.f32 %v13730_v10, %v13777_v15  ;;  %v5890_v36 = vadd.f32 %v13727_v24, %v13783_v46  ;;  %v6550_v48 = vld [vmem:[#allocation10 + $0x4f0] sm:$0xff] }
 0xe65   : > { %6910 = vmatmul.mubr.f32.gmra.mrb[168].mxu1 %v6298_v12  ;;  %v6315_v12 = vmax.f32 %v5886_v34, 0.0  ;;  %v9403_v24 = vpack.c.bf16 %v6550_v48, %v6548_v52  ;;  %v6556_v48 = vld [vmem:[#allocation10 + $0x520] sm:$0xff] }
 0xe66   : > { %v13863_v26 = vpop.f32.mrb[140].mxu1  ;;  %v13865_v49 = vpop.f32.mrb[204].mxu0  ;;  %6915 = vmatprep.mubr.f32.mxu1 %v6307_v32  ;;  %9392 = vmatpush1.bf16.msra.mxu1 %v9391_v2  ;;  %v6551_v32 = vld [vmem:[#allocation10 + $0x4f8] sm:$0xff]  ;;  %v6322_v28 = vmax.f32 %v5890_v36, 0.0 }
 0xe67   : > { %14655 = vst [vmem:[#allocation36_spill] sm:$0xff] %v13865_v49  ;;  %v13869_v63 = vpop.f32.mrb[141].mxu1  ;;  %v13871_v19 = vpop.f32.mrb[205].mxu0  ;;  %9394 = vmatprep.subr.bf16.mxu1 %v9393_v23  ;;  %v6549_v49 = vld [vmem:[#allocation10 + $0x4e8] sm:$0xff] }
 0xe68   : > { %14656 = vst [vmem:[#allocation86_spill] sm:$0xff] %v13871_v19  ;;  %v9401_v10 = vpack.c.bf16 %v6551_v32, %v6549_v49  ;;  %v5898_v19 = vadd.f32 %v13736_v0, %v13777_v15  ;;  %v5896_v49 = vadd.f32 %v13733_v38, %v13783_v46  ;;  %v6554_v32 = vld [vmem:[#allocation10 + $0x510] sm:$0xff] }
 0xe69   : > { %6916 = vmatmul.mubr.f32.gmra.mrb[170].mxu1 %v6306_v58  ;;  %v6323_v58 = vmax.f32 %v5892_v62, 0.0  ;;  %v9407_v38 = vpack.c.bf16 %v6554_v32, %v6552_v59  ;;  %v6560_v32 = vld [vmem:[#allocation10 + $0x540] sm:$0xff] }
 0xe6a   : > { %v13875_v2 = vpop.f32.mrb[142].mxu1  ;;  %v13877_v1 = vpop.f32.mrb[206].mxu0  ;;  %6921 = vmatprep.mubr.f32.mxu1 %v6315_v12  ;;  %9396 = vmatpush1.bf16.msra.mxu1 %v9395_v35  ;;  %v6555_v12 = vld [vmem:[#allocation10 + $0x518] sm:$0xff]  ;;  %v6330_v52 = vmax.f32 %v5896_v49, 0.0 }
 0xe6b   : > { %14657 = vst [vmem:[#allocation87_spill] sm:$0xff] %v13877_v1  ;;  %v13881_v23 = vpop.f32.mrb[143].mxu1  ;;  %v13883_v34 = vpop.f32.mrb[207].mxu0  ;;  %9398 = vmatprep.subr.bf16.mxu1 %v9397_v45  ;;  %v6553_v1 = vld [vmem:[#allocation10 + $0x508] sm:$0xff] }
 0xe6c   : > { %14658 = vst [vmem:[#allocation54_spill] sm:$0xff] %v13883_v34  ;;  %v9405_v0 = vpack.c.bf16 %v6555_v12, %v6553_v1  ;;  %v5904_v34 = vadd.f32 %v13742_v16, %v13777_v15  ;;  %v5902_v1 = vadd.f32 %v13739_v30, %v13783_v46  ;;  %v6558_v12 = vld [vmem:[#allocation10 + $0x530] sm:$0xff] }
 0xe6d   : > { %6922 = vmatmul.mubr.f32.gmra.mrb[172].mxu1 %v6314_v4  ;;  %v6331_v4 = vmax.f32 %v5898_v19, 0.0  ;;  %v9411_v30 = vpack.c.bf16 %v6558_v12, %v6556_v48  ;;  %v6564_v12 = vld [vmem:[#allocation10 + $0x560] sm:$0xff] }
 0xe6e   : > { %v13887_v35 = vpop.f32.mrb[144].mxu1  ;;  %v13889_v44 = vpop.f32.mrb[208].mxu0  ;;  %6927 = vmatprep.mubr.f32.mxu1 %v6323_v58  ;;  %9400 = vmatpush1.bf16.msra.mxu1 %v9399_v56  ;;  %v6559_v58 = vld [vmem:[#allocation10 + $0x538] sm:$0xff]  ;;  %v6338_v59 = vmax.f32 %v5902_v1, 0.0 }
 0xe6f   : > { %14659 = vst [vmem:[#allocation53_spill] sm:$0xff] %v13889_v44  ;;  %v13893_v45 = vpop.f32.mrb[145].mxu1  ;;  %v13895_v62 = vpop.f32.mrb[209].mxu0  ;;  %9402 = vmatprep.subr.bf16.mxu1 %v9401_v10  ;;  %v6557_v44 = vld [vmem:[#allocation10 + $0x528] sm:$0xff] }
 0xe70   : > { %14660 = vst [vmem:[#allocation57_spill] sm:$0xff] %v13895_v62  ;;  %v9409_v16 = vpack.c.bf16 %v6559_v58, %v6557_v44  ;;  %v5910_v62 = vadd.f32 %v13748_v54, %v13777_v15  ;;  %v5908_v44 = vadd.f32 %v13745_v18, %v13783_v46  ;;  %v6562_v58 = vld [vmem:[#allocation10 + $0x550] sm:$0xff] }
 0xe71   : > { %6928 = vmatmul.mubr.f32.gmra.mrb[174].mxu1 %v6322_v28  ;;  %v6339_v28 = vmax.f32 %v5904_v34, 0.0  ;;  %v9415_v18 = vpack.c.bf16 %v6562_v58, %v6560_v32  ;;  %v6568_v58 = vld [vmem:[#allocation10 + $0x580] sm:$0xff] }
 0xe72   : > { %v13899_v56 = vpop.f32.mrb[146].mxu1  ;;  %v13901_v36 = vpop.f32.mrb[210].mxu0  ;;  %6933 = vmatprep.mubr.f32.mxu1 %v6331_v4  ;;  %9404 = vmatpush1.bf16.msra.mxu1 %v9403_v24  ;;  %v6563_v4 = vld [vmem:[#allocation10 + $0x558] sm:$0xff]  ;;  %v6346_v48 = vmax.f32 %v5908_v44, 0.0 }
 0xe73   : > { %14661 = vst [vmem:[#allocation56_spill] sm:$0xff] %v13901_v36  ;;  %v13905_v10 = vpop.f32.mrb[147].mxu1  ;;  %v13907_v19 = vpop.f32.mrb[211].mxu0  ;;  %9406 = vmatprep.subr.bf16.mxu1 %v9405_v0  ;;  %v6561_v36 = vld [vmem:[#allocation10 + $0x548] sm:$0xff] }
 0xe74   : > { %14662 = vst [vmem:[#allocation60_spill] sm:$0xff] %v13907_v19  ;;  %v9413_v54 = vpack.c.bf16 %v6563_v4, %v6561_v36  ;;  %v5916_v19 = vadd.f32 %v13754_v61, %v13777_v15  ;;  %v5914_v36 = vadd.f32 %v13751_v41, %v13783_v46  ;;  %v6566_v4 = vld [vmem:[#allocation10 + $0x570] sm:$0xff] }
 0xe75   : > { %6934 = vmatmul.mubr.f32.gmra.mrb[176].mxu1 %v6330_v52  ;;  %v6347_v52 = vmax.f32 %v5910_v62, 0.0  ;;  %v9419_v41 = vpack.c.bf16 %v6566_v4, %v6564_v12  ;;  %v6572_v4 = vld [vmem:[#allocation10 + $0x5a0] sm:$0xff] }
 0xe76   : > { %v13911_v24 = vpop.f32.mrb[148].mxu1  ;;  %v13913_v49 = vpop.f32.mrb[212].mxu0  ;;  %6939 = vmatprep.mubr.f32.mxu1 %v6339_v28  ;;  %9408 = vmatpush1.bf16.msra.mxu1 %v9407_v38  ;;  %v6567_v28 = vld [vmem:[#allocation10 + $0x578] sm:$0xff]  ;;  %v6354_v32 = vmax.f32 %v5914_v36, 0.0 }
 0xe77   : > { %14663 = vst [vmem:[#allocation59_spill] sm:$0xff] %v13913_v49  ;;  %v13917_v0 = vpop.f32.mrb[149].mxu1  ;;  %v13919_v34 = vpop.f32.mrb[213].mxu0  ;;  %9410 = vmatprep.subr.bf16.mxu1 %v9409_v16  ;;  %v6565_v49 = vld [vmem:[#allocation10 + $0x568] sm:$0xff] }
 0xe78   : > { %14664 = vst [vmem:[#allocation63_spill] sm:$0xff] %v13919_v34  ;;  %v9417_v61 = vpack.c.bf16 %v6567_v28, %v6565_v49  ;;  %v5922_v34 = vadd.f32 %v13760_v17, %v13777_v15  ;;  %v5920_v49 = vadd.f32 %v13757_v55, %v13783_v46  ;;  %v6570_v28 = vld [vmem:[#allocation10 + $0x590] sm:$0xff] }
 0xe79   : > { %6940 = vmatmul.mubr.f32.gmra.mrb[178].mxu1 %v6338_v59  ;;  %v6355_v59 = vmax.f32 %v5916_v19, 0.0  ;;  %v9423_v55 = vpack.c.bf16 %v6570_v28, %v6568_v58  ;;  %v6579_v58 = vld [vmem:[#allocation10 + $0x5d8] sm:$0xff] }
 0xe7a   : > { %v13923_v38 = vpop.f32.mrb[150].mxu1  ;;  %v13925_v1 = vpop.f32.mrb[214].mxu0  ;;  %6945 = vmatprep.mubr.f32.mxu1 %v6347_v52  ;;  %9412 = vmatpush1.bf16.msra.mxu1 %v9411_v30  ;;  %v6571_v52 = vld [vmem:[#allocation10 + $0x598] sm:$0xff]  ;;  %v6362_v12 = vmax.f32 %v5920_v49, 0.0 }
 0xe7b   : > { %14665 = vst [vmem:[#allocation62_spill] sm:$0xff] %v13925_v1  ;;  %v13929_v16 = vpop.f32.mrb[151].mxu1  ;;  %v13931_v62 = vpop.f32.mrb[215].mxu0  ;;  %9414 = vmatprep.subr.bf16.mxu1 %v9413_v54  ;;  %v6569_v1 = vld [vmem:[#allocation10 + $0x588] sm:$0xff] }
 0xe7c   : > { %14666 = vst [vmem:[#allocation66_spill] sm:$0xff] %v13931_v62  ;;  %v9421_v17 = vpack.c.bf16 %v6571_v52, %v6569_v1  ;;  %v5928_v62 = vadd.f32 %v13766_v42, %v13777_v15  ;;  %v5926_v1 = vadd.f32 %v13763_v31, %v13783_v46  ;;  %v6574_v52 = vld [vmem:[#allocation10 + $0x5b0] sm:$0xff] }
 0xe7d   : > { %6946 = vmatmul.mubr.f32.gmra.mrb[180].mxu1 %v6346_v48  ;;  %v6363_v48 = vmax.f32 %v5922_v34, 0.0  ;;  %v9427_v28 = vpack.c.bf16 %v6574_v52, %v6572_v4  ;;  %v6583_v4 = vld [vmem:[#allocation10 + $0x5f8] sm:$0xff] }
 0xe7e   : > { %v13935_v30 = vpop.f32.mrb[152].mxu1  ;;  %v13937_v44 = vpop.f32.mrb[216].mxu0  ;;  %6951 = vmatprep.mubr.f32.mxu1 %v6355_v59  ;;  %9416 = vmatpush1.bf16.msra.mxu1 %v9415_v18  ;;  %v6575_v59 = vld [vmem:[#allocation10 + $0x5b8] sm:$0xff] }
 0xe7f   : > { %14667 = vst [vmem:[#allocation65_spill] sm:$0xff] %v13937_v44  ;;  %v13941_v54 = vpop.f32.mrb[153].mxu1  ;;  %v13943_v19 = vpop.f32.mrb[217].mxu0  ;;  %9418 = vmatprep.subr.bf16.mxu1 %v9417_v61  ;;  %v6573_v44 = vld [vmem:[#allocation10 + $0x5a8] sm:$0xff] }
 0xe80   : > { %14668 = vst [vmem:[#allocation69_spill] sm:$0xff] %v13943_v19  ;;  %v9425_v42 = vpack.c.bf16 %v6575_v59, %v6573_v44  ;;  %v5934_v19 = vadd.f32 %v13774_v33, %v13777_v15  ;;  %v5932_v44 = vadd.f32 %v13770_v27, %v13783_v46 }
 0xe81   : > { %6952 = vmatmul.mubr.f32.gmra.mrb[182].mxu1 %v6354_v32  ;;  %v6371_v32 = vmax.f32 %v5928_v62, 0.0  ;;  %v5598_v62 = vsub.s32 4, %v14649_v7 }
 0xe82   : > { %v13947_v18 = vpop.f32.mrb[154].mxu1  ;;  %v13949_v36 = vpop.f32.mrb[218].mxu0  ;;  %6957 = vmatprep.mubr.f32.mxu1 %v6363_v48  ;;  %9420 = vmatpush1.bf16.msra.mxu1 %v9419_v41  ;;  %v5602_v48 = vsub.s32 5, %v14649_v7  ;;  %v6577_v41 = vld [vmem:[#allocation10 + $0x5c8] sm:$0xff]  ;;  %v6379_v5 = vmax.f32 %v5934_v19, 0.0 }
 0xe83   : > { %14669 = vst [vmem:[#allocation68_spill] sm:$0xff] %v13949_v36  ;;  %v13953_v61 = vpop.f32.mrb[155].mxu1  ;;  %v13955_v34 = vpop.f32.mrb[219].mxu0  ;;  %9422 = vmatprep.subr.bf16.mxu1 %v9421_v17  ;;  %v6370_v17 = vmax.f32 %v5926_v1, 0.0  ;;  %v9429_v36 = vpack.c.bf16 %v6579_v58, %v6577_v41  ;;  %v6581_v1 = vld [vmem:[#allocation10 + $0x5e8] sm:$0xff]  ;;  %v6378_v41 = vmax.f32 %v5932_v44, 0.0 }
 0xe84   : > { %14670 = vst [vmem:[#allocation72_spill] sm:$0xff] %v13955_v34  ;;  %v6578_v34 = vld [vmem:[#allocation10 + $0x5d0] sm:$0xff] }
 0xe85   : > { %6958 = vmatmul.mubr.f32.gmra.mrb[184].mxu1 %v6362_v12  ;;  %v6576_v12 = vld [vmem:[#allocation10 + $0x5c0] sm:$0xff] }
 0xe86   : > { %v13960_v49 = vpop.f32.mrb[156].mxu1  ;;  %v13962_v31 = vpop.f32.mrb[220].mxu0  ;;  %6963 = vmatprep.mubr.f32.mxu1 %v6371_v32  ;;  %9424 = vmatpush1.bf16.msra.mxu1 %v9423_v55  ;;  %v5940_v32 = vadd.f32 %v13786_v60, %v13777_v15  ;;  %v13976_v55 = vld [vmem:[%s14646_s27] sm:$0xff]  ;;  %v9431_v19 = vpack.c.bf16 %v6578_v34, %v6576_v12  ;;  %v5938_v15 = vadd.f32 %v13780_v13, %v13783_v46  ;;  %v6585_v34 = vld [vmem:[#allocation10 + $0x608] sm:$0xff]  ;;  %v6586_v12 = vld [vmem:[#allocation10 + $0x610] sm:$0xff] }
 0xe87   : > { %14671 = vst [vmem:[#allocation71_spill] sm:$0xff] %v13962_v31  ;;  %v13967_v59 = vpop.f32.mrb[157].mxu1  ;;  %v13969_v33 = vpop.f32.mrb[221].mxu0  ;;  %9426 = vmatprep.subr.bf16.mxu1 %v9425_v42  ;;  %v13979_v27 = vrot.slane %v13976_v55, %v5602_v48  ;;  %v13988_v60 = vrot.slane %v13976_v55, %v5598_v62  ;;  %v6580_v31 = vld [vmem:[#allocation10 + $0x5e0] sm:$0xff] }
 0xe88   : > { %14672 = vst [vmem:[#allocation75_spill] sm:$0xff] %v13969_v33  ;;  %v6582_v33 = vld [vmem:[#allocation10 + $0x5f0] sm:$0xff]  ;;  %v6387_v51 = vmax.f32 %v5940_v32, 0.0  ;;  %v6386_v46 = vmax.f32 %v5938_v15, 0.0 }
 0xe89   : > { %6964 = vmatmul.mubr.f32.gmra.mrb[186].mxu1 %v6370_v17  ;;  %v9433_v17 = vpack.c.bf16 %v6583_v4, %v6581_v1  ;;  %v9435_v13 = vpack.c.bf16 %v6582_v33, %v6580_v31  ;;  %v6009_v44 = vadd.f32 %v13791_v43, %v13988_v60  ;;  %v6017_v32 = vadd.f32 %v13809_v50, %v13979_v27  ;;  %v6589_v4 = vld [vmem:[#allocation10 + $0x628] sm:$0xff]  ;;  %v6588_v33 = vld [vmem:[#allocation10 + $0x620] sm:$0xff]  ;;  %v6595_v50 = vld [vmem:[#allocation10 + $0x658] sm:$0xff] }
 0xe8a   : > { %v13981_v52 = vpop.f32.mrb[158].mxu1  ;;  %v13983_v42 = vpop.f32.mrb[222].mxu0  ;;  %6969 = vmatprep.mubr.f32.mxu1 %v6379_v5  ;;  %9428 = vmatpush1.bf16.msra.mxu1 %v9427_v28  ;;  %v6011_v5 = vadd.f32 %v13797_v6, %v13979_v27  ;;  %v6587_v28 = vld [vmem:[#allocation10 + $0x618] sm:$0xff]  ;;  %v6015_v31 = vadd.f32 %v13803_v20, %v13988_v60 }
 0xe8b   : > { %v13990_v58 = vpop.f32.mrb[159].mxu1  ;;  %v13992_v48 = vpop.f32.mrb[223].mxu0  ;;  %9430 = vmatprep.subr.bf16.mxu1 %v9429_v36  ;;  %v9437_v62 = vpack.c.bf16 %v6587_v28, %v6585_v34  ;;  %v6584_v36 = vld [vmem:[#allocation10 + $0x600] sm:$0xff]  ;;  %v6591_v6 = vld [vmem:[#allocation10 + $0x638] sm:$0xff]  ;;  %v6277_v15 = vmax.f32 %v6017_v32, 0.0 }
 0xe8c   : > { %v6269_v1 = vmax.f32 %v6011_v5, 0.0  ;;  %v9441_v43 = vpack.c.bf16 %v6591_v6, %v6589_v4  ;;  %v6593_v5 = vld [vmem:[#allocation10 + $0x648] sm:$0xff]  ;;  %v6276_v28 = vmax.f32 %v6015_v31, 0.0  ;;  %v6027_v4 = vadd.f32 %v13827_v29, %v13988_v60  ;;  %v6596_v6 = vld [vmem:[#allocation10 + $0x660] sm:$0xff] }
 0xe8d   : > { %6970 = vmatmul.mubr.f32.gmra.mrb[188].mxu1 %v6378_v41  ;;  %v6590_v41 = vld [vmem:[#allocation10 + $0x630] sm:$0xff]  ;;  %v9445_v20 = vpack.c.bf16 %v6595_v50, %v6593_v5  ;;  %v6035_v31 = vadd.f32 %v13845_v57, %v13979_v27  ;;  %v6607_v57 = vld [vmem:[#allocation10 + $0x6b8] sm:$0xff] }
 0xe8e   : > { %6975 = vmatprep.mubr.f32.mxu1 %v6387_v51  ;;  %9432 = vmatpush1.bf16.msra.mxu1 %v9431_v19  ;;  %v9439_v51 = vpack.c.bf16 %v6586_v12, %v6584_v36  ;;  %v6268_v19 = vmax.f32 %v6009_v44, 0.0  ;;  %v9443_v34 = vpack.c.bf16 %v6590_v41, %v6588_v33  ;;  %v6594_v44 = vld [vmem:[#allocation10 + $0x650] sm:$0xff]  ;;  %v6029_v36 = vadd.f32 %v13833_v9, %v13979_v27  ;;  %v6597_v12 = vld [vmem:[#allocation10 + $0x668] sm:$0xff]  ;;  %v6603_v9 = vld [vmem:[#allocation10 + $0x698] sm:$0xff] }
 0xe8f   : > { %9434 = vmatprep.subr.bf16.mxu1 %v9433_v17  ;;  %v6023_v17 = vadd.f32 %v13821_v21, %v13979_v27  ;;  %v6599_v21 = vld [vmem:[#allocation10 + $0x678] sm:$0xff]  ;;  %v6292_v41 = vmax.f32 %v6027_v4, 0.0  ;;  %v6602_v5 = vld [vmem:[#allocation10 + $0x690] sm:$0xff]  ;;  %v6301_v50 = vmax.f32 %v6035_v31, 0.0  ;;  %v6045_v4 = vadd.f32 %v13863_v26, %v13988_v60  ;;  %v6613_v31 = vld [vmem:[#allocation10 + $0x6e8] sm:$0xff] }
 0xe91   : > { %6976 = vmatmul.mubr.f32.gmra.mrb[190].mxu1 %v6386_v46  ;;  %v6592_v46 = vld [vmem:[#allocation10 + $0x640] sm:$0xff] }
 0xe92   : > { %9436 = vmatpush1.bf16.msra.mxu1 %v9435_v13  ;;  %7046 = vmatprep.mubr.f32.mxu1 %v6269_v1  ;;  %v6021_v13 = vadd.f32 %v13815_v39, %v13988_v60  ;;  %v9447_v1 = vpack.c.bf16 %v6594_v44, %v6592_v46  ;;  %v9449_v39 = vpack.c.bf16 %v6599_v21, %v6597_v12  ;;  %v6604_v44 = vld [vmem:[#allocation10 + $0x6a0] sm:$0xff]  ;;  %v6609_v21 = vld [vmem:[#allocation10 + $0x6c8] sm:$0xff] }
 0xe93   : > { %9438 = vmatprep.subr.bf16.mxu1 %v9437_v62  ;;  %v6285_v62 = vmax.f32 %v6023_v17, 0.0  ;;  %v6600_v17 = vld [vmem:[#allocation10 + $0x680] sm:$0xff]  ;;  %v6039_v46 = vadd.f32 %v13851_v47, %v13988_v60  ;;  %v6047_v12 = vadd.f32 %v13869_v63, %v13979_v27  ;;  %v6615_v63 = vld [vmem:[#allocation10 + $0x6f8] sm:$0xff] }
 0xe94   : > { %v6284_v32 = vmax.f32 %v6021_v13, 0.0  ;;  %v9455_v13 = vpack.c.bf16 %v6602_v5, %v6600_v17  ;;  %v9465_v26 = vpack.c.bf16 %v6615_v63, %v6613_v31  ;;  %v6059_v17 = vadd.f32 %v13893_v45, %v13979_v27  ;;  %v6617_v5 = vld [vmem:[#allocation10 + $0x708] sm:$0xff]  ;;  %v6623_v45 = vld [vmem:[#allocation10 + $0x738] sm:$0xff] }
 0xe95   : > { %7047 = vmatmul.mubr.f32.vlgmr.msra.gmra.mrb[160].mxu1 %v6268_v19  ;;  %v6293_v19 = vmax.f32 %v6029_v36, 0.0  ;;  %v6077_v31 = vadd.f32 %v13929_v16, %v13979_v27  ;;  %v6629_v63 = vld [vmem:[#allocation10 + $0x768] sm:$0xff]  ;;  %v6635_v16 = vld [vmem:[#allocation10 + $0x798] sm:$0xff] }
 0xe96   : > { %7052 = vmatprep.mubr.f32.mxu1 %v6277_v15  ;;  %9440 = vmatpush1.bf16.msra.mxu1 %v9439_v51  ;;  %v6598_v51 = vld [vmem:[#allocation10 + $0x670] sm:$0xff]  ;;  %v6033_v15 = vadd.f32 %v13839_v40, %v13988_v60 }
 0xe97   : > { %9442 = vmatprep.subr.bf16.mxu1 %v9441_v43  ;;  %v6601_v43 = vld [vmem:[#allocation10 + $0x688] sm:$0xff]  ;;  %v9451_v33 = vpack.c.bf16 %v6598_v51, %v6596_v6  ;;  %v6610_v6 = vld [vmem:[#allocation10 + $0x6d0] sm:$0xff]  ;;  %v6317_v51 = vmax.f32 %v6047_v12, 0.0  ;;  %v6620_v12 = vld [vmem:[#allocation10 + $0x720] sm:$0xff] }
 0xe98   : > { %v9453_v29 = vpack.c.bf16 %v6603_v9, %v6601_v43  ;;  %v6316_v9 = vmax.f32 %v6045_v4, 0.0 }
 0xe99   : > { %7053 = vmatmul.mubr.f32.gmra.mrb[162].mxu1 %v6276_v28  ;;  %v6605_v28 = vld [vmem:[#allocation10 + $0x6a8] sm:$0xff] }
 0xe9a   : > { %7058 = vmatprep.mubr.f32.mxu1 %v6285_v62  ;;  %9444 = vmatpush1.bf16.msra.mxu1 %v9443_v34  ;;  %v6041_v34 = vadd.f32 %v13857_v22, %v13979_v27  ;;  %v9457_v40 = vpack.c.bf16 %v6607_v57, %v6605_v28  ;;  %v6606_v62 = vld [vmem:[#allocation10 + $0x6b0] sm:$0xff]  ;;  %v6611_v22 = vld [vmem:[#allocation10 + $0x6d8] sm:$0xff]  ;;  %v6057_v28 = vadd.f32 %v13887_v35, %v13988_v60  ;;  %v6616_v57 = vld [vmem:[#allocation10 + $0x700] sm:$0xff] }
 0xe9b   : > { %9446 = vmatprep.subr.bf16.mxu1 %v9445_v20  ;;  %v6300_v20 = vmax.f32 %v6033_v15, 0.0  ;;  %v9461_v47 = vpack.c.bf16 %v6611_v22, %v6609_v21  ;;  %v6614_v15 = vld [vmem:[#allocation10 + $0x6f0] sm:$0xff] }
 0xe9c   : > { %v6309_v36 = vmax.f32 %v6041_v34, 0.0  ;;  %v6622_v21 = vld [vmem:[#allocation10 + $0x730] sm:$0xff] }
 0xe9d   : > { %7059 = vmatmul.mubr.f32.gmra.mrb[164].mxu1 %v6284_v32  ;;  %v6308_v32 = vmax.f32 %v6039_v46, 0.0  ;;  %v6065_v46 = vadd.f32 %v13905_v10, %v13979_v27  ;;  %v6627_v10 = vld [vmem:[#allocation10 + $0x758] sm:$0xff]  ;;  %v9475_v4 = vpack.c.bf16 %v6622_v21, %v6620_v12 }
 0xe9e   : > { %7064 = vmatprep.mubr.f32.mxu1 %v6293_v19  ;;  %9448 = vmatpush1.bf16.msra.mxu1 %v9447_v1  ;;  %v9459_v1 = vpack.c.bf16 %v6606_v62, %v6604_v44  ;;  %v6053_v19 = vadd.f32 %v13881_v23, %v13979_v27  ;;  %v6619_v23 = vld [vmem:[#allocation10 + $0x718] sm:$0xff]  ;;  %v6332_v62 = vmax.f32 %v6057_v28, 0.0  ;;  %v6634_v28 = vld [vmem:[#allocation10 + $0x790] sm:$0xff] }
 0xe9f   : > { %9450 = vmatprep.subr.bf16.mxu1 %v9449_v39  ;;  %v6608_v39 = vld [vmem:[#allocation10 + $0x6c0] sm:$0xff]  ;;  %v6341_v22 = vmax.f32 %v6065_v46, 0.0  ;;  %v6643_v12 = vld [vmem:[#allocation10 + $0x7d8] sm:$0xff] }
 0xea0   : > { %v9463_v43 = vpack.c.bf16 %v6610_v6, %v6608_v39  ;;  %v6069_v39 = vadd.f32 %v13911_v24, %v13988_v60  ;;  %v6624_v6 = vld [vmem:[#allocation10 + $0x740] sm:$0xff] }
 0xea1   : > { %7065 = vmatmul.mubr.f32.gmra.mrb[166].mxu1 %v6292_v41  ;;  %v6612_v41 = vld [vmem:[#allocation10 + $0x6e0] sm:$0xff] }
 0xea2   : > { %7070 = vmatprep.mubr.f32.mxu1 %v6301_v50  ;;  %9452 = vmatpush1.bf16.msra.mxu1 %v9451_v33  ;;  %v6051_v33 = vadd.f32 %v13875_v2, %v13988_v60  ;;  %v9467_v50 = vpack.c.bf16 %v6614_v15, %v6612_v41  ;;  %v9469_v2 = vpack.c.bf16 %v6619_v23, %v6617_v5  ;;  %v6630_v41 = vld [vmem:[#allocation10 + $0x770] sm:$0xff]  ;;  %v6357_v15 = vmax.f32 %v6077_v31, 0.0 }
 0xea3   : > { %9454 = vmatprep.subr.bf16.mxu1 %v9453_v29  ;;  %v6325_v29 = vmax.f32 %v6053_v19, 0.0 }
 0xea4   : > { %v6324_v34 = vmax.f32 %v6051_v33, 0.0  ;;  %v6075_v33 = vadd.f32 %v13923_v38, %v13988_v60 }
 0xea5   : > { %7071 = vmatmul.mubr.f32.gmra.mrb[168].mxu1 %v6300_v20  ;;  %v6333_v20 = vmax.f32 %v6059_v17, 0.0  ;;  %v6633_v17 = vld [vmem:[#allocation10 + $0x788] sm:$0xff] }
 0xea6   : > { %7076 = vmatprep.mubr.f32.mxu1 %v6309_v36  ;;  %9456 = vmatpush1.bf16.msra.mxu1 %v9455_v13  ;;  %v6618_v13 = vld [vmem:[#allocation10 + $0x710] sm:$0xff]  ;;  %v6063_v36 = vadd.f32 %v13899_v56, %v13988_v60  ;;  %v6356_v23 = vmax.f32 %v6075_v33, 0.0  ;;  %v9485_v38 = vpack.c.bf16 %v6635_v16, %v6633_v17  ;;  %v14673_v17 = vld [vmem:[#allocation31_spill] sm:$0xff] }
 0xea7   : > { %9458 = vmatprep.subr.bf16.mxu1 %v9457_v40  ;;  %v6621_v40 = vld [vmem:[#allocation10 + $0x728] sm:$0xff]  ;;  %v9471_v44 = vpack.c.bf16 %v6618_v13, %v6616_v57  ;;  %v6089_v57 = vadd.f32 %v13953_v61, %v13979_v27  ;;  %v6095_v61 = vadd.f32 %v13967_v59, %v13979_v27 }
 0xea8   : > { %v9473_v35 = vpack.c.bf16 %v6623_v45, %v6621_v40  ;;  %v6637_v13 = vld [vmem:[#allocation10 + $0x7a8] sm:$0xff]  ;;  %v6087_v40 = vadd.f32 %v13947_v18, %v13988_v60  ;;  %v6636_v45 = vld [vmem:[#allocation10 + $0x7a0] sm:$0xff]  ;;  %v6093_v18 = vadd.f32 %v13960_v49, %v13988_v60 }
 0xea9   : > { %7077 = vmatmul.mubr.f32.gmra.mrb[170].mxu1 %v6308_v32  ;;  %v6625_v32 = vld [vmem:[#allocation10 + $0x748] sm:$0xff]  ;;  %v6381_v59 = vmax.f32 %v6095_v61, 0.0 }
 0xeaa   : > { %7082 = vmatprep.mubr.f32.mxu1 %v6317_v51  ;;  %9460 = vmatpush1.bf16.msra.mxu1 %v9459_v1  ;;  %v6071_v1 = vadd.f32 %v13917_v0, %v13979_v27  ;;  %v9477_v56 = vpack.c.bf16 %v6627_v10, %v6625_v32  ;;  %v6626_v51 = vld [vmem:[#allocation10 + $0x750] sm:$0xff]  ;;  %v6631_v0 = vld [vmem:[#allocation10 + $0x778] sm:$0xff]  ;;  %v6640_v10 = vld [vmem:[#allocation10 + $0x7c0] sm:$0xff]  ;;  %v6380_v49 = vmax.f32 %v6093_v18, 0.0 }
 0xeab   : > { %9462 = vmatprep.subr.bf16.mxu1 %v9461_v47  ;;  %v6340_v47 = vmax.f32 %v6063_v36, 0.0  ;;  %v9481_v24 = vpack.c.bf16 %v6631_v0, %v6629_v63  ;;  %v6373_v36 = vmax.f32 %v6089_v57, 0.0  ;;  %v6644_v63 = vld [vmem:[#allocation10 + $0x7e0] sm:$0xff]  ;;  %v6646_v0 = vld [vmem:[#allocation10 + $0x7f0] sm:$0xff]  ;;  %v14681_v61 = vld [vmem:[#allocation87_spill] sm:$0xff] }
 0xeac   : > { %v6349_v19 = vmax.f32 %v6071_v1, 0.0  ;;  %v6372_v1 = vmax.f32 %v6087_v40, 0.0  ;;  %v14679_v40 = vld [vmem:[#allocation36_spill] sm:$0xff]  ;;  %v14683_v18 = vld [vmem:[#allocation53_spill] sm:$0xff] }
 0xead   : > { %7083 = vmatmul.mubr.f32.gmra.mrb[172].mxu1 %v6316_v9  ;;  %v6348_v9 = vmax.f32 %v6069_v39, 0.0  ;;  %v6101_v39 = vadd.f32 %v13990_v58, %v13979_v27 }
 0xeae   : > { %7088 = vmatprep.mubr.f32.mxu1 %v6325_v29  ;;  %9464 = vmatpush1.bf16.msra.mxu1 %v9463_v43  ;;  %v9479_v43 = vpack.c.bf16 %v6626_v51, %v6624_v6  ;;  %v6083_v29 = vadd.f32 %v13941_v54, %v13979_v27  ;;  %v6639_v54 = vld [vmem:[#allocation10 + $0x7b8] sm:$0xff] }
 0xeaf   : > { %9466 = vmatprep.subr.bf16.mxu1 %v9465_v26  ;;  %v6628_v26 = vld [vmem:[#allocation10 + $0x760] sm:$0xff]  ;;  %v6647_v6 = vld [vmem:[#allocation10 + $0x7f8] sm:$0xff]  ;;  %v6389_v58 = vmax.f32 %v6101_v39, 0.0 }
 0xeb0   : > { %v9483_v5 = vpack.c.bf16 %v6630_v41, %v6628_v26 }
 0xeb1   : > { %7089 = vmatmul.mubr.f32.gmra.mrb[174].mxu1 %v6324_v34  ;;  %v6632_v34 = vld [vmem:[#allocation10 + $0x780] sm:$0xff] }
 0xeb2   : > { %7094 = vmatprep.mubr.f32.mxu1 %v6333_v20  ;;  %9468 = vmatpush1.bf16.msra.mxu1 %v9467_v50  ;;  %v6081_v50 = vadd.f32 %v13935_v30, %v13988_v60  ;;  %v9487_v20 = vpack.c.bf16 %v6634_v28, %v6632_v34  ;;  %v9489_v30 = vpack.c.bf16 %v6639_v54, %v6637_v13  ;;  %v14676_v34 = vld [vmem:[#allocation35_spill] sm:$0xff]  ;;  %v14678_v54 = vld [vmem:[#allocation86_spill] sm:$0xff] }
 0xeb3   : > { %9470 = vmatprep.subr.bf16.mxu1 %v9469_v2  ;;  %v6365_v2 = vmax.f32 %v6083_v29, 0.0 }
 0xeb4   : > { %v6364_v46 = vmax.f32 %v6081_v50, 0.0  ;;  %v14675_v50 = vld [vmem:[#allocation32_spill] sm:$0xff] }
 0xeb5   : > { %7095 = vmatmul.mubr.f32.gmra.mrb[176].mxu1 %v6332_v62  ;;  %v5610_v62 = vsub.s32 7, %v14649_v7 }
 0xeb6   : > { %7100 = vmatprep.mubr.f32.mxu1 %v6341_v22  ;;  %9472 = vmatpush1.bf16.msra.mxu1 %v9471_v44  ;;  %v6638_v44 = vld [vmem:[#allocation10 + $0x7b0] sm:$0xff]  ;;  %v5606_v22 = vsub.s32 6, %v14649_v7 }
 0xeb7   : > { %9474 = vmatprep.subr.bf16.mxu1 %v9473_v35  ;;  %v6641_v35 = vld [vmem:[#allocation10 + $0x7c8] sm:$0xff]  ;;  %v9491_v21 = vpack.c.bf16 %v6638_v44, %v6636_v45  ;;  %v14680_v44 = vld [vmem:[#allocation54_spill] sm:$0xff] }
 0xeb8   : > { %v9493_v32 = vpack.c.bf16 %v6643_v12, %v6641_v35  ;;  %v14062_v51 = vrot.slane %v13976_v55, %v5606_v22 }
 0xeb9   : > { %7101 = vmatmul.mubr.f32.gmra.mrb[178].mxu1 %v6340_v47  ;;  %v14057_v47 = vrot.slane %v13976_v55, %v5610_v62 }
 0xeba   : > { %7106 = vmatprep.mubr.f32.mxu1 %v6349_v19  ;;  %9476 = vmatpush1.bf16.msra.mxu1 %v9475_v4  ;;  %v6642_v4 = vld [vmem:[#allocation10 + $0x7d0] sm:$0xff]  ;;  %v6099_v19 = vadd.f32 %v13981_v52, %v13988_v60  ;;  %v6170_v55 = vadd.f32 %v13793_v25, %v14062_v51  ;;  %v6182_v41 = vadd.f32 %v13817_v3, %v14062_v51 }
 0xebb   : > { %9478 = vmatprep.subr.bf16.mxu1 %v9477_v56  ;;  %v6645_v56 = vld [vmem:[#allocation10 + $0x7e8] sm:$0xff]  ;;  %v9495_v7 = vpack.c.bf16 %v6642_v4, %v6640_v10  ;;  %v6172_v27 = vadd.f32 %v13799_v14, %v14057_v47  ;;  %v6178_v52 = vadd.f32 %v13811_v37, %v14057_v47  ;;  %v6176_v14 = vadd.f32 %v13805_v53, %v14062_v51  ;;  %v14684_v4 = vld [vmem:[#allocation60_spill] sm:$0xff] }
 0xebc   : > { %v9497_v31 = vpack.c.bf16 %v6647_v6, %v6645_v56  ;;  %v6270_v60 = vmax.f32 %v6170_v55, 0.0  ;;  %v6184_v26 = vadd.f32 %v13823_v8, %v14057_v47  ;;  %v6190_v37 = vadd.f32 %v13835_v11, %v14057_v47  ;;  %v14685_v56 = vld [vmem:[#allocation56_spill] sm:$0xff] }
 0xebd   : > { %7107 = vmatmul.mubr.f32.gmra.mrb[180].mxu1 %v6348_v9  ;;  %v6388_v9 = vmax.f32 %v6099_v19, 0.0  ;;  %v6271_v33 = vmax.f32 %v6172_v27, 0.0  ;;  %v6278_v25 = vmax.f32 %v6176_v14, 0.0  ;;  %v6286_v29 = vmax.f32 %v6182_v41, 0.0 }
 0xebe   : > { %7112 = vmatprep.mubr.f32.mxu1 %v6357_v15  ;;  %9480 = vmatpush1.bf16.msra.mxu1 %v9479_v43  ;;  %v9499_v43 = vpack.c.bf16 %v6646_v0, %v6644_v63  ;;  %v6287_v15 = vmax.f32 %v6184_v26, 0.0  ;;  %v6188_v53 = vadd.f32 %v14673_v17, %v14062_v51  ;;  %v6295_v16 = vmax.f32 %v6190_v37, 0.0  ;;  %v14687_v63 = vld [vmem:[#allocation59_spill] sm:$0xff]  ;;  %v14691_v26 = vld [vmem:[#allocation65_spill] sm:$0xff]  ;;  %v14693_v17 = vld [vmem:[#allocation68_spill] sm:$0xff] }
 0xebf   : > { %9482 = vmatprep.subr.bf16.mxu1 %v9481_v24  ;;  %v6279_v24 = vmax.f32 %v6178_v52, 0.0  ;;  %v6194_v3 = vadd.f32 %v14675_v50, %v14062_v51  ;;  %v6202_v11 = vadd.f32 %v14676_v34, %v14057_v47  ;;  %v6214_v62 = vadd.f32 %v14680_v44, %v14057_v47  ;;  %v14695_v50 = vld [vmem:[#allocation71_spill] sm:$0xff] }
 0xec0   : > { %v6212_v35 = vadd.f32 %v14681_v61, %v14062_v51  ;;  %v6224_v6 = vadd.f32 %v14685_v56, %v14062_v51  ;;  %v6230_v0 = vadd.f32 %v14687_v63, %v14062_v51  ;;  %v6262_v34 = vadd.f32 %v13992_v48, %v14057_v47  ;;  %v14698_v48 = vld [vmem:[#allocation19_spill] sm:$0xff] }
 0xec1   : > { %7113 = vmatmul.mubr.f32.gmra.mrb[182].mxu1 %v6356_v23  ;;  %v6294_v23 = vmax.f32 %v6188_v53, 0.0  ;;  %v6302_v28 = vmax.f32 %v6194_v3, 0.0  ;;  %v6311_v13 = vmax.f32 %v6202_v11, 0.0  ;;  %v6327_v12 = vmax.f32 %v6214_v62, 0.0  ;;  %v14700_v44 = vld [vmem:[#allocation79_spill] sm:$0xff] }
 0xec2   : > { %7118 = vmatprep.mubr.f32.mxu1 %v6365_v2  ;;  %9484 = vmatpush1.bf16.msra.mxu1 %v9483_v5  ;;  %v14674_v5 = vld [vmem:[#allocation33_spill] sm:$0xff]  ;;  %v14677_v2 = vld [vmem:[#allocation34_spill] sm:$0xff]  ;;  %v6350_v55 = vmax.f32 %v6230_v0, 0.0  ;;  %v6248_v53 = vadd.f32 %v14693_v17, %v14062_v51  ;;  %v6254_v3 = vadd.f32 %v14695_v50, %v14062_v51  ;;  %v14705_v0 = vld [vmem:[#allocation48_spill] sm:$0xff] }
 0xec3   : > { %9486 = vmatprep.subr.bf16.mxu1 %v9485_v38  ;;  %v6196_v8 = vadd.f32 %v14674_v5, %v14057_v47  ;;  %v6200_v57 = vadd.f32 %v14677_v2, %v14062_v51  ;;  %v14694_v5 = vld [vmem:[#allocation75_spill] sm:$0xff]  ;;  %v6391_v2 = vmax.f32 %v6262_v34, 0.0  ;;  %v14712_v34 = vld [vmem:[#allocation50_spill] sm:$0xff] }
 0xec4   : > { %v6382_v11 = vmax.f32 %v6254_v3, 0.0  ;;  %v14711_v3 = vld [vmem:[#allocation51_spill] sm:$0xff] }
 0xec5   : > { %7119 = vmatmul.mubr.f32.gmra.mrb[184].mxu1 %v6364_v46  ;;  %v6303_v38 = vmax.f32 %v6196_v8, 0.0  ;;  %v6310_v46 = vmax.f32 %v6200_v57, 0.0  ;;  %v6256_v8 = vadd.f32 %v14694_v5, %v14057_v47 }
 0xec6   : > { %7124 = vmatprep.mubr.f32.mxu1 %v6373_v36  ;;  %9488 = vmatpush1.bf16.msra.mxu1 %v9487_v20  ;;  %v6208_v20 = vadd.f32 %v14678_v54, %v14057_v47  ;;  %v14697_v54 = vld [vmem:[#allocation20_spill] sm:$0xff] }
 0xec7   : > { %9490 = vmatprep.subr.bf16.mxu1 %v9489_v30  ;;  %v6206_v30 = vadd.f32 %v14679_v40, %v14062_v51 }
 0xec8   : > { %v6319_v45 = vmax.f32 %v6208_v20, 0.0 }
 0xec9   : > { %7125 = vmatmul.mubr.f32.gmra.mrb[186].mxu1 %v6372_v1  ;;  %v6318_v36 = vmax.f32 %v6206_v30, 0.0  ;;  %v6326_v1 = vmax.f32 %v6212_v35, 0.0  ;;  %v14699_v30 = vld [vmem:[#allocation76_spill] sm:$0xff] }
 0xeca   : > { %7130 = vmatprep.mubr.f32.mxu1 %v6381_v59  ;;  %9492 = vmatpush1.bf16.msra.mxu1 %v9491_v21  ;;  %v14682_v21 = vld [vmem:[#allocation57_spill] sm:$0xff]  ;;  %v6226_v59 = vadd.f32 %v14684_v4, %v14057_v47 }
 0xecb   : > { %9494 = vmatprep.subr.bf16.mxu1 %v9493_v32  ;;  %v6220_v22 = vadd.f32 %v14682_v21, %v14057_v47  ;;  %v6218_v32 = vadd.f32 %v14683_v18, %v14062_v51  ;;  %v14701_v21 = vld [vmem:[#allocation82_spill] sm:$0xff] }
 0xecd   : > { %7131 = vmatmul.mubr.f32.gmra.mrb[188].mxu1 %v6380_v49  ;;  %v6335_v10 = vmax.f32 %v6220_v22, 0.0  ;;  %v6334_v39 = vmax.f32 %v6218_v32, 0.0  ;;  %v14686_v49 = vld [vmem:[#allocation63_spill] sm:$0xff] }
 0xece   : > { %7136 = vmatprep.mubr.f32.mxu1 %v6389_v58  ;;  %9496 = vmatpush1.bf16.msra.mxu1 %v9495_v7  ;;  %v6343_v7 = vmax.f32 %v6226_v59, 0.0  ;;  %v6232_v19 = vadd.f32 %v14686_v49, %v14057_v47  ;;  %v14688_v58 = vld [vmem:[#allocation66_spill] sm:$0xff] }
 0xecf   : > { %9498 = vmatprep.subr.bf16.mxu1 %v9497_v31  ;;  %v6342_v31 = vmax.f32 %v6224_v6, 0.0  ;;  %v14704_v6 = vld [vmem:[#allocation37_spill] sm:$0xff] }
 0xed0   : > { %v6351_v27 = vmax.f32 %v6232_v19, 0.0 }
 0xed1   : > { %7137 = vmatmul.mubr.f32.gmra.mrb[190].mxu1 %v6388_v9  ;;  %v14689_v9 = vld [vmem:[#allocation62_spill] sm:$0xff] }
 0xed2   : > { %9500 = vmatpush1.bf16.msra.mxu1 %v9499_v43  ;;  %7207 = vmatprep.mubr.f32.mxu1 %v6271_v33  ;;  %v6238_v43 = vadd.f32 %v14688_v58, %v14057_v47  ;;  %v6236_v33 = vadd.f32 %v14689_v9, %v14062_v51  ;;  %v14706_v58 = vld [vmem:[#allocation47_spill] sm:$0xff] }
 0xed4   : > { %v6359_v52 = vmax.f32 %v6238_v43, 0.0 }
 0xed5   : > { %7208 = vmatmul.mubr.f32.vlgmr.msra.gmra.mrb[160].mxu1 %v6270_v60  ;;  %v14690_v60 = vld [vmem:[#allocation69_spill] sm:$0xff] }
 0xed6   : > { %7213 = vmatprep.mubr.f32.mxu1 %v6279_v24  ;;  %v6244_v14 = vadd.f32 %v14690_v60, %v14057_v47  ;;  %v6358_v24 = vmax.f32 %v6236_v33, 0.0  ;;  %v14707_v60 = vld [vmem:[#allocation42_spill] sm:$0xff] }
 0xed8   : > { %v6367_v41 = vmax.f32 %v6244_v14, 0.0 }
 0xed9   : > { %7214 = vmatmul.mubr.f32.gmra.mrb[162].mxu1 %v6278_v25  ;;  %v6242_v25 = vadd.f32 %v14691_v26, %v14062_v51 }
 0xeda   : > { %7219 = vmatprep.mubr.f32.mxu1 %v6287_v15  ;;  %v14692_v15 = vld [vmem:[#allocation72_spill] sm:$0xff] }
 0xedb   : > { %v6250_v37 = vadd.f32 %v14692_v15, %v14057_v47 }
 0xedd   : > { %7220 = vmatmul.mubr.f32.gmra.mrb[164].mxu1 %v6286_v29  ;;  %v6366_v29 = vmax.f32 %v6242_v25, 0.0 }
 0xede   : > { %7225 = vmatprep.mubr.f32.mxu1 %v6295_v16  ;;  %v6375_v16 = vmax.f32 %v6250_v37, 0.0 }
 0xee1   : > { %7226 = vmatmul.mubr.f32.gmra.mrb[166].mxu1 %v6294_v23  ;;  %v6374_v23 = vmax.f32 %v6248_v53, 0.0  ;;  %v14710_v53 = vld [vmem:[#allocation44_spill] sm:$0xff] }
 0xee2   : > { %7231 = vmatprep.mubr.f32.mxu1 %v6303_v38  ;;  %v6383_v38 = vmax.f32 %v6256_v8, 0.0 }
 0xee5   : > { %7232 = vmatmul.mubr.f32.gmra.mrb[168].mxu1 %v6302_v28  ;;  %v6260_v28 = vadd.f32 %v13983_v42, %v14062_v51 }
 0xee6   : > { %7237 = vmatprep.mubr.f32.mxu1 %v6311_v13  ;;  %v6648_v13 = vld [vmem:[%s14696_s1] sm:$0x3] }
 0xee7   : > { %v6390_v57 = vmax.f32 %v6260_v28, 0.0  ;;  %v14134_v20 = vrot.slane %v6648_v13, %v14697_v54  ;;  %v14137_v47 = vrot.slane %v6648_v13, %v14698_v48  ;;  %v14713_v54 = vld [vmem:[#allocation40_spill] sm:$0xff] }
 0xee9   : > { %7238 = vmatmul.mubr.f32.gmra.mrb[170].mxu1 %v6310_v46 }
 0xeea   : > { %7243 = vmatprep.mubr.f32.mxu1 %v6319_v45 }
 0xeed   : > { %7244 = vmatmul.mubr.f32.gmra.mrb[172].mxu1 %v6318_v36 }
 0xeee   : > { %7249 = vmatprep.mubr.f32.mxu1 %v6327_v12 }
 0xef1   : > { %7250 = vmatmul.mubr.f32.gmra.mrb[174].mxu1 %v6326_v1  ;;  %v14702_v1 = vld [vmem:[#allocation85_spill] sm:$0xff] }
 0xef2   : > { %7255 = vmatprep.mubr.f32.mxu1 %v6335_v10 }
 0xef5   : > { %7256 = vmatmul.mubr.f32.gmra.mrb[176].mxu1 %v6334_v39  ;;  %v14703_v39 = vld [vmem:[#allocation39_spill] sm:$0xff] }
 0xef6   : > { %7261 = vmatprep.mubr.f32.mxu1 %v6343_v7 }
 0xef9   : > { %7262 = vmatmul.mubr.f32.gmra.mrb[178].mxu1 %v6342_v31 }
 0xefa   : > { %7267 = vmatprep.mubr.f32.mxu1 %v6351_v27 }
 0xefd   : > { %7268 = vmatmul.mubr.f32.gmra.mrb[180].mxu1 %v6350_v55 }
 0xefe   : > { %7273 = vmatprep.mubr.f32.mxu1 %v6359_v52 }
 0xf01   : > { %7274 = vmatmul.mubr.f32.gmra.mrb[182].mxu1 %v6358_v24  ;;  %v14708_v24 = vld [vmem:[#allocation41_spill] sm:$0xff] }
 0xf02   : > { %7279 = vmatprep.mubr.f32.mxu1 %v6367_v41 }
 0xf05   : > { %7280 = vmatmul.mubr.f32.gmra.mrb[184].mxu1 %v6366_v29  ;;  %v14709_v29 = vld [vmem:[#allocation45_spill] sm:$0xff] }
 0xf06   : > { %7285 = vmatprep.mubr.f32.mxu1 %v6375_v16 }
 0xf09   : > { %7286 = vmatmul.mubr.f32.gmra.mrb[186].mxu1 %v6374_v23 }
 0xf0a   : > { %7291 = vmatprep.mubr.f32.mxu1 %v6383_v38 }
 0xf0d   : > { %7292 = vmatmul.mubr.f32.gmra.mrb[188].mxu1 %v6382_v11 }
 0xf0e   : > { %7297 = vmatprep.mubr.f32.mxu1 %v6391_v2 }
 0xf11   : > { %7298 = vmatmul.mubr.f32.gmra.mrb[190].mxu1 %v6390_v57 }
 0xfa8   : > { %v7209_v46 = vpop.f32.mrb[160].mxu1 }
 0xfa9   : > { %v9501_v40 = vadd.f32 %v7209_v46, %v14134_v20  ;;  %v7211_v42 = vpop.f32.mrb[161].mxu1  ;;  %v14714_v46 = vld [vmem:[#allocation38_spill] sm:$0xff] }
 0xfaa   : > { %v9502_v51 = vadd.f32 %v7211_v42, %v14137_v47 }
 0xfab   : > { %v7304_v45 = vadd.f32 %v9501_v40, %v14699_v30 }
 0xfac   : > { %v7305_v62 = vadd.f32 %v9502_v51, %v14700_v44  ;;  %v7215_v36 = vpop.f32.mrb[162].mxu1  ;;  %v14715_v44 = vld [vmem:[#allocation43_spill] sm:$0xff] }
 0xfad   : > { %7336 = vst [vmem:[%s14145_s14] sm:$0xff] %v7304_v45  ;;  %v9503_v61 = vadd.f32 %v7215_v36, %v14134_v20  ;;  %v7217_v35 = vpop.f32.mrb[163].mxu1  ;;  %v14716_v36 = vld [vmem:[#allocation46_spill] sm:$0xff] }
 0xfae   : > { %7337 = vst [vmem:[%s14145_s14 + $0x8] sm:$0xff] %v7305_v62  ;;  %v9504_v12 = vadd.f32 %v7217_v35, %v14137_v47 }
 0xfaf   : > { %v7306_v22 = vadd.f32 %v9503_v61, %v14701_v21 }
 0xfb0   : > { %v7307_v18 = vadd.f32 %v9504_v12, %v14702_v1  ;;  %v7221_v32 = vpop.f32.mrb[164].mxu1  ;;  %v14717_v1 = vld [vmem:[#allocation49_spill] sm:$0xff] }
 0xfb1   : > { %7338 = vst [vmem:[%s14145_s14 + $0x10] sm:$0xff] %v7306_v22  ;;  %v9505_v10 = vadd.f32 %v7221_v32, %v14134_v20  ;;  %v7223_v4 = vpop.f32.mrb[165].mxu1  ;;  %v14718_v32 = vld [vmem:[#allocation52_spill] sm:$0xff] }
 0xfb2   : > { %7339 = vst [vmem:[%s14145_s14 + $0x18] sm:$0xff] %v7307_v18  ;;  %v9506_v59 = vadd.f32 %v7223_v4, %v14137_v47 }
 0xfb3   : > { %v7308_v56 = vadd.f32 %v9505_v10, %v14703_v39 }
 0xfb4   : > { %v7309_v7 = vadd.f32 %v9506_v59, %v14704_v6  ;;  %v7227_v49 = vpop.f32.mrb[166].mxu1  ;;  %v14719_v6 = vld [vmem:[#allocation55_spill] sm:$0xff] }
 0xfb5   : > { %7340 = vst [vmem:[%s14145_s14 + $0x20] sm:$0xff] %v7308_v56  ;;  %v9507_v19 = vadd.f32 %v7227_v49, %v14134_v20  ;;  %v7229_v31 = vpop.f32.mrb[167].mxu1  ;;  %v14720_v49 = vld [vmem:[#allocation58_spill] sm:$0xff] }
 0xfb6   : > { %7341 = vst [vmem:[%s14145_s14 + $0x28] sm:$0xff] %v7309_v7  ;;  %v9508_v63 = vadd.f32 %v7229_v31, %v14137_v47 }
 0xfb7   : > { %v7310_v27 = vadd.f32 %v9507_v19, %v14705_v0 }
 0xfb8   : > { %v7311_v43 = vadd.f32 %v9508_v63, %v14706_v58  ;;  %v7233_v55 = vpop.f32.mrb[168].mxu1  ;;  %v14721_v58 = vld [vmem:[#allocation61_spill] sm:$0xff] }
 0xfb9   : > { %7342 = vst [vmem:[%s14145_s14 + $0x30] sm:$0xff] %v7310_v27  ;;  %v9509_v9 = vadd.f32 %v7233_v55, %v14134_v20  ;;  %v7235_v33 = vpop.f32.mrb[169].mxu1  ;;  %v14722_v55 = vld [vmem:[#allocation21_spill] sm:$0xff] }
 0xfba   : > { %7343 = vst [vmem:[%s14145_s14 + $0x38] sm:$0xff] %v7311_v43  ;;  %v9510_v52 = vadd.f32 %v7235_v33, %v14137_v47 }
 0xfbb   : > { %v7312_v14 = vadd.f32 %v9509_v9, %v14707_v60 }
 0xfbc   : > { %v7313_v26 = vadd.f32 %v9510_v52, %v14708_v24  ;;  %v7239_v25 = vpop.f32.mrb[170].mxu1  ;;  %v14723_v24 = vld [vmem:[#allocation22_spill] sm:$0xff] }
 0xfbd   : > { %7344 = vst [vmem:[%s14145_s14 + $0x40] sm:$0xff] %v7312_v14  ;;  %v9511_v41 = vadd.f32 %v7239_v25, %v14134_v20  ;;  %v7241_v15 = vpop.f32.mrb[171].mxu1  ;;  %v14724_v25 = vld [vmem:[#allocation23_spill] sm:$0xff] }
 0xfbe   : > { %7345 = vst [vmem:[%s14145_s14 + $0x48] sm:$0xff] %v7313_v26  ;;  %v9512_v37 = vadd.f32 %v7241_v15, %v14137_v47 }
 0xfbf   : > { %v7314_v17 = vadd.f32 %v9511_v41, %v14709_v29 }
 0xfc0   : > { %v7315_v16 = vadd.f32 %v9512_v37, %v14710_v53  ;;  %v7245_v5 = vpop.f32.mrb[172].mxu1  ;;  %v14725_v53 = vld [vmem:[#allocation24_spill] sm:$0xff] }
 0xfc1   : > { %7346 = vst [vmem:[%s14145_s14 + $0x50] sm:$0xff] %v7314_v17  ;;  %v9513_v8 = vadd.f32 %v7245_v5, %v14134_v20  ;;  %v7247_v23 = vpop.f32.mrb[173].mxu1  ;;  %v14726_v5 = vld [vmem:[#allocation25_spill] sm:$0xff] }
 0xfc2   : > { %7347 = vst [vmem:[%s14145_s14 + $0x58] sm:$0xff] %v7315_v16  ;;  %v9514_v50 = vadd.f32 %v7247_v23, %v14137_v47 }
 0xfc3   : > { %v7316_v38 = vadd.f32 %v9513_v8, %v14711_v3 }
 0xfc4   : > { %v7317_v11 = vadd.f32 %v9514_v50, %v14712_v34  ;;  %v7251_v28 = vpop.f32.mrb[174].mxu1  ;;  %v14727_v34 = vld [vmem:[#allocation26_spill] sm:$0xff] }
 0xfc5   : > { %7348 = vst [vmem:[%s14145_s14 + $0x60] sm:$0xff] %v7316_v38  ;;  %v9515_v2 = vadd.f32 %v7251_v28, %v14134_v20  ;;  %v7253_v57 = vpop.f32.mrb[175].mxu1  ;;  %v14728_v28 = vld [vmem:[#allocation27_spill] sm:$0xff] }
 0xfc6   : > { %7349 = vst [vmem:[%s14145_s14 + $0x68] sm:$0xff] %v7317_v11  ;;  %v9516_v13 = vadd.f32 %v7253_v57, %v14137_v47 }
 0xfc7   : > { %v7318_v48 = vadd.f32 %v9515_v2, %v14713_v54 }
 0xfc8   : > { %v7319_v40 = vadd.f32 %v9516_v13, %v14714_v46  ;;  %v7257_v42 = vpop.f32.mrb[176].mxu1  ;;  %v14729_v46 = vld [vmem:[#allocation28_spill] sm:$0xff] }
 0xfc9   : > { %7350 = vst [vmem:[%s14145_s14 + $0x70] sm:$0xff] %v7318_v48  ;;  %v9517_v51 = vadd.f32 %v7257_v42, %v14134_v20  ;;  %v7259_v30 = vpop.f32.mrb[177].mxu1  ;;  %v14731_v42 = vld [vmem:[#allocation29_spill] sm:$0xff] }
 0xfca   : > { %7351 = vst [vmem:[%s14145_s14 + $0x78] sm:$0xff] %v7319_v40  ;;  %v9518_v45 = vadd.f32 %v7259_v30, %v14137_v47 }
 0xfcb   : > { %v7320_v62 = vadd.f32 %v9517_v51, %v14715_v44 }
 0xfcc   : > { %v7321_v61 = vadd.f32 %v9518_v45, %v14716_v36  ;;  %v7263_v35 = vpop.f32.mrb[178].mxu1 }
 0xfcd   : > { %7352 = vst [vmem:[%s14145_s14 + $0x80] sm:$0xff] %v7320_v62  ;;  %v9519_v12 = vadd.f32 %v7263_v35, %v14134_v20  ;;  %v7265_v21 = vpop.f32.mrb[179].mxu1 }
 0xfce   : > { %7353 = vst [vmem:[%s14145_s14 + $0x88] sm:$0xff] %v7321_v61  ;;  %v9520_v22 = vadd.f32 %v7265_v21, %v14137_v47 }
 0xfcf   : > { %v7322_v18 = vadd.f32 %v9519_v12, %v14717_v1 }
 0xfd0   : > { %v7323_v10 = vadd.f32 %v9520_v22, %v14718_v32  ;;  %v7269_v4 = vpop.f32.mrb[180].mxu1 }
 0xfd1   : > { %7354 = vst [vmem:[%s14145_s14 + $0x90] sm:$0xff] %v7322_v18  ;;  %v9521_v59 = vadd.f32 %v7269_v4, %v14134_v20  ;;  %v7271_v39 = vpop.f32.mrb[181].mxu1 }
 0xfd2   : > { %7355 = vst [vmem:[%s14145_s14 + $0x98] sm:$0xff] %v7323_v10  ;;  %v9522_v56 = vadd.f32 %v7271_v39, %v14137_v47 }
 0xfd3   : > { %v7324_v7 = vadd.f32 %v9521_v59, %v14719_v6 }
 0xfd4   : > { %v7325_v19 = vadd.f32 %v9522_v56, %v14720_v49  ;;  %v7275_v31 = vpop.f32.mrb[182].mxu1 }
 0xfd5   : > { %7356 = vst [vmem:[%s14145_s14 + $0xa0] sm:$0xff] %v7324_v7  ;;  %v9523_v63 = vadd.f32 %v7275_v31, %v14134_v20  ;;  %v7277_v0 = vpop.f32.mrb[183].mxu1 }
 0xfd6   : > { %7357 = vst [vmem:[%s14145_s14 + $0xa8] sm:$0xff] %v7325_v19  ;;  %v9524_v27 = vadd.f32 %v7277_v0, %v14137_v47 }
 0xfd7   : > { %v7326_v43 = vadd.f32 %v9523_v63, %v14721_v58 }
 0xfd8   : > { %v7327_v9 = vadd.f32 %v9524_v27, %v14722_v55  ;;  %v7281_v33 = vpop.f32.mrb[184].mxu1 }
 0xfd9   : > { %7358 = vst [vmem:[%s14145_s14 + $0xb0] sm:$0xff] %v7326_v43  ;;  %v9525_v52 = vadd.f32 %v7281_v33, %v14134_v20  ;;  %v7283_v60 = vpop.f32.mrb[185].mxu1 }
 0xfda   : > { %7359 = vst [vmem:[%s14145_s14 + $0xb8] sm:$0xff] %v7327_v9  ;;  %v9526_v14 = vadd.f32 %v7283_v60, %v14137_v47 }
 0xfdb   : > { %v7328_v26 = vadd.f32 %v9525_v52, %v14723_v24 }
 0xfdc   : > { %v7329_v41 = vadd.f32 %v9526_v14, %v14724_v25  ;;  %v7287_v15 = vpop.f32.mrb[186].mxu1 }
 0xfdd   : > { %7360 = vst [vmem:[%s14145_s14 + $0xc0] sm:$0xff] %v7328_v26  ;;  %v9527_v37 = vadd.f32 %v7287_v15, %v14134_v20  ;;  %v7289_v29 = vpop.f32.mrb[187].mxu1 }
 0xfde   : > { %7361 = vst [vmem:[%s14145_s14 + $0xc8] sm:$0xff] %v7329_v41  ;;  %v9528_v17 = vadd.f32 %v7289_v29, %v14137_v47 }
 0xfdf   : > { %v7330_v16 = vadd.f32 %v9527_v37, %v14725_v53 }
 0xfe0   : > { %v7331_v8 = vadd.f32 %v9528_v17, %v14726_v5  ;;  %v7293_v23 = vpop.f32.mrb[188].mxu1 }
 0xfe1   : > { %7362 = vst [vmem:[%s14145_s14 + $0xd0] sm:$0xff] %v7330_v16  ;;  %v9529_v50 = vadd.f32 %v7293_v23, %v14134_v20  ;;  %v7295_v3 = vpop.f32.mrb[189].mxu1 }
 0xfe2   : > { %7363 = vst [vmem:[%s14145_s14 + $0xd8] sm:$0xff] %v7331_v8  ;;  %v9530_v38 = vadd.f32 %v7295_v3, %v14137_v47 }
 0xfe3   : > { %v7332_v11 = vadd.f32 %v9529_v50, %v14727_v34 }
 0xfe4   : > { %v7333_v2 = vadd.f32 %v9530_v38, %v14728_v28  ;;  %v7299_v57 = vpop.f32.mrb[190].mxu1 }
 0xfe5   : > { %7364 = vst [vmem:[%s14145_s14 + $0xe0] sm:$0xff] %v7332_v11  ;;  %v9531_v13 = vadd.f32 %v7299_v57, %v14134_v20  ;;  %v7301_v54 = vpop.f32.mrb[191].mxu1 }
 0xfe6   : > { %7365 = vst [vmem:[%s14145_s14 + $0xe8] sm:$0xff] %v7333_v2  ;;  %v9532_v48 = vadd.f32 %v7301_v54, %v14137_v47 }
 0xfe7   : > { %v7334_v40 = vadd.f32 %v9531_v13, %v14729_v46 }
 0xfe8   : > { %v7335_v51 = vadd.f32 %v9532_v48, %v14731_v42 }
 0xfe9   : > { %7366 = vst [vmem:[%s14145_s14 + $0xf0] sm:$0xff] %v7334_v40 }
 0xfea   : > { %7367 = vst [vmem:[%s14145_s14 + $0xf8] sm:$0xff] %v7335_v51 }
 0xfeb   : > { %10491 = shalt.err (!%p10488_p13)
}
 0xfec   : > { %s10492_s16 = scalar_lea.hbm %s14241_s28, 4096  ;;  %s10496_s17 = scalar_lea.hbm %s14730_s13, 8192 }
 0xfed   : > { %p10493_p9 = scmp.ne.s32.totalorder %s14241_s28, %s10492_s16  ;;  %p10497_p4 = scmp.lt.u32.totalorder %s14241_s28, %s14730_s13 }
 0xfee   : > { %p10498_p8 = scmp.lt.u32.totalorder %s10496_s17, %s10492_s16  ;;  %p10500_p3 = scmp.lt.u32.totalorder %s10492_s16, %s14241_s28 }
 0xfef   : > { %p10494_p0 = pnand %p10493_p9, %p10798_p10 }
 0xff0   : > { %p10499_p6 = por %p10498_p8, %p10497_p4 }
 0xff1   : > { %p10495_p11 = pneg %p10494_p0 }
 0xff2   : > { %p10501_p5 = por %p10500_p3, %p10499_p6 }
 0xff4   : > { %p10502_p7 = pnand %p10501_p5, %p10495_p11 }
 0xff6   : > { %10505 = shalt.err (!%p10502_p7)
}
 0xff7   : > { %s10569_s12 = smov 256   ;;  %s10570_s29 = smov 16  }
 0xff8   : > { %9743 = dma.vmem_to_hbm [thread:$0]  (%p10798_p10), %s14243_s26, 4096, %s14241_s28, %s7369_s25, %s10569_s12, %s10569_s12, %s10570_s29  }
 0xff9 PF: > { %s14732_s7 = sld [smem:[#allocation16_spill]]  ;;  %s14733_s5 = sld [smem:[#allocation17_spill]] }
 0xffa   : > { %p14735_p2 = scmp.ge.s32.totalorder %s10552_s24, 2 }
 0xfff   : > { %s7397_s1 = sand.u32 1, %s14732_s7   ;;  %p14734_p12 = scmp.ne.s32.totalorder %s14733_s5, 0 }
0x1000   : > { %s7398_s16 = scalar_lea.sflag [#allocation4], %s7397_s1 }
0x1001   : > { %p9763_p1 = pnand %p14735_p2, %p14734_p12 }
0x1003   : > { %10535 = dma.done.wait (!%p9763_p1), %s7398_s16, 4096  }
0x1004   : > { %10537 = vsyncadd (!%p9763_p1), %s7398_s16, 4294963200  ;;  %p27_p13 = scmp.ge.s32.totalorder %s10788_s30, 4   ;;  %s14736_s21 = smov %s10544_s22 }
0x1005   : > { %s14737_s22 = smov %s10548_s23  ;;  %s14738_s23 = smov %s10804_s20 }
0x1006   : > { %s14739_s24 = smov %s10788_s30  ;;  %29 = sbr.rel (!%p27_p13) target bundleno = 12 (0xc), region = 129 }
0x100d   :  { %7403 = vsyncpa [#allocation3], 1 }
0x100e   :  { %7405 = vsyncpa [#allocation3 + $0x1], 1 }
0x100f   :  { %7406 = vsyncpa [#allocation6], 1 }
0x1010   :  { %7407 = vsyncpa [#allocation9], 1 }
0x1011   :  { %7408 = vsyncpa [#allocation4], 1 }
0x1012   :  { %7410 = vsyncpa [#allocation4 + $0x1], 1 }

</bundles_post_ra>
